<compile_context>
chip_gen: v7x
topology: tpu7x:2x2x1
jax: 0.10.0
libtpu: 0.0.40
codegen_flags: <defaults>
</compile_context>

<pallas_src>
import functools

import jax
import jax.numpy as jnp
import numpy as np
from jax.experimental import pallas as pl
from jax.experimental.pallas import tpu as pltpu

LANE = 128
# Sized for v7x (64 MiB/TC physical VMEM). On v5e/v6e (128 MiB) this can be raised
# toward ~100 MiB to keep larger graphs resident and use TE=512.
VMEM_LIMIT_BYTES = 40 * 1024 * 1024


def _round_up(x, m):
    return ((x + m - 1) // m) * m


def _pad2(a, rows, cols):
    return jnp.pad(a, ((0, rows - a.shape[0]), (0, cols - a.shape[1])))


def _one_hot_bf16(cmp):
    # bool -> {0,1} bf16 (exact) for the MXU scatter operands
    return jnp.where(cmp, 1.0, 0.0).astype(jnp.bfloat16)


# ----------------------------------------------------------------------------
# Optional single-buffering of constant-index resident blocks (review item #4).
# Probed once so the script runs on Pallas versions without pipeline_mode.
# ----------------------------------------------------------------------------
_BUFFERED_OK = None


def _probe_kernel(x_ref, o_ref):
    o_ref[...] = x_ref[...] + 1.0


def _buffered_supported():
    global _BUFFERED_OK
    if _BUFFERED_OK is None:
        ok = False
        if hasattr(pl, "Buffered"):
            try:
                spec = pl.BlockSpec((8, LANE), lambda i: (0, 0),
                                    pipeline_mode=pl.Buffered(1))
                fn = pl.pallas_call(
                    _probe_kernel,
                    out_shape=jax.ShapeDtypeStruct((8, LANE), jnp.float32),
                    grid=(2,),
                    in_specs=[spec],
                    out_specs=pl.BlockSpec((8, LANE), lambda i: (0, 0)))
                jax.block_until_ready(fn(jnp.zeros((8, LANE), jnp.float32)))
                ok = True
            except Exception:
                ok = False
        _BUFFERED_OK = ok
    return _BUFFERED_OK


def _resident_spec(shape):
    """BlockSpec for a block whose index never changes across the (1-D) grid."""
    index_map = lambda t: (0,) * len(shape)
    if _buffered_supported():
        return pl.BlockSpec(shape, index_map, pipeline_mode=pl.Buffered(1))
    return pl.BlockSpec(shape, index_map)


# ----------------------------------------------------------------------------
# Kernel 1: row-tiled linear  y = x @ w + b     (PE encoder, predictor node proj)
# ----------------------------------------------------------------------------
def _linear_kernel(x_ref, w_ref, b_ref, o_ref):
    o_ref[...] = (jnp.dot(x_ref[...].astype(jnp.bfloat16), w_ref[...],
                          preferred_element_type=jnp.float32) + b_ref[...])


def pallas_linear(x, w, b, tile_rows=128):
    M, K = x.shape
    N = w.shape[1]
    return pl.pallas_call(
        _linear_kernel,
        out_shape=jax.ShapeDtypeStruct((M, N), jnp.float32),
        grid=(M // tile_rows,),
        in_specs=[pl.BlockSpec((tile_rows, K), lambda i: (i, 0)),
                  _resident_spec((K, N)),
                  _resident_spec((1, N))],
        out_specs=pl.BlockSpec((tile_rows, N), lambda i: (i, 0)),
        compiler_params=pltpu.CompilerParams(dimension_semantics=("parallel",)),
    )(x, w, b)


# ----------------------------------------------------------------------------
# Kernel 2: fused 2-layer edge encoder  y = relu(x @ w1 + b1) @ w2 + b2
# ----------------------------------------------------------------------------
def _mlp2_kernel(x_ref, w1_ref, b1_ref, w2_ref, b2_ref, o_ref):
    bf, f32 = jnp.bfloat16, jnp.float32
    h = (jnp.dot(x_ref[...].astype(bf), w1_ref[...],
                 preferred_element_type=f32) + b1_ref[...])
    h = jnp.maximum(h, 0.0)
    o_ref[...] = (jnp.dot(h.astype(bf), w2_ref[...],
                          preferred_element_type=f32) + b2_ref[...])


def pallas_edge_encoder(x, w1, b1, w2, b2, tile_rows=256):
    M, K = x.shape
    Kh = w1.shape[1]
    N = w2.shape[1]
    return pl.pallas_call(
        _mlp2_kernel,
        out_shape=jax.ShapeDtypeStruct((M, N), jnp.float32),
        grid=(M // tile_rows,),
        in_specs=[pl.BlockSpec((tile_rows, K), lambda i: (i, 0)),
                  _resident_spec((K, Kh)),
                  _resident_spec((1, Kh)),
                  _resident_spec((Kh, N)),
                  _resident_spec((1, N))],
        out_specs=pl.BlockSpec((tile_rows, N), lambda i: (i, 0)),
        compiler_params=pltpu.CompilerParams(dimension_semantics=("parallel",)),
    )(x, w1, b1, w2, b2)


# ----------------------------------------------------------------------------
# Kernel 3: per-layer node projection — A1,B1,A2,B2,A3 fused into one [H,5H]
# bf16 lane-dense matmul; emits f32 A1h and bf16 gather tables [B1|A2] / [B2|A3].
# ----------------------------------------------------------------------------
def _node_proj_kernel(h_ref, w_ref, b_ref, a1_ref, tsrc_ref, tdst_ref):
    Hp = a1_ref.shape[1]
    proj = (jnp.dot(h_ref[...].astype(jnp.bfloat16), w_ref[...],
                    preferred_element_type=jnp.float32) + b_ref[...])
    a1_ref[...] = proj[:, 0:Hp]
    tsrc_ref[...] = proj[:, Hp:3 * Hp].astype(jnp.bfloat16)      # [B1h | A2h]
    tdst_ref[...] = proj[:, 3 * Hp:5 * Hp].astype(jnp.bfloat16)  # [B2h | A3h]


def pallas_node_proj(h, w_cat, b_cat, tile_rows=128):
    Np, Hp = h.shape
    return pl.pallas_call(
        _node_proj_kernel,
        out_shape=(jax.ShapeDtypeStruct((Np, Hp), jnp.float32),
                   jax.ShapeDtypeStruct((Np, 2 * Hp), jnp.bfloat16),
                   jax.ShapeDtypeStruct((Np, 2 * Hp), jnp.bfloat16)),
        grid=(Np // tile_rows,),
        in_specs=[pl.BlockSpec((tile_rows, Hp), lambda i: (i, 0)),
                  _resident_spec((Hp, 5 * Hp)),
                  _resident_spec((1, 5 * Hp))],
        out_specs=(pl.BlockSpec((tile_rows, Hp), lambda i: (i, 0)),
                   pl.BlockSpec((tile_rows, 2 * Hp), lambda i: (i, 0)),
                   pl.BlockSpec((tile_rows, 2 * Hp), lambda i: (i, 0))),
        compiler_params=pltpu.CompilerParams(dimension_semantics=("parallel",)),
    )(h, w_cat, b_cat)


# ----------------------------------------------------------------------------
# Kernel 4: SymGatedGCN message passing + edge/node update.
# Grid over edge tiles ("arbitrary"); per-edge gathered tables arrive as tiled
# inputs (XLA gather in the wrapper); gated segment sums accumulate in a f32 VMEM
# scratch via one-hot MXU scatter; node update at the last tile.
# Padded edges carry scatter index == Np (matches no iota value -> zero one-hot
# column -> they contribute nothing to the segment sums).
# ----------------------------------------------------------------------------
def _gcn_message_kernel(e_ref, gsrc_ref, gdst_ref, src_row_ref, dst_row_ref,
                        a1_ref, h_ref, wb3_ref, vec_ref,
                        h_out_ref, e_out_ref, acc_ref):
    f32 = jnp.float32
    TE, Hp = e_ref.shape
    Np = a1_ref.shape[0]
    t = pl.program_id(0)

    @pl.when(t == 0)
    def _init():
        acc_ref[...] = jnp.zeros_like(acc_ref)

    e = e_ref[...]
    gs = gsrc_ref[...].astype(f32)                  # [TE, 2Hp] = [B1h_src | A2h_src]
    gd = gdst_ref[...].astype(f32)                  # [TE, 2Hp] = [B2h_dst | A3h_dst]
    b1h_src, a2h_src = gs[:, 0:Hp], gs[:, Hp:2 * Hp]
    b2h_dst, a3h_dst = gd[:, 0:Hp], gd[:, Hp:2 * Hp]

    # --- edge update:  e <- e + relu(BN(B1 h_src + B2 h_dst + B3 e)) ---
    b3e = jnp.dot(e.astype(jnp.bfloat16), wb3_ref[...],
                  preferred_element_type=f32) + vec_ref[0]
    e_hat = (b1h_src + b2h_dst + b3e) * vec_ref[1] + vec_ref[2]
    e_new = e + jnp.maximum(e_hat, 0.0)
    e_out_ref[...] = e_new
    sigma = jax.nn.sigmoid(e_new)

    # --- gated scatter-sums: pack [numerator | denominator] lane-dense (256) ---
    pack_f = jnp.concatenate([sigma * a2h_src, sigma], axis=1).astype(jnp.bfloat16)
    pack_b = jnp.concatenate([sigma * a3h_dst, sigma], axis=1).astype(jnp.bfloat16)
    iota_ne = jax.lax.broadcasted_iota(jnp.int32, (Np, TE), 0)
    dst_ohT = _one_hot_bf16(iota_ne == dst_row_ref[...])   # [Np, TE]
    src_ohT = _one_hot_bf16(iota_ne == src_row_ref[...])
    acc_ref[:, 0:2 * Hp] = acc_ref[:, 0:2 * Hp] + jnp.dot(
        dst_ohT, pack_f, preferred_element_type=f32)
    acc_ref[:, 2 * Hp:4 * Hp] = acc_ref[:, 2 * Hp:4 * Hp] + jnp.dot(
        src_ohT, pack_b, preferred_element_type=f32)

    # --- node update, once all edge tiles are accumulated ---
    @pl.when(t == pl.num_programs(0) - 1)
    def _finalize():
        acc = acc_ref[...]
        h_f = acc[:, 0:Hp] / (acc[:, Hp:2 * Hp] + 1e-6)
        h_b = acc[:, 2 * Hp:3 * Hp] / (acc[:, 3 * Hp:4 * Hp] + 1e-6)
        h_hat = (a1_ref[...] + h_f + h_b) * vec_ref[3] + vec_ref[4]
        h_out_ref[...] = h_ref[...] + jnp.maximum(h_hat, 0.0)


def pallas_gcn_layer(h, e, src_g, dst_g, src_row, dst_row, lp, tile_edges=256):
    Np, Hp = h.shape
    Ep = e.shape[0]
    a1, tab_src, tab_dst = pallas_node_proj(h, lp['w_cat'], lp['b_cat'])
    # Per-edge gathers of the resident node tables (bf16): plain XLA row-gather.
    g_src = jnp.take(tab_src, src_g, axis=0)        # [Ep, 2Hp] bf16
    g_dst = jnp.take(tab_dst, dst_g, axis=0)        # [Ep, 2Hp] bf16

    h_new, e_new = pl.pallas_call(
        _gcn_message_kernel,
        out_shape=(jax.ShapeDtypeStruct((Np, Hp), jnp.float32),
                   jax.ShapeDtypeStruct((Ep, Hp), jnp.float32)),
        grid=(Ep // tile_edges,),
        in_specs=[
            pl.BlockSpec((tile_edges, Hp), lambda t: (t, 0)),        # e tile
            pl.BlockSpec((tile_edges, 2 * Hp), lambda t: (t, 0)),    # [B1h|A2h] gathered
            pl.BlockSpec((tile_edges, 2 * Hp), lambda t: (t, 0)),    # [B2h|A3h] gathered
            pl.BlockSpec((1, tile_edges), lambda t: (0, t)),         # src (scatter row)
            pl.BlockSpec((1, tile_edges), lambda t: (0, t)),         # dst (scatter row)
            _resident_spec((Np, Hp)),                                # A1h resident
            _resident_spec((Np, Hp)),                                # h resident
            _resident_spec((Hp, Hp)),                                # W_B3 (bf16)
            _resident_spec((5, 1, Hp)),                              # b_B3, BN vectors
        ],
        out_specs=(pl.BlockSpec((Np, Hp), lambda t: (0, 0)),         # h_new (resident)
                   pl.BlockSpec((tile_edges, Hp), lambda t: (t, 0))),
        scratch_shapes=[pltpu.VMEM((Np, 4 * Hp), jnp.float32)],
        compiler_params=pltpu.CompilerParams(
            dimension_semantics=("arbitrary",),
            vmem_limit_bytes=VMEM_LIMIT_BYTES),
    )(e, g_src, g_dst, src_row, dst_row, a1, h, lp['w_b3'], lp['vec'])
    return h_new, e_new


# ----------------------------------------------------------------------------
# Kernel 5: ScorePredictor edge part — per-node x@W1_src / x@W1_dst are
# precomputed (pallas_linear) and gathered in the wrapper; here only
# relu(xs_src + xd_dst + e@W1_e + b1) @ W2 + b2, 128-lane-dense output
# (real score lives in column 0).
# ----------------------------------------------------------------------------
def _predictor_kernel(e_ref, xs_ref, xd_ref, w1e_ref, b1_ref, w2_ref, b2_ref, o_ref):
    bf, f32 = jnp.bfloat16, jnp.float32
    hdn = (xs_ref[...] + xd_ref[...]
           + jnp.dot(e_ref[...].astype(bf), w1e_ref[...], preferred_element_type=f32)
           + b1_ref[...])
    hdn = jnp.maximum(hdn, 0.0)
    o_ref[...] = (jnp.dot(hdn.astype(bf), w2_ref[...],
                          preferred_element_type=f32) + b2_ref[...])


def pallas_predictor(e, xs_src, xd_dst, pp, tile_edges=256):
    Ep, Hp = e.shape
    Sp = pp['w1e'].shape[1]
    return pl.pallas_call(
        _predictor_kernel,
        out_shape=jax.ShapeDtypeStruct((Ep, LANE), jnp.float32),
        grid=(Ep // tile_edges,),
        in_specs=[
            pl.BlockSpec((tile_edges, Hp), lambda t: (t, 0)),
            pl.BlockSpec((tile_edges, Sp), lambda t: (t, 0)),
            pl.BlockSpec((tile_edges, Sp), lambda t: (t, 0)),
            _resident_spec((Hp, Sp)),
            _resident_spec((1, Sp)),
            _resident_spec((Sp, LANE)),
            _resident_spec((1, LANE)),
        ],
        out_specs=pl.BlockSpec((tile_edges, LANE), lambda t: (t, 0)),
        compiler_params=pltpu.CompilerParams(
            dimension_semantics=("parallel",),
            vmem_limit_bytes=VMEM_LIMIT_BYTES),
    )(e, xs_src, xd_dst, pp['w1e'], pp['b1'], pp['w2'], pp['b2'])


# ----------------------------------------------------------------------------
# Parameters (PyTorch-Linear-style init), padding, glue, and pure-JAX reference
# ----------------------------------------------------------------------------
def init_linear(key, fan_in, fan_out):
    k1, k2 = jax.random.split(key)
    bound = 1.0 / np.sqrt(fan_in)
    w = jax.random.uniform(k1, (fan_in, fan_out), jnp.float32, -bound, bound)
    b = jax.random.uniform(k2, (fan_out,), jnp.float32, -bound, bound)
    return w, b


def init_params(key, edge_features, hidden_features, hidden_edge_features,
                num_layers, hidden_edge_scores, nb_pos_enc):
    H = hidden_features
    keys = iter(jax.random.split(key, 8 + num_layers * 8))
    p = {}
    p['pe_w'], p['pe_b'] = init_linear(next(keys), nb_pos_enc + 2, H)
    p['e1_w'], p['e1_b'] = init_linear(next(keys), edge_features, hidden_edge_features)
    p['e2_w'], p['e2_b'] = init_linear(next(keys), hidden_edge_features, H)
    # (linear1_node / linear2_node exist in __init__ but are never used in forward.)
    layers_p = []
    for _ in range(num_layers):
        lp = {}
        for name in ('A1', 'A2', 'A3', 'B1', 'B2', 'B3'):
            w, b = init_linear(next(keys), H, H)
            lp[name + '_w'] = w
            lp[name + '_b'] = b
        # BatchNorm1d eval mode: running_mean=0, running_var=1, deterministic affine
        u = jax.random.uniform(next(keys), (4, H), jnp.float32, -1.0, 1.0)
        inv = 1.0 / np.sqrt(1.0 + 1e-5)
        lp['bnh_scale'] = (1.0 + 0.1 * u[0]) * inv
        lp['bnh_shift'] = 0.1 * u[1]
        lp['bne_scale'] = (1.0 + 0.1 * u[2]) * inv
        lp['bne_shift'] = 0.1 * u[3]
        layers_p.append(lp)
    p['layers'] = layers_p
    p['W1'], p['b1'] = init_linear(next(keys), 3 * H, hidden_edge_scores)
    p['W2'], p['b2'] = init_linear(next(keys), hidden_edge_scores, 1)
    return p


def pad_params(p, H, HE, pe_dim, ef_dim, S):
    """Zero-pad hidden dims to 128 lanes, cast weights to bf16, pack per-layer."""
    Hp = _round_up(H, LANE)
    HEp = _round_up(HE, LANE)
    PEp = _round_up(pe_dim, 8)
    EFp = _round_up(ef_dim, 8)
    Sp = _round_up(S, LANE)
    bf = jnp.bfloat16
    kp = {
        'pe_w': _pad2(p['pe_w'], PEp, Hp).astype(bf),
        'pe_b': _pad2(p['pe_b'][None, :], 1, Hp),
        'e1_w': _pad2(p['e1_w'], EFp, HEp).astype(bf),
        'e1_b': _pad2(p['e1_b'][None, :], 1, HEp),
        'e2_w': _pad2(p['e2_w'], HEp, Hp).astype(bf),
        'e2_b': _pad2(p['e2_b'][None, :], 1, Hp),
    }
    layers = []
    for lp in p['layers']:
        order = ('A1', 'B1', 'A2', 'B2', 'A3')   # -> [A1 | (B1,A2)=src tab | (B2,A3)=dst tab]
        w_cat = jnp.concatenate([_pad2(lp[n + '_w'], Hp, Hp) for n in order],
                                axis=1).astype(bf)
        b_cat = jnp.concatenate([_pad2(lp[n + '_b'][None, :], 1, Hp) for n in order],
                                axis=1)
        vec = jnp.stack([
            _pad2(lp['B3_b'][None, :], 1, Hp),
            _pad2(lp['bne_scale'][None, :], 1, Hp),
            _pad2(lp['bne_shift'][None, :], 1, Hp),
            _pad2(lp['bnh_scale'][None, :], 1, Hp),
            _pad2(lp['bnh_shift'][None, :], 1, Hp)], axis=0)   # [5, 1, Hp]
        layers.append({'w_cat': w_cat, 'b_cat': b_cat,
                       'w_b3': _pad2(lp['B3_w'], Hp, Hp).astype(bf), 'vec': vec})
    kp['layers'] = layers
    W1 = p['W1']
    kp['pred'] = {
        'w1sd': jnp.concatenate([_pad2(W1[0:H], Hp, Sp),
                                 _pad2(W1[H:2 * H], Hp, Sp)], axis=1).astype(bf),
        'b_zero': jnp.zeros((1, 2 * Sp), jnp.float32),
        'w1e': _pad2(W1[2 * H:3 * H], Hp, Sp).astype(bf),
        'b1': _pad2(p['b1'][None, :], 1, Sp),
        'w2': _pad2(p['W2'], Sp, LANE).astype(bf),
        'b2': jnp.full((1, LANE), float(p['b2'][0]), jnp.float32),
    }
    return kp


def forward_pallas(kp, e_feat_p, pe_p, src_g, dst_g, src_row, dst_row,
                   tile_edges=256):
    # x = linear_pe(pe) ; e = linear2_edge(relu(linear1_edge(e)))
    x = pallas_linear(pe_p, kp['pe_w'], kp['pe_b'], tile_rows=128)
    e = pallas_edge_encoder(e_feat_p, kp['e1_w'], kp['e1_b'],
                            kp['e2_w'], kp['e2_b'], tile_rows=tile_edges)
    for lp in kp['layers']:
        x, e = pallas_gcn_layer(x, e, src_g, dst_g, src_row, dst_row, lp,
                                tile_edges=tile_edges)
    # predictor: per-node projections once (O(N)), gathered per edge (O(E)).
    pp = kp['pred']
    Sp = pp['w1e'].shape[1]
    xsd = pallas_linear(x, pp['w1sd'], pp['b_zero'], tile_rows=128)   # [Np, 2Sp]
    xs_src = jnp.take(xsd[:, 0:Sp], src_g, axis=0)                    # [Ep, Sp]
    xd_dst = jnp.take(xsd[:, Sp:2 * Sp], dst_g, axis=0)
    scores = pallas_predictor(e, xs_src, xd_dst, pp, tile_edges=tile_edges)
    return scores[:, 0:1]


def forward_ref(p, e_feat, pe, src, dst, N):
    """Pure-JAX reference mirroring the kernels' bf16 MXU-operand rounding."""
    f32 = jnp.float32
    bf = jnp.bfloat16
    c = lambda v: v.astype(bf).astype(f32)
    mm = lambda a, b: jnp.dot(a.astype(bf), b.astype(bf), preferred_element_type=f32)
    H = p['W1'].shape[0] // 3

    x = mm(pe, p['pe_w']) + p['pe_b']
    e = jnp.maximum(mm(e_feat, p['e1_w']) + p['e1_b'], 0.0)
    e = mm(e, p['e2_w']) + p['e2_b']
    for lp in p['layers']:
        A1h = mm(x, lp['A1_w']) + lp['A1_b']
        A2h = c(mm(x, lp['A2_w']) + lp['A2_b'])
        A3h = c(mm(x, lp['A3_w']) + lp['A3_b'])
        B1h = c(mm(x, lp['B1_w']) + lp['B1_b'])
        B2h = c(mm(x, lp['B2_w']) + lp['B2_b'])
        B3e = mm(e, lp['B3_w']) + lp['B3_b']
        e_hat = (B1h[src] + B2h[dst] + B3e) * lp['bne_scale'] + lp['bne_shift']
        e = e + jax.nn.relu(e_hat)
        sigma = jax.nn.sigmoid(e)
        num_f = jax.ops.segment_sum(c(sigma * A2h[src]), dst, N)
        den_f = jax.ops.segment_sum(c(sigma), dst, N)
        num_b = jax.ops.segment_sum(c(sigma * A3h[dst]), src, N)
        den_b = jax.ops.segment_sum(c(sigma), src, N)
        h_f = num_f / (den_f + 1e-6)
        h_b = num_b / (den_b + 1e-6)
        h_hat = (A1h + h_f + h_b) * lp['bnh_scale'] + lp['bnh_shift']
        x = x + jax.nn.relu(h_hat)
    xs = mm(x, p['W1'][0:H])
    xd = mm(x, p['W1'][H:2 * H])
    hdn = jax.nn.relu(xs[src] + xd[dst] + mm(e, p['W1'][2 * H:3 * H]) + p['b1'])
    return mm(hdn, p['W2']) + p['b2']


if __name__ == "__main__":
    # Resolve optional single-buffering support before tracing the main graph.
    _buffered_supported()

    # model hyper-params (small, consistent with the module signature)
    node_features = 2          # unused by forward() — matches the PyTorch module
    edge_features = 3
    hidden_features = 32
    hidden_edge_features = 16
    num_layers = 2
    hidden_edge_scores = 16
    nb_pos_enc = 8
    N, E = 300, 600            # nodes / edges (multiple tiles after padding)
    TE = 256                   # edge tile (use 512 on v5e/v6e for large graphs)

    Np = _round_up(N, LANE)    # 384 -> 3 node tiles
    Ep = _round_up(E, TE)      # 768 -> 3 edge tiles

    root = jax.random.PRNGKey(0)
    k_par, k_src, k_dst, k_e, k_pe = jax.random.split(root, 5)

    params = init_params(k_par, edge_features, hidden_features,
                         hidden_edge_features, num_layers,
                         hidden_edge_scores, nb_pos_enc)
    kparams = pad_params(params, hidden_features, hidden_edge_features,
                         nb_pos_enc + 2, edge_features, hidden_edge_scores)

    src = jax.random.randint(k_src, (E,), 0, N)
    dst = jax.random.randint(k_dst, (E,), 0, N)
    e_feat = jax.random.normal(k_e, (E, edge_features), jnp.float32)
    pe = jax.random.normal(k_pe, (N, nb_pos_enc + 2), jnp.float32)

    # Gather indices: padded edges point at node 0 (results discarded).
    # Scatter indices: padded edges carry index == Np, which matches no iota row,
    # so they contribute nothing to the gated segment sums.
    src_g = jnp.zeros((Ep,), jnp.int32).at[:E].set(src.astype(jnp.int32))
    dst_g = jnp.zeros((Ep,), jnp.int32).at[:E].set(dst.astype(jnp.int32))
    src_row = jnp.full((1, Ep), Np, jnp.int32).at[0, :E].set(src.astype(jnp.int32))
    dst_row = jnp.full((1, Ep), Np, jnp.int32).at[0, :E].set(dst.astype(jnp.int32))
    e_feat_p = _pad2(e_feat, Ep, _round_up(edge_features, 8))
    pe_p = _pad2(pe, Np, _round_up(nb_pos_enc + 2, 8))

    fwd = jax.jit(functools.partial(forward_pallas, tile_edges=TE))
    scores_p = fwd(kparams, e_feat_p, pe_p, src_g, dst_g, src_row, dst_row)
    scores_p = jax.block_until_ready(scores_p)
    scores = np.asarray(scores_p)[:E]

    ref = np.asarray(forward_ref(params, e_feat, pe, src, dst, N))
    assert scores.shape == (E, 1), scores.shape
    np.testing.assert_allclose(scores, ref, rtol=1e-2, atol=1e-2)
    print("KERNEL_OK")
</pallas_src>

<mosaic_0001>
module attributes {stable_mosaic.version = 11 : i64} {
  func.func @_probe_kernel(%arg0: i32, %arg1: memref<8x128xf32, #tpu.memory_space<vmem>>, %arg2: memref<8x128xf32, #tpu.memory_space<vmem>>) attributes {dimension_semantics = [#tpu.dimension_semantics<arbitrary>], iteration_bounds = array<i64: 2>, scalar_prefetch = 0 : i64, scratch_operands = 0 : i64, tpu.core_type = #tpu.core_type<tc>, window_params = [{pipeline_mode = #tpu.pipeline_mode<synchronous>, transform_indices = @transform_0, window_bounds = array<i64: 8, 128>}, {pipeline_mode = #tpu.pipeline_mode<synchronous>, transform_indices = @transform_1, window_bounds = array<i64: 8, 128>}]} {
    %c0 = arith.constant 0 : index
    %c0_0 = arith.constant 0 : index
    %0 = vector.load %arg1[%c0, %c0_0] : memref<8x128xf32, #tpu.memory_space<vmem>>, vector<8x128xf32>
    %cst = arith.constant 1.000000e+00 : f32
    %1 = vector.broadcast %cst : f32 to vector<8x128xf32>
    %2 = arith.addf %0, %1 : vector<8x128xf32>
    %c0_1 = arith.constant 0 : index
    %c0_2 = arith.constant 0 : index
    %3 = vector.load %arg2[%c0_1, %c0_2] : memref<8x128xf32, #tpu.memory_space<vmem>>, vector<8x128xf32>
    tpu.vector_store %arg2[%c0_1, %c0_2], %2 {strides = array<i32>} : memref<8x128xf32, #tpu.memory_space<vmem>>, vector<8x128xf32>,
    return
  }
  func.func @transform_0(%arg0: i32) -> (i32, i32) {
    %c0_i32 = arith.constant 0 : i32
    %c0_i32_0 = arith.constant 0 : i32
    %c0_i32_1 = arith.constant 0 : i32
    return %c0_i32, %c0_i32_0 : i32, i32
  }
  func.func @transform_1(%arg0: i32) -> (i32, i32) {
    %c0_i32 = arith.constant 0 : i32
    %c0_i32_0 = arith.constant 0 : i32
    %c0_i32_1 = arith.constant 0 : i32
    return %c0_i32, %c0_i32_0 : i32, i32
  }
}

module attributes {stable_mosaic.version = 11 : i64} {
  func.func @_node_proj_kernel(%arg0: i32, %arg1: memref<128x128xf32, #tpu.memory_space<vmem>>, %arg2: memref<128x640xbf16, #tpu.memory_space<vmem>>, %arg3: memref<1x640xf32, #tpu.memory_space<vmem>>, %arg4: memref<128x128xf32, #tpu.memory_space<vmem>>, %arg5: memref<128x256xbf16, #tpu.memory_space<vmem>>, %arg6: memref<128x256xbf16, #tpu.memory_space<vmem>>) attributes {dimension_semantics = [#tpu.dimension_semantics<parallel>], iteration_bounds = array<i64: 3>, scalar_prefetch = 0 : i64, scratch_operands = 0 : i64, tpu.core_type = #tpu.core_type<tc>, window_params = [{transform_indices = @transform_0, window_bounds = array<i64: 128, 128>}, {pipeline_mode = #tpu.pipeline_mode<synchronous>, transform_indices = @transform_1, window_bounds = array<i64: 128, 640>}, {pipeline_mode = #tpu.pipeline_mode<synchronous>, transform_indices = @transform_2, window_bounds = array<i64: 1, 640>}, {transform_indices = @transform_3, window_bounds = array<i64: 128, 128>}, {transform_indices = @transform_4, window_bounds = array<i64: 128, 256>}, {transform_indices = @transform_5, window_bounds = array<i64: 128, 256>}]} {
    %c0 = arith.constant 0 : index
    %c0_0 = arith.constant 0 : index
    %0 = vector.load %arg1[%c0, %c0_0] : memref<128x128xf32, #tpu.memory_space<vmem>>, vector<128x128xf32>
    %1 = arith.truncf %0 : vector<128x128xf32> to vector<128x128xbf16>
    %c0_1 = arith.constant 0 : index
    %c0_2 = arith.constant 0 : index
    %2 = vector.load %arg2[%c0_1, %c0_2] : memref<128x640xbf16, #tpu.memory_space<vmem>>, vector<128x640xbf16>
    %cst = arith.constant dense<0.000000e+00> : vector<128x640xf32>
    %3 = tpu.matmul %1, %2, %cst {dimension_numbers = #tpu.dot_dimension_numbers<[1], [0], [0], [1], [0, 0, 1, 1], [], []>} : vector<128x128xbf16>, vector<128x640xbf16>, vector<128x640xf32> -> vector<128x640xf32>
    %c0_3 = arith.constant 0 : index
    %c0_4 = arith.constant 0 : index
    %4 = vector.load %arg3[%c0_3, %c0_4] : memref<1x640xf32, #tpu.memory_space<vmem>>, vector<1x640xf32>
    %5 = vector.broadcast %4 : vector<1x640xf32> to vector<128x640xf32>
    %6 = arith.addf %3, %5 : vector<128x640xf32>
    %7 = vector.extract_strided_slice %6 {offsets = [0, 0], sizes = [128, 128], strides = [1, 1]} : vector<128x640xf32> to vector<128x128xf32>
    %c0_5 = arith.constant 0 : index
    %c0_6 = arith.constant 0 : index
    %8 = vector.load %arg4[%c0_5, %c0_6] : memref<128x128xf32, #tpu.memory_space<vmem>>, vector<128x128xf32>
    tpu.vector_store %arg4[%c0_5, %c0_6], %7 {strides = array<i32>} : memref<128x128xf32, #tpu.memory_space<vmem>>, vector<128x128xf32>,
    %9 = vector.extract_strided_slice %6 {offsets = [0, 128], sizes = [128, 256], strides = [1, 1]} : vector<128x640xf32> to vector<128x256xf32>
    %10 = arith.truncf %9 : vector<128x256xf32> to vector<128x256xbf16>
    %c0_7 = arith.constant 0 : index
    %c0_8 = arith.constant 0 : index
    %11 = vector.load %arg5[%c0_7, %c0_8] : memref<128x256xbf16, #tpu.memory_space<vmem>>, vector<128x256xbf16>
    tpu.vector_store %arg5[%c0_7, %c0_8], %10 {strides = array<i32>} : memref<128x256xbf16, #tpu.memory_space<vmem>>, vector<128x256xbf16>,
    %12 = vector.extract_strided_slice %6 {offsets = [0, 384], sizes = [128, 256], strides = [1, 1]} : vector<128x640xf32> to vector<128x256xf32>
    %13 = arith.truncf %12 : vector<128x256xf32> to vector<128x256xbf16>
    %c0_9 = arith.constant 0 : index
    %c0_10 = arith.constant 0 : index
    %14 = vector.load %arg6[%c0_9, %c0_10] : memref<128x256xbf16, #tpu.memory_space<vmem>>, vector<128x256xbf16>
    tpu.vector_store %arg6[%c0_9, %c0_10], %13 {strides = array<i32>} : memref<128x256xbf16, #tpu.memory_space<vmem>>, vector<128x256xbf16>,
    return
  }
  func.func @transform_0(%arg0: i32) -> (i32, i32) {
    %c0_i32 = arith.constant 0 : i32
    %c0_i32_0 = arith.constant 0 : i32
    return %arg0, %c0_i32 : i32, i32
  }
  func.func @transform_1(%arg0: i32) -> (i32, i32) {
    %c0_i32 = arith.constant 0 : i32
    %c0_i32_0 = arith.constant 0 : i32
    %c0_i32_1 = arith.constant 0 : i32
    return %c0_i32, %c0_i32_0 : i32, i32
  }
  func.func @transform_2(%arg0: i32) -> (i32, i32) {
    %c0_i32 = arith.constant 0 : i32
    %c0_i32_0 = arith.constant 0 : i32
    %c0_i32_1 = arith.constant 0 : i32
    return %c0_i32, %c0_i32_0 : i32, i32
  }
  func.func @transform_3(%arg0: i32) -> (i32, i32) {
    %c0_i32 = arith.constant 0 : i32
    %c0_i32_0 = arith.constant 0 : i32
    return %arg0, %c0_i32 : i32, i32
  }
  func.func @transform_4(%arg0: i32) -> (i32, i32) {
    %c0_i32 = arith.constant 0 : i32
    %c0_i32_0 = arith.constant 0 : i32
    return %arg0, %c0_i32 : i32, i32
  }
  func.func @transform_5(%arg0: i32) -> (i32, i32) {
    %c0_i32 = arith.constant 0 : i32
    %c0_i32_0 = arith.constant 0 : i32
    return %arg0, %c0_i32 : i32, i32
  }
}

module attributes {stable_mosaic.version = 11 : i64} {
  func.func @_linear_kernel(%arg0: i32, %arg1: memref<128x16xf32, #tpu.memory_space<vmem>>, %arg2: memref<16x128xbf16, #tpu.memory_space<vmem>>, %arg3: memref<1x128xf32, #tpu.memory_space<vmem>>, %arg4: memref<128x128xf32, #tpu.memory_space<vmem>>) attributes {dimension_semantics = [#tpu.dimension_semantics<parallel>], iteration_bounds = array<i64: 3>, scalar_prefetch = 0 : i64, scratch_operands = 0 : i64, tpu.core_type = #tpu.core_type<tc>, window_params = [{transform_indices = @transform_0, window_bounds = array<i64: 128, 16>}, {pipeline_mode = #tpu.pipeline_mode<synchronous>, transform_indices = @transform_1, window_bounds = array<i64: 16, 128>}, {pipeline_mode = #tpu.pipeline_mode<synchronous>, transform_indices = @transform_2, window_bounds = array<i64: 1, 128>}, {transform_indices = @transform_3, window_bounds = array<i64: 128, 128>}]} {
    %c0 = arith.constant 0 : index
    %c0_0 = arith.constant 0 : index
    %0 = vector.load %arg1[%c0, %c0_0] : memref<128x16xf32, #tpu.memory_space<vmem>>, vector<128x16xf32>
    %1 = arith.truncf %0 : vector<128x16xf32> to vector<128x16xbf16>
    %c0_1 = arith.constant 0 : index
    %c0_2 = arith.constant 0 : index
    %2 = vector.load %arg2[%c0_1, %c0_2] : memref<16x128xbf16, #tpu.memory_space<vmem>>, vector<16x128xbf16>
    %cst = arith.constant dense<0.000000e+00> : vector<128x128xf32>
    %3 = tpu.matmul %1, %2, %cst {dimension_numbers = #tpu.dot_dimension_numbers<[1], [0], [0], [1], [0, 0, 1, 1], [], []>} : vector<128x16xbf16>, vector<16x128xbf16>, vector<128x128xf32> -> vector<128x128xf32>
    %c0_3 = arith.constant 0 : index
    %c0_4 = arith.constant 0 : index
    %4 = vector.load %arg3[%c0_3, %c0_4] : memref<1x128xf32, #tpu.memory_space<vmem>>, vector<1x128xf32>
    %5 = vector.broadcast %4 : vector<1x128xf32> to vector<128x128xf32>
    %6 = arith.addf %3, %5 : vector<128x128xf32>
    %c0_5 = arith.constant 0 : index
    %c0_6 = arith.constant 0 : index
    %7 = vector.load %arg4[%c0_5, %c0_6] : memref<128x128xf32, #tpu.memory_space<vmem>>, vector<128x128xf32>
    tpu.vector_store %arg4[%c0_5, %c0_6], %6 {strides = array<i32>} : memref<128x128xf32, #tpu.memory_space<vmem>>, vector<128x128xf32>,
    return
  }
  func.func @transform_0(%arg0: i32) -> (i32, i32) {
    %c0_i32 = arith.constant 0 : i32
    %c0_i32_0 = arith.constant 0 : i32
    return %arg0, %c0_i32 : i32, i32
  }
  func.func @transform_1(%arg0: i32) -> (i32, i32) {
    %c0_i32 = arith.constant 0 : i32
    %c0_i32_0 = arith.constant 0 : i32
    %c0_i32_1 = arith.constant 0 : i32
    return %c0_i32, %c0_i32_0 : i32, i32
  }
  func.func @transform_2(%arg0: i32) -> (i32, i32) {
    %c0_i32 = arith.constant 0 : i32
    %c0_i32_0 = arith.constant 0 : i32
    %c0_i32_1 = arith.constant 0 : i32
    return %c0_i32, %c0_i32_0 : i32, i32
  }
  func.func @transform_3(%arg0: i32) -> (i32, i32) {
    %c0_i32 = arith.constant 0 : i32
    %c0_i32_0 = arith.constant 0 : i32
    return %arg0, %c0_i32 : i32, i32
  }
}

module attributes {stable_mosaic.version = 11 : i64} {
  func.func @_mlp2_kernel(%arg0: i32, %arg1: memref<256x8xf32, #tpu.memory_space<vmem>>, %arg2: memref<8x128xbf16, #tpu.memory_space<vmem>>, %arg3: memref<1x128xf32, #tpu.memory_space<vmem>>, %arg4: memref<128x128xbf16, #tpu.memory_space<vmem>>, %arg5: memref<1x128xf32, #tpu.memory_space<vmem>>, %arg6: memref<256x128xf32, #tpu.memory_space<vmem>>) attributes {dimension_semantics = [#tpu.dimension_semantics<parallel>], iteration_bounds = array<i64: 3>, scalar_prefetch = 0 : i64, scratch_operands = 0 : i64, tpu.core_type = #tpu.core_type<tc>, window_params = [{transform_indices = @transform_0, window_bounds = array<i64: 256, 8>}, {pipeline_mode = #tpu.pipeline_mode<synchronous>, transform_indices = @transform_1, window_bounds = array<i64: 8, 128>}, {pipeline_mode = #tpu.pipeline_mode<synchronous>, transform_indices = @transform_2, window_bounds = array<i64: 1, 128>}, {pipeline_mode = #tpu.pipeline_mode<synchronous>, transform_indices = @transform_3, window_bounds = array<i64: 128, 128>}, {pipeline_mode = #tpu.pipeline_mode<synchronous>, transform_indices = @transform_4, window_bounds = array<i64: 1, 128>}, {transform_indices = @transform_5, window_bounds = array<i64: 256, 128>}]} {
    %c0 = arith.constant 0 : index
    %c0_0 = arith.constant 0 : index
    %0 = vector.load %arg1[%c0, %c0_0] : memref<256x8xf32, #tpu.memory_space<vmem>>, vector<256x8xf32>
    %1 = arith.truncf %0 : vector<256x8xf32> to vector<256x8xbf16>
    %c0_1 = arith.constant 0 : index
    %c0_2 = arith.constant 0 : index
    %2 = vector.load %arg2[%c0_1, %c0_2] : memref<8x128xbf16, #tpu.memory_space<vmem>>, vector<8x128xbf16>
    %cst = arith.constant dense<0.000000e+00> : vector<256x128xf32>
    %3 = tpu.matmul %1, %2, %cst {dimension_numbers = #tpu.dot_dimension_numbers<[1], [0], [0], [1], [0, 0, 1, 1], [], []>} : vector<256x8xbf16>, vector<8x128xbf16>, vector<256x128xf32> -> vector<256x128xf32>
    %c0_3 = arith.constant 0 : index
    %c0_4 = arith.constant 0 : index
    %4 = vector.load %arg3[%c0_3, %c0_4] : memref<1x128xf32, #tpu.memory_space<vmem>>, vector<1x128xf32>
    %5 = vector.broadcast %4 : vector<1x128xf32> to vector<256x128xf32>
    %6 = arith.addf %3, %5 : vector<256x128xf32>
    %cst_5 = arith.constant 0.000000e+00 : f32
    %7 = vector.broadcast %cst_5 : f32 to vector<256x128xf32>
    %8 = arith.maximumf %6, %7 : vector<256x128xf32>
    %9 = arith.truncf %8 : vector<256x128xf32> to vector<256x128xbf16>
    %c0_6 = arith.constant 0 : index
    %c0_7 = arith.constant 0 : index
    %10 = vector.load %arg4[%c0_6, %c0_7] : memref<128x128xbf16, #tpu.memory_space<vmem>>, vector<128x128xbf16>
    %cst_8 = arith.constant dense<0.000000e+00> : vector<256x128xf32>
    %11 = tpu.matmul %9, %10, %cst_8 {dimension_numbers = #tpu.dot_dimension_numbers<[1], [0], [0], [1], [0, 0, 1, 1], [], []>} : vector<256x128xbf16>, vector<128x128xbf16>, vector<256x128xf32> -> vector<256x128xf32>
    %c0_9 = arith.constant 0 : index
    %c0_10 = arith.constant 0 : index
    %12 = vector.load %arg5[%c0_9, %c0_10] : memref<1x128xf32, #tpu.memory_space<vmem>>, vector<1x128xf32>
    %13 = vector.broadcast %12 : vector<1x128xf32> to vector<256x128xf32>
    %14 = arith.addf %11, %13 : vector<256x128xf32>
    %c0_11 = arith.constant 0 : index
    %c0_12 = arith.constant 0 : index
    %15 = vector.load %arg6[%c0_11, %c0_12] : memref<256x128xf32, #tpu.memory_space<vmem>>, vector<256x128xf32>
    tpu.vector_store %arg6[%c0_11, %c0_12], %14 {strides = array<i32>} : memref<256x128xf32, #tpu.memory_space<vmem>>, vector<256x128xf32>,
    return
  }
  func.func @transform_0(%arg0: i32) -> (i32, i32) {
    %c0_i32 = arith.constant 0 : i32
    %c0_i32_0 = arith.constant 0 : i32
    return %arg0, %c0_i32 : i32, i32
  }
  func.func @transform_1(%arg0: i32) -> (i32, i32) {
    %c0_i32 = arith.constant 0 : i32
    %c0_i32_0 = arith.constant 0 : i32
    %c0_i32_1 = arith.constant 0 : i32
    return %c0_i32, %c0_i32_0 : i32, i32
  }
  func.func @transform_2(%arg0: i32) -> (i32, i32) {
    %c0_i32 = arith.constant 0 : i32
    %c0_i32_0 = arith.constant 0 : i32
    %c0_i32_1 = arith.constant 0 : i32
    return %c0_i32, %c0_i32_0 : i32, i32
  }
  func.func @transform_3(%arg0: i32) -> (i32, i32) {
    %c0_i32 = arith.constant 0 : i32
    %c0_i32_0 = arith.constant 0 : i32
    %c0_i32_1 = arith.constant 0 : i32
    return %c0_i32, %c0_i32_0 : i32, i32
  }
  func.func @transform_4(%arg0: i32) -> (i32, i32) {
    %c0_i32 = arith.constant 0 : i32
    %c0_i32_0 = arith.constant 0 : i32
    %c0_i32_1 = arith.constant 0 : i32
    return %c0_i32, %c0_i32_0 : i32, i32
  }
  func.func @transform_5(%arg0: i32) -> (i32, i32) {
    %c0_i32 = arith.constant 0 : i32
    %c0_i32_0 = arith.constant 0 : i32
    return %arg0, %c0_i32 : i32, i32
  }
}

module attributes {stable_mosaic.version = 11 : i64} {
  func.func @_gcn_message_kernel(%arg0: i32, %arg1: memref<256x128xf32, #tpu.memory_space<vmem>>, %arg2: memref<256x256xbf16, #tpu.memory_space<vmem>>, %arg3: memref<256x256xbf16, #tpu.memory_space<vmem>>, %arg4: memref<1x256xi32, #tpu.memory_space<vmem>>, %arg5: memref<1x256xi32, #tpu.memory_space<vmem>>, %arg6: memref<384x128xf32, #tpu.memory_space<vmem>>, %arg7: memref<384x128xf32, #tpu.memory_space<vmem>>, %arg8: memref<128x128xbf16, #tpu.memory_space<vmem>>, %arg9: memref<5x1x128xf32, #tpu.memory_space<vmem>>, %arg10: memref<384x128xf32, #tpu.memory_space<vmem>>, %arg11: memref<256x128xf32, #tpu.memory_space<vmem>>, %arg12: memref<384x512xf32, #tpu.memory_space<vmem>>) attributes {dimension_semantics = [#tpu.dimension_semantics<arbitrary>], iteration_bounds = array<i64: 3>, scalar_prefetch = 0 : i64, scratch_operands = 1 : i64, tpu.core_type = #tpu.core_type<tc>, window_params = [{transform_indices = @transform_0, window_bounds = array<i64: 256, 128>}, {transform_indices = @transform_1, window_bounds = array<i64: 256, 256>}, {transform_indices = @transform_2, window_bounds = array<i64: 256, 256>}, {transform_indices = @transform_3, window_bounds = array<i64: 1, 256>}, {transform_indices = @transform_4, window_bounds = array<i64: 1, 256>}, {pipeline_mode = #tpu.pipeline_mode<synchronous>, transform_indices = @transform_5, window_bounds = array<i64: 384, 128>}, {pipeline_mode = #tpu.pipeline_mode<synchronous>, transform_indices = @transform_6, window_bounds = array<i64: 384, 128>}, {pipeline_mode = #tpu.pipeline_mode<synchronous>, transform_indices = @transform_7, window_bounds = array<i64: 128, 128>}, {pipeline_mode = #tpu.pipeline_mode<synchronous>, transform_indices = @transform_8, window_bounds = array<i64: 5, 1, 128>}, {pipeline_mode = #tpu.pipeline_mode<synchronous>, transform_indices = @transform_9, window_bounds = array<i64: 384, 128>}, {transform_indices = @transform_10, window_bounds = array<i64: 256, 128>}]} {
    %c0_i32 = arith.constant 0 : i32
    %0 = arith.cmpi eq, %arg0, %c0_i32 : i32
    %1 = arith.extui %0 : i1 to i32
    %c0_i32_0 = arith.constant 0 : i32
    %2 = arith.cmpi ne, %1, %c0_i32_0 : i32
    scf.if %2 {
      %cst_37 = arith.constant 0.000000e+00 : f32
      %70 = vector.broadcast %cst_37 : f32 to vector<384x512xf32>
      %c0_38 = arith.constant 0 : index
      %c0_39 = arith.constant 0 : index
      %71 = vector.load %arg12[%c0_38, %c0_39] : memref<384x512xf32, #tpu.memory_space<vmem>>, vector<384x512xf32>
      tpu.vector_store %arg12[%c0_38, %c0_39], %70 {strides = array<i32>} : memref<384x512xf32, #tpu.memory_space<vmem>>, vector<384x512xf32>,
    } else {
    }
    %c0 = arith.constant 0 : index
    %c0_1 = arith.constant 0 : index
    %3 = vector.load %arg1[%c0, %c0_1] : memref<256x128xf32, #tpu.memory_space<vmem>>, vector<256x128xf32>
    %c0_2 = arith.constant 0 : index
    %c0_3 = arith.constant 0 : index
    %4 = vector.load %arg2[%c0_2, %c0_3] : memref<256x256xbf16, #tpu.memory_space<vmem>>, vector<256x256xbf16>
    %5 = arith.extf %4 : vector<256x256xbf16> to vector<256x256xf32>
    %c0_4 = arith.constant 0 : index
    %c0_5 = arith.constant 0 : index
    %6 = vector.load %arg3[%c0_4, %c0_5] : memref<256x256xbf16, #tpu.memory_space<vmem>>, vector<256x256xbf16>
    %7 = arith.extf %6 : vector<256x256xbf16> to vector<256x256xf32>
    %8 = vector.extract_strided_slice %5 {offsets = [0, 0], sizes = [256, 128], strides = [1, 1]} : vector<256x256xf32> to vector<256x128xf32>
    %9 = vector.extract_strided_slice %5 {offsets = [0, 128], sizes = [256, 128], strides = [1, 1]} : vector<256x256xf32> to vector<256x128xf32>
    %10 = vector.extract_strided_slice %7 {offsets = [0, 0], sizes = [256, 128], strides = [1, 1]} : vector<256x256xf32> to vector<256x128xf32>
    %11 = vector.extract_strided_slice %7 {offsets = [0, 128], sizes = [256, 128], strides = [1, 1]} : vector<256x256xf32> to vector<256x128xf32>
    %12 = arith.truncf %3 : vector<256x128xf32> to vector<256x128xbf16>
    %c0_6 = arith.constant 0 : index
    %c0_7 = arith.constant 0 : index
    %13 = vector.load %arg8[%c0_6, %c0_7] : memref<128x128xbf16, #tpu.memory_space<vmem>>, vector<128x128xbf16>
    %cst = arith.constant dense<0.000000e+00> : vector<256x128xf32>
    %14 = tpu.matmul %12, %13, %cst {dimension_numbers = #tpu.dot_dimension_numbers<[1], [0], [0], [1], [0, 0, 1, 1], [], []>} : vector<256x128xbf16>, vector<128x128xbf16>, vector<256x128xf32> -> vector<256x128xf32>
    %c0_8 = arith.constant 0 : index
    %c0_9 = arith.constant 0 : index
    %c0_10 = arith.constant 0 : index
    %15 = vector.load %arg9[%c0_8, %c0_9, %c0_10] : memref<5x1x128xf32, #tpu.memory_space<vmem>>, vector<1x1x128xf32>
    %16 = vector.shape_cast %15 : vector<1x1x128xf32> to vector<1x128xf32>
    %17 = vector.broadcast %16 : vector<1x128xf32> to vector<256x128xf32>
    %18 = arith.addf %14, %17 : vector<256x128xf32>
    %19 = arith.addf %8, %10 : vector<256x128xf32>
    %20 = arith.addf %19, %18 : vector<256x128xf32>
    %c1 = arith.constant 1 : index
    %c0_11 = arith.constant 0 : index
    %c0_12 = arith.constant 0 : index
    %21 = vector.load %arg9[%c1, %c0_11, %c0_12] : memref<5x1x128xf32, #tpu.memory_space<vmem>>, vector<1x1x128xf32>
    %22 = vector.shape_cast %21 : vector<1x1x128xf32> to vector<1x128xf32>
    %23 = vector.broadcast %22 : vector<1x128xf32> to vector<256x128xf32>
    %24 = arith.mulf %20, %23 : vector<256x128xf32>
    %c2 = arith.constant 2 : index
    %c0_13 = arith.constant 0 : index
    %c0_14 = arith.constant 0 : index
    %25 = vector.load %arg9[%c2, %c0_13, %c0_14] : memref<5x1x128xf32, #tpu.memory_space<vmem>>, vector<1x1x128xf32>
    %26 = vector.shape_cast %25 : vector<1x1x128xf32> to vector<1x128xf32>
    %27 = vector.broadcast %26 : vector<1x128xf32> to vector<256x128xf32>
    %28 = arith.addf %24, %27 : vector<256x128xf32>
    %cst_15 = arith.constant 0.000000e+00 : f32
    %29 = vector.broadcast %cst_15 : f32 to vector<256x128xf32>
    %30 = arith.maximumf %28, %29 : vector<256x128xf32>
    %31 = arith.addf %3, %30 : vector<256x128xf32>
    %c0_16 = arith.constant 0 : index
    %c0_17 = arith.constant 0 : index
    %32 = vector.load %arg11[%c0_16, %c0_17] : memref<256x128xf32, #tpu.memory_space<vmem>>, vector<256x128xf32>
    tpu.vector_store %arg11[%c0_16, %c0_17], %31 {strides = array<i32>} : memref<256x128xf32, #tpu.memory_space<vmem>>, vector<256x128xf32>,
    %33 = arith.negf %31 : vector<256x128xf32>
    %34 = math.exp %33 : vector<256x128xf32>
    %cst_18 = arith.constant 1.000000e+00 : f32
    %35 = vector.broadcast %cst_18 : f32 to vector<256x128xf32>
    %36 = arith.addf %35, %34 : vector<256x128xf32>
    %37 = arith.divf %35, %36 : vector<256x128xf32>
    %38 = arith.mulf %37, %9 : vector<256x128xf32>
    %39 = tpu.concatenate %38, %37 in 1 : vector<256x128xf32>, vector<256x128xf32> -> vector<256x256xf32>
    %40 = arith.truncf %39 : vector<256x256xf32> to vector<256x256xbf16>
    %41 = arith.mulf %37, %11 : vector<256x128xf32>
    %42 = tpu.concatenate %41, %37 in 1 : vector<256x128xf32>, vector<256x128xf32> -> vector<256x256xf32>
    %43 = arith.truncf %42 : vector<256x256xf32> to vector<256x256xbf16>
    %44 = tpu.iota {dimensions = array<i32: 0>} : vector<384x256xi32>
    %c0_19 = arith.constant 0 : index
    %c0_20 = arith.constant 0 : index
    %45 = vector.load %arg5[%c0_19, %c0_20] : memref<1x256xi32, #tpu.memory_space<vmem>>, vector<1x256xi32>
    %46 = vector.broadcast %45 : vector<1x256xi32> to vector<384x256xi32>
    %47 = arith.cmpi eq, %44, %46 : vector<384x256xi32>
    %cst_21 = arith.constant 1.000000e+00 : f32
    %cst_22 = arith.constant 0.000000e+00 : f32
    %48 = vector.broadcast %cst_21 : f32 to vector<384x256xf32>
    %49 = vector.broadcast %cst_22 : f32 to vector<384x256xf32>
    %50 = arith.select %47, %48, %49 : vector<384x256xi1>, vector<384x256xf32>
    %51 = arith.truncf %50 : vector<384x256xf32> to vector<384x256xbf16>
    %c0_23 = arith.constant 0 : index
    %c0_24 = arith.constant 0 : index
    %52 = vector.load %arg4[%c0_23, %c0_24] : memref<1x256xi32, #tpu.memory_space<vmem>>, vector<1x256xi32>
    %53 = vector.broadcast %52 : vector<1x256xi32> to vector<384x256xi32>
    %54 = arith.cmpi eq, %44, %53 : vector<384x256xi32>
    %cst_25 = arith.constant 1.000000e+00 : f32
    %cst_26 = arith.constant 0.000000e+00 : f32
    %55 = vector.broadcast %cst_25 : f32 to vector<384x256xf32>
    %56 = vector.broadcast %cst_26 : f32 to vector<384x256xf32>
    %57 = arith.select %54, %55, %56 : vector<384x256xi1>, vector<384x256xf32>
    %58 = arith.truncf %57 : vector<384x256xf32> to vector<384x256xbf16>
    %c0_27 = arith.constant 0 : index
    %c0_28 = arith.constant 0 : index
    %59 = vector.load %arg12[%c0_27, %c0_28] : memref<384x512xf32, #tpu.memory_space<vmem>>, vector<384x256xf32>
    %cst_29 = arith.constant dense<0.000000e+00> : vector<384x256xf32>
    %60 = tpu.matmul %51, %40, %cst_29 {dimension_numbers = #tpu.dot_dimension_numbers<[1], [0], [0], [1], [0, 0, 1, 1], [], []>} : vector<384x256xbf16>, vector<256x256xbf16>, vector<384x256xf32> -> vector<384x256xf32>
    %61 = arith.addf %59, %60 : vector<384x256xf32>
    %c0_30 = arith.constant 0 : index
    %c0_31 = arith.constant 0 : index
    %62 = vector.load %arg12[%c0_30, %c0_31] : memref<384x512xf32, #tpu.memory_space<vmem>>, vector<384x256xf32>
    tpu.vector_store %arg12[%c0_30, %c0_31], %61 {strides = array<i32>} : memref<384x512xf32, #tpu.memory_space<vmem>>, vector<384x256xf32>,
    %c0_32 = arith.constant 0 : index
    %c256 = arith.constant 256 : index
    %63 = vector.load %arg12[%c0_32, %c256] : memref<384x512xf32, #tpu.memory_space<vmem>>, vector<384x256xf32>
    %cst_33 = arith.constant dense<0.000000e+00> : vector<384x256xf32>
    %64 = tpu.matmul %58, %43, %cst_33 {dimension_numbers = #tpu.dot_dimension_numbers<[1], [0], [0], [1], [0, 0, 1, 1], [], []>} : vector<384x256xbf16>, vector<256x256xbf16>, vector<384x256xf32> -> vector<384x256xf32>
    %65 = arith.addf %63, %64 : vector<384x256xf32>
    %c0_34 = arith.constant 0 : index
    %c256_35 = arith.constant 256 : index
    %66 = vector.load %arg12[%c0_34, %c256_35] : memref<384x512xf32, #tpu.memory_space<vmem>>, vector<384x256xf32>
    tpu.vector_store %arg12[%c0_34, %c256_35], %65 {strides = array<i32>} : memref<384x512xf32, #tpu.memory_space<vmem>>, vector<384x256xf32>,
    %c2_i32 = arith.constant 2 : i32
    %67 = arith.cmpi eq, %arg0, %c2_i32 : i32
    %68 = arith.extui %67 : i1 to i32
    %c0_i32_36 = arith.constant 0 : i32
    %69 = arith.cmpi ne, %68, %c0_i32_36 : i32
    scf.if %69 {
      %c0_37 = arith.constant 0 : index
      %c0_38 = arith.constant 0 : index
      %70 = vector.load %arg12[%c0_37, %c0_38] : memref<384x512xf32, #tpu.memory_space<vmem>>, vector<384x512xf32>
      %71 = vector.extract_strided_slice %70 {offsets = [0, 0], sizes = [384, 128], strides = [1, 1]} : vector<384x512xf32> to vector<384x128xf32>
      %72 = vector.extract_strided_slice %70 {offsets = [0, 128], sizes = [384, 128], strides = [1, 1]} : vector<384x512xf32> to vector<384x128xf32>
      %cst_39 = arith.constant 9.99999997E-7 : f32
      %73 = vector.broadcast %cst_39 : f32 to vector<384x128xf32>
      %74 = arith.addf %72, %73 : vector<384x128xf32>
      %75 = arith.divf %71, %74 : vector<384x128xf32>
      %76 = vector.extract_strided_slice %70 {offsets = [0, 256], sizes = [384, 128], strides = [1, 1]} : vector<384x512xf32> to vector<384x128xf32>
      %77 = vector.extract_strided_slice %70 {offsets = [0, 384], sizes = [384, 128], strides = [1, 1]} : vector<384x512xf32> to vector<384x128xf32>
      %cst_40 = arith.constant 9.99999997E-7 : f32
      %78 = vector.broadcast %cst_40 : f32 to vector<384x128xf32>
      %79 = arith.addf %77, %78 : vector<384x128xf32>
      %80 = arith.divf %76, %79 : vector<384x128xf32>
      %c0_41 = arith.constant 0 : index
      %c0_42 = arith.constant 0 : index
      %81 = vector.load %arg6[%c0_41, %c0_42] : memref<384x128xf32, #tpu.memory_space<vmem>>, vector<384x128xf32>
      %82 = arith.addf %81, %75 : vector<384x128xf32>
      %83 = arith.addf %82, %80 : vector<384x128xf32>
      %c3 = arith.constant 3 : index
      %c0_43 = arith.constant 0 : index
      %c0_44 = arith.constant 0 : index
      %84 = vector.load %arg9[%c3, %c0_43, %c0_44] : memref<5x1x128xf32, #tpu.memory_space<vmem>>, vector<1x1x128xf32>
      %85 = vector.shape_cast %84 : vector<1x1x128xf32> to vector<1x128xf32>
      %86 = vector.broadcast %85 : vector<1x128xf32> to vector<384x128xf32>
      %87 = arith.mulf %83, %86 : vector<384x128xf32>
      %c4 = arith.constant 4 : index
      %c0_45 = arith.constant 0 : index
      %c0_46 = arith.constant 0 : index
      %88 = vector.load %arg9[%c4, %c0_45, %c0_46] : memref<5x1x128xf32, #tpu.memory_space<vmem>>, vector<1x1x128xf32>
      %89 = vector.shape_cast %88 : vector<1x1x128xf32> to vector<1x128xf32>
      %90 = vector.broadcast %89 : vector<1x128xf32> to vector<384x128xf32>
      %91 = arith.addf %87, %90 : vector<384x128xf32>
      %c0_47 = arith.constant 0 : index
      %c0_48 = arith.constant 0 : index
      %92 = vector.load %arg7[%c0_47, %c0_48] : memref<384x128xf32, #tpu.memory_space<vmem>>, vector<384x128xf32>
      %cst_49 = arith.constant 0.000000e+00 : f32
      %93 = vector.broadcast %cst_49 : f32 to vector<384x128xf32>
      %94 = arith.maximumf %91, %93 : vector<384x128xf32>
      %95 = arith.addf %92, %94 : vector<384x128xf32>
      %c0_50 = arith.constant 0 : index
      %c0_51 = arith.constant 0 : index
      %96 = vector.load %arg10[%c0_50, %c0_51] : memref<384x128xf32, #tpu.memory_space<vmem>>, vector<384x128xf32>
      tpu.vector_store %arg10[%c0_50, %c0_51], %95 {strides = array<i32>} : memref<384x128xf32, #tpu.memory_space<vmem>>, vector<384x128xf32>,
    } else {
    }
    return
  }
  func.func @transform_0(%arg0: i32) -> (i32, i32) {
    %c0_i32 = arith.constant 0 : i32
    %c0_i32_0 = arith.constant 0 : i32
    return %arg0, %c0_i32 : i32, i32
  }
  func.func @transform_1(%arg0: i32) -> (i32, i32) {
    %c0_i32 = arith.constant 0 : i32
    %c0_i32_0 = arith.constant 0 : i32
    return %arg0, %c0_i32 : i32, i32
  }
  func.func @transform_2(%arg0: i32) -> (i32, i32) {
    %c0_i32 = arith.constant 0 : i32
    %c0_i32_0 = arith.constant 0 : i32
    return %arg0, %c0_i32 : i32, i32
  }
  func.func @transform_3(%arg0: i32) -> (i32, i32) {
    %c0_i32 = arith.constant 0 : i32
    %c0_i32_0 = arith.constant 0 : i32
    return %c0_i32, %arg0 : i32, i32
  }
  func.func @transform_4(%arg0: i32) -> (i32, i32) {
    %c0_i32 = arith.constant 0 : i32
    %c0_i32_0 = arith.constant 0 : i32
    return %c0_i32, %arg0 : i32, i32
  }
  func.func @transform_5(%arg0: i32) -> (i32, i32) {
    %c0_i32 = arith.constant 0 : i32
    %c0_i32_0 = arith.constant 0 : i32
    %c0_i32_1 = arith.constant 0 : i32
    return %c0_i32, %c0_i32_0 : i32, i32
  }
  func.func @transform_6(%arg0: i32) -> (i32, i32) {
    %c0_i32 = arith.constant 0 : i32
    %c0_i32_0 = arith.constant 0 : i32
    %c0_i32_1 = arith.constant 0 : i32
    return %c0_i32, %c0_i32_0 : i32, i32
  }
  func.func @transform_7(%arg0: i32) -> (i32, i32) {
    %c0_i32 = arith.constant 0 : i32
    %c0_i32_0 = arith.constant 0 : i32
    %c0_i32_1 = arith.constant 0 : i32
    return %c0_i32, %c0_i32_0 : i32, i32
  }
  func.func @transform_8(%arg0: i32) -> (i32, i32, i32) {
    %c0_i32 = arith.constant 0 : i32
    %c0_i32_0 = arith.constant 0 : i32
    %c0_i32_1 = arith.constant 0 : i32
    %c0_i32_2 = arith.constant 0 : i32
    return %c0_i32, %c0_i32_0, %c0_i32_1 : i32, i32, i32
  }
  func.func @transform_9(%arg0: i32) -> (i32, i32) {
    %c0_i32 = arith.constant 0 : i32
    %c0_i32_0 = arith.constant 0 : i32
    %c0_i32_1 = arith.constant 0 : i32
    return %c0_i32, %c0_i32_0 : i32, i32
  }
  func.func @transform_10(%arg0: i32) -> (i32, i32) {
    %c0_i32 = arith.constant 0 : i32
    %c0_i32_0 = arith.constant 0 : i32
    return %arg0, %c0_i32 : i32, i32
  }
}

module attributes {stable_mosaic.version = 11 : i64} {
  func.func @_linear_kernel(%arg0: i32, %arg1: memref<128x128xf32, #tpu.memory_space<vmem>>, %arg2: memref<128x256xbf16, #tpu.memory_space<vmem>>, %arg3: memref<1x256xf32, #tpu.memory_space<vmem>>, %arg4: memref<128x256xf32, #tpu.memory_space<vmem>>) attributes {dimension_semantics = [#tpu.dimension_semantics<parallel>], iteration_bounds = array<i64: 3>, scalar_prefetch = 0 : i64, scratch_operands = 0 : i64, tpu.core_type = #tpu.core_type<tc>, window_params = [{transform_indices = @transform_0, window_bounds = array<i64: 128, 128>}, {pipeline_mode = #tpu.pipeline_mode<synchronous>, transform_indices = @transform_1, window_bounds = array<i64: 128, 256>}, {pipeline_mode = #tpu.pipeline_mode<synchronous>, transform_indices = @transform_2, window_bounds = array<i64: 1, 256>}, {transform_indices = @transform_3, window_bounds = array<i64: 128, 256>}]} {
    %c0 = arith.constant 0 : index
    %c0_0 = arith.constant 0 : index
    %0 = vector.load %arg1[%c0, %c0_0] : memref<128x128xf32, #tpu.memory_space<vmem>>, vector<128x128xf32>
    %1 = arith.truncf %0 : vector<128x128xf32> to vector<128x128xbf16>
    %c0_1 = arith.constant 0 : index
    %c0_2 = arith.constant 0 : index
    %2 = vector.load %arg2[%c0_1, %c0_2] : memref<128x256xbf16, #tpu.memory_space<vmem>>, vector<128x256xbf16>
    %cst = arith.constant dense<0.000000e+00> : vector<128x256xf32>
    %3 = tpu.matmul %1, %2, %cst {dimension_numbers = #tpu.dot_dimension_numbers<[1], [0], [0], [1], [0, 0, 1, 1], [], []>} : vector<128x128xbf16>, vector<128x256xbf16>, vector<128x256xf32> -> vector<128x256xf32>
    %c0_3 = arith.constant 0 : index
    %c0_4 = arith.constant 0 : index
    %4 = vector.load %arg3[%c0_3, %c0_4] : memref<1x256xf32, #tpu.memory_space<vmem>>, vector<1x256xf32>
    %5 = vector.broadcast %4 : vector<1x256xf32> to vector<128x256xf32>
    %6 = arith.addf %3, %5 : vector<128x256xf32>
    %c0_5 = arith.constant 0 : index
    %c0_6 = arith.constant 0 : index
    %7 = vector.load %arg4[%c0_5, %c0_6] : memref<128x256xf32, #tpu.memory_space<vmem>>, vector<128x256xf32>
    tpu.vector_store %arg4[%c0_5, %c0_6], %6 {strides = array<i32>} : memref<128x256xf32, #tpu.memory_space<vmem>>, vector<128x256xf32>,
    return
  }
  func.func @transform_0(%arg0: i32) -> (i32, i32) {
    %c0_i32 = arith.constant 0 : i32
    %c0_i32_0 = arith.constant 0 : i32
    return %arg0, %c0_i32 : i32, i32
  }
  func.func @transform_1(%arg0: i32) -> (i32, i32) {
    %c0_i32 = arith.constant 0 : i32
    %c0_i32_0 = arith.constant 0 : i32
    %c0_i32_1 = arith.constant 0 : i32
    return %c0_i32, %c0_i32_0 : i32, i32
  }
  func.func @transform_2(%arg0: i32) -> (i32, i32) {
    %c0_i32 = arith.constant 0 : i32
    %c0_i32_0 = arith.constant 0 : i32
    %c0_i32_1 = arith.constant 0 : i32
    return %c0_i32, %c0_i32_0 : i32, i32
  }
  func.func @transform_3(%arg0: i32) -> (i32, i32) {
    %c0_i32 = arith.constant 0 : i32
    %c0_i32_0 = arith.constant 0 : i32
    return %arg0, %c0_i32 : i32, i32
  }
}

module attributes {stable_mosaic.version = 11 : i64} {
  func.func @_predictor_kernel(%arg0: i32, %arg1: memref<256x128xf32, #tpu.memory_space<vmem>>, %arg2: memref<256x128xf32, #tpu.memory_space<vmem>>, %arg3: memref<256x128xf32, #tpu.memory_space<vmem>>, %arg4: memref<128x128xbf16, #tpu.memory_space<vmem>>, %arg5: memref<1x128xf32, #tpu.memory_space<vmem>>, %arg6: memref<128x128xbf16, #tpu.memory_space<vmem>>, %arg7: memref<1x128xf32, #tpu.memory_space<vmem>>, %arg8: memref<256x128xf32, #tpu.memory_space<vmem>>) attributes {dimension_semantics = [#tpu.dimension_semantics<parallel>], iteration_bounds = array<i64: 3>, scalar_prefetch = 0 : i64, scratch_operands = 0 : i64, tpu.core_type = #tpu.core_type<tc>, window_params = [{transform_indices = @transform_0, window_bounds = array<i64: 256, 128>}, {transform_indices = @transform_1, window_bounds = array<i64: 256, 128>}, {transform_indices = @transform_2, window_bounds = array<i64: 256, 128>}, {pipeline_mode = #tpu.pipeline_mode<synchronous>, transform_indices = @transform_3, window_bounds = array<i64: 128, 128>}, {pipeline_mode = #tpu.pipeline_mode<synchronous>, transform_indices = @transform_4, window_bounds = array<i64: 1, 128>}, {pipeline_mode = #tpu.pipeline_mode<synchronous>, transform_indices = @transform_5, window_bounds = array<i64: 128, 128>}, {pipeline_mode = #tpu.pipeline_mode<synchronous>, transform_indices = @transform_6, window_bounds = array<i64: 1, 128>}, {transform_indices = @transform_7, window_bounds = array<i64: 256, 128>}]} {
    %c0 = arith.constant 0 : index
    %c0_0 = arith.constant 0 : index
    %0 = vector.load %arg2[%c0, %c0_0] : memref<256x128xf32, #tpu.memory_space<vmem>>, vector<256x128xf32>
    %c0_1 = arith.constant 0 : index
    %c0_2 = arith.constant 0 : index
    %1 = vector.load %arg3[%c0_1, %c0_2] : memref<256x128xf32, #tpu.memory_space<vmem>>, vector<256x128xf32>
    %2 = arith.addf %0, %1 : vector<256x128xf32>
    %c0_3 = arith.constant 0 : index
    %c0_4 = arith.constant 0 : index
    %3 = vector.load %arg1[%c0_3, %c0_4] : memref<256x128xf32, #tpu.memory_space<vmem>>, vector<256x128xf32>
    %4 = arith.truncf %3 : vector<256x128xf32> to vector<256x128xbf16>
    %c0_5 = arith.constant 0 : index
    %c0_6 = arith.constant 0 : index
    %5 = vector.load %arg4[%c0_5, %c0_6] : memref<128x128xbf16, #tpu.memory_space<vmem>>, vector<128x128xbf16>
    %cst = arith.constant dense<0.000000e+00> : vector<256x128xf32>
    %6 = tpu.matmul %4, %5, %cst {dimension_numbers = #tpu.dot_dimension_numbers<[1], [0], [0], [1], [0, 0, 1, 1], [], []>} : vector<256x128xbf16>, vector<128x128xbf16>, vector<256x128xf32> -> vector<256x128xf32>
    %7 = arith.addf %2, %6 : vector<256x128xf32>
    %c0_7 = arith.constant 0 : index
    %c0_8 = arith.constant 0 : index
    %8 = vector.load %arg5[%c0_7, %c0_8] : memref<1x128xf32, #tpu.memory_space<vmem>>, vector<1x128xf32>
    %9 = vector.broadcast %8 : vector<1x128xf32> to vector<256x128xf32>
    %10 = arith.addf %7, %9 : vector<256x128xf32>
    %cst_9 = arith.constant 0.000000e+00 : f32
    %11 = vector.broadcast %cst_9 : f32 to vector<256x128xf32>
    %12 = arith.maximumf %10, %11 : vector<256x128xf32>
    %13 = arith.truncf %12 : vector<256x128xf32> to vector<256x128xbf16>
    %c0_10 = arith.constant 0 : index
    %c0_11 = arith.constant 0 : index
    %14 = vector.load %arg6[%c0_10, %c0_11] : memref<128x128xbf16, #tpu.memory_space<vmem>>, vector<128x128xbf16>
    %cst_12 = arith.constant dense<0.000000e+00> : vector<256x128xf32>
    %15 = tpu.matmul %13, %14, %cst_12 {dimension_numbers = #tpu.dot_dimension_numbers<[1], [0], [0], [1], [0, 0, 1, 1], [], []>} : vector<256x128xbf16>, vector<128x128xbf16>, vector<256x128xf32> -> vector<256x128xf32>
    %c0_13 = arith.constant 0 : index
    %c0_14 = arith.constant 0 : index
    %16 = vector.load %arg7[%c0_13, %c0_14] : memref<1x128xf32, #tpu.memory_space<vmem>>, vector<1x128xf32>
    %17 = vector.broadcast %16 : vector<1x128xf32> to vector<256x128xf32>
    %18 = arith.addf %15, %17 : vector<256x128xf32>
    %c0_15 = arith.constant 0 : index
    %c0_16 = arith.constant 0 : index
    %19 = vector.load %arg8[%c0_15, %c0_16] : memref<256x128xf32, #tpu.memory_space<vmem>>, vector<256x128xf32>
    tpu.vector_store %arg8[%c0_15, %c0_16], %18 {strides = array<i32>} : memref<256x128xf32, #tpu.memory_space<vmem>>, vector<256x128xf32>,
    return
  }
  func.func @transform_0(%arg0: i32) -> (i32, i32) {
    %c0_i32 = arith.constant 0 : i32
    %c0_i32_0 = arith.constant 0 : i32
    return %arg0, %c0_i32 : i32, i32
  }
  func.func @transform_1(%arg0: i32) -> (i32, i32) {
    %c0_i32 = arith.constant 0 : i32
    %c0_i32_0 = arith.constant 0 : i32
    return %arg0, %c0_i32 : i32, i32
  }
  func.func @transform_2(%arg0: i32) -> (i32, i32) {
    %c0_i32 = arith.constant 0 : i32
    %c0_i32_0 = arith.constant 0 : i32
    return %arg0, %c0_i32 : i32, i32
  }
  func.func @transform_3(%arg0: i32) -> (i32, i32) {
    %c0_i32 = arith.constant 0 : i32
    %c0_i32_0 = arith.constant 0 : i32
    %c0_i32_1 = arith.constant 0 : i32
    return %c0_i32, %c0_i32_0 : i32, i32
  }
  func.func @transform_4(%arg0: i32) -> (i32, i32) {
    %c0_i32 = arith.constant 0 : i32
    %c0_i32_0 = arith.constant 0 : i32
    %c0_i32_1 = arith.constant 0 : i32
    return %c0_i32, %c0_i32_0 : i32, i32
  }
  func.func @transform_5(%arg0: i32) -> (i32, i32) {
    %c0_i32 = arith.constant 0 : i32
    %c0_i32_0 = arith.constant 0 : i32
    %c0_i32_1 = arith.constant 0 : i32
    return %c0_i32, %c0_i32_0 : i32, i32
  }
  func.func @transform_6(%arg0: i32) -> (i32, i32) {
    %c0_i32 = arith.constant 0 : i32
    %c0_i32_0 = arith.constant 0 : i32
    %c0_i32_1 = arith.constant 0 : i32
    return %c0_i32, %c0_i32_0 : i32, i32
  }
  func.func @transform_7(%arg0: i32) -> (i32, i32) {
    %c0_i32 = arith.constant 0 : i32
    %c0_i32_0 = arith.constant 0 : i32
    return %arg0, %c0_i32 : i32, i32
  }
}

</mosaic_0001>

<bundles_post_ra>
// kernel: tpu_custom_call.1
= control target key start
LH: loop header
LB: loop body
LE: loop exit
PB: predicated region body
PF: predicated region fallthrough
CT: control target
= control target key end

     0   :  { %6 = vsyncpa [#allocation3], 0  ;;  %s341_s0 = inlined_call_operand.hbm [shape: f32[8,128], index: 0, kind: input, shape index: {}]   ;;  %s342_s1 = inlined_call_operand.hbm [shape: f32[8,128], index: 1, kind: output, shape index: {}]  }
   0x1   :  { %7 = vsyncpa [#allocation4], 0  ;;  %s262_s6 = smov 0  }
   0x2 LB: > { %s145_s7 = sadd.s32 4294967295, %s248_s6   ;;  %p146_p0 = scmp.ge.s32.totalorder %s248_s6, 1  ;;  %s248_s6 = sphi %s262_s6, %s13_s6  }
   0x3   : > { %p60_p1 = scmp.lt.s32.totalorder %s248_s6, 3  ;;  %p276_p3 = scmp.eq.s32.totalorder %s145_s7, 0 }
   0x4   : > { %s250_s10 = smov [#allocation2]   ;;  %s180_s15 = scalar_lea.hbm %s341_s0, 128 }
   0x5   : > { %p270_p2 = pnand %p146_p0, %p60_p1  ;;  %s73_s11 = sshll.u32 %s250_s10, 4  ;;  %s74_s11 = int_to_ptr.vmem [resolvable:$true] %s73_s11 }
   0x6   : > { %s347_s9 = scalar_select %p276_p3, 1, 0 }
   0x7   : > { %s346_s8 = scalar_select %p270_p2, 1, 0 }
   0x8   : > { %p162_p4 = pneg %p270_p2  ;;  %p181_p6 = scmp.ne.s32.totalorder %s341_s0, %s180_s15 }
   0x9   : > { %p187_p10 = scmp.lt.u32.totalorder %s180_s15, %s341_s0 }
   0xa   : > { %p284_p5 = pnand %p276_p3, %p162_p4 }
   0xc   : > { %p182_p7 = pneg %p284_p5 }
   0xe   : > { %p183_p8 = pnand %p182_p7, %p181_p6 }
  0x10   : > { %p184_p9 = pneg %p183_p8 }
  0x12   : > { %p189_p11 = pnand %p187_p10, %p184_p9 }
  0x14   : > { %192 = shalt.err (!%p189_p11)
}
  0x15   : > { %s193_s20 = scalar_lea.vmem %s74_s11, 128  ;;  %p201_p1 = scmp.lt.s32.totalorder %s74_s11, %s74_s11 }
  0x16   : > { %p194_p12 = scmp.ne.s32.totalorder %s74_s11, %s193_s20  ;;  %p202_p4 = scmp.lt.s32.totalorder %s193_s20, %s193_s20 }
  0x18   : > { %p196_p13 = pnand %p194_p12, %p182_p7  ;;  %p203_p3 = por %p202_p4, %p201_p1 }
  0x1a   : > { %p197_p0 = pneg %p196_p13 }
  0x1c   : > { %p204_p2 = pnand %p203_p3, %p197_p0 }
  0x1e   : > { %207 = shalt.err (!%p204_p2)
}
  0x1f   : > { %165 = dma.hbm_to_vmem [thread:$0]  (!%p284_p5), %s341_s0, 128, %s74_s11, [#allocation3]  }
  0x20   : > { %p349_p6 = scmp.ne.s32.totalorder %s346_s8, 0 }
  0x21   : > { %p350_p8 = scmp.ne.s32.totalorder (!%p349_p6), %s347_s9, 0 }
  0x22   : > { %86 = sbr.rel (%p349_p6) target bundleno = 67 (0x43), region = 24 }
  0x29   : > { %239 = dma.done.wait (%p350_p8), [#allocation3], 128  }
  0x2a   : > { %241 = vsyncadd (%p350_p8), [#allocation3], 4294967168  ;;  %s251_s23 = smov [#allocation5]   ;;  %v96_v0 = vld [vmem:[#allocation2] sm:$0xff]  ;;  %p312_p2 = scmp.eq.s32.totalorder %s145_s7, 1 }
  0x2b   : > { %s106_s24 = sshll.u32 %s251_s23, 4  ;;  %v97_v1 = vadd.f32 1.0, %v96_v0  ;;  %s107_s24 = int_to_ptr.vmem [resolvable:$true] %s106_s24 }
  0x2c   : > { %s208_s26 = scalar_lea.vmem %s107_s24, 128  ;;  %p215_p9 = scmp.lt.s32.totalorder %s107_s24, %s107_s24 }
  0x2d   : > { %98 = vst [vmem:[#allocation5] sm:$0xff] %v97_v1  ;;  %p209_p3 = scmp.ne.s32.totalorder %s107_s24, %s208_s26  ;;  %p216_p10 = scmp.lt.s32.totalorder %s208_s26, %s208_s26 }
  0x2f   : > { %p210_p5 = pnand %p209_p3, %p312_p2  ;;  %p217_p11 = por %p216_p10, %p215_p9 }
  0x31   : > { %p211_p7 = pneg %p210_p5 }
  0x33   : > { %p218_p12 = pnand %p217_p11, %p211_p7 }
  0x35   : > { %221 = shalt.err (!%p218_p12)
}
  0x36   : > { %s222_s29 = scalar_lea.hbm %s342_s1, 128 }
  0x37   : > { %p223_p13 = scmp.ne.s32.totalorder %s342_s1, %s222_s29  ;;  %p228_p4 = scmp.lt.u32.totalorder %s222_s29, %s342_s1 }
  0x39   : > { %p224_p0 = pnand %p223_p13, %p312_p2 }
  0x3b   : > { %p225_p1 = pneg %p224_p0 }
  0x3d   : > { %p230_p6 = pnand %p228_p4, %p225_p1 }
  0x3f   : > { %233 = shalt.err (!%p230_p6)
}
  0x40   : > { %159 = dma.vmem_to_hbm [thread:$0]  (%p312_p2), %s107_s24, 128, %s342_s1, [#allocation4]  }
  0x41   : > { %243 = dma.done.wait (%p312_p2), [#allocation4], 128  }
  0x42   : > { %245 = vsyncadd (%p312_p2), [#allocation4], 4294967168 }
  0x43 PF: > { %s13_s6 = sadd.s32 1, %s248_s6  }
  0x44   : > { %p10_p8 = scmp.ge.s32.totalorder %s13_s6, 4  }
  0x46   :  { %12 = sbr.rel (!%p10_p8) target bundleno = 2 (0x2), region = 53 }
  0x4d   :  { %119 = vsyncpa [#allocation3], 1 }
  0x4e   :  { %121 = vsyncpa [#allocation3 + $0x1], 1 }
  0x4f   :  { %122 = vsyncpa [#allocation4], 1 }
  0x50   :  { %124 = vsyncpa [#allocation4 + $0x1], 1 }

// kernel: forward_pallas.8
= control target key start
LH: loop header
LB: loop body
LE: loop exit
PB: predicated region body
PF: predicated region fallthrough
CT: control target
= control target key end

     0   :  { %s495_s12 = smov 0   ;;  %s551_s0 = inlined_call_operand.vmem [shape: f32[384,16], index: 0, kind: input, shape index: {}]   ;;  %s552_s1 = inlined_call_operand.vmem [shape: bf16[16,128], index: 1, kind: input, shape index: {}]   ;;  %s553_s2 = inlined_call_operand.vmem [shape: f32[1,128], index: 2, kind: input, shape index: {}]   ;;  %s554_s3 = inlined_call_operand.vmem [shape: f32[384,128], index: 3, kind: output, shape index: {}]  }
   0x1 LB: > { %s408_s13 = sadd.s32 4294967295, %s473_s12   ;;  %p412_p0 = scmp.ge.s32.totalorder %s473_s12, 1  ;;  %s473_s12 = sphi %s495_s12, %s13_s12  }
   0x2   : > { %p138_p1 = scmp.lt.s32.totalorder %s473_s12, 4 }
   0x4   : > { %p139_p2 = pnand %p412_p0, %p138_p1 }
   0x5   : > { %v466_v0 = vld [vmem:[%s552_s1] sm:$0xff] (!%p139_p2)   ;;  %s413_s16 = sshll.u32 (!%p139_p2), %s408_s13, 4  ;;  %vm214_vm0 = vcmask (!%p139_p2), 130048  }
   0x6   : > { %142 = sbr.rel (%p139_p2) target bundleno = 247 (0xf7), region = 32  ;;  %p163_p3 = scmp.lt.s32.totalorder (!%p139_p2), %s413_s16, 47  ;;  %438 = vmatprep.subr.bf16.mxu0 (!%p139_p2), %v466_v0  ;;  %456 = vmatprep.subr.bf16.mxu1 (!%p139_p2), %v466_v0  ;;  %v417_v25 = vld [vmem:[%s553_s2] ss:$0 sm:$0xff] (!%p139_p2) }
   0x7   : > { %439 = vmatpush3.bf16.msra.mxu0 (!%p139_p2), %v466_v0  ;;  %457 = vmatpush3.bf16.msra.mxu1 (!%p139_p2), %v466_v0 }
   0xd   : > { %s556_s16 = smov (!%p163_p3, %s413_s16), 47 }
   0xe   : > { %s414_s17 = sshll.u32 %s556_s16, 3 }
   0xf   : > { %s166_s20 = scalar_lea.vmem %s551_s0, %s414_s17  ;;  %s530_s25 = scalar_lea.vmem %s554_s3, %s414_s17 }
  0x10   : > { %v175_v1 = vld [vmem:[%s166_s20] sm:$0xff]  ;;  %v176_v2 = vld [vmem:[%s166_s20 + $0x8] sm:$0xff]  ;;  %v177_v6 = vld [vmem:[%s166_s20 + $0x10] sm:$0xff] }
  0x11   : > { %v183_v3 = vld [vmem:[%s166_s20 + $0x40] sm:$0xff]  ;;  %v191_v4 = vpack.c.bf16 %v176_v2, %v175_v1  ;;  %v184_v5 = vld [vmem:[%s166_s20 + $0x48] sm:$0xff]  ;;  %v178_v7 = vld [vmem:[%s166_s20 + $0x18] sm:$0xff] }
  0x12   : > { %v195_v8 = vpack.c.bf16 %v184_v5, %v183_v3  ;;  %v192_v9 = vpack.c.bf16 %v178_v7, %v177_v6  ;;  %v185_v10 = vld [vmem:[%s166_s20 + $0x50] sm:$0xff]  ;;  %v186_v11 = vld [vmem:[%s166_s20 + $0x58] sm:$0xff]  ;;  %v179_v12 = vld [vmem:[%s166_s20 + $0x20] sm:$0xff] }
  0x13   : > { %440 = vmatprep.mubr.msk.bf16.mxu0 %vm214_vm0, %v191_v4  ;;  %v196_v13 = vpack.c.bf16 %v186_v11, %v185_v10  ;;  %v180_v14 = vld [vmem:[%s166_s20 + $0x28] sm:$0xff]  ;;  %v187_v15 = vld [vmem:[%s166_s20 + $0x60] sm:$0xff]  ;;  %v181_v19 = vld [vmem:[%s166_s20 + $0x30] sm:$0xff] }
  0x14   : > { %v188_v16 = vld [vmem:[%s166_s20 + $0x68] sm:$0xff]  ;;  %448 = vmatprep.mubr.msk.bf16.mxu1 %vm214_vm0, %v195_v8  ;;  %441 = vmatmul.mubr.msk.bf16.vlgmr.msra.gmra.mrb[0].mxu0 %vm214_vm0, %v192_v9  ;;  %v193_v17 = vpack.c.bf16 %v180_v14, %v179_v12  ;;  %v182_v20 = vld [vmem:[%s166_s20 + $0x38] sm:$0xff]  ;;  %v189_v21 = vld [vmem:[%s166_s20 + $0x70] sm:$0xff] }
  0x15   : > { %v197_v18 = vpack.c.bf16 %v188_v16, %v187_v15  ;;  %449 = vmatmul.mubr.msk.bf16.vlgmr.msra.gmra.mrb[0].mxu1 %vm214_vm0, %v196_v13  ;;  %v190_v22 = vld [vmem:[%s166_s20 + $0x78] sm:$0xff]  ;;  %v194_v23 = vpack.c.bf16 %v182_v20, %v181_v19 }
  0x16   : > { %444 = vmatprep.mubr.msk.bf16.mxu0 %vm214_vm0, %v193_v17  ;;  %v198_v24 = vpack.c.bf16 %v190_v22, %v189_v21 }
  0x17   : > { %452 = vmatprep.mubr.msk.bf16.mxu1 %vm214_vm0, %v197_v18 }
  0x1c   : > { %445 = vmatmul.mubr.msk.bf16.gmra.mrb[4].mxu0 %vm214_vm0, %v194_v23 }
  0x1d   : > { %453 = vmatmul.mubr.msk.bf16.gmra.mrb[4].mxu1 %vm214_vm0, %v198_v24 }
  0xe7   : > { %v442_v26 = vpop.f32.mrb[0].mxu0 }
  0xe8   : > { %v282_v27 = vadd.f32 %v442_v26, %v417_v25  ;;  %v450_v28 = vpop.f32.mrb[0].mxu1  ;;  %v273_v29 = vpop.f32.mrb[1].mxu0 }
  0xe9   : > { %v314_v30 = vadd.f32 %v450_v28, %v417_v25  ;;  %v274_v31 = vadd.f32 %v417_v25, %v273_v29  ;;  %v305_v32 = vpop.f32.mrb[1].mxu1  ;;  %v443_v33 = vpop.f32.mrb[2].mxu0 }
  0xea   : > { %338 = vst [vmem:[%s530_s25 + $0x10] sm:$0xff] %v282_v27  ;;  %v306_v34 = vadd.f32 %v417_v25, %v305_v32  ;;  %v285_v35 = vadd.f32 %v443_v33, %v417_v25  ;;  %v451_v36 = vpop.f32.mrb[2].mxu1  ;;  %v276_v37 = vpop.f32.mrb[3].mxu0 }
  0xeb   : > { %346 = vst [vmem:[%s530_s25 + $0x50] sm:$0xff] %v314_v30  ;;  %336 = vst [vmem:[%s530_s25] sm:$0xff] %v274_v31  ;;  %v317_v38 = vadd.f32 %v451_v36, %v417_v25  ;;  %v277_v39 = vadd.f32 %v417_v25, %v276_v37  ;;  %v308_v40 = vpop.f32.mrb[3].mxu1 }
  0xec   : > { %344 = vst [vmem:[%s530_s25 + $0x40] sm:$0xff] %v306_v34  ;;  %339 = vst [vmem:[%s530_s25 + $0x18] sm:$0xff] %v285_v35  ;;  %v309_v41 = vadd.f32 %v417_v25, %v308_v40 }
  0xed   : > { %347 = vst [vmem:[%s530_s25 + $0x58] sm:$0xff] %v317_v38  ;;  %337 = vst [vmem:[%s530_s25 + $0x8] sm:$0xff] %v277_v39 }
  0xee   : > { %345 = vst [vmem:[%s530_s25 + $0x48] sm:$0xff] %v309_v41 }
  0xef   : > { %v446_v42 = vpop.f32.mrb[4].mxu0 }
  0xf0   : > { %v298_v43 = vadd.f32 %v446_v42, %v417_v25  ;;  %v454_v44 = vpop.f32.mrb[4].mxu1  ;;  %v289_v45 = vpop.f32.mrb[5].mxu0 }
  0xf1   : > { %v330_v46 = vadd.f32 %v454_v44, %v417_v25  ;;  %v290_v47 = vadd.f32 %v417_v25, %v289_v45  ;;  %v321_v48 = vpop.f32.mrb[5].mxu1  ;;  %v447_v49 = vpop.f32.mrb[6].mxu0 }
  0xf2   : > { %342 = vst [vmem:[%s530_s25 + $0x30] sm:$0xff] %v298_v43  ;;  %v322_v50 = vadd.f32 %v417_v25, %v321_v48  ;;  %v301_v51 = vadd.f32 %v447_v49, %v417_v25  ;;  %v455_v52 = vpop.f32.mrb[6].mxu1  ;;  %v292_v53 = vpop.f32.mrb[7].mxu0 }
  0xf3   : > { %350 = vst [vmem:[%s530_s25 + $0x70] sm:$0xff] %v330_v46  ;;  %340 = vst [vmem:[%s530_s25 + $0x20] sm:$0xff] %v290_v47  ;;  %v333_v54 = vadd.f32 %v455_v52, %v417_v25  ;;  %v293_v55 = vadd.f32 %v417_v25, %v292_v53  ;;  %v324_v56 = vpop.f32.mrb[7].mxu1 }
  0xf4   : > { %348 = vst [vmem:[%s530_s25 + $0x60] sm:$0xff] %v322_v50  ;;  %343 = vst [vmem:[%s530_s25 + $0x38] sm:$0xff] %v301_v51  ;;  %v325_v57 = vadd.f32 %v417_v25, %v324_v56 }
  0xf5   : > { %351 = vst [vmem:[%s530_s25 + $0x78] sm:$0xff] %v333_v54  ;;  %341 = vst [vmem:[%s530_s25 + $0x28] sm:$0xff] %v293_v55 }
  0xf6   : > { %349 = vst [vmem:[%s530_s25 + $0x68] sm:$0xff] %v325_v57 }
  0xf7 PF: > { %s13_s12 = sadd.s32 1, %s473_s12  }
  0xf8   : > { %p10_p4 = scmp.ge.s32.totalorder %s13_s12, 5  }
  0xfa   :  { %12 = sbr.rel (!%p10_p4) target bundleno = 1 (0x1), region = 62 }

// kernel: forward_pallas.10
= control target key start
LH: loop header
LB: loop body
LE: loop exit
PB: predicated region body
PF: predicated region fallthrough
CT: control target
= control target key end

     0   :  { %s1549_s18 = smov 0   ;;  %s1939_s0 = inlined_call_operand.vmem [shape: f32[384,128], index: 0, kind: input, shape index: {}]   ;;  %s1940_s1 = inlined_call_operand.vmem [shape: bf16[128,640], index: 1, kind: input, shape index: {}]   ;;  %s1941_s2 = inlined_call_operand.vmem [shape: f32[1,640], index: 2, kind: input, shape index: {}]   ;;  %s1942_s3 = inlined_call_operand.vmem [shape: f32[384,128], index: 3, kind: output, shape index: {0}]   ;;  %s1943_s4 = inlined_call_operand.vmem [shape: bf16[384,256], index: 4, kind: output, shape index: {1}]   ;;  %s1944_s5 = inlined_call_operand.vmem [shape: bf16[384,256], index: 5, kind: output, shape index: {2}]  }
   0x1 LB: > { %s1258_s19 = sadd.s32 4294967295, %s1516_s18   ;;  %p1262_p0 = scmp.ge.s32.totalorder %s1516_s18, 1  ;;  %s1516_s18 = sphi %s1549_s18, %s16_s18  }
   0x2   : > { %p193_p1 = scmp.lt.s32.totalorder %s1516_s18, 4 }
   0x4   : > { %p194_p2 = pnand %p1262_p0, %p193_p1 }
   0x5   : > { %v1454_v0 = vld [vmem:[%s1940_s1 + $0x4] ss:$20 sps:$4 sm:$0xff] (!%p194_p2)   ;;  %v1456_v1 = vld [vmem:[%s1940_s1 + $0xc] ss:$20 sps:$4 sm:$0xff] (!%p194_p2)   ;;  %v1518_v2 = vmov (!%p194_p2), 0   ;;  %s1263_s27 = sshll.u32 (!%p194_p2), %s1258_s19, 4 }
   0x6   : > { %197 = sbr.rel (%p194_p2) target bundleno = 331 (0x14b), region = 32  ;;  %599 = vmatprep.mubr.bf16.mxu0 (!%p194_p2), %v1518_v2  ;;  %712 = vmatprep.mubr.bf16.mxu1 (!%p194_p2), %v1518_v2  ;;  %v1458_v3 = vld [vmem:[%s1940_s1] ss:$20 sps:$4 sm:$0xff] (!%p194_p2)   ;;  %v1459_v4 = vld [vmem:[%s1940_s1 + $0x8] ss:$20 sps:$4 sm:$0xff] (!%p194_p2)   ;;  %p234_p3 = scmp.lt.s32.totalorder (!%p194_p2), %s1263_s27, 47 }
   0x7   : > { %567 = vmatprep.subr.bf16.mxu0 (!%p194_p2), %v1454_v0  ;;  %680 = vmatprep.subr.bf16.mxu1 (!%p194_p2), %v1456_v1  ;;  %v1460_v5 = vld [vmem:[%s1940_s1 + $0x2c] ss:$20 sps:$4 sm:$0xff] (!%p194_p2)   ;;  %v1462_v6 = vld [vmem:[%s1940_s1 + $0x34] ss:$20 sps:$4 sm:$0xff] (!%p194_p2)   ;;  %v1465_v8 = vld [vmem:[%s1940_s1 + $0x30] ss:$20 sps:$4 sm:$0xff] (!%p194_p2)   ;;  %v334_v1 = vlaneseq (!%p194_p2) }
   0x8   : > { %568 = vmatpush1.bf16.msra.mxu0 (!%p194_p2), %v1458_v3  ;;  %681 = vmatpush1.bf16.msra.mxu1 (!%p194_p2), %v1459_v4  ;;  %v1464_v7 = vld [vmem:[%s1940_s1 + $0x28] ss:$20 sps:$4 sm:$0xff] (!%p194_p2)   ;;  %v1470_v11 = vld [vmem:[%s1940_s1 + $0x50] ss:$20 sps:$4 sm:$0xff] (!%p194_p2)   ;;  %v1471_v12 = vld [vmem:[%s1940_s1 + $0x58] ss:$20 sps:$4 sm:$0xff] (!%p194_p2)  }
   0x9   : > { %569 = vmatprep.subr.bf16.mxu0 (!%p194_p2), %v1460_v5  ;;  %682 = vmatprep.subr.bf16.mxu1 (!%p194_p2), %v1462_v6  ;;  %v1466_v9 = vld [vmem:[%s1940_s1 + $0x54] ss:$20 sps:$4 sm:$0xff] (!%p194_p2)   ;;  %v1468_v10 = vld [vmem:[%s1940_s1 + $0x5c] ss:$20 sps:$4 sm:$0xff] (!%p194_p2)   ;;  %v1474_v14 = vld [vmem:[%s1940_s1 + $0x84] ss:$20 sps:$4 sm:$0xff] (!%p194_p2)  }
   0xa   : > { %v1472_v13 = vld [vmem:[%s1940_s1 + $0x7c] ss:$20 sps:$4 sm:$0xff] (!%p194_p2)   ;;  %v1476_v15 = vld [vmem:[%s1940_s1 + $0x78] ss:$20 sps:$4 sm:$0xff] (!%p194_p2)   ;;  %v1477_v16 = vld [vmem:[%s1940_s1 + $0x80] ss:$20 sps:$4 sm:$0xff] (!%p194_p2)  }
   0xb   : > { %v1478_v17 = vld [vmem:[%s1940_s1 + $0xa4] ss:$20 sps:$4 sm:$0xff] (!%p194_p2)   ;;  %v1480_v18 = vld [vmem:[%s1940_s1 + $0xac] ss:$20 sps:$4 sm:$0xff] (!%p194_p2)   ;;  %v1483_v20 = vld [vmem:[%s1940_s1 + $0xa8] ss:$20 sps:$4 sm:$0xff] (!%p194_p2)  }
   0xc   : > { %570 = vmatpush1.bf16.msra.mxu0 (!%p194_p2), %v1464_v7  ;;  %683 = vmatpush1.bf16.msra.mxu1 (!%p194_p2), %v1465_v8  ;;  %v1482_v19 = vld [vmem:[%s1940_s1 + $0xa0] ss:$20 sps:$4 sm:$0xff] (!%p194_p2)   ;;  %v1488_v23 = vld [vmem:[%s1940_s1 + $0xc8] ss:$20 sps:$4 sm:$0xff] (!%p194_p2)   ;;  %v1489_v24 = vld [vmem:[%s1940_s1 + $0xd0] ss:$20 sps:$4 sm:$0xff] (!%p194_p2)  }
   0xd   : > { %571 = vmatprep.subr.bf16.mxu0 %v1466_v9  ;;  %684 = vmatprep.subr.bf16.mxu1 %v1468_v10  ;;  %v1484_v21 = vld [vmem:[%s1940_s1 + $0xcc] ss:$20 sps:$4 sm:$0xff]   ;;  %v1486_v22 = vld [vmem:[%s1940_s1 + $0xd4] ss:$20 sps:$4 sm:$0xff]   ;;  %s1946_s27 = smov (!%p234_p3, %s1263_s27), 47  ;;  %v335_v3 = vshrl.u32 %v334_v1, 7 }
   0xe   : > { %v1490_v25 = vld [vmem:[%s1940_s1 + $0xf4] ss:$20 sps:$4 sm:$0xff]   ;;  %v1492_v26 = vld [vmem:[%s1940_s1 + $0xfc] ss:$20 sps:$4 sm:$0xff]   ;;  %s1639_s26 = sshll.u32 %s1946_s27, 3 }
   0xf   : > { %v1494_v27 = vld [vmem:[%s1940_s1 + $0xf0] ss:$20 sps:$4 sm:$0xff]   ;;  %v1495_v28 = vld [vmem:[%s1940_s1 + $0xf8] ss:$20 sps:$4 sm:$0xff]   ;;  %s1657_s11 = scalar_lea.vmem %s1939_s0, %s1639_s26  ;;  %v1501_v32 = vld [vmem:[%s1940_s1 + $0x120] ss:$20 sps:$4 sm:$0xff]   ;;  %s1746_s13 = scalar_lea.vmem %s1942_s3, %s1639_s26 }
  0x10   : > { %572 = vmatpush1.bf16.msra.mxu0 %v1470_v11  ;;  %685 = vmatpush1.bf16.msra.mxu1 %v1471_v12  ;;  %v1496_v29 = vld [vmem:[%s1940_s1 + $0x11c] ss:$20 sps:$4 sm:$0xff]   ;;  %v1498_v30 = vld [vmem:[%s1940_s1 + $0x124] ss:$20 sps:$4 sm:$0xff]   ;;  %v261_v34 = vld [vmem:[%s1657_s11 + $0x8] sm:$0xff]  ;;  %v348_v4 = vsub.s32 3, %v335_v3  ;;  %s1759_s16 = scalar_lea.vmem %s1943_s4, %s1639_s26  ;;  %s1888_s21 = scalar_lea.vmem %s1944_s5, %s1639_s26 }
  0x11   : > { %573 = vmatprep.subr.bf16.mxu0 %v1472_v13  ;;  %686 = vmatprep.subr.bf16.mxu1 %v1474_v14  ;;  %v1500_v31 = vld [vmem:[%s1940_s1 + $0x118] ss:$20 sps:$4 sm:$0xff]   ;;  %v260_v33 = vld [vmem:[%s1657_s11] sm:$0xff]  ;;  %v262_v38 = vld [vmem:[%s1657_s11 + $0x10] sm:$0xff]  ;;  %v352_v6 = vsub.s32 4, %v335_v3  ;;  %v336_v8 = vsub.s32 0, %v335_v3 }
  0x12   : > { %v1502_v35 = vld [vmem:[%s1940_s1 + $0x10] ss:$20 sps:$4 sm:$0xff]   ;;  %v1670_v36 = vpack.c.bf16 %v261_v34, %v260_v33  ;;  %v1503_v37 = vld [vmem:[%s1940_s1 + $0x38] ss:$20 sps:$4 sm:$0xff]   ;;  %v1504_v40 = vld [vmem:[%s1940_s1 + $0x60] ss:$20 sps:$4 sm:$0xff]  }
  0x13   : > { %v263_v39 = vld [vmem:[%s1657_s11 + $0x18] sm:$0xff]  ;;  %v264_v43 = vld [vmem:[%s1657_s11 + $0x20] sm:$0xff]  ;;  %v265_v44 = vld [vmem:[%s1657_s11 + $0x28] sm:$0xff]  ;;  %v344_v9 = vsub.s32 2, %v335_v3  ;;  %v340_v10 = vsub.s32 1, %v335_v3 }
  0x14   : > { %574 = vmatpush1.bf16.msra.mxu0 %v1476_v15  ;;  %687 = vmatpush1.bf16.msra.mxu1 %v1477_v16  ;;  %v1684_v41 = vpack.c.bf16 %v263_v39, %v262_v38  ;;  %v1505_v42 = vld [vmem:[%s1940_s1 + $0x88] ss:$20 sps:$4 sm:$0xff]   ;;  %v1506_v45 = vld [vmem:[%s1940_s1 + $0xb0] ss:$20 sps:$4 sm:$0xff]   ;;  %v278_v46 = vpack.c.bf16 %v265_v44, %v264_v43  ;;  %v1507_v47 = vld [vmem:[%s1940_s1 + $0xd8] ss:$20 sps:$4 sm:$0xff]  }
  0x15   : > { %575 = vmatprep.subr.bf16.mxu0 %v1478_v17  ;;  %688 = vmatprep.subr.bf16.mxu1 %v1480_v18  ;;  %v266_v48 = vld [vmem:[%s1657_s11 + $0x30] sm:$0xff]  ;;  %v267_v49 = vld [vmem:[%s1657_s11 + $0x38] sm:$0xff]  ;;  %v268_v53 = vld [vmem:[%s1657_s11 + $0x40] sm:$0xff] }
  0x16   : > { %v1508_v50 = vld [vmem:[%s1940_s1 + $0x100] ss:$20 sps:$4 sm:$0xff]   ;;  %v279_v51 = vpack.c.bf16 %v267_v49, %v266_v48  ;;  %v1509_v52 = vld [vmem:[%s1940_s1 + $0x128] ss:$20 sps:$4 sm:$0xff]  }
  0x17   : > { %v269_v54 = vld [vmem:[%s1657_s11 + $0x48] sm:$0xff]  ;;  %v270_v56 = vld [vmem:[%s1657_s11 + $0x50] sm:$0xff]  ;;  %v271_v57 = vld [vmem:[%s1657_s11 + $0x58] sm:$0xff] }
  0x18   : > { %576 = vmatpush1.bf16.msra.mxu0 %v1482_v19  ;;  %689 = vmatpush1.bf16.msra.mxu1 %v1483_v20  ;;  %v280_v55 = vpack.c.bf16 %v269_v54, %v268_v53  ;;  %v281_v58 = vpack.c.bf16 %v271_v57, %v270_v56  ;;  %v272_v59 = vld [vmem:[%s1657_s11 + $0x60] sm:$0xff]  ;;  %v273_v60 = vld [vmem:[%s1657_s11 + $0x68] sm:$0xff]  ;;  %v274_v62 = vld [vmem:[%s1657_s11 + $0x70] sm:$0xff] }
  0x19   : > { %577 = vmatprep.subr.bf16.mxu0 %v1484_v21  ;;  %690 = vmatprep.subr.bf16.mxu1 %v1486_v22  ;;  %v282_v61 = vpack.c.bf16 %v273_v60, %v272_v59  ;;  %v275_v63 = vld [vmem:[%s1657_s11 + $0x78] sm:$0xff] }
  0x1a   : > { %v283_v0 = vpack.c.bf16 %v275_v63, %v274_v62 }
  0x1c   : > { %578 = vmatpush1.bf16.msra.mxu0 %v1488_v23  ;;  %691 = vmatpush1.bf16.msra.mxu1 %v1489_v24 }
  0x1d   : > { %579 = vmatprep.subr.bf16.mxu0 %v1490_v25  ;;  %692 = vmatprep.subr.bf16.mxu1 %v1492_v26 }
  0x20   : > { %580 = vmatpush1.bf16.msra.mxu0 %v1494_v27  ;;  %693 = vmatpush1.bf16.msra.mxu1 %v1495_v28 }
  0x21   : > { %581 = vmatprep.subr.bf16.mxu0 %v1496_v29  ;;  %694 = vmatprep.subr.bf16.mxu1 %v1498_v30 }
  0x24   : > { %582 = vmatpush1.bf16.msra.mxu0 %v1500_v31  ;;  %695 = vmatpush1.bf16.msra.mxu1 %v1501_v32 }
  0x25   : > { %1397 = vmatprep.subr.bf16.mxu0 %v1502_v35  ;;  %1429 = vmatprep.subr.bf16.mxu1 %v1502_v35 }
  0x27   : > { %600 = vmatmul.mubr.bf16.vlgmr.msra.gmra.mrb[0].mxu0 %v1670_v36  ;;  %713 = vmatmul.mubr.bf16.vlgmr.msra.gmra.mrb[0].mxu1 %v1670_v36 }
  0x28   : > { %1398 = vmatpush3.bf16.msra.mxu0 %v1502_v35  ;;  %1437 = vmatpush3.bf16.msra.mxu1 %v1502_v35 }
  0x29   : > { %609 = vmatprep.mubr.bf16.mxu0 %v1518_v2  ;;  %722 = vmatprep.mubr.bf16.mxu1 %v1518_v2 }
  0x2a   : > { %1399 = vmatprep.subr.bf16.mxu0 %v1503_v37  ;;  %1430 = vmatprep.subr.bf16.mxu1 %v1503_v37 }
  0x2c   : > { %1400 = vmatpush3.bf16.msra.mxu0 %v1503_v37  ;;  %1438 = vmatpush3.bf16.msra.mxu1 %v1503_v37 }
  0x2d   : > { %1401 = vmatprep.subr.bf16.mxu0 %v1504_v40  ;;  %1431 = vmatprep.subr.bf16.mxu1 %v1504_v40 }
  0x2f   : > { %610 = vmatmul.mubr.bf16.gmra.mrb[4].mxu0 %v1684_v41  ;;  %723 = vmatmul.mubr.bf16.gmra.mrb[4].mxu1 %v1684_v41 }
  0x30   : > { %619 = vmatprep.mubr.bf16.mxu0 %v1518_v2  ;;  %732 = vmatprep.mubr.bf16.mxu1 %v1518_v2 }
  0x31   : > { %1402 = vmatpush3.bf16.msra.mxu0 %v1504_v40  ;;  %1439 = vmatpush3.bf16.msra.mxu1 %v1504_v40 }
  0x32   : > { %1403 = vmatprep.subr.bf16.mxu0 %v1505_v42  ;;  %1432 = vmatprep.subr.bf16.mxu1 %v1505_v42 }
  0x35   : > { %1404 = vmatpush3.bf16.msra.mxu0 %v1505_v42  ;;  %1440 = vmatpush3.bf16.msra.mxu1 %v1505_v42 }
  0x36   : > { %1405 = vmatprep.subr.bf16.mxu0 %v1506_v45  ;;  %1433 = vmatprep.subr.bf16.mxu1 %v1506_v45 }
  0x37   : > { %620 = vmatmul.mubr.bf16.gmra.mrb[8].mxu0 %v278_v46  ;;  %733 = vmatmul.mubr.bf16.gmra.mrb[8].mxu1 %v278_v46 }
  0x38   : > { %629 = vmatprep.mubr.bf16.mxu0 %v1518_v2  ;;  %742 = vmatprep.mubr.bf16.mxu1 %v1518_v2 }
  0x39   : > { %1406 = vmatpush3.bf16.msra.mxu0 %v1506_v45  ;;  %1441 = vmatpush3.bf16.msra.mxu1 %v1506_v45 }
  0x3a   : > { %1407 = vmatprep.subr.bf16.mxu0 %v1507_v47  ;;  %1434 = vmatprep.subr.bf16.mxu1 %v1507_v47 }
  0x3d   : > { %1408 = vmatpush3.bf16.msra.mxu0 %v1507_v47  ;;  %1442 = vmatpush3.bf16.msra.mxu1 %v1507_v47 }
  0x3e   : > { %1409 = vmatprep.subr.bf16.mxu0 %v1508_v50  ;;  %1435 = vmatprep.subr.bf16.mxu1 %v1508_v50 }
  0x3f   : > { %630 = vmatmul.mubr.bf16.gmra.mrb[12].mxu0 %v279_v51  ;;  %743 = vmatmul.mubr.bf16.gmra.mrb[12].mxu1 %v279_v51 }
  0x40   : > { %639 = vmatprep.mubr.bf16.mxu0 %v1518_v2  ;;  %752 = vmatprep.mubr.bf16.mxu1 %v1518_v2 }
  0x41   : > { %1410 = vmatpush3.bf16.msra.mxu0 %v1508_v50  ;;  %1443 = vmatpush3.bf16.msra.mxu1 %v1508_v50 }
  0x42   : > { %1411 = vmatprep.subr.bf16.mxu0 %v1509_v52  ;;  %1436 = vmatprep.subr.bf16.mxu1 %v1509_v52 }
  0x45   : > { %1412 = vmatpush3.bf16.msra.mxu0 %v1509_v52  ;;  %1444 = vmatpush3.bf16.msra.mxu1 %v1509_v52 }
  0x47   : > { %640 = vmatmul.mubr.bf16.gmra.mrb[16].mxu0 %v280_v55  ;;  %753 = vmatmul.mubr.bf16.gmra.mrb[16].mxu1 %v280_v55 }
  0x48   : > { %649 = vmatprep.mubr.bf16.mxu0 %v1518_v2  ;;  %762 = vmatprep.mubr.bf16.mxu1 %v1518_v2 }
  0x4f   : > { %650 = vmatmul.mubr.bf16.gmra.mrb[20].mxu0 %v281_v58  ;;  %763 = vmatmul.mubr.bf16.gmra.mrb[20].mxu1 %v281_v58 }
  0x50   : > { %659 = vmatprep.mubr.bf16.mxu0 %v1518_v2  ;;  %772 = vmatprep.mubr.bf16.mxu1 %v1518_v2 }
  0x57   : > { %660 = vmatmul.mubr.bf16.gmra.mrb[24].mxu0 %v282_v61  ;;  %773 = vmatmul.mubr.bf16.gmra.mrb[24].mxu1 %v282_v61 }
  0x58   : > { %669 = vmatprep.mubr.bf16.mxu0 %v1518_v2  ;;  %782 = vmatprep.mubr.bf16.mxu1 %v1518_v2  ;;  %v332_v2 = vld [vmem:[%s1941_s2] sm:$0x1f] }
  0x59   : > { %v1732_v5 = vrot.slane %v332_v2, %v348_v4  ;;  %v1734_v7 = vrot.slane %v332_v2, %v352_v6  ;;  %v1736_v11 = vrot.slane %v332_v2, %v336_v8  ;;  %v1738_v12 = vrot.slane %v332_v2, %v344_v9 }
  0x5a   : > { %v1740_v13 = vrot.slane %v332_v2, %v340_v10 }
  0x5f   : > { %670 = vmatmul.mubr.bf16.gmra.mrb[28].mxu0 %v283_v0  ;;  %783 = vmatmul.mubr.bf16.gmra.mrb[28].mxu1 %v283_v0 }
  0x60   : > { %1413 = vmatprep.mubr.bf16.mxu0 %v1670_v36  ;;  %1421 = vmatprep.mubr.bf16.mxu1 %v280_v55 }
  0x67   : > { %1414 = vmatmul.mubr.bf16.vlgmr.msra.gmra.mrb[32].mxu0 %v1684_v41  ;;  %1422 = vmatmul.mubr.bf16.vlgmr.msra.gmra.mrb[32].mxu1 %v281_v58 }
  0x68   : > { %1417 = vmatprep.mubr.bf16.mxu0 %v278_v46  ;;  %1425 = vmatprep.mubr.bf16.mxu1 %v282_v61 }
  0x6f   : > { %1418 = vmatmul.mubr.bf16.gmra.mrb[36].mxu0 %v279_v51  ;;  %1426 = vmatmul.mubr.bf16.gmra.mrb[36].mxu1 %v283_v0 }
  0xfa   : > { %v601_v14 = vpop.f32.mrb[0].mxu0  ;;  %v714_v15 = vpop.f32.mrb[0].mxu1 }
  0xfb   : > { %v602_v16 = vadd.f32 %v601_v14, %v1736_v11  ;;  %v715_v17 = vadd.f32 %v714_v15, %v1738_v12  ;;  %v603_v18 = vpop.f32.mrb[1].mxu0  ;;  %v716_v19 = vpop.f32.mrb[1].mxu1 }
  0xfc   : > { %v604_v20 = vadd.f32 %v603_v18, %v1740_v13  ;;  %v1752_v21 = vadd.f32 %v716_v19, %v1732_v5  ;;  %v605_v22 = vpop.f32.mrb[2].mxu0  ;;  %v718_v23 = vpop.f32.mrb[2].mxu1 }
  0xfd   : > { %890 = vst [vmem:[%s1746_s13] sm:$0xff] %v602_v16  ;;  %v606_v24 = vadd.f32 %v605_v22, %v1736_v11  ;;  %v719_v25 = vadd.f32 %v718_v23, %v1738_v12  ;;  %v607_v26 = vpop.f32.mrb[3].mxu0  ;;  %v720_v27 = vpop.f32.mrb[3].mxu1 }
  0xfe   : > { %v1349_v28 = vpack.c.bf16 %v715_v17, %v604_v20  ;;  %v608_v29 = vadd.f32 %v607_v26, %v1740_v13  ;;  %v1765_v30 = vadd.f32 %v720_v27, %v1732_v5 }
  0xff   : > { %891 = vst [vmem:[%s1746_s13 + $0x8] sm:$0xff] %v606_v24 }
 0x100   : > { %1002 = vst [vmem:[%s1759_s16] sm:$0xff] %v1349_v28  ;;  %v1350_v31 = vpack.c.bf16 %v719_v25, %v608_v29 }
 0x102   : > { %1003 = vst [vmem:[%s1759_s16 + $0x8] sm:$0xff] %v1350_v31  ;;  %v611_v32 = vpop.f32.mrb[4].mxu0  ;;  %v724_v33 = vpop.f32.mrb[4].mxu1 }
 0x103   : > { %v612_v34 = vadd.f32 %v611_v32, %v1736_v11  ;;  %v725_v35 = vadd.f32 %v724_v33, %v1738_v12  ;;  %v613_v36 = vpop.f32.mrb[5].mxu0  ;;  %v726_v37 = vpop.f32.mrb[5].mxu1 }
 0x104   : > { %v614_v38 = vadd.f32 %v613_v36, %v1740_v13  ;;  %v1774_v39 = vadd.f32 %v726_v37, %v1732_v5  ;;  %v615_v40 = vpop.f32.mrb[6].mxu0  ;;  %v728_v41 = vpop.f32.mrb[6].mxu1 }
 0x105   : > { %892 = vst [vmem:[%s1746_s13 + $0x10] sm:$0xff] %v612_v34  ;;  %v616_v42 = vadd.f32 %v615_v40, %v1736_v11  ;;  %v729_v43 = vadd.f32 %v728_v41, %v1738_v12  ;;  %v617_v44 = vpop.f32.mrb[7].mxu0  ;;  %v730_v45 = vpop.f32.mrb[7].mxu1 }
 0x106   : > { %v1351_v46 = vpack.c.bf16 %v725_v35, %v614_v38  ;;  %v618_v47 = vadd.f32 %v617_v44, %v1740_v13  ;;  %v1781_v48 = vadd.f32 %v730_v45, %v1732_v5 }
 0x107   : > { %893 = vst [vmem:[%s1746_s13 + $0x18] sm:$0xff] %v616_v42 }
 0x108   : > { %1004 = vst [vmem:[%s1759_s16 + $0x10] sm:$0xff] %v1351_v46  ;;  %v1352_v49 = vpack.c.bf16 %v729_v43, %v618_v47 }
 0x10a   : > { %1005 = vst [vmem:[%s1759_s16 + $0x18] sm:$0xff] %v1352_v49  ;;  %v621_v50 = vpop.f32.mrb[8].mxu0  ;;  %v734_v51 = vpop.f32.mrb[8].mxu1 }
 0x10b   : > { %v622_v52 = vadd.f32 %v621_v50, %v1736_v11  ;;  %v735_v53 = vadd.f32 %v734_v51, %v1738_v12  ;;  %v623_v54 = vpop.f32.mrb[9].mxu0  ;;  %v736_v55 = vpop.f32.mrb[9].mxu1 }
 0x10c   : > { %v624_v56 = vadd.f32 %v623_v54, %v1740_v13  ;;  %v1790_v57 = vadd.f32 %v736_v55, %v1732_v5  ;;  %v625_v58 = vpop.f32.mrb[10].mxu0  ;;  %v738_v59 = vpop.f32.mrb[10].mxu1 }
 0x10d   : > { %894 = vst [vmem:[%s1746_s13 + $0x20] sm:$0xff] %v622_v52  ;;  %v626_v60 = vadd.f32 %v625_v58, %v1736_v11  ;;  %v739_v61 = vadd.f32 %v738_v59, %v1738_v12  ;;  %v627_v62 = vpop.f32.mrb[11].mxu0  ;;  %v740_v63 = vpop.f32.mrb[11].mxu1 }
 0x10e   : > { %v1353_v0 = vpack.c.bf16 %v735_v53, %v624_v56  ;;  %v628_v1 = vadd.f32 %v627_v62, %v1740_v13  ;;  %v1797_v3 = vadd.f32 %v740_v63, %v1732_v5 }
 0x10f   : > { %895 = vst [vmem:[%s1746_s13 + $0x28] sm:$0xff] %v626_v60 }
 0x110   : > { %1006 = vst [vmem:[%s1759_s16 + $0x20] sm:$0xff] %v1353_v0  ;;  %v1354_v2 = vpack.c.bf16 %v739_v61, %v628_v1 }
 0x112   : > { %1007 = vst [vmem:[%s1759_s16 + $0x28] sm:$0xff] %v1354_v2  ;;  %v631_v4 = vpop.f32.mrb[12].mxu0  ;;  %v744_v6 = vpop.f32.mrb[12].mxu1 }
 0x113   : > { %v632_v8 = vadd.f32 %v631_v4, %v1736_v11  ;;  %v745_v9 = vadd.f32 %v744_v6, %v1738_v12  ;;  %v633_v10 = vpop.f32.mrb[13].mxu0  ;;  %v746_v14 = vpop.f32.mrb[13].mxu1 }
 0x114   : > { %v634_v15 = vadd.f32 %v633_v10, %v1740_v13  ;;  %v1806_v16 = vadd.f32 %v746_v14, %v1732_v5  ;;  %v635_v17 = vpop.f32.mrb[14].mxu0  ;;  %v748_v18 = vpop.f32.mrb[14].mxu1 }
 0x115   : > { %896 = vst [vmem:[%s1746_s13 + $0x30] sm:$0xff] %v632_v8  ;;  %v636_v19 = vadd.f32 %v635_v17, %v1736_v11  ;;  %v749_v20 = vadd.f32 %v748_v18, %v1738_v12  ;;  %v637_v22 = vpop.f32.mrb[15].mxu0  ;;  %v750_v23 = vpop.f32.mrb[15].mxu1 }
 0x116   : > { %v1355_v24 = vpack.c.bf16 %v745_v9, %v634_v15  ;;  %v638_v25 = vadd.f32 %v637_v22, %v1740_v13  ;;  %v1813_v26 = vadd.f32 %v750_v23, %v1732_v5 }
 0x117   : > { %897 = vst [vmem:[%s1746_s13 + $0x38] sm:$0xff] %v636_v19 }
 0x118   : > { %1008 = vst [vmem:[%s1759_s16 + $0x30] sm:$0xff] %v1355_v24  ;;  %v1356_v27 = vpack.c.bf16 %v749_v20, %v638_v25 }
 0x11a   : > { %1009 = vst [vmem:[%s1759_s16 + $0x38] sm:$0xff] %v1356_v27  ;;  %v641_v28 = vpop.f32.mrb[16].mxu0  ;;  %v754_v29 = vpop.f32.mrb[16].mxu1 }
 0x11b   : > { %v642_v31 = vadd.f32 %v641_v28, %v1736_v11  ;;  %v755_v32 = vadd.f32 %v754_v29, %v1738_v12  ;;  %v643_v33 = vpop.f32.mrb[17].mxu0  ;;  %v756_v34 = vpop.f32.mrb[17].mxu1 }
 0x11c   : > { %v644_v35 = vadd.f32 %v643_v33, %v1740_v13  ;;  %v1822_v36 = vadd.f32 %v756_v34, %v1732_v5  ;;  %v645_v37 = vpop.f32.mrb[18].mxu0  ;;  %v758_v38 = vpop.f32.mrb[18].mxu1 }
 0x11d   : > { %898 = vst [vmem:[%s1746_s13 + $0x40] sm:$0xff] %v642_v31  ;;  %v646_v40 = vadd.f32 %v645_v37, %v1736_v11  ;;  %v759_v41 = vadd.f32 %v758_v38, %v1738_v12  ;;  %v647_v42 = vpop.f32.mrb[19].mxu0  ;;  %v760_v43 = vpop.f32.mrb[19].mxu1 }
 0x11e   : > { %v1357_v44 = vpack.c.bf16 %v755_v32, %v644_v35  ;;  %v648_v45 = vadd.f32 %v647_v42, %v1740_v13  ;;  %v1829_v46 = vadd.f32 %v760_v43, %v1732_v5 }
 0x11f   : > { %899 = vst [vmem:[%s1746_s13 + $0x48] sm:$0xff] %v646_v40 }
 0x120   : > { %1010 = vst [vmem:[%s1759_s16 + $0x40] sm:$0xff] %v1357_v44  ;;  %v1358_v47 = vpack.c.bf16 %v759_v41, %v648_v45 }
 0x122   : > { %1011 = vst [vmem:[%s1759_s16 + $0x48] sm:$0xff] %v1358_v47  ;;  %v651_v49 = vpop.f32.mrb[20].mxu0  ;;  %v764_v50 = vpop.f32.mrb[20].mxu1 }
 0x123   : > { %v652_v51 = vadd.f32 %v651_v49, %v1736_v11  ;;  %v765_v52 = vadd.f32 %v764_v50, %v1738_v12  ;;  %v653_v53 = vpop.f32.mrb[21].mxu0  ;;  %v766_v54 = vpop.f32.mrb[21].mxu1 }
 0x124   : > { %v654_v55 = vadd.f32 %v653_v53, %v1740_v13  ;;  %v1838_v56 = vadd.f32 %v766_v54, %v1732_v5  ;;  %v655_v58 = vpop.f32.mrb[22].mxu0  ;;  %v768_v59 = vpop.f32.mrb[22].mxu1 }
 0x125   : > { %900 = vst [vmem:[%s1746_s13 + $0x50] sm:$0xff] %v652_v51  ;;  %v656_v60 = vadd.f32 %v655_v58, %v1736_v11  ;;  %v769_v61 = vadd.f32 %v768_v59, %v1738_v12  ;;  %v657_v62 = vpop.f32.mrb[23].mxu0  ;;  %v770_v63 = vpop.f32.mrb[23].mxu1 }
 0x126   : > { %v1359_v0 = vpack.c.bf16 %v765_v52, %v654_v55  ;;  %v658_v1 = vadd.f32 %v657_v62, %v1740_v13  ;;  %v1845_v2 = vadd.f32 %v770_v63, %v1732_v5 }
 0x127   : > { %901 = vst [vmem:[%s1746_s13 + $0x58] sm:$0xff] %v656_v60 }
 0x128   : > { %1012 = vst [vmem:[%s1759_s16 + $0x50] sm:$0xff] %v1359_v0  ;;  %v1360_v4 = vpack.c.bf16 %v769_v61, %v658_v1 }
 0x12a   : > { %1013 = vst [vmem:[%s1759_s16 + $0x58] sm:$0xff] %v1360_v4  ;;  %v661_v6 = vpop.f32.mrb[24].mxu0  ;;  %v774_v8 = vpop.f32.mrb[24].mxu1 }
 0x12b   : > { %v662_v9 = vadd.f32 %v661_v6, %v1736_v11  ;;  %v775_v10 = vadd.f32 %v774_v8, %v1738_v12  ;;  %v663_v14 = vpop.f32.mrb[25].mxu0  ;;  %v776_v15 = vpop.f32.mrb[25].mxu1 }
 0x12c   : > { %v664_v17 = vadd.f32 %v663_v14, %v1740_v13  ;;  %v1854_v18 = vadd.f32 %v776_v15, %v1732_v5  ;;  %v665_v19 = vpop.f32.mrb[26].mxu0  ;;  %v778_v20 = vpop.f32.mrb[26].mxu1 }
 0x12d   : > { %902 = vst [vmem:[%s1746_s13 + $0x60] sm:$0xff] %v662_v9  ;;  %v666_v22 = vadd.f32 %v665_v19, %v1736_v11  ;;  %v779_v23 = vadd.f32 %v778_v20, %v1738_v12  ;;  %v667_v24 = vpop.f32.mrb[27].mxu0  ;;  %v780_v25 = vpop.f32.mrb[27].mxu1 }
 0x12e   : > { %v1361_v27 = vpack.c.bf16 %v775_v10, %v664_v17  ;;  %v668_v28 = vadd.f32 %v667_v24, %v1740_v13  ;;  %v1861_v29 = vadd.f32 %v780_v25, %v1732_v5 }
 0x12f   : > { %903 = vst [vmem:[%s1746_s13 + $0x68] sm:$0xff] %v666_v22 }
 0x130   : > { %1014 = vst [vmem:[%s1759_s16 + $0x60] sm:$0xff] %v1361_v27  ;;  %v1362_v31 = vpack.c.bf16 %v779_v23, %v668_v28 }
 0x132   : > { %1015 = vst [vmem:[%s1759_s16 + $0x68] sm:$0xff] %v1362_v31  ;;  %v671_v32 = vpop.f32.mrb[28].mxu0  ;;  %v784_v33 = vpop.f32.mrb[28].mxu1 }
 0x133   : > { %v672_v34 = vadd.f32 %v671_v32, %v1736_v11  ;;  %v785_v35 = vadd.f32 %v784_v33, %v1738_v12  ;;  %v673_v37 = vpop.f32.mrb[29].mxu0  ;;  %v786_v38 = vpop.f32.mrb[29].mxu1 }
 0x134   : > { %v674_v40 = vadd.f32 %v673_v37, %v1740_v13  ;;  %v1870_v41 = vadd.f32 %v786_v38, %v1732_v5  ;;  %v675_v42 = vpop.f32.mrb[30].mxu0  ;;  %v788_v43 = vpop.f32.mrb[30].mxu1 }
 0x135   : > { %904 = vst [vmem:[%s1746_s13 + $0x70] sm:$0xff] %v672_v34  ;;  %v676_v44 = vadd.f32 %v675_v42, %v1736_v11  ;;  %v789_v45 = vadd.f32 %v788_v43, %v1738_v12  ;;  %v677_v47 = vpop.f32.mrb[31].mxu0  ;;  %v790_v49 = vpop.f32.mrb[31].mxu1 }
 0x136   : > { %v1363_v50 = vpack.c.bf16 %v785_v35, %v674_v40  ;;  %v678_v51 = vadd.f32 %v677_v47, %v1740_v13  ;;  %v1877_v52 = vadd.f32 %v790_v49, %v1732_v5 }
 0x137   : > { %905 = vst [vmem:[%s1746_s13 + $0x78] sm:$0xff] %v676_v44 }
 0x138   : > { %1016 = vst [vmem:[%s1759_s16 + $0x70] sm:$0xff] %v1363_v50  ;;  %v1364_v53 = vpack.c.bf16 %v789_v45, %v678_v51 }
 0x13a   : > { %1017 = vst [vmem:[%s1759_s16 + $0x78] sm:$0xff] %v1364_v53  ;;  %v1415_v54 = vpop.f32.mrb[32].mxu0  ;;  %v1423_v55 = vpop.f32.mrb[32].mxu1 }
 0x13b   : > { %v836_v58 = vadd.f32 %v1415_v54, %v1734_v7  ;;  %v868_v11 = vadd.f32 %v1423_v55, %v1734_v7  ;;  %v827_v12 = vpop.f32.mrb[33].mxu0  ;;  %v859_v59 = vpop.f32.mrb[33].mxu1 }
 0x13c   : > { %v828_v5 = vadd.f32 %v827_v12, %v1734_v7  ;;  %v860_v13 = vadd.f32 %v859_v59, %v1734_v7  ;;  %v1416_v60 = vpop.f32.mrb[34].mxu0  ;;  %v1424_v61 = vpop.f32.mrb[34].mxu1 }
 0x13d   : > { %v1367_v62 = vpack.c.bf16 %v836_v58, %v1774_v39  ;;  %v1375_v63 = vpack.c.bf16 %v868_v11, %v1838_v56  ;;  %v839_v0 = vadd.f32 %v1416_v60, %v1734_v7  ;;  %v871_v1 = vadd.f32 %v1424_v61, %v1734_v7  ;;  %v830_v4 = vpop.f32.mrb[35].mxu0  ;;  %v862_v6 = vpop.f32.mrb[35].mxu1 }
 0x13e   : > { %v1365_v8 = vpack.c.bf16 %v828_v5, %v1752_v21  ;;  %v1373_v9 = vpack.c.bf16 %v860_v13, %v1822_v36  ;;  %v831_v10 = vadd.f32 %v830_v4, %v1734_v7  ;;  %v863_v39 = vadd.f32 %v862_v6, %v1734_v7 }
 0x13f   : > { %1116 = vst [vmem:[%s1888_s21 + $0x10] sm:$0xff] %v1367_v62  ;;  %1124 = vst [vmem:[%s1888_s21 + $0x50] sm:$0xff] %v1375_v63  ;;  %v1368_v56 = vpack.c.bf16 %v839_v0, %v1781_v48  ;;  %v1376_v14 = vpack.c.bf16 %v871_v1, %v1845_v2 }
 0x140   : > { %1114 = vst [vmem:[%s1888_s21] sm:$0xff] %v1365_v8  ;;  %1122 = vst [vmem:[%s1888_s21 + $0x40] sm:$0xff] %v1373_v9  ;;  %v1366_v15 = vpack.c.bf16 %v831_v10, %v1765_v30  ;;  %v1374_v17 = vpack.c.bf16 %v863_v39, %v1829_v46 }
 0x141   : > { %1117 = vst [vmem:[%s1888_s21 + $0x18] sm:$0xff] %v1368_v56  ;;  %1125 = vst [vmem:[%s1888_s21 + $0x58] sm:$0xff] %v1376_v14 }
 0x142   : > { %1115 = vst [vmem:[%s1888_s21 + $0x8] sm:$0xff] %v1366_v15  ;;  %1123 = vst [vmem:[%s1888_s21 + $0x48] sm:$0xff] %v1374_v17  ;;  %v1419_v21 = vpop.f32.mrb[36].mxu0  ;;  %v1427_v36 = vpop.f32.mrb[36].mxu1 }
 0x143   : > { %v852_v19 = vadd.f32 %v1419_v21, %v1734_v7  ;;  %v884_v20 = vadd.f32 %v1427_v36, %v1734_v7  ;;  %v843_v22 = vpop.f32.mrb[37].mxu0  ;;  %v875_v48 = vpop.f32.mrb[37].mxu1 }
 0x144   : > { %v844_v2 = vadd.f32 %v843_v22, %v1734_v7  ;;  %v876_v30 = vadd.f32 %v875_v48, %v1734_v7  ;;  %v1420_v23 = vpop.f32.mrb[38].mxu0  ;;  %v1428_v46 = vpop.f32.mrb[38].mxu1 }
 0x145   : > { %v1371_v24 = vpack.c.bf16 %v852_v19, %v1806_v16  ;;  %v1379_v25 = vpack.c.bf16 %v884_v20, %v1870_v41  ;;  %v855_v27 = vadd.f32 %v1420_v23, %v1734_v7  ;;  %v887_v28 = vadd.f32 %v1428_v46, %v1734_v7  ;;  %v846_v31 = vpop.f32.mrb[39].mxu0  ;;  %v878_v32 = vpop.f32.mrb[39].mxu1 }
 0x146   : > { %v1369_v33 = vpack.c.bf16 %v844_v2, %v1790_v57  ;;  %v1377_v34 = vpack.c.bf16 %v876_v30, %v1854_v18  ;;  %v847_v35 = vadd.f32 %v846_v31, %v1734_v7  ;;  %v879_v16 = vadd.f32 %v878_v32, %v1734_v7 }
 0x147   : > { %1120 = vst [vmem:[%s1888_s21 + $0x30] sm:$0xff] %v1371_v24  ;;  %1128 = vst [vmem:[%s1888_s21 + $0x70] sm:$0xff] %v1379_v25  ;;  %v1372_v37 = vpack.c.bf16 %v855_v27, %v1813_v26  ;;  %v1380_v38 = vpack.c.bf16 %v887_v28, %v1877_v52 }
 0x148   : > { %1118 = vst [vmem:[%s1888_s21 + $0x20] sm:$0xff] %v1369_v33  ;;  %1126 = vst [vmem:[%s1888_s21 + $0x60] sm:$0xff] %v1377_v34  ;;  %v1370_v40 = vpack.c.bf16 %v847_v35, %v1797_v3  ;;  %v1378_v41 = vpack.c.bf16 %v879_v16, %v1861_v29 }
 0x149   : > { %1121 = vst [vmem:[%s1888_s21 + $0x38] sm:$0xff] %v1372_v37  ;;  %1129 = vst [vmem:[%s1888_s21 + $0x78] sm:$0xff] %v1380_v38 }
 0x14a   : > { %1119 = vst [vmem:[%s1888_s21 + $0x28] sm:$0xff] %v1370_v40  ;;  %1127 = vst [vmem:[%s1888_s21 + $0x68] sm:$0xff] %v1378_v41 }
 0x14b PF: > { %s16_s18 = sadd.s32 1, %s1516_s18  }
 0x14c   : > { %p13_p4 = scmp.ge.s32.totalorder %s16_s18, 5  }
 0x14e   :  { %15 = sbr.rel (!%p13_p4) target bundleno = 1 (0x1), region = 86 }

// kernel: forward_pallas.9
= control target key start
LH: loop header
LB: loop body
LE: loop exit
PB: predicated region body
PF: predicated region fallthrough
CT: control target
= control target key end

     0   :  { %s1098_s18 = smov 0   ;;  %s1307_s0 = inlined_call_operand.vmem [shape: f32[768,8], index: 0, kind: input, shape index: {}]   ;;  %s1308_s1 = inlined_call_operand.vmem [shape: bf16[8,128], index: 1, kind: input, shape index: {}]   ;;  %s1309_s2 = inlined_call_operand.vmem [shape: f32[1,128], index: 2, kind: input, shape index: {}]   ;;  %s1310_s3 = inlined_call_operand.vmem [shape: bf16[128,128], index: 3, kind: input, shape index: {}]   ;;  %s1311_s4 = inlined_call_operand.vmem [shape: f32[1,128], index: 4, kind: input, shape index: {}]   ;;  %s1312_s5 = inlined_call_operand.vmem [shape: f32[768,128], index: 5, kind: output, shape index: {}]  }
   0x1 LB: > { %s867_s19 = sadd.s32 4294967295, %s1066_s18   ;;  %p871_p0 = scmp.ge.s32.totalorder %s1066_s18, 1  ;;  %s1066_s18 = sphi %s1098_s18, %s15_s18  }
   0x2   : > { %p188_p1 = scmp.lt.s32.totalorder %s1066_s18, 4 }
   0x4   : > { %p189_p2 = pnand %p871_p0, %p188_p1 }
   0x5   : > { %v277_v0 = vld [vmem:[%s1308_s1] sm:$0xf] (!%p189_p2)  ;;  %vm334_vm0 = vcmask (!%p189_p2), 1043456   ;;  %s872_s22 = sshll.u32 (!%p189_p2), %s867_s19, 5  ;;  %v1053_v3 = vld [vmem:[%s1310_s3 + $0x8] sm:$0xff] (!%p189_p2)   ;;  %v1054_v4 = vld [vmem:[%s1310_s3 + $0x10] sm:$0xff] (!%p189_p2)  }
   0x6   : > { %192 = sbr.rel (%p189_p2) target bundleno = 516 (0x204), region = 40  ;;  %v1052_v1 = vld [vmem:[%s1310_s3] sm:$0xff] (!%p189_p2)   ;;  %1043 = vmatprep.subr.msk.bf16.mxu0 (!%p189_p2), %vm334_vm0, %v277_v0  ;;  %v336_v2 = vsel (!%p189_p2), %vm334_vm0, %v277_v0, 0  ;;  %p217_p3 = scmp.lt.s32.totalorder (!%p189_p2), %s872_s22, 95  ;;  %vm285_vm1 = vcmask (!%p189_p2), 64512   ;;  %v1055_v14 = vld [vmem:[%s1310_s3 + $0x18] sm:$0xff] (!%p189_p2)  }
   0x7   : > { %946 = vmatpush3.bf16.msra.mxu0 (!%p189_p2), %v336_v2  ;;  %1027 = vmatprep.subr.bf16.mxu1 (!%p189_p2), %v1052_v1  ;;  %v1056_v19 = vld [vmem:[%s1310_s3 + $0x20] sm:$0xff] (!%p189_p2)   ;;  %v1057_v22 = vld [vmem:[%s1310_s3 + $0x28] sm:$0xff] (!%p189_p2)   ;;  %v1058_v56 = vld [vmem:[%s1310_s3 + $0x30] sm:$0xff] (!%p189_p2)  }
   0x8   : > { %979 = vmatprep.subr.bf16.mxu0 (!%p189_p2), %v1052_v1  ;;  %1035 = vmatpush3.bf16.msra.mxu1 (!%p189_p2), %v1052_v1  ;;  %v1059_v57 = vld [vmem:[%s1310_s3 + $0x38] sm:$0xff] (!%p189_p2)   ;;  %v1194_v58 = vld [vmem:[%s1309_s2] ss:$0 sm:$0xff] (!%p189_p2) }
   0x9   : > { %1028 = vmatprep.subr.bf16.mxu1 (!%p189_p2), %v1053_v3 }
   0xc   : > { %1036 = vmatpush3.bf16.msra.mxu1 (!%p189_p2), %v1053_v3 }
   0xd   : > { %s1314_s22 = smov (!%p217_p3, %s872_s22), 95  ;;  %1029 = vmatprep.subr.bf16.mxu1 %v1054_v4 }
   0xe   : > { %s873_s27 = sshll.u32 %s1314_s22, 3 }
   0xf   : > { %s1123_s30 = scalar_lea.vmem %s1307_s0, %s873_s27  ;;  %s1238_s26 = scalar_lea.vmem %s1312_s5, %s873_s27 }
  0x10   : > { %v229_v5 = vld [vmem:[%s1123_s30] sm:$0xff]  ;;  %v230_v6 = vld [vmem:[%s1123_s30 + $0x8] sm:$0xff]  ;;  %v231_v7 = vld [vmem:[%s1123_s30 + $0x10] sm:$0xff]  ;;  %1037 = vmatpush3.bf16.msra.mxu1 %v1054_v4 }
  0x11   : > { %v261_v8 = vpack.c.bf16 %v230_v6, %v229_v5  ;;  %v232_v9 = vld [vmem:[%s1123_s30 + $0x18] sm:$0xff]  ;;  %v233_v10 = vld [vmem:[%s1123_s30 + $0x20] sm:$0xff]  ;;  %v234_v11 = vld [vmem:[%s1123_s30 + $0x28] sm:$0xff]  ;;  %1030 = vmatprep.subr.bf16.mxu1 %v1055_v14 }
  0x12   : > { %v262_v12 = vpack.c.bf16 %v232_v9, %v231_v7  ;;  %v263_v13 = vpack.c.bf16 %v234_v11, %v233_v10  ;;  %v235_v15 = vld [vmem:[%s1123_s30 + $0x30] sm:$0xff]  ;;  %v236_v16 = vld [vmem:[%s1123_s30 + $0x38] sm:$0xff]  ;;  %v237_v17 = vld [vmem:[%s1123_s30 + $0x40] sm:$0xff] }
  0x13   : > { %947 = vmatprep.mubr.msk.bf16.mxu0 %vm285_vm1, %v261_v8  ;;  %v238_v18 = vld [vmem:[%s1123_s30 + $0x48] sm:$0xff]  ;;  %v264_v20 = vpack.c.bf16 %v236_v16, %v235_v15  ;;  %v239_v23 = vld [vmem:[%s1123_s30 + $0x50] sm:$0xff]  ;;  %v240_v24 = vld [vmem:[%s1123_s30 + $0x58] sm:$0xff] }
  0x14   : > { %948 = vmatmul.mubr.msk.bf16.vlgmr.msra.gmra.mrb[0].mxu0 %vm285_vm1, %v262_v12  ;;  %1038 = vmatpush3.bf16.msra.mxu1 %v1055_v14  ;;  %v265_v21 = vpack.c.bf16 %v238_v18, %v237_v17  ;;  %v241_v25 = vld [vmem:[%s1123_s30 + $0x60] sm:$0xff]  ;;  %v242_v26 = vld [vmem:[%s1123_s30 + $0x68] sm:$0xff]  ;;  %v266_v27 = vpack.c.bf16 %v240_v24, %v239_v23  ;;  %v243_v29 = vld [vmem:[%s1123_s30 + $0x70] sm:$0xff] }
  0x15   : > { %951 = vmatprep.mubr.msk.bf16.mxu0 %vm285_vm1, %v263_v13  ;;  %980 = vmatpush3.bf16.msra.mxu0 %v1052_v1  ;;  %v267_v28 = vpack.c.bf16 %v242_v26, %v241_v25  ;;  %v244_v30 = vld [vmem:[%s1123_s30 + $0x78] sm:$0xff]  ;;  %v245_v31 = vld [vmem:[%s1123_s30 + $0x80] sm:$0xff]  ;;  %v246_v32 = vld [vmem:[%s1123_s30 + $0x88] sm:$0xff] }
  0x16   : > { %981 = vmatprep.subr.bf16.mxu0 %v1053_v3  ;;  %1031 = vmatprep.subr.bf16.mxu1 %v1056_v19  ;;  %v268_v33 = vpack.c.bf16 %v244_v30, %v243_v29  ;;  %v269_v34 = vpack.c.bf16 %v246_v32, %v245_v31  ;;  %v247_v35 = vld [vmem:[%s1123_s30 + $0x90] sm:$0xff]  ;;  %v248_v36 = vld [vmem:[%s1123_s30 + $0x98] sm:$0xff]  ;;  %v249_v37 = vld [vmem:[%s1123_s30 + $0xa0] sm:$0xff] }
  0x17   : > { %v250_v38 = vld [vmem:[%s1123_s30 + $0xa8] sm:$0xff]  ;;  %v270_v39 = vpack.c.bf16 %v248_v36, %v247_v35  ;;  %v251_v41 = vld [vmem:[%s1123_s30 + $0xb0] sm:$0xff]  ;;  %v252_v42 = vld [vmem:[%s1123_s30 + $0xb8] sm:$0xff] }
  0x18   : > { %1039 = vmatpush3.bf16.msra.mxu1 %v1056_v19  ;;  %v271_v40 = vpack.c.bf16 %v250_v38, %v249_v37  ;;  %v253_v43 = vld [vmem:[%s1123_s30 + $0xc0] sm:$0xff]  ;;  %v254_v44 = vld [vmem:[%s1123_s30 + $0xc8] sm:$0xff]  ;;  %v272_v45 = vpack.c.bf16 %v252_v42, %v251_v41  ;;  %v255_v47 = vld [vmem:[%s1123_s30 + $0xd0] sm:$0xff] }
  0x19   : > { %982 = vmatpush3.bf16.msra.mxu0 %v1053_v3  ;;  %1032 = vmatprep.subr.bf16.mxu1 %v1057_v22  ;;  %v273_v46 = vpack.c.bf16 %v254_v44, %v253_v43  ;;  %v256_v48 = vld [vmem:[%s1123_s30 + $0xd8] sm:$0xff]  ;;  %v257_v49 = vld [vmem:[%s1123_s30 + $0xe0] sm:$0xff]  ;;  %v258_v50 = vld [vmem:[%s1123_s30 + $0xe8] sm:$0xff] }
  0x1a   : > { %983 = vmatprep.subr.bf16.mxu0 %v1054_v4  ;;  %v274_v51 = vpack.c.bf16 %v256_v48, %v255_v47  ;;  %v275_v52 = vpack.c.bf16 %v258_v50, %v257_v49  ;;  %v259_v53 = vld [vmem:[%s1123_s30 + $0xf0] sm:$0xff]  ;;  %v260_v54 = vld [vmem:[%s1123_s30 + $0xf8] sm:$0xff] }
  0x1b   : > { %v276_v55 = vpack.c.bf16 %v260_v54, %v259_v53 }
  0x1c   : > { %952 = vmatmul.mubr.msk.bf16.gmra.mrb[4].mxu0 %vm285_vm1, %v264_v20  ;;  %1040 = vmatpush3.bf16.msra.mxu1 %v1057_v22 }
  0x1d   : > { %955 = vmatprep.mubr.msk.bf16.mxu0 %vm285_vm1, %v265_v21  ;;  %984 = vmatpush3.bf16.msra.mxu0 %v1054_v4 }
  0x1e   : > { %985 = vmatprep.subr.bf16.mxu0 %v1055_v14  ;;  %1033 = vmatprep.subr.bf16.mxu1 %v1058_v56 }
  0x20   : > { %1041 = vmatpush3.bf16.msra.mxu1 %v1058_v56 }
  0x21   : > { %986 = vmatpush3.bf16.msra.mxu0 %v1055_v14  ;;  %1034 = vmatprep.subr.bf16.mxu1 %v1059_v57 }
  0x22   : > { %987 = vmatprep.subr.bf16.mxu0 %v1056_v19 }
  0x24   : > { %956 = vmatmul.mubr.msk.bf16.gmra.mrb[8].mxu0 %vm285_vm1, %v266_v27  ;;  %1042 = vmatpush3.bf16.msra.mxu1 %v1059_v57 }
  0x25   : > { %959 = vmatprep.mubr.msk.bf16.mxu0 %vm285_vm1, %v267_v28  ;;  %988 = vmatpush3.bf16.msra.mxu0 %v1056_v19 }
  0x26   : > { %989 = vmatprep.subr.bf16.mxu0 %v1057_v22 }
  0x29   : > { %990 = vmatpush3.bf16.msra.mxu0 %v1057_v22 }
  0x2a   : > { %991 = vmatprep.subr.bf16.mxu0 %v1058_v56 }
  0x2c   : > { %960 = vmatmul.mubr.msk.bf16.gmra.mrb[12].mxu0 %vm285_vm1, %v268_v33 }
  0x2d   : > { %963 = vmatprep.mubr.msk.bf16.mxu0 %vm285_vm1, %v269_v34  ;;  %992 = vmatpush3.bf16.msra.mxu0 %v1058_v56 }
  0x2e   : > { %993 = vmatprep.subr.bf16.mxu0 %v1059_v57 }
  0x31   : > { %994 = vmatpush3.bf16.msra.mxu0 %v1059_v57 }
  0x34   : > { %964 = vmatmul.mubr.msk.bf16.gmra.mrb[16].mxu0 %vm285_vm1, %v270_v39 }
  0x35   : > { %967 = vmatprep.mubr.msk.bf16.mxu0 %vm285_vm1, %v271_v40 }
  0x3c   : > { %968 = vmatmul.mubr.msk.bf16.gmra.mrb[20].mxu0 %vm285_vm1, %v272_v45 }
  0x3d   : > { %971 = vmatprep.mubr.msk.bf16.mxu0 %vm285_vm1, %v273_v46 }
  0x44   : > { %972 = vmatmul.mubr.msk.bf16.gmra.mrb[24].mxu0 %vm285_vm1, %v274_v51 }
  0x45   : > { %975 = vmatprep.mubr.msk.bf16.mxu0 %vm285_vm1, %v275_v52 }
  0x4c   : > { %976 = vmatmul.mubr.msk.bf16.gmra.mrb[28].mxu0 %vm285_vm1, %v276_v55 }
  0xe7   : > { %v949_v59 = vpop.f32.mrb[0].mxu0 }
  0xe8   : > { %v381_v60 = vadd.f32 %v949_v59, %v1194_v58  ;;  %v372_v61 = vpop.f32.mrb[1].mxu0 }
  0xe9   : > { %v373_v62 = vadd.f32 %v1194_v58, %v372_v61  ;;  %v950_v63 = vpop.f32.mrb[2].mxu0 }
  0xea   : > { %v384_v0 = vadd.f32 %v950_v63, %v1194_v58  ;;  %v375_v1 = vpop.f32.mrb[3].mxu0  ;;  %v501_v3 = vmax.f32 %v381_v60, 0.0 }
  0xeb   : > { %v376_v2 = vadd.f32 %v1194_v58, %v375_v1  ;;  %v499_v5 = vmax.f32 %v373_v62, 0.0 }
  0xec   : > { %v502_v4 = vmax.f32 %v384_v0, 0.0 }
  0xed   : > { %v500_v6 = vmax.f32 %v376_v2, 0.0 }
  0xee   : > { %v532_v7 = vpack.c.bf16 %v502_v4, %v501_v3 }
  0xef   : > { %v531_v8 = vpack.c.bf16 %v500_v6, %v499_v5  ;;  %v953_v9 = vpop.f32.mrb[4].mxu0 }
  0xf0   : > { %v397_v10 = vadd.f32 %v953_v9, %v1194_v58  ;;  %v388_v11 = vpop.f32.mrb[5].mxu0 }
  0xf1   : > { %v389_v12 = vadd.f32 %v1194_v58, %v388_v11  ;;  %v954_v13 = vpop.f32.mrb[6].mxu0  ;;  %995 = vmatprep.mubr.bf16.mxu0 %v531_v8 }
  0xf2   : > { %v400_v14 = vadd.f32 %v954_v13, %v1194_v58  ;;  %v391_v15 = vpop.f32.mrb[7].mxu0  ;;  %996 = vmatmul.mubr.bf16.vlgmr.msra.gmra.mrb[32].mxu0 %v532_v7  ;;  %v505_v17 = vmax.f32 %v397_v10, 0.0 }
  0xf3   : > { %v392_v16 = vadd.f32 %v1194_v58, %v391_v15  ;;  %v503_v19 = vmax.f32 %v389_v12, 0.0 }
  0xf4   : > { %v506_v18 = vmax.f32 %v400_v14, 0.0 }
  0xf5   : > { %v504_v20 = vmax.f32 %v392_v16, 0.0 }
  0xf6   : > { %v534_v21 = vpack.c.bf16 %v506_v18, %v505_v17 }
  0xf7   : > { %v957_v22 = vpop.f32.mrb[8].mxu0  ;;  %v533_v23 = vpack.c.bf16 %v504_v20, %v503_v19 }
  0xf8   : > { %v413_v24 = vadd.f32 %v957_v22, %v1194_v58  ;;  %v404_v25 = vpop.f32.mrb[9].mxu0 }
  0xf9   : > { %v405_v26 = vadd.f32 %v1194_v58, %v404_v25  ;;  %v958_v27 = vpop.f32.mrb[10].mxu0  ;;  %999 = vmatprep.mubr.bf16.mxu1 %v533_v23 }
  0xfa   : > { %v416_v28 = vadd.f32 %v958_v27, %v1194_v58  ;;  %v407_v29 = vpop.f32.mrb[11].mxu0  ;;  %1000 = vmatmul.mubr.bf16.vlgmr.msra.gmra.mrb[0].mxu1 %v534_v21  ;;  %v509_v31 = vmax.f32 %v413_v24, 0.0 }
  0xfb   : > { %v408_v30 = vadd.f32 %v1194_v58, %v407_v29  ;;  %v507_v33 = vmax.f32 %v405_v26, 0.0 }
  0xfc   : > { %v510_v32 = vmax.f32 %v416_v28, 0.0 }
  0xfd   : > { %v508_v34 = vmax.f32 %v408_v30, 0.0 }
  0xfe   : > { %v536_v35 = vpack.c.bf16 %v510_v32, %v509_v31 }
  0xff   : > { %v535_v36 = vpack.c.bf16 %v508_v34, %v507_v33  ;;  %v961_v37 = vpop.f32.mrb[12].mxu0 }
 0x100   : > { %v429_v38 = vadd.f32 %v961_v37, %v1194_v58  ;;  %v420_v39 = vpop.f32.mrb[13].mxu0 }
 0x101   : > { %v421_v40 = vadd.f32 %v1194_v58, %v420_v39  ;;  %v962_v41 = vpop.f32.mrb[14].mxu0  ;;  %1003 = vmatprep.mubr.bf16.mxu1 %v535_v36 }
 0x102   : > { %v432_v42 = vadd.f32 %v962_v41, %v1194_v58  ;;  %v423_v43 = vpop.f32.mrb[15].mxu0  ;;  %1004 = vmatmul.mubr.bf16.gmra.mrb[4].mxu1 %v536_v35  ;;  %v513_v45 = vmax.f32 %v429_v38, 0.0 }
 0x103   : > { %v424_v44 = vadd.f32 %v1194_v58, %v423_v43  ;;  %v511_v47 = vmax.f32 %v421_v40, 0.0 }
 0x104   : > { %v514_v46 = vmax.f32 %v432_v42, 0.0 }
 0x105   : > { %v512_v48 = vmax.f32 %v424_v44, 0.0  ;;  %v1231_v44 = vld [vmem:[%s1311_s4] ss:$0 sm:$0xff] }
 0x106   : > { %v538_v49 = vpack.c.bf16 %v514_v46, %v513_v45 }
 0x107   : > { %v537_v50 = vpack.c.bf16 %v512_v48, %v511_v47  ;;  %v965_v51 = vpop.f32.mrb[16].mxu0 }
 0x108   : > { %v445_v52 = vadd.f32 %v965_v51, %v1194_v58  ;;  %v436_v53 = vpop.f32.mrb[17].mxu0 }
 0x109   : > { %v437_v54 = vadd.f32 %v1194_v58, %v436_v53  ;;  %v966_v55 = vpop.f32.mrb[18].mxu0  ;;  %1007 = vmatprep.mubr.bf16.mxu1 %v537_v50 }
 0x10a   : > { %v448_v56 = vadd.f32 %v966_v55, %v1194_v58  ;;  %v439_v57 = vpop.f32.mrb[19].mxu0  ;;  %1008 = vmatmul.mubr.bf16.gmra.mrb[8].mxu1 %v538_v49  ;;  %v517_v60 = vmax.f32 %v445_v52, 0.0 }
 0x10b   : > { %v440_v59 = vadd.f32 %v1194_v58, %v439_v57  ;;  %v515_v62 = vmax.f32 %v437_v54, 0.0 }
 0x10c   : > { %v518_v61 = vmax.f32 %v448_v56, 0.0 }
 0x10d   : > { %v516_v63 = vmax.f32 %v440_v59, 0.0 }
 0x10e   : > { %v540_v0 = vpack.c.bf16 %v518_v61, %v517_v60 }
 0x10f   : > { %v539_v1 = vpack.c.bf16 %v516_v63, %v515_v62  ;;  %v969_v2 = vpop.f32.mrb[20].mxu0 }
 0x110   : > { %v461_v3 = vadd.f32 %v969_v2, %v1194_v58  ;;  %v452_v4 = vpop.f32.mrb[21].mxu0 }
 0x111   : > { %v453_v5 = vadd.f32 %v1194_v58, %v452_v4  ;;  %v970_v6 = vpop.f32.mrb[22].mxu0  ;;  %1011 = vmatprep.mubr.bf16.mxu1 %v539_v1 }
 0x112   : > { %v464_v7 = vadd.f32 %v970_v6, %v1194_v58  ;;  %v455_v8 = vpop.f32.mrb[23].mxu0  ;;  %1012 = vmatmul.mubr.bf16.gmra.mrb[12].mxu1 %v540_v0  ;;  %v521_v10 = vmax.f32 %v461_v3, 0.0 }
 0x113   : > { %v456_v9 = vadd.f32 %v1194_v58, %v455_v8  ;;  %v519_v12 = vmax.f32 %v453_v5, 0.0 }
 0x114   : > { %v522_v11 = vmax.f32 %v464_v7, 0.0 }
 0x115   : > { %v520_v13 = vmax.f32 %v456_v9, 0.0 }
 0x116   : > { %v542_v14 = vpack.c.bf16 %v522_v11, %v521_v10 }
 0x117   : > { %v541_v15 = vpack.c.bf16 %v520_v13, %v519_v12  ;;  %v973_v16 = vpop.f32.mrb[24].mxu0 }
 0x118   : > { %v477_v17 = vadd.f32 %v973_v16, %v1194_v58  ;;  %v468_v18 = vpop.f32.mrb[25].mxu0 }
 0x119   : > { %v469_v19 = vadd.f32 %v1194_v58, %v468_v18  ;;  %v974_v20 = vpop.f32.mrb[26].mxu0  ;;  %1015 = vmatprep.mubr.bf16.mxu1 %v541_v15 }
 0x11a   : > { %v480_v21 = vadd.f32 %v974_v20, %v1194_v58  ;;  %v471_v22 = vpop.f32.mrb[27].mxu0  ;;  %1016 = vmatmul.mubr.bf16.gmra.mrb[16].mxu1 %v542_v14  ;;  %v525_v24 = vmax.f32 %v477_v17, 0.0 }
 0x11b   : > { %v472_v23 = vadd.f32 %v1194_v58, %v471_v22  ;;  %v523_v26 = vmax.f32 %v469_v19, 0.0 }
 0x11c   : > { %v526_v25 = vmax.f32 %v480_v21, 0.0 }
 0x11d   : > { %v524_v27 = vmax.f32 %v472_v23, 0.0 }
 0x11e   : > { %v544_v28 = vpack.c.bf16 %v526_v25, %v525_v24 }
 0x11f   : > { %v543_v29 = vpack.c.bf16 %v524_v27, %v523_v26  ;;  %v977_v30 = vpop.f32.mrb[28].mxu0 }
 0x120   : > { %v493_v31 = vadd.f32 %v977_v30, %v1194_v58  ;;  %v484_v32 = vpop.f32.mrb[29].mxu0 }
 0x121   : > { %v485_v33 = vadd.f32 %v1194_v58, %v484_v32  ;;  %v978_v34 = vpop.f32.mrb[30].mxu0  ;;  %1019 = vmatprep.mubr.bf16.mxu1 %v543_v29 }
 0x122   : > { %v496_v35 = vadd.f32 %v978_v34, %v1194_v58  ;;  %v487_v36 = vpop.f32.mrb[31].mxu0  ;;  %1020 = vmatmul.mubr.bf16.gmra.mrb[20].mxu1 %v544_v28  ;;  %v529_v38 = vmax.f32 %v493_v31, 0.0 }
 0x123   : > { %v488_v37 = vadd.f32 %v1194_v58, %v487_v36  ;;  %v527_v40 = vmax.f32 %v485_v33, 0.0 }
 0x124   : > { %v530_v39 = vmax.f32 %v496_v35, 0.0 }
 0x125   : > { %v528_v41 = vmax.f32 %v488_v37, 0.0 }
 0x126   : > { %v546_v42 = vpack.c.bf16 %v530_v39, %v529_v38 }
 0x127   : > { %v545_v43 = vpack.c.bf16 %v528_v41, %v527_v40 }
 0x129   : > { %1023 = vmatprep.mubr.bf16.mxu1 %v545_v43 }
 0x12a   : > { %1024 = vmatmul.mubr.bf16.gmra.mrb[24].mxu1 %v546_v42 }
 0x1c5   : > { %v997_v58 = vpop.f32.mrb[32].mxu0 }
 0x1c6   : > { %v661_v45 = vadd.f32 %v997_v58, %v1231_v44  ;;  %v652_v46 = vpop.f32.mrb[33].mxu0 }
 0x1c7   : > { %v653_v47 = vadd.f32 %v1231_v44, %v652_v46  ;;  %v998_v48 = vpop.f32.mrb[34].mxu0 }
 0x1c8   : > { %781 = vst [vmem:[%s1238_s26 + $0x10] sm:$0xff] %v661_v45  ;;  %v664_v49 = vadd.f32 %v998_v48, %v1231_v44  ;;  %v655_v50 = vpop.f32.mrb[35].mxu0 }
 0x1c9   : > { %779 = vst [vmem:[%s1238_s26] sm:$0xff] %v653_v47  ;;  %v656_v51 = vadd.f32 %v1231_v44, %v655_v50 }
 0x1ca   : > { %782 = vst [vmem:[%s1238_s26 + $0x18] sm:$0xff] %v664_v49 }
 0x1cb   : > { %780 = vst [vmem:[%s1238_s26 + $0x8] sm:$0xff] %v656_v51 }
 0x1cd   : > { %v1001_v52 = vpop.f32.mrb[0].mxu1 }
 0x1ce   : > { %v677_v53 = vadd.f32 %v1001_v52, %v1231_v44  ;;  %v668_v54 = vpop.f32.mrb[1].mxu1 }
 0x1cf   : > { %v669_v55 = vadd.f32 %v1231_v44, %v668_v54  ;;  %v1002_v56 = vpop.f32.mrb[2].mxu1 }
 0x1d0   : > { %785 = vst [vmem:[%s1238_s26 + $0x30] sm:$0xff] %v677_v53  ;;  %v680_v57 = vadd.f32 %v1002_v56, %v1231_v44  ;;  %v671_v59 = vpop.f32.mrb[3].mxu1 }
 0x1d1   : > { %783 = vst [vmem:[%s1238_s26 + $0x20] sm:$0xff] %v669_v55  ;;  %v672_v60 = vadd.f32 %v1231_v44, %v671_v59 }
 0x1d2   : > { %786 = vst [vmem:[%s1238_s26 + $0x38] sm:$0xff] %v680_v57 }
 0x1d3   : > { %784 = vst [vmem:[%s1238_s26 + $0x28] sm:$0xff] %v672_v60 }
 0x1d5   : > { %v1005_v61 = vpop.f32.mrb[4].mxu1 }
 0x1d6   : > { %v693_v62 = vadd.f32 %v1005_v61, %v1231_v44  ;;  %v684_v63 = vpop.f32.mrb[5].mxu1 }
 0x1d7   : > { %v685_v0 = vadd.f32 %v1231_v44, %v684_v63  ;;  %v1006_v1 = vpop.f32.mrb[6].mxu1 }
 0x1d8   : > { %789 = vst [vmem:[%s1238_s26 + $0x50] sm:$0xff] %v693_v62  ;;  %v696_v2 = vadd.f32 %v1006_v1, %v1231_v44  ;;  %v687_v3 = vpop.f32.mrb[7].mxu1 }
 0x1d9   : > { %787 = vst [vmem:[%s1238_s26 + $0x40] sm:$0xff] %v685_v0  ;;  %v688_v4 = vadd.f32 %v1231_v44, %v687_v3 }
 0x1da   : > { %790 = vst [vmem:[%s1238_s26 + $0x58] sm:$0xff] %v696_v2 }
 0x1db   : > { %788 = vst [vmem:[%s1238_s26 + $0x48] sm:$0xff] %v688_v4 }
 0x1dd   : > { %v1009_v5 = vpop.f32.mrb[8].mxu1 }
 0x1de   : > { %v709_v6 = vadd.f32 %v1009_v5, %v1231_v44  ;;  %v700_v7 = vpop.f32.mrb[9].mxu1 }
 0x1df   : > { %v701_v8 = vadd.f32 %v1231_v44, %v700_v7  ;;  %v1010_v9 = vpop.f32.mrb[10].mxu1 }
 0x1e0   : > { %793 = vst [vmem:[%s1238_s26 + $0x70] sm:$0xff] %v709_v6  ;;  %v712_v10 = vadd.f32 %v1010_v9, %v1231_v44  ;;  %v703_v11 = vpop.f32.mrb[11].mxu1 }
 0x1e1   : > { %791 = vst [vmem:[%s1238_s26 + $0x60] sm:$0xff] %v701_v8  ;;  %v704_v12 = vadd.f32 %v1231_v44, %v703_v11 }
 0x1e2   : > { %794 = vst [vmem:[%s1238_s26 + $0x78] sm:$0xff] %v712_v10 }
 0x1e3   : > { %792 = vst [vmem:[%s1238_s26 + $0x68] sm:$0xff] %v704_v12 }
 0x1e5   : > { %v1013_v13 = vpop.f32.mrb[12].mxu1 }
 0x1e6   : > { %v725_v14 = vadd.f32 %v1013_v13, %v1231_v44  ;;  %v716_v15 = vpop.f32.mrb[13].mxu1 }
 0x1e7   : > { %v717_v16 = vadd.f32 %v1231_v44, %v716_v15  ;;  %v1014_v17 = vpop.f32.mrb[14].mxu1 }
 0x1e8   : > { %797 = vst [vmem:[%s1238_s26 + $0x90] sm:$0xff] %v725_v14  ;;  %v728_v18 = vadd.f32 %v1014_v17, %v1231_v44  ;;  %v719_v19 = vpop.f32.mrb[15].mxu1 }
 0x1e9   : > { %795 = vst [vmem:[%s1238_s26 + $0x80] sm:$0xff] %v717_v16  ;;  %v720_v20 = vadd.f32 %v1231_v44, %v719_v19 }
 0x1ea   : > { %798 = vst [vmem:[%s1238_s26 + $0x98] sm:$0xff] %v728_v18 }
 0x1eb   : > { %796 = vst [vmem:[%s1238_s26 + $0x88] sm:$0xff] %v720_v20 }
 0x1ed   : > { %v1017_v21 = vpop.f32.mrb[16].mxu1 }
 0x1ee   : > { %v741_v22 = vadd.f32 %v1017_v21, %v1231_v44  ;;  %v732_v23 = vpop.f32.mrb[17].mxu1 }
 0x1ef   : > { %v733_v24 = vadd.f32 %v1231_v44, %v732_v23  ;;  %v1018_v25 = vpop.f32.mrb[18].mxu1 }
 0x1f0   : > { %801 = vst [vmem:[%s1238_s26 + $0xb0] sm:$0xff] %v741_v22  ;;  %v744_v26 = vadd.f32 %v1018_v25, %v1231_v44  ;;  %v735_v27 = vpop.f32.mrb[19].mxu1 }
 0x1f1   : > { %799 = vst [vmem:[%s1238_s26 + $0xa0] sm:$0xff] %v733_v24  ;;  %v736_v28 = vadd.f32 %v1231_v44, %v735_v27 }
 0x1f2   : > { %802 = vst [vmem:[%s1238_s26 + $0xb8] sm:$0xff] %v744_v26 }
 0x1f3   : > { %800 = vst [vmem:[%s1238_s26 + $0xa8] sm:$0xff] %v736_v28 }
 0x1f5   : > { %v1021_v29 = vpop.f32.mrb[20].mxu1 }
 0x1f6   : > { %v757_v30 = vadd.f32 %v1021_v29, %v1231_v44  ;;  %v748_v31 = vpop.f32.mrb[21].mxu1 }
 0x1f7   : > { %v749_v32 = vadd.f32 %v1231_v44, %v748_v31  ;;  %v1022_v33 = vpop.f32.mrb[22].mxu1 }
 0x1f8   : > { %805 = vst [vmem:[%s1238_s26 + $0xd0] sm:$0xff] %v757_v30  ;;  %v760_v34 = vadd.f32 %v1022_v33, %v1231_v44  ;;  %v751_v35 = vpop.f32.mrb[23].mxu1 }
 0x1f9   : > { %803 = vst [vmem:[%s1238_s26 + $0xc0] sm:$0xff] %v749_v32  ;;  %v752_v36 = vadd.f32 %v1231_v44, %v751_v35 }
 0x1fa   : > { %806 = vst [vmem:[%s1238_s26 + $0xd8] sm:$0xff] %v760_v34 }
 0x1fb   : > { %804 = vst [vmem:[%s1238_s26 + $0xc8] sm:$0xff] %v752_v36 }
 0x1fd   : > { %v1025_v37 = vpop.f32.mrb[24].mxu1 }
 0x1fe   : > { %v773_v38 = vadd.f32 %v1025_v37, %v1231_v44  ;;  %v764_v39 = vpop.f32.mrb[25].mxu1 }
 0x1ff   : > { %v765_v40 = vadd.f32 %v1231_v44, %v764_v39  ;;  %v1026_v41 = vpop.f32.mrb[26].mxu1 }
 0x200   : > { %809 = vst [vmem:[%s1238_s26 + $0xf0] sm:$0xff] %v773_v38  ;;  %v776_v42 = vadd.f32 %v1026_v41, %v1231_v44  ;;  %v767_v43 = vpop.f32.mrb[27].mxu1 }
 0x201   : > { %807 = vst [vmem:[%s1238_s26 + $0xe0] sm:$0xff] %v765_v40  ;;  %v768_v58 = vadd.f32 %v1231_v44, %v767_v43 }
 0x202   : > { %810 = vst [vmem:[%s1238_s26 + $0xf8] sm:$0xff] %v776_v42 }
 0x203   : > { %808 = vst [vmem:[%s1238_s26 + $0xe8] sm:$0xff] %v768_v58 }
 0x204 PF: > { %s15_s18 = sadd.s32 1, %s1066_s18  }
 0x205   : > { %p12_p4 = scmp.ge.s32.totalorder %s15_s18, 5  }
 0x207   :  { %14 = sbr.rel (!%p12_p4) target bundleno = 1 (0x1), region = 70 }

// kernel: forward_pallas.14
= control target key start
LH: loop header
LB: loop body
LE: loop exit
PB: predicated region body
PF: predicated region fallthrough
CT: control target
= control target key end

     0   :  { %s619_s12 = smov 0   ;;  %s787_s0 = inlined_call_operand.vmem [shape: f32[384,128], index: 0, kind: input, shape index: {}]   ;;  %s788_s1 = inlined_call_operand.vmem [shape: bf16[128,256], index: 1, kind: input, shape index: {}]   ;;  %s789_s2 = inlined_call_operand.vmem [shape: f32[1,256], index: 2, kind: input, shape index: {}]   ;;  %s790_s3 = inlined_call_operand.vmem [shape: f32[384,256], index: 3, kind: output, shape index: {}]  }
   0x1 LB: > { %s512_s13 = sadd.s32 4294967295, %s596_s12   ;;  %p516_p0 = scmp.ge.s32.totalorder %s596_s12, 1  ;;  %s596_s12 = sphi %s619_s12, %s13_s12  }
   0x2   : > { %p138_p1 = scmp.lt.s32.totalorder %s596_s12, 4 }
   0x4   : > { %p139_p2 = pnand %p516_p0, %p138_p1 }
   0x5   : > { %v566_v0 = vld [vmem:[%s788_s1 + $0x4] ss:$8 sps:$4 sm:$0xff] (!%p139_p2)   ;;  %v568_v1 = vld [vmem:[%s788_s1] ss:$8 sps:$4 sm:$0xff] (!%p139_p2)   ;;  %v598_v2 = vmov (!%p139_p2), 0   ;;  %s517_s28 = sshll.u32 (!%p139_p2), %s512_s13, 4  ;;  %v219_v41 = vlaneseq (!%p139_p2) }
   0x6   : > { %142 = sbr.rel (%p139_p2) target bundleno = 281 (0x119), region = 32  ;;  %341 = vmatprep.mubr.bf16.mxu0 (!%p139_p2), %v598_v2  ;;  %381 = vmatprep.mubr.bf16.mxu1 (!%p139_p2), %v598_v2  ;;  %v569_v3 = vld [vmem:[%s788_s1 + $0x14] ss:$8 sps:$4 sm:$0xff] (!%p139_p2)   ;;  %v571_v4 = vld [vmem:[%s788_s1 + $0x10] ss:$8 sps:$4 sm:$0xff] (!%p139_p2)   ;;  %p164_p3 = scmp.lt.s32.totalorder (!%p139_p2), %s517_s28, 47 }
   0x7   : > { %309 = vmatprep.subr.bf16.mxu0 (!%p139_p2), %v566_v0  ;;  %541 = vmatprep.subr.bf16.mxu1 (!%p139_p2), %v566_v0  ;;  %v572_v5 = vld [vmem:[%s788_s1 + $0x24] ss:$8 sps:$4 sm:$0xff] (!%p139_p2)   ;;  %v574_v6 = vld [vmem:[%s788_s1 + $0x20] ss:$8 sps:$4 sm:$0xff] (!%p139_p2)   ;;  %v575_v7 = vld [vmem:[%s788_s1 + $0x34] ss:$8 sps:$4 sm:$0xff] (!%p139_p2)  }
   0x8   : > { %310 = vmatpush1.bf16.msra.mxu0 (!%p139_p2), %v568_v1  ;;  %549 = vmatpush1.bf16.msra.mxu1 (!%p139_p2), %v568_v1  ;;  %v577_v8 = vld [vmem:[%s788_s1 + $0x30] ss:$8 sps:$4 sm:$0xff] (!%p139_p2)   ;;  %v578_v9 = vld [vmem:[%s788_s1 + $0x44] ss:$8 sps:$4 sm:$0xff] (!%p139_p2)   ;;  %v580_v10 = vld [vmem:[%s788_s1 + $0x40] ss:$8 sps:$4 sm:$0xff] (!%p139_p2)  }
   0x9   : > { %311 = vmatprep.subr.bf16.mxu0 (!%p139_p2), %v569_v3  ;;  %542 = vmatprep.subr.bf16.mxu1 (!%p139_p2), %v569_v3  ;;  %v581_v11 = vld [vmem:[%s788_s1 + $0x54] ss:$8 sps:$4 sm:$0xff] (!%p139_p2)   ;;  %v583_v12 = vld [vmem:[%s788_s1 + $0x50] ss:$8 sps:$4 sm:$0xff] (!%p139_p2)   ;;  %v584_v13 = vld [vmem:[%s788_s1 + $0x64] ss:$8 sps:$4 sm:$0xff] (!%p139_p2)  }
   0xa   : > { %v586_v14 = vld [vmem:[%s788_s1 + $0x60] ss:$8 sps:$4 sm:$0xff] (!%p139_p2)   ;;  %v587_v15 = vld [vmem:[%s788_s1 + $0x74] ss:$8 sps:$4 sm:$0xff] (!%p139_p2)   ;;  %v589_v16 = vld [vmem:[%s788_s1 + $0x70] ss:$8 sps:$4 sm:$0xff] (!%p139_p2)  }
   0xb   : > { %v220_v42 = vshrl.u32 (!%p139_p2), %v219_v41, 7  ;;  %v217_v44 = vld [vmem:[%s789_s2] sm:$0x3] (!%p139_p2) }
   0xc   : > { %312 = vmatpush1.bf16.msra.mxu0 (!%p139_p2), %v571_v4  ;;  %550 = vmatpush1.bf16.msra.mxu1 (!%p139_p2), %v571_v4 }
   0xd   : > { %313 = vmatprep.subr.bf16.mxu0 %v572_v5  ;;  %543 = vmatprep.subr.bf16.mxu1 %v572_v5  ;;  %s792_s28 = smov (!%p164_p3, %s517_s28), 47  ;;  %v221_v43 = vsub.s32 0, %v220_v42  ;;  %v225_v45 = vsub.s32 1, %v220_v42 }
   0xe   : > { %s518_s15 = sshll.u32 %s792_s28, 3  ;;  %s540_s27 = sshll.u32 %s792_s28, 4 }
   0xf   : > { %s677_s20 = scalar_lea.vmem %s787_s0, %s518_s15  ;;  %v711_v46 = vrot.slane %v217_v44, %v221_v43  ;;  %v713_v47 = vrot.slane %v217_v44, %v225_v45  ;;  %s718_s4 = scalar_lea.vmem %s790_s3, %s540_s27 }
  0x10   : > { %314 = vmatpush1.bf16.msra.mxu0 %v574_v6  ;;  %551 = vmatpush1.bf16.msra.mxu1 %v574_v6  ;;  %v177_v17 = vld [vmem:[%s677_s20] sm:$0xff]  ;;  %v178_v18 = vld [vmem:[%s677_s20 + $0x8] sm:$0xff]  ;;  %v179_v23 = vld [vmem:[%s677_s20 + $0x10] sm:$0xff] }
  0x11   : > { %315 = vmatprep.subr.bf16.mxu0 %v575_v7  ;;  %544 = vmatprep.subr.bf16.mxu1 %v575_v7  ;;  %v185_v19 = vld [vmem:[%s677_s20 + $0x40] sm:$0xff]  ;;  %v186_v20 = vld [vmem:[%s677_s20 + $0x48] sm:$0xff]  ;;  %v193_v21 = vpack.c.bf16 %v178_v18, %v177_v17  ;;  %v180_v24 = vld [vmem:[%s677_s20 + $0x18] sm:$0xff] }
  0x12   : > { %v197_v22 = vpack.c.bf16 %v186_v20, %v185_v19  ;;  %v187_v25 = vld [vmem:[%s677_s20 + $0x50] sm:$0xff]  ;;  %v188_v26 = vld [vmem:[%s677_s20 + $0x58] sm:$0xff]  ;;  %v194_v27 = vpack.c.bf16 %v180_v24, %v179_v23  ;;  %v181_v29 = vld [vmem:[%s677_s20 + $0x20] sm:$0xff] }
  0x13   : > { %v198_v28 = vpack.c.bf16 %v188_v26, %v187_v25  ;;  %v182_v30 = vld [vmem:[%s677_s20 + $0x28] sm:$0xff]  ;;  %v189_v31 = vld [vmem:[%s677_s20 + $0x60] sm:$0xff]  ;;  %v183_v35 = vld [vmem:[%s677_s20 + $0x30] sm:$0xff] }
  0x14   : > { %316 = vmatpush1.bf16.msra.mxu0 %v577_v8  ;;  %552 = vmatpush1.bf16.msra.mxu1 %v577_v8  ;;  %v190_v32 = vld [vmem:[%s677_s20 + $0x68] sm:$0xff]  ;;  %v195_v33 = vpack.c.bf16 %v182_v30, %v181_v29  ;;  %v184_v36 = vld [vmem:[%s677_s20 + $0x38] sm:$0xff]  ;;  %v191_v37 = vld [vmem:[%s677_s20 + $0x70] sm:$0xff] }
  0x15   : > { %317 = vmatprep.subr.bf16.mxu0 %v578_v9  ;;  %545 = vmatprep.subr.bf16.mxu1 %v578_v9  ;;  %v199_v34 = vpack.c.bf16 %v190_v32, %v189_v31  ;;  %v192_v38 = vld [vmem:[%s677_s20 + $0x78] sm:$0xff]  ;;  %v196_v39 = vpack.c.bf16 %v184_v36, %v183_v35 }
  0x16   : > { %v200_v40 = vpack.c.bf16 %v192_v38, %v191_v37 }
  0x18   : > { %318 = vmatpush1.bf16.msra.mxu0 %v580_v10  ;;  %553 = vmatpush1.bf16.msra.mxu1 %v580_v10 }
  0x19   : > { %319 = vmatprep.subr.bf16.mxu0 %v581_v11  ;;  %546 = vmatprep.subr.bf16.mxu1 %v581_v11 }
  0x1c   : > { %320 = vmatpush1.bf16.msra.mxu0 %v583_v12  ;;  %554 = vmatpush1.bf16.msra.mxu1 %v583_v12 }
  0x1d   : > { %321 = vmatprep.subr.bf16.mxu0 %v584_v13  ;;  %547 = vmatprep.subr.bf16.mxu1 %v584_v13 }
  0x20   : > { %322 = vmatpush1.bf16.msra.mxu0 %v586_v14  ;;  %555 = vmatpush1.bf16.msra.mxu1 %v586_v14 }
  0x21   : > { %323 = vmatprep.subr.bf16.mxu0 %v587_v15  ;;  %548 = vmatprep.subr.bf16.mxu1 %v587_v15 }
  0x24   : > { %324 = vmatpush1.bf16.msra.mxu0 %v589_v16  ;;  %556 = vmatpush1.bf16.msra.mxu1 %v589_v16 }
  0x27   : > { %342 = vmatmul.mubr.bf16.vlgmr.msra.gmra.mrb[0].mxu0 %v193_v21  ;;  %382 = vmatmul.mubr.bf16.vlgmr.msra.gmra.mrb[0].mxu1 %v197_v22 }
  0x28   : > { %351 = vmatprep.mubr.bf16.mxu0 %v598_v2  ;;  %391 = vmatprep.mubr.bf16.mxu1 %v598_v2 }
  0x2f   : > { %352 = vmatmul.mubr.bf16.gmra.mrb[4].mxu0 %v194_v27  ;;  %392 = vmatmul.mubr.bf16.gmra.mrb[4].mxu1 %v198_v28 }
  0x30   : > { %361 = vmatprep.mubr.bf16.mxu0 %v598_v2  ;;  %401 = vmatprep.mubr.bf16.mxu1 %v598_v2 }
  0x37   : > { %362 = vmatmul.mubr.bf16.gmra.mrb[8].mxu0 %v195_v33  ;;  %402 = vmatmul.mubr.bf16.gmra.mrb[8].mxu1 %v199_v34 }
  0x38   : > { %371 = vmatprep.mubr.bf16.mxu0 %v598_v2  ;;  %411 = vmatprep.mubr.bf16.mxu1 %v598_v2 }
  0x3f   : > { %372 = vmatmul.mubr.bf16.gmra.mrb[12].mxu0 %v196_v39  ;;  %412 = vmatmul.mubr.bf16.gmra.mrb[12].mxu1 %v200_v40 }
  0xfa   : > { %v343_v48 = vpop.f32.mrb[0].mxu0  ;;  %v383_v49 = vpop.f32.mrb[0].mxu1 }
  0xfb   : > { %v344_v50 = vadd.f32 %v343_v48, %v711_v46  ;;  %v384_v51 = vadd.f32 %v383_v49, %v711_v46  ;;  %v345_v52 = vpop.f32.mrb[1].mxu0  ;;  %v385_v53 = vpop.f32.mrb[1].mxu1 }
  0xfc   : > { %v346_v54 = vadd.f32 %v345_v52, %v713_v47  ;;  %v386_v55 = vadd.f32 %v385_v53, %v713_v47  ;;  %v347_v56 = vpop.f32.mrb[2].mxu0  ;;  %v387_v57 = vpop.f32.mrb[2].mxu1 }
  0xfd   : > { %422 = vst [vmem:[%s718_s4] sm:$0xff] %v344_v50  ;;  %438 = vst [vmem:[%s718_s4 + $0x80] sm:$0xff] %v384_v51  ;;  %v348_v58 = vadd.f32 %v347_v56, %v711_v46  ;;  %v388_v59 = vadd.f32 %v387_v57, %v711_v46  ;;  %v349_v60 = vpop.f32.mrb[3].mxu0  ;;  %v389_v61 = vpop.f32.mrb[3].mxu1 }
  0xfe   : > { %423 = vst [vmem:[%s718_s4 + $0x8] sm:$0xff] %v346_v54  ;;  %439 = vst [vmem:[%s718_s4 + $0x88] sm:$0xff] %v386_v55  ;;  %v350_v62 = vadd.f32 %v349_v60, %v713_v47  ;;  %v390_v63 = vadd.f32 %v389_v61, %v713_v47 }
  0xff   : > { %424 = vst [vmem:[%s718_s4 + $0x10] sm:$0xff] %v348_v58  ;;  %440 = vst [vmem:[%s718_s4 + $0x90] sm:$0xff] %v388_v59 }
 0x100   : > { %425 = vst [vmem:[%s718_s4 + $0x18] sm:$0xff] %v350_v62  ;;  %441 = vst [vmem:[%s718_s4 + $0x98] sm:$0xff] %v390_v63 }
 0x102   : > { %v353_v0 = vpop.f32.mrb[4].mxu0  ;;  %v393_v1 = vpop.f32.mrb[4].mxu1 }
 0x103   : > { %v354_v2 = vadd.f32 %v353_v0, %v711_v46  ;;  %v394_v3 = vadd.f32 %v393_v1, %v711_v46  ;;  %v355_v4 = vpop.f32.mrb[5].mxu0  ;;  %v395_v5 = vpop.f32.mrb[5].mxu1 }
 0x104   : > { %v356_v6 = vadd.f32 %v355_v4, %v713_v47  ;;  %v396_v7 = vadd.f32 %v395_v5, %v713_v47  ;;  %v357_v8 = vpop.f32.mrb[6].mxu0  ;;  %v397_v9 = vpop.f32.mrb[6].mxu1 }
 0x105   : > { %426 = vst [vmem:[%s718_s4 + $0x20] sm:$0xff] %v354_v2  ;;  %442 = vst [vmem:[%s718_s4 + $0xa0] sm:$0xff] %v394_v3  ;;  %v358_v10 = vadd.f32 %v357_v8, %v711_v46  ;;  %v398_v11 = vadd.f32 %v397_v9, %v711_v46  ;;  %v359_v12 = vpop.f32.mrb[7].mxu0  ;;  %v399_v13 = vpop.f32.mrb[7].mxu1 }
 0x106   : > { %427 = vst [vmem:[%s718_s4 + $0x28] sm:$0xff] %v356_v6  ;;  %443 = vst [vmem:[%s718_s4 + $0xa8] sm:$0xff] %v396_v7  ;;  %v360_v14 = vadd.f32 %v359_v12, %v713_v47  ;;  %v400_v15 = vadd.f32 %v399_v13, %v713_v47 }
 0x107   : > { %428 = vst [vmem:[%s718_s4 + $0x30] sm:$0xff] %v358_v10  ;;  %444 = vst [vmem:[%s718_s4 + $0xb0] sm:$0xff] %v398_v11 }
 0x108   : > { %429 = vst [vmem:[%s718_s4 + $0x38] sm:$0xff] %v360_v14  ;;  %445 = vst [vmem:[%s718_s4 + $0xb8] sm:$0xff] %v400_v15 }
 0x10a   : > { %v363_v16 = vpop.f32.mrb[8].mxu0  ;;  %v403_v17 = vpop.f32.mrb[8].mxu1 }
 0x10b   : > { %v364_v18 = vadd.f32 %v363_v16, %v711_v46  ;;  %v404_v19 = vadd.f32 %v403_v17, %v711_v46  ;;  %v365_v20 = vpop.f32.mrb[9].mxu0  ;;  %v405_v21 = vpop.f32.mrb[9].mxu1 }
 0x10c   : > { %v366_v22 = vadd.f32 %v365_v20, %v713_v47  ;;  %v406_v23 = vadd.f32 %v405_v21, %v713_v47  ;;  %v367_v24 = vpop.f32.mrb[10].mxu0  ;;  %v407_v25 = vpop.f32.mrb[10].mxu1 }
 0x10d   : > { %430 = vst [vmem:[%s718_s4 + $0x40] sm:$0xff] %v364_v18  ;;  %446 = vst [vmem:[%s718_s4 + $0xc0] sm:$0xff] %v404_v19  ;;  %v368_v26 = vadd.f32 %v367_v24, %v711_v46  ;;  %v408_v27 = vadd.f32 %v407_v25, %v711_v46  ;;  %v369_v28 = vpop.f32.mrb[11].mxu0  ;;  %v409_v29 = vpop.f32.mrb[11].mxu1 }
 0x10e   : > { %431 = vst [vmem:[%s718_s4 + $0x48] sm:$0xff] %v366_v22  ;;  %447 = vst [vmem:[%s718_s4 + $0xc8] sm:$0xff] %v406_v23  ;;  %v370_v30 = vadd.f32 %v369_v28, %v713_v47  ;;  %v410_v31 = vadd.f32 %v409_v29, %v713_v47 }
 0x10f   : > { %432 = vst [vmem:[%s718_s4 + $0x50] sm:$0xff] %v368_v26  ;;  %448 = vst [vmem:[%s718_s4 + $0xd0] sm:$0xff] %v408_v27 }
 0x110   : > { %433 = vst [vmem:[%s718_s4 + $0x58] sm:$0xff] %v370_v30  ;;  %449 = vst [vmem:[%s718_s4 + $0xd8] sm:$0xff] %v410_v31 }
 0x112   : > { %v373_v32 = vpop.f32.mrb[12].mxu0  ;;  %v413_v33 = vpop.f32.mrb[12].mxu1 }
 0x113   : > { %v374_v34 = vadd.f32 %v373_v32, %v711_v46  ;;  %v414_v35 = vadd.f32 %v413_v33, %v711_v46  ;;  %v375_v36 = vpop.f32.mrb[13].mxu0  ;;  %v415_v37 = vpop.f32.mrb[13].mxu1 }
 0x114   : > { %v376_v38 = vadd.f32 %v375_v36, %v713_v47  ;;  %v416_v39 = vadd.f32 %v415_v37, %v713_v47  ;;  %v377_v40 = vpop.f32.mrb[14].mxu0  ;;  %v417_v41 = vpop.f32.mrb[14].mxu1 }
 0x115   : > { %434 = vst [vmem:[%s718_s4 + $0x60] sm:$0xff] %v374_v34  ;;  %450 = vst [vmem:[%s718_s4 + $0xe0] sm:$0xff] %v414_v35  ;;  %v378_v42 = vadd.f32 %v377_v40, %v711_v46  ;;  %v418_v43 = vadd.f32 %v417_v41, %v711_v46  ;;  %v379_v44 = vpop.f32.mrb[15].mxu0  ;;  %v419_v45 = vpop.f32.mrb[15].mxu1 }
 0x116   : > { %435 = vst [vmem:[%s718_s4 + $0x68] sm:$0xff] %v376_v38  ;;  %451 = vst [vmem:[%s718_s4 + $0xe8] sm:$0xff] %v416_v39  ;;  %v380_v48 = vadd.f32 %v379_v44, %v713_v47  ;;  %v420_v49 = vadd.f32 %v419_v45, %v713_v47 }
 0x117   : > { %436 = vst [vmem:[%s718_s4 + $0x70] sm:$0xff] %v378_v42  ;;  %452 = vst [vmem:[%s718_s4 + $0xf0] sm:$0xff] %v418_v43 }
 0x118   : > { %437 = vst [vmem:[%s718_s4 + $0x78] sm:$0xff] %v380_v48  ;;  %453 = vst [vmem:[%s718_s4 + $0xf8] sm:$0xff] %v420_v49 }
 0x119 PF: > { %s13_s12 = sadd.s32 1, %s596_s12  }
 0x11a   : > { %p10_p4 = scmp.ge.s32.totalorder %s13_s12, 5  }
 0x11c   :  { %12 = sbr.rel (!%p10_p4) target bundleno = 1 (0x1), region = 62 }

// kernel: forward_pallas.15
= control target key start
LH: loop header
LB: loop body
LE: loop exit
PB: predicated region body
PF: predicated region fallthrough
CT: control target
= control target key end

     0   :  { %s1408_s24 = smov 0   ;;  %s1695_s0 = inlined_call_operand.vmem [shape: f32[768,128], index: 0, kind: input, shape index: {}]   ;;  %s1696_s1 = inlined_call_operand.vmem [shape: f32[768,128], index: 1, kind: input, shape index: {}]   ;;  %s1697_s2 = inlined_call_operand.vmem [shape: f32[768,128], index: 2, kind: input, shape index: {}]   ;;  %s1698_s3 = inlined_call_operand.vmem [shape: bf16[128,128], index: 3, kind: input, shape index: {}]   ;;  %s1699_s4 = inlined_call_operand.vmem [shape: f32[1,128], index: 4, kind: input, shape index: {}]   ;;  %s1700_s5 = inlined_call_operand.vmem [shape: bf16[128,128], index: 5, kind: input, shape index: {}]   ;;  %s1701_s6 = inlined_call_operand.vmem [shape: f32[1,128], index: 6, kind: input, shape index: {}]   ;;  %s1702_s7 = inlined_call_operand.vmem [shape: f32[768,128], index: 7, kind: output, shape index: {}]  }
   0x1 LB: > { %s1159_s25 = sadd.s32 4294967295, %s1366_s24   ;;  %p1163_p0 = scmp.ge.s32.totalorder %s1366_s24, 1  ;;  %s1366_s24 = sphi %s1408_s24, %s17_s24  }
   0x2   : > { %p260_p1 = scmp.lt.s32.totalorder %s1366_s24, 4 }
   0x4   : > { %p261_p2 = pnand %p1163_p0, %p260_p1 }
   0x5   : > { %v1344_v0 = vld [vmem:[%s1698_s3] sm:$0xff] (!%p261_p2)   ;;  %s1164_s28 = sshll.u32 (!%p261_p2), %s1159_s25, 5  ;;  %v1345_v1 = vld [vmem:[%s1698_s3 + $0x8] sm:$0xff] (!%p261_p2)   ;;  %v1346_v2 = vld [vmem:[%s1698_s3 + $0x10] sm:$0xff] (!%p261_p2)  }
   0x6   : > { %264 = sbr.rel (%p261_p2) target bundleno = 536 (0x218), region = 48  ;;  %p303_p3 = scmp.lt.s32.totalorder (!%p261_p2), %s1164_s28, 95  ;;  %1240 = vmatprep.subr.bf16.mxu0 (!%p261_p2), %v1344_v0  ;;  %v1347_v3 = vld [vmem:[%s1698_s3 + $0x18] sm:$0xff] (!%p261_p2)   ;;  %v1348_v7 = vld [vmem:[%s1698_s3 + $0x20] sm:$0xff] (!%p261_p2)   ;;  %v1349_v8 = vld [vmem:[%s1698_s3 + $0x28] sm:$0xff] (!%p261_p2)  }
   0x7   : > { %1241 = vmatpush3.bf16.msra.mxu0 (!%p261_p2), %v1344_v0  ;;  %v1350_v9 = vld [vmem:[%s1698_s3 + $0x30] sm:$0xff] (!%p261_p2)   ;;  %v1352_v10 = vld [vmem:[%s1700_s5] sm:$0xff] (!%p261_p2)   ;;  %v1353_v11 = vld [vmem:[%s1700_s5 + $0x8] sm:$0xff] (!%p261_p2)  }
   0x8   : > { %1242 = vmatprep.subr.bf16.mxu0 (!%p261_p2), %v1345_v1  ;;  %1288 = vmatprep.subr.bf16.mxu1 (!%p261_p2), %v1352_v10  ;;  %v1354_v12 = vld [vmem:[%s1700_s5 + $0x10] sm:$0xff] (!%p261_p2)   ;;  %v1351_v13 = vld [vmem:[%s1698_s3 + $0x38] sm:$0xff] (!%p261_p2)   ;;  %v1356_v21 = vld [vmem:[%s1700_s5 + $0x20] sm:$0xff] (!%p261_p2)  }
   0x9   : > { %1289 = vmatpush3.bf16.msra.mxu1 (!%p261_p2), %v1352_v10  ;;  %v1355_v16 = vld [vmem:[%s1700_s5 + $0x18] sm:$0xff] (!%p261_p2)   ;;  %v1357_v61 = vld [vmem:[%s1700_s5 + $0x28] sm:$0xff] (!%p261_p2)   ;;  %v1358_v62 = vld [vmem:[%s1700_s5 + $0x30] sm:$0xff] (!%p261_p2)  }
   0xa   : > { %1290 = vmatprep.subr.bf16.mxu1 (!%p261_p2), %v1353_v11  ;;  %v1359_v63 = vld [vmem:[%s1700_s5 + $0x38] sm:$0xff] (!%p261_p2)  }
   0xb   : > { %1243 = vmatpush3.bf16.msra.mxu0 (!%p261_p2), %v1345_v1 }
   0xc   : > { %1244 = vmatprep.subr.bf16.mxu0 (!%p261_p2), %v1346_v2 }
   0xd   : > { %s1704_s28 = smov (!%p303_p3, %s1164_s28), 95  ;;  %1291 = vmatpush3.bf16.msra.mxu1 %v1353_v11 }
   0xe   : > { %s1425_s10 = sshll.u32 %s1704_s28, 3  ;;  %1292 = vmatprep.subr.bf16.mxu1 %v1354_v12 }
   0xf   : > { %s1431_s13 = scalar_lea.vmem %s1695_s0, %s1425_s10  ;;  %1245 = vmatpush3.bf16.msra.mxu0 %v1346_v2  ;;  %s1508_s21 = scalar_lea.vmem %s1696_s1, %s1425_s10 }
  0x10   : > { %v423_v4 = vld [vmem:[%s1431_s13] sm:$0xff]  ;;  %v424_v5 = vld [vmem:[%s1431_s13 + $0x8] sm:$0xff]  ;;  %1246 = vmatprep.subr.bf16.mxu0 %v1347_v3  ;;  %v425_v14 = vld [vmem:[%s1431_s13 + $0x10] sm:$0xff]  ;;  %s1514_s25 = scalar_lea.vmem %s1697_s2, %s1425_s10  ;;  %s1626_s9 = scalar_lea.vmem %s1702_s7, %s1425_s10 }
  0x11   : > { %v455_v6 = vpack.c.bf16 %v424_v5, %v423_v4  ;;  %v426_v15 = vld [vmem:[%s1431_s13 + $0x18] sm:$0xff]  ;;  %v427_v17 = vld [vmem:[%s1431_s13 + $0x20] sm:$0xff]  ;;  %v428_v18 = vld [vmem:[%s1431_s13 + $0x28] sm:$0xff]  ;;  %1293 = vmatpush3.bf16.msra.mxu1 %v1354_v12 }
  0x12   : > { %v456_v19 = vpack.c.bf16 %v426_v15, %v425_v14  ;;  %v457_v20 = vpack.c.bf16 %v428_v18, %v427_v17  ;;  %1294 = vmatprep.subr.bf16.mxu1 %v1355_v16  ;;  %v429_v22 = vld [vmem:[%s1431_s13 + $0x30] sm:$0xff]  ;;  %v430_v23 = vld [vmem:[%s1431_s13 + $0x38] sm:$0xff]  ;;  %v431_v24 = vld [vmem:[%s1431_s13 + $0x40] sm:$0xff] }
  0x13   : > { %1256 = vmatprep.mubr.bf16.mxu0 %v455_v6  ;;  %1247 = vmatpush3.bf16.msra.mxu0 %v1347_v3  ;;  %v432_v25 = vld [vmem:[%s1431_s13 + $0x48] sm:$0xff]  ;;  %v458_v26 = vpack.c.bf16 %v430_v23, %v429_v22  ;;  %v433_v28 = vld [vmem:[%s1431_s13 + $0x50] sm:$0xff]  ;;  %v434_v29 = vld [vmem:[%s1431_s13 + $0x58] sm:$0xff] }
  0x14   : > { %1248 = vmatprep.subr.bf16.mxu0 %v1348_v7  ;;  %v459_v27 = vpack.c.bf16 %v432_v25, %v431_v24  ;;  %v435_v30 = vld [vmem:[%s1431_s13 + $0x60] sm:$0xff]  ;;  %v436_v31 = vld [vmem:[%s1431_s13 + $0x68] sm:$0xff]  ;;  %v460_v32 = vpack.c.bf16 %v434_v29, %v433_v28  ;;  %v437_v34 = vld [vmem:[%s1431_s13 + $0x70] sm:$0xff] }
  0x15   : > { %1295 = vmatpush3.bf16.msra.mxu1 %v1355_v16  ;;  %v461_v33 = vpack.c.bf16 %v436_v31, %v435_v30  ;;  %v438_v35 = vld [vmem:[%s1431_s13 + $0x78] sm:$0xff]  ;;  %v439_v36 = vld [vmem:[%s1431_s13 + $0x80] sm:$0xff]  ;;  %v440_v37 = vld [vmem:[%s1431_s13 + $0x88] sm:$0xff] }
  0x16   : > { %1296 = vmatprep.subr.bf16.mxu1 %v1356_v21  ;;  %v462_v38 = vpack.c.bf16 %v438_v35, %v437_v34  ;;  %v463_v39 = vpack.c.bf16 %v440_v37, %v439_v36  ;;  %v441_v40 = vld [vmem:[%s1431_s13 + $0x90] sm:$0xff]  ;;  %v442_v41 = vld [vmem:[%s1431_s13 + $0x98] sm:$0xff]  ;;  %v443_v42 = vld [vmem:[%s1431_s13 + $0xa0] sm:$0xff] }
  0x17   : > { %1249 = vmatpush3.bf16.msra.mxu0 %v1348_v7  ;;  %v444_v43 = vld [vmem:[%s1431_s13 + $0xa8] sm:$0xff]  ;;  %v464_v44 = vpack.c.bf16 %v442_v41, %v441_v40  ;;  %v445_v46 = vld [vmem:[%s1431_s13 + $0xb0] sm:$0xff]  ;;  %v446_v47 = vld [vmem:[%s1431_s13 + $0xb8] sm:$0xff] }
  0x18   : > { %1250 = vmatprep.subr.bf16.mxu0 %v1349_v8  ;;  %v465_v45 = vpack.c.bf16 %v444_v43, %v443_v42  ;;  %v447_v48 = vld [vmem:[%s1431_s13 + $0xc0] sm:$0xff]  ;;  %v448_v49 = vld [vmem:[%s1431_s13 + $0xc8] sm:$0xff]  ;;  %v466_v50 = vpack.c.bf16 %v446_v47, %v445_v46  ;;  %v449_v52 = vld [vmem:[%s1431_s13 + $0xd0] sm:$0xff] }
  0x19   : > { %1297 = vmatpush3.bf16.msra.mxu1 %v1356_v21  ;;  %v467_v51 = vpack.c.bf16 %v448_v49, %v447_v48  ;;  %v450_v53 = vld [vmem:[%s1431_s13 + $0xd8] sm:$0xff]  ;;  %v451_v54 = vld [vmem:[%s1431_s13 + $0xe0] sm:$0xff]  ;;  %v452_v55 = vld [vmem:[%s1431_s13 + $0xe8] sm:$0xff] }
  0x1a   : > { %v468_v56 = vpack.c.bf16 %v450_v53, %v449_v52  ;;  %v469_v57 = vpack.c.bf16 %v452_v55, %v451_v54  ;;  %v453_v58 = vld [vmem:[%s1431_s13 + $0xf0] sm:$0xff]  ;;  %v454_v59 = vld [vmem:[%s1431_s13 + $0xf8] sm:$0xff]  ;;  %1298 = vmatprep.subr.bf16.mxu1 %v1357_v61  ;;  %v327_v2 = vld [vmem:[%s1508_s21] sm:$0xff] }
  0x1b   : > { %1251 = vmatpush3.bf16.msra.mxu0 %v1349_v8  ;;  %v470_v60 = vpack.c.bf16 %v454_v59, %v453_v58  ;;  %v329_v0 = vld [vmem:[%s1508_s21 + $0x10] sm:$0xff]  ;;  %v359_v3 = vld [vmem:[%s1514_s25] sm:$0xff]  ;;  %v330_v4 = vld [vmem:[%s1508_s21 + $0x18] sm:$0xff] }
  0x1c   : > { %1252 = vmatprep.subr.bf16.mxu0 %v1350_v9  ;;  %v361_v1 = vld [vmem:[%s1514_s25 + $0x10] sm:$0xff]  ;;  %v362_v5 = vld [vmem:[%s1514_s25 + $0x18] sm:$0xff]  ;;  %v328_v7 = vld [vmem:[%s1508_s21 + $0x8] sm:$0xff] }
  0x1d   : > { %1299 = vmatpush3.bf16.msra.mxu1 %v1357_v61  ;;  %v393_v6 = vadd.f32 %v361_v1, %v329_v0  ;;  %v360_v8 = vld [vmem:[%s1514_s25 + $0x8] sm:$0xff]  ;;  %v394_v10 = vadd.f32 %v362_v5, %v330_v4  ;;  %v1527_v12 = vld [vmem:[%s1699_s4] ss:$0 sm:$0xff]  ;;  %v333_v18 = vld [vmem:[%s1508_s21 + $0x30] sm:$0xff] }
  0x1e   : > { %1300 = vmatprep.subr.bf16.mxu1 %v1358_v62  ;;  %v331_v23 = vld [vmem:[%s1508_s21 + $0x20] sm:$0xff]  ;;  %v332_v31 = vld [vmem:[%s1508_s21 + $0x28] sm:$0xff]  ;;  %v337_v48 = vld [vmem:[%s1508_s21 + $0x50] sm:$0xff] }
  0x1f   : > { %1253 = vmatpush3.bf16.msra.mxu0 %v1350_v9  ;;  %v391_v9 = vadd.f32 %v359_v3, %v327_v2  ;;  %v363_v24 = vld [vmem:[%s1514_s25 + $0x20] sm:$0xff]  ;;  %v369_v49 = vld [vmem:[%s1514_s25 + $0x50] sm:$0xff]  ;;  %v370_v58 = vld [vmem:[%s1514_s25 + $0x58] sm:$0xff] }
  0x20   : > { %1254 = vmatprep.subr.bf16.mxu0 %v1351_v13  ;;  %v335_v53 = vld [vmem:[%s1508_s21 + $0x40] sm:$0xff]  ;;  %v336_v61 = vld [vmem:[%s1508_s21 + $0x48] sm:$0xff] }
  0x21   : > { %1301 = vmatpush3.bf16.msra.mxu1 %v1358_v62  ;;  %v367_v54 = vld [vmem:[%s1514_s25 + $0x40] sm:$0xff]  ;;  %v368_v62 = vld [vmem:[%s1514_s25 + $0x48] sm:$0xff] }
  0x22   : > { %1302 = vmatprep.subr.bf16.mxu1 %v1359_v63  ;;  %v399_v0 = vadd.f32 %v367_v54, %v335_v53  ;;  %v346_v54 = vld [vmem:[%s1508_s21 + $0x98] sm:$0xff] }
  0x23   : > { %1255 = vmatpush3.bf16.msra.mxu0 %v1351_v13  ;;  %v392_v13 = vadd.f32 %v360_v8, %v328_v7  ;;  %v400_v7 = vadd.f32 %v368_v62, %v336_v61 }
  0x25   : > { %1303 = vmatpush3.bf16.msra.mxu1 %v1359_v63 }
  0x26   : > { %1257 = vmatmul.mubr.bf16.vlgmr.msra.gmra.mrb[0].mxu0 %v456_v19  ;;  %v365_v19 = vld [vmem:[%s1514_s25 + $0x30] sm:$0xff] }
  0x27   : > { %1260 = vmatprep.mubr.bf16.mxu0 %v457_v20  ;;  %v397_v30 = vadd.f32 %v365_v19, %v333_v18 }
  0x2e   : > { %1261 = vmatmul.mubr.bf16.gmra.mrb[4].mxu0 %v458_v26  ;;  %v334_v26 = vld [vmem:[%s1508_s21 + $0x38] sm:$0xff] }
  0x2f   : > { %1264 = vmatprep.mubr.bf16.mxu0 %v459_v27  ;;  %v366_v27 = vld [vmem:[%s1514_s25 + $0x38] sm:$0xff] }
  0x30   : > { %v398_v37 = vadd.f32 %v366_v27, %v334_v26 }
  0x36   : > { %1265 = vmatmul.mubr.bf16.gmra.mrb[8].mxu0 %v460_v32  ;;  %v364_v32 = vld [vmem:[%s1514_s25 + $0x28] sm:$0xff] }
  0x37   : > { %1268 = vmatprep.mubr.bf16.mxu0 %v461_v33  ;;  %v395_v33 = vadd.f32 %v363_v24, %v331_v23  ;;  %v342_v24 = vld [vmem:[%s1508_s21 + $0x78] sm:$0xff] }
  0x3e   : > { %1269 = vmatmul.mubr.bf16.gmra.mrb[12].mxu0 %v462_v38 }
  0x3f   : > { %1272 = vmatprep.mubr.bf16.mxu0 %v463_v39  ;;  %v396_v39 = vadd.f32 %v364_v32, %v332_v31 }
  0x46   : > { %1273 = vmatmul.mubr.bf16.gmra.mrb[16].mxu0 %v464_v44 }
  0x47   : > { %1276 = vmatprep.mubr.bf16.mxu0 %v465_v45 }
  0x4e   : > { %1277 = vmatmul.mubr.bf16.gmra.mrb[20].mxu0 %v466_v50 }
  0x4f   : > { %1280 = vmatprep.mubr.bf16.mxu0 %v467_v51 }
  0x56   : > { %1281 = vmatmul.mubr.bf16.gmra.mrb[24].mxu0 %v468_v56 }
  0x57   : > { %1284 = vmatprep.mubr.bf16.mxu0 %v469_v57  ;;  %v338_v57 = vld [vmem:[%s1508_s21 + $0x58] sm:$0xff] }
  0x58   : > { %v402_v3 = vadd.f32 %v370_v58, %v338_v57  ;;  %v344_v58 = vld [vmem:[%s1508_s21 + $0x88] sm:$0xff] }
  0x5e   : > { %1285 = vmatmul.mubr.bf16.gmra.mrb[28].mxu0 %v470_v60  ;;  %v401_v60 = vadd.f32 %v369_v49, %v337_v48 }
  0xf9   : > { %v1258_v11 = vpop.f32.mrb[0].mxu0 }
  0xfa   : > { %v698_v14 = vadd.f32 %v1258_v11, %v393_v6  ;;  %v569_v15 = vpop.f32.mrb[1].mxu0 }
  0xfb   : > { %v696_v16 = vadd.f32 %v569_v15, %v391_v9  ;;  %v1259_v17 = vpop.f32.mrb[2].mxu0  ;;  %v341_v15 = vld [vmem:[%s1508_s21 + $0x70] sm:$0xff] }
  0xfc   : > { %v737_v20 = vadd.f32 %v1527_v12, %v698_v14  ;;  %v699_v21 = vadd.f32 %v1259_v17, %v394_v10  ;;  %v572_v22 = vpop.f32.mrb[3].mxu0 }
  0xfd   : > { %v697_v25 = vadd.f32 %v572_v22, %v392_v13  ;;  %v735_v28 = vadd.f32 %v1527_v12, %v696_v16  ;;  %v373_v16 = vld [vmem:[%s1514_s25 + $0x70] sm:$0xff] }
  0xfe   : > { %v738_v29 = vadd.f32 %v1527_v12, %v699_v21  ;;  %v769_v35 = vmax.f32 %v737_v20, 0.0  ;;  %v339_v20 = vld [vmem:[%s1508_s21 + $0x60] sm:$0xff]  ;;  %v405_v27 = vadd.f32 %v373_v16, %v341_v15 }
  0xff   : > { %v736_v34 = vadd.f32 %v1527_v12, %v697_v25  ;;  %v767_v40 = vmax.f32 %v735_v28, 0.0  ;;  %v371_v21 = vld [vmem:[%s1514_s25 + $0x60] sm:$0xff]  ;;  %v374_v25 = vld [vmem:[%s1514_s25 + $0x78] sm:$0xff]  ;;  %v340_v28 = vld [vmem:[%s1508_s21 + $0x68] sm:$0xff] }
 0x100   : > { %v770_v36 = vmax.f32 %v738_v29, 0.0  ;;  %v372_v29 = vld [vmem:[%s1514_s25 + $0x68] sm:$0xff]  ;;  %v403_v31 = vadd.f32 %v371_v21, %v339_v20  ;;  %v350_v21 = vld [vmem:[%s1508_s21 + $0xb8] sm:$0xff] }
 0x101   : > { %v1262_v38 = vpop.f32.mrb[4].mxu0  ;;  %v768_v41 = vmax.f32 %v736_v34, 0.0  ;;  %v406_v34 = vadd.f32 %v374_v25, %v342_v24  ;;  %v348_v25 = vld [vmem:[%s1508_s21 + $0xa8] sm:$0xff] }
 0x102   : > { %v702_v42 = vadd.f32 %v1262_v38, %v397_v30  ;;  %v585_v43 = vpop.f32.mrb[5].mxu0  ;;  %v800_v44 = vpack.c.bf16 %v770_v36, %v769_v35  ;;  %v404_v38 = vadd.f32 %v372_v29, %v340_v28 }
 0x103   : > { %v700_v45 = vadd.f32 %v585_v43, %v395_v33  ;;  %v1263_v46 = vpop.f32.mrb[6].mxu0  ;;  %v799_v47 = vpack.c.bf16 %v768_v41, %v767_v40 }
 0x104   : > { %v741_v50 = vadd.f32 %v1527_v12, %v702_v42  ;;  %v703_v51 = vadd.f32 %v1263_v46, %v398_v37  ;;  %v588_v52 = vpop.f32.mrb[7].mxu0  ;;  %v377_v46 = vld [vmem:[%s1514_s25 + $0x90] sm:$0xff] }
 0x105   : > { %v739_v55 = vadd.f32 %v1527_v12, %v700_v45  ;;  %v701_v56 = vadd.f32 %v588_v52, %v396_v39  ;;  %1304 = vmatprep.mubr.bf16.mxu1 %v799_v47  ;;  %v345_v45 = vld [vmem:[%s1508_s21 + $0x90] sm:$0xff] }
 0x106   : > { %v742_v59 = vadd.f32 %v1527_v12, %v703_v51  ;;  %1305 = vmatmul.mubr.bf16.vlgmr.msra.gmra.mrb[0].mxu1 %v800_v44  ;;  %v773_v1 = vmax.f32 %v741_v50, 0.0  ;;  %v343_v50 = vld [vmem:[%s1508_s21 + $0x80] sm:$0xff]  ;;  %v409_v57 = vadd.f32 %v377_v46, %v345_v45 }
 0x107   : > { %v740_v63 = vadd.f32 %v1527_v12, %v701_v56  ;;  %v771_v4 = vmax.f32 %v739_v55, 0.0  ;;  %v375_v51 = vld [vmem:[%s1514_s25 + $0x80] sm:$0xff]  ;;  %v378_v55 = vld [vmem:[%s1514_s25 + $0x98] sm:$0xff] }
 0x108   : > { %v774_v2 = vmax.f32 %v742_v59, 0.0  ;;  %v376_v59 = vld [vmem:[%s1514_s25 + $0x88] sm:$0xff]  ;;  %v407_v61 = vadd.f32 %v375_v51, %v343_v50  ;;  %v354_v51 = vld [vmem:[%s1508_s21 + $0xd8] sm:$0xff] }
 0x109   : > { %v772_v5 = vmax.f32 %v740_v63, 0.0  ;;  %v1266_v6 = vpop.f32.mrb[8].mxu0 }
 0x10a   : > { %v706_v8 = vadd.f32 %v1266_v6, %v401_v60  ;;  %v601_v9 = vpop.f32.mrb[9].mxu0  ;;  %v802_v10 = vpack.c.bf16 %v774_v2, %v773_v1 }
 0x10b   : > { %v704_v11 = vadd.f32 %v601_v9, %v399_v0  ;;  %v1267_v13 = vpop.f32.mrb[10].mxu0  ;;  %v801_v14 = vpack.c.bf16 %v772_v5, %v771_v4  ;;  %v410_v0 = vadd.f32 %v378_v55, %v346_v54  ;;  %v408_v4 = vadd.f32 %v376_v59, %v344_v58  ;;  %v352_v55 = vld [vmem:[%s1508_s21 + $0xc8] sm:$0xff] }
 0x10c   : > { %v745_v17 = vadd.f32 %v1527_v12, %v706_v8  ;;  %v707_v18 = vadd.f32 %v1267_v13, %v402_v3  ;;  %v604_v19 = vpop.f32.mrb[11].mxu0  ;;  %v381_v13 = vld [vmem:[%s1514_s25 + $0xb0] sm:$0xff] }
 0x10d   : > { %v743_v22 = vadd.f32 %v1527_v12, %v704_v11  ;;  %v705_v23 = vadd.f32 %v604_v19, %v400_v7  ;;  %1308 = vmatprep.mubr.bf16.mxu1 %v801_v14  ;;  %v349_v11 = vld [vmem:[%s1508_s21 + $0xb0] sm:$0xff] }
 0x10e   : > { %v746_v26 = vadd.f32 %v1527_v12, %v707_v18  ;;  %1309 = vmatmul.mubr.bf16.gmra.mrb[4].mxu1 %v802_v10  ;;  %v777_v32 = vmax.f32 %v745_v17, 0.0  ;;  %v347_v17 = vld [vmem:[%s1508_s21 + $0xa0] sm:$0xff]  ;;  %v413_v24 = vadd.f32 %v381_v13, %v349_v11 }
 0x10f   : > { %v744_v30 = vadd.f32 %v1527_v12, %v705_v23  ;;  %v775_v35 = vmax.f32 %v743_v22, 0.0  ;;  %v379_v18 = vld [vmem:[%s1514_s25 + $0xa0] sm:$0xff]  ;;  %v382_v22 = vld [vmem:[%s1514_s25 + $0xb8] sm:$0xff] }
 0x110   : > { %v778_v33 = vmax.f32 %v746_v26, 0.0  ;;  %v380_v26 = vld [vmem:[%s1514_s25 + $0xa8] sm:$0xff]  ;;  %v411_v28 = vadd.f32 %v379_v18, %v347_v17  ;;  %v358_v18 = vld [vmem:[%s1508_s21 + $0xf8] sm:$0xff] }
 0x111   : > { %v776_v36 = vmax.f32 %v744_v30, 0.0  ;;  %v1270_v37 = vpop.f32.mrb[12].mxu0 }
 0x112   : > { %v710_v39 = vadd.f32 %v1270_v37, %v405_v27  ;;  %v617_v40 = vpop.f32.mrb[13].mxu0  ;;  %v804_v41 = vpack.c.bf16 %v778_v33, %v777_v32 }
 0x113   : > { %v708_v42 = vadd.f32 %v617_v40, %v403_v31  ;;  %v1271_v43 = vpop.f32.mrb[14].mxu0  ;;  %v803_v44 = vpack.c.bf16 %v776_v36, %v775_v35  ;;  %v414_v31 = vadd.f32 %v382_v22, %v350_v21  ;;  %v412_v35 = vadd.f32 %v380_v26, %v348_v25  ;;  %v356_v22 = vld [vmem:[%s1508_s21 + $0xe8] sm:$0xff] }
 0x114   : > { %v749_v47 = vadd.f32 %v1527_v12, %v710_v39  ;;  %v711_v48 = vadd.f32 %v1271_v43, %v406_v34  ;;  %v620_v49 = vpop.f32.mrb[15].mxu0  ;;  %v385_v43 = vld [vmem:[%s1514_s25 + $0xd0] sm:$0xff] }
 0x115   : > { %v747_v52 = vadd.f32 %v1527_v12, %v708_v42  ;;  %v709_v53 = vadd.f32 %v620_v49, %v404_v38  ;;  %1312 = vmatprep.mubr.bf16.mxu1 %v803_v44  ;;  %v353_v42 = vld [vmem:[%s1508_s21 + $0xd0] sm:$0xff] }
 0x116   : > { %v750_v56 = vadd.f32 %v1527_v12, %v711_v48  ;;  %1313 = vmatmul.mubr.bf16.gmra.mrb[8].mxu1 %v804_v41  ;;  %v781_v62 = vmax.f32 %v749_v47, 0.0  ;;  %v351_v47 = vld [vmem:[%s1508_s21 + $0xc0] sm:$0xff]  ;;  %v417_v54 = vadd.f32 %v385_v43, %v353_v42 }
 0x117   : > { %v748_v60 = vadd.f32 %v1527_v12, %v709_v53  ;;  %v779_v1 = vmax.f32 %v747_v52, 0.0  ;;  %v383_v48 = vld [vmem:[%s1514_s25 + $0xc0] sm:$0xff]  ;;  %v386_v52 = vld [vmem:[%s1514_s25 + $0xd8] sm:$0xff] }
 0x118   : > { %v782_v63 = vmax.f32 %v750_v56, 0.0  ;;  %v384_v56 = vld [vmem:[%s1514_s25 + $0xc8] sm:$0xff]  ;;  %v415_v58 = vadd.f32 %v383_v48, %v351_v47 }
 0x119   : > { %v780_v2 = vmax.f32 %v748_v60, 0.0  ;;  %v1274_v3 = vpop.f32.mrb[16].mxu0 }
 0x11a   : > { %v714_v5 = vadd.f32 %v1274_v3, %v409_v57  ;;  %v633_v6 = vpop.f32.mrb[17].mxu0  ;;  %v806_v7 = vpack.c.bf16 %v782_v63, %v781_v62 }
 0x11b   : > { %v712_v8 = vadd.f32 %v633_v6, %v407_v61  ;;  %v1275_v9 = vpop.f32.mrb[18].mxu0  ;;  %v805_v10 = vpack.c.bf16 %v780_v2, %v779_v1  ;;  %v418_v61 = vadd.f32 %v386_v52, %v354_v51  ;;  %v416_v1 = vadd.f32 %v384_v56, %v352_v55  ;;  %v1620_v52 = vld [vmem:[%s1701_s6] ss:$0 sm:$0xff] }
 0x11c   : > { %v753_v14 = vadd.f32 %v1527_v12, %v714_v5  ;;  %v715_v15 = vadd.f32 %v1275_v9, %v410_v0  ;;  %v636_v16 = vpop.f32.mrb[19].mxu0  ;;  %v389_v9 = vld [vmem:[%s1514_s25 + $0xf0] sm:$0xff] }
 0x11d   : > { %v751_v19 = vadd.f32 %v1527_v12, %v712_v8  ;;  %v713_v20 = vadd.f32 %v636_v16, %v408_v4  ;;  %1316 = vmatprep.mubr.bf16.mxu1 %v805_v10  ;;  %v357_v8 = vld [vmem:[%s1508_s21 + $0xf0] sm:$0xff] }
 0x11e   : > { %v754_v23 = vadd.f32 %v1527_v12, %v715_v15  ;;  %1317 = vmatmul.mubr.bf16.gmra.mrb[12].mxu1 %v806_v7  ;;  %v785_v29 = vmax.f32 %v753_v14, 0.0  ;;  %v355_v14 = vld [vmem:[%s1508_s21 + $0xe0] sm:$0xff]  ;;  %v421_v21 = vadd.f32 %v389_v9, %v357_v8 }
 0x11f   : > { %v752_v27 = vadd.f32 %v1527_v12, %v713_v20  ;;  %v783_v32 = vmax.f32 %v751_v19, 0.0  ;;  %v387_v15 = vld [vmem:[%s1514_s25 + $0xe0] sm:$0xff]  ;;  %v390_v19 = vld [vmem:[%s1514_s25 + $0xf8] sm:$0xff] }
 0x120   : > { %v786_v30 = vmax.f32 %v754_v23, 0.0  ;;  %v388_v23 = vld [vmem:[%s1514_s25 + $0xe8] sm:$0xff]  ;;  %v419_v25 = vadd.f32 %v387_v15, %v355_v14 }
 0x121   : > { %v784_v33 = vmax.f32 %v752_v27, 0.0  ;;  %v1278_v34 = vpop.f32.mrb[20].mxu0 }
 0x122   : > { %v718_v36 = vadd.f32 %v1278_v34, %v413_v24  ;;  %v649_v37 = vpop.f32.mrb[21].mxu0  ;;  %v808_v38 = vpack.c.bf16 %v786_v30, %v785_v29 }
 0x123   : > { %v716_v39 = vadd.f32 %v649_v37, %v411_v28  ;;  %v1279_v40 = vpop.f32.mrb[22].mxu0  ;;  %v807_v41 = vpack.c.bf16 %v784_v33, %v783_v32  ;;  %v422_v28 = vadd.f32 %v390_v19, %v358_v18  ;;  %v420_v32 = vadd.f32 %v388_v23, %v356_v22 }
 0x124   : > { %v757_v44 = vadd.f32 %v1527_v12, %v718_v36  ;;  %v719_v45 = vadd.f32 %v1279_v40, %v414_v31  ;;  %v652_v46 = vpop.f32.mrb[23].mxu0 }
 0x125   : > { %v755_v49 = vadd.f32 %v1527_v12, %v716_v39  ;;  %v717_v50 = vadd.f32 %v652_v46, %v412_v35  ;;  %1320 = vmatprep.mubr.bf16.mxu1 %v807_v41 }
 0x126   : > { %v758_v53 = vadd.f32 %v1527_v12, %v719_v45  ;;  %1321 = vmatmul.mubr.bf16.gmra.mrb[16].mxu1 %v808_v38  ;;  %v789_v59 = vmax.f32 %v757_v44, 0.0 }
 0x127   : > { %v756_v57 = vadd.f32 %v1527_v12, %v717_v50  ;;  %v787_v62 = vmax.f32 %v755_v49, 0.0 }
 0x128   : > { %v790_v60 = vmax.f32 %v758_v53, 0.0 }
 0x129   : > { %v788_v63 = vmax.f32 %v756_v57, 0.0  ;;  %v1282_v0 = vpop.f32.mrb[24].mxu0 }
 0x12a   : > { %v722_v2 = vadd.f32 %v1282_v0, %v417_v54  ;;  %v665_v3 = vpop.f32.mrb[25].mxu0  ;;  %v810_v4 = vpack.c.bf16 %v790_v60, %v789_v59 }
 0x12b   : > { %v720_v5 = vadd.f32 %v665_v3, %v415_v58  ;;  %v1283_v6 = vpop.f32.mrb[26].mxu0  ;;  %v809_v7 = vpack.c.bf16 %v788_v63, %v787_v62 }
 0x12c   : > { %v761_v10 = vadd.f32 %v1527_v12, %v722_v2  ;;  %v723_v11 = vadd.f32 %v1283_v6, %v418_v61  ;;  %v668_v13 = vpop.f32.mrb[27].mxu0 }
 0x12d   : > { %v759_v16 = vadd.f32 %v1527_v12, %v720_v5  ;;  %v721_v17 = vadd.f32 %v668_v13, %v416_v1  ;;  %1324 = vmatprep.mubr.bf16.mxu1 %v809_v7 }
 0x12e   : > { %v762_v20 = vadd.f32 %v1527_v12, %v723_v11  ;;  %1325 = vmatmul.mubr.bf16.gmra.mrb[20].mxu1 %v810_v4  ;;  %v793_v26 = vmax.f32 %v761_v10, 0.0 }
 0x12f   : > { %v760_v24 = vadd.f32 %v1527_v12, %v721_v17  ;;  %v791_v29 = vmax.f32 %v759_v16, 0.0 }
 0x130   : > { %v794_v27 = vmax.f32 %v762_v20, 0.0 }
 0x131   : > { %v792_v30 = vmax.f32 %v760_v24, 0.0  ;;  %v1286_v31 = vpop.f32.mrb[28].mxu0 }
 0x132   : > { %v726_v33 = vadd.f32 %v1286_v31, %v421_v21  ;;  %v681_v34 = vpop.f32.mrb[29].mxu0  ;;  %v812_v35 = vpack.c.bf16 %v794_v27, %v793_v26 }
 0x133   : > { %v724_v36 = vadd.f32 %v681_v34, %v419_v25  ;;  %v1287_v37 = vpop.f32.mrb[30].mxu0  ;;  %v811_v38 = vpack.c.bf16 %v792_v30, %v791_v29 }
 0x134   : > { %v765_v39 = vadd.f32 %v1527_v12, %v726_v33  ;;  %v727_v40 = vadd.f32 %v1287_v37, %v422_v28  ;;  %v684_v41 = vpop.f32.mrb[31].mxu0 }
 0x135   : > { %v763_v42 = vadd.f32 %v1527_v12, %v724_v36  ;;  %v725_v43 = vadd.f32 %v684_v41, %v420_v32  ;;  %1328 = vmatprep.mubr.bf16.mxu1 %v811_v38 }
 0x136   : > { %v766_v44 = vadd.f32 %v1527_v12, %v727_v40  ;;  %1329 = vmatmul.mubr.bf16.gmra.mrb[24].mxu1 %v812_v35  ;;  %v797_v46 = vmax.f32 %v765_v39, 0.0 }
 0x137   : > { %v764_v45 = vadd.f32 %v1527_v12, %v725_v43  ;;  %v795_v48 = vmax.f32 %v763_v42, 0.0 }
 0x138   : > { %v798_v47 = vmax.f32 %v766_v44, 0.0 }
 0x139   : > { %v796_v49 = vmax.f32 %v764_v45, 0.0 }
 0x13a   : > { %v814_v50 = vpack.c.bf16 %v798_v47, %v797_v46 }
 0x13b   : > { %v813_v51 = vpack.c.bf16 %v796_v49, %v795_v48 }
 0x13d   : > { %1332 = vmatprep.mubr.bf16.mxu1 %v813_v51 }
 0x13e   : > { %1333 = vmatmul.mubr.bf16.gmra.mrb[28].mxu1 %v814_v50 }
 0x1d9   : > { %v1306_v12 = vpop.f32.mrb[0].mxu1 }
 0x1da   : > { %v929_v53 = vadd.f32 %v1306_v12, %v1620_v52  ;;  %v920_v54 = vpop.f32.mrb[1].mxu1 }
 0x1db   : > { %v921_v55 = vadd.f32 %v1620_v52, %v920_v54  ;;  %v1307_v56 = vpop.f32.mrb[2].mxu1 }
 0x1dc   : > { %1049 = vst [vmem:[%s1626_s9 + $0x10] sm:$0xff] %v929_v53  ;;  %v932_v57 = vadd.f32 %v1307_v56, %v1620_v52  ;;  %v923_v58 = vpop.f32.mrb[3].mxu1 }
 0x1dd   : > { %1047 = vst [vmem:[%s1626_s9] sm:$0xff] %v921_v55  ;;  %v924_v59 = vadd.f32 %v1620_v52, %v923_v58 }
 0x1de   : > { %1050 = vst [vmem:[%s1626_s9 + $0x18] sm:$0xff] %v932_v57 }
 0x1df   : > { %1048 = vst [vmem:[%s1626_s9 + $0x8] sm:$0xff] %v924_v59 }
 0x1e1   : > { %v1310_v60 = vpop.f32.mrb[4].mxu1 }
 0x1e2   : > { %v945_v61 = vadd.f32 %v1310_v60, %v1620_v52  ;;  %v936_v62 = vpop.f32.mrb[5].mxu1 }
 0x1e3   : > { %v937_v63 = vadd.f32 %v1620_v52, %v936_v62  ;;  %v1311_v0 = vpop.f32.mrb[6].mxu1 }
 0x1e4   : > { %1053 = vst [vmem:[%s1626_s9 + $0x30] sm:$0xff] %v945_v61  ;;  %v948_v1 = vadd.f32 %v1311_v0, %v1620_v52  ;;  %v939_v2 = vpop.f32.mrb[7].mxu1 }
 0x1e5   : > { %1051 = vst [vmem:[%s1626_s9 + $0x20] sm:$0xff] %v937_v63  ;;  %v940_v3 = vadd.f32 %v1620_v52, %v939_v2 }
 0x1e6   : > { %1054 = vst [vmem:[%s1626_s9 + $0x38] sm:$0xff] %v948_v1 }
 0x1e7   : > { %1052 = vst [vmem:[%s1626_s9 + $0x28] sm:$0xff] %v940_v3 }
 0x1e9   : > { %v1314_v4 = vpop.f32.mrb[8].mxu1 }
 0x1ea   : > { %v961_v5 = vadd.f32 %v1314_v4, %v1620_v52  ;;  %v952_v6 = vpop.f32.mrb[9].mxu1 }
 0x1eb   : > { %v953_v7 = vadd.f32 %v1620_v52, %v952_v6  ;;  %v1315_v8 = vpop.f32.mrb[10].mxu1 }
 0x1ec   : > { %1057 = vst [vmem:[%s1626_s9 + $0x50] sm:$0xff] %v961_v5  ;;  %v964_v9 = vadd.f32 %v1315_v8, %v1620_v52  ;;  %v955_v10 = vpop.f32.mrb[11].mxu1 }
 0x1ed   : > { %1055 = vst [vmem:[%s1626_s9 + $0x40] sm:$0xff] %v953_v7  ;;  %v956_v11 = vadd.f32 %v1620_v52, %v955_v10 }
 0x1ee   : > { %1058 = vst [vmem:[%s1626_s9 + $0x58] sm:$0xff] %v964_v9 }
 0x1ef   : > { %1056 = vst [vmem:[%s1626_s9 + $0x48] sm:$0xff] %v956_v11 }
 0x1f1   : > { %v1318_v13 = vpop.f32.mrb[12].mxu1 }
 0x1f2   : > { %v977_v14 = vadd.f32 %v1318_v13, %v1620_v52  ;;  %v968_v15 = vpop.f32.mrb[13].mxu1 }
 0x1f3   : > { %v969_v16 = vadd.f32 %v1620_v52, %v968_v15  ;;  %v1319_v17 = vpop.f32.mrb[14].mxu1 }
 0x1f4   : > { %1061 = vst [vmem:[%s1626_s9 + $0x70] sm:$0xff] %v977_v14  ;;  %v980_v18 = vadd.f32 %v1319_v17, %v1620_v52  ;;  %v971_v19 = vpop.f32.mrb[15].mxu1 }
 0x1f5   : > { %1059 = vst [vmem:[%s1626_s9 + $0x60] sm:$0xff] %v969_v16  ;;  %v972_v20 = vadd.f32 %v1620_v52, %v971_v19 }
 0x1f6   : > { %1062 = vst [vmem:[%s1626_s9 + $0x78] sm:$0xff] %v980_v18 }
 0x1f7   : > { %1060 = vst [vmem:[%s1626_s9 + $0x68] sm:$0xff] %v972_v20 }
 0x1f9   : > { %v1322_v21 = vpop.f32.mrb[16].mxu1 }
 0x1fa   : > { %v993_v22 = vadd.f32 %v1322_v21, %v1620_v52  ;;  %v984_v23 = vpop.f32.mrb[17].mxu1 }
 0x1fb   : > { %v985_v24 = vadd.f32 %v1620_v52, %v984_v23  ;;  %v1323_v25 = vpop.f32.mrb[18].mxu1 }
 0x1fc   : > { %1065 = vst [vmem:[%s1626_s9 + $0x90] sm:$0xff] %v993_v22  ;;  %v996_v26 = vadd.f32 %v1323_v25, %v1620_v52  ;;  %v987_v27 = vpop.f32.mrb[19].mxu1 }
 0x1fd   : > { %1063 = vst [vmem:[%s1626_s9 + $0x80] sm:$0xff] %v985_v24  ;;  %v988_v28 = vadd.f32 %v1620_v52, %v987_v27 }
 0x1fe   : > { %1066 = vst [vmem:[%s1626_s9 + $0x98] sm:$0xff] %v996_v26 }
 0x1ff   : > { %1064 = vst [vmem:[%s1626_s9 + $0x88] sm:$0xff] %v988_v28 }
 0x201   : > { %v1326_v29 = vpop.f32.mrb[20].mxu1 }
 0x202   : > { %v1009_v30 = vadd.f32 %v1326_v29, %v1620_v52  ;;  %v1000_v31 = vpop.f32.mrb[21].mxu1 }
 0x203   : > { %v1001_v32 = vadd.f32 %v1620_v52, %v1000_v31  ;;  %v1327_v33 = vpop.f32.mrb[22].mxu1 }
 0x204   : > { %1069 = vst [vmem:[%s1626_s9 + $0xb0] sm:$0xff] %v1009_v30  ;;  %v1012_v34 = vadd.f32 %v1327_v33, %v1620_v52  ;;  %v1003_v35 = vpop.f32.mrb[23].mxu1 }
 0x205   : > { %1067 = vst [vmem:[%s1626_s9 + $0xa0] sm:$0xff] %v1001_v32  ;;  %v1004_v36 = vadd.f32 %v1620_v52, %v1003_v35 }
 0x206   : > { %1070 = vst [vmem:[%s1626_s9 + $0xb8] sm:$0xff] %v1012_v34 }
 0x207   : > { %1068 = vst [vmem:[%s1626_s9 + $0xa8] sm:$0xff] %v1004_v36 }
 0x209   : > { %v1330_v37 = vpop.f32.mrb[24].mxu1 }
 0x20a   : > { %v1025_v38 = vadd.f32 %v1330_v37, %v1620_v52  ;;  %v1016_v39 = vpop.f32.mrb[25].mxu1 }
 0x20b   : > { %v1017_v40 = vadd.f32 %v1620_v52, %v1016_v39  ;;  %v1331_v41 = vpop.f32.mrb[26].mxu1 }
 0x20c   : > { %1073 = vst [vmem:[%s1626_s9 + $0xd0] sm:$0xff] %v1025_v38  ;;  %v1028_v42 = vadd.f32 %v1331_v41, %v1620_v52  ;;  %v1019_v43 = vpop.f32.mrb[27].mxu1 }
 0x20d   : > { %1071 = vst [vmem:[%s1626_s9 + $0xc0] sm:$0xff] %v1017_v40  ;;  %v1020_v44 = vadd.f32 %v1620_v52, %v1019_v43 }
 0x20e   : > { %1074 = vst [vmem:[%s1626_s9 + $0xd8] sm:$0xff] %v1028_v42 }
 0x20f   : > { %1072 = vst [vmem:[%s1626_s9 + $0xc8] sm:$0xff] %v1020_v44 }
 0x211   : > { %v1334_v45 = vpop.f32.mrb[28].mxu1 }
 0x212   : > { %v1041_v46 = vadd.f32 %v1334_v45, %v1620_v52  ;;  %v1032_v47 = vpop.f32.mrb[29].mxu1 }
 0x213   : > { %v1033_v48 = vadd.f32 %v1620_v52, %v1032_v47  ;;  %v1335_v49 = vpop.f32.mrb[30].mxu1 }
 0x214   : > { %1077 = vst [vmem:[%s1626_s9 + $0xf0] sm:$0xff] %v1041_v46  ;;  %v1044_v50 = vadd.f32 %v1335_v49, %v1620_v52  ;;  %v1035_v51 = vpop.f32.mrb[31].mxu1 }
 0x215   : > { %1075 = vst [vmem:[%s1626_s9 + $0xe0] sm:$0xff] %v1033_v48  ;;  %v1036_v12 = vadd.f32 %v1620_v52, %v1035_v51 }
 0x216   : > { %1078 = vst [vmem:[%s1626_s9 + $0xf8] sm:$0xff] %v1044_v50 }
 0x217   : > { %1076 = vst [vmem:[%s1626_s9 + $0xe8] sm:$0xff] %v1036_v12 }
 0x218 PF: > { %s17_s24 = sadd.s32 1, %s1366_s24  }
 0x219   : > { %p14_p4 = scmp.ge.s32.totalorder %s17_s24, 5  }
 0x21b   :  { %16 = sbr.rel (!%p14_p4) target bundleno = 1 (0x1), region = 84 }

// kernel: forward_pallas.11
= control target key start
LH: loop header
LB: loop body
LE: loop exit
PB: predicated region body
PF: predicated region fallthrough
CT: control target
= control target key end

     0   :  { %s5159_s13 = smov 0   ;;  %s7475_s0 = inlined_call_operand.vmem [shape: f32[768,128], index: 0, kind: input, shape index: {}]   ;;  %s7476_s1 = inlined_call_operand.vmem [shape: bf16[768,256], index: 1, kind: input, shape index: {}]   ;;  %s7477_s2 = inlined_call_operand.vmem [shape: bf16[768,256], index: 2, kind: input, shape index: {}]   ;;  %s7478_s3 = inlined_call_operand.vmem [shape: s32[1,768], index: 3, kind: input, shape index: {}]   ;;  %s7479_s4 = inlined_call_operand.vmem [shape: s32[1,768], index: 4, kind: input, shape index: {}]   ;;  %s7480_s5 = inlined_call_operand.vmem [shape: f32[384,128], index: 5, kind: input, shape index: {}]   ;;  %s7481_s6 = inlined_call_operand.vmem [shape: f32[384,128], index: 6, kind: input, shape index: {}]   ;;  %s7482_s7 = inlined_call_operand.vmem [shape: bf16[128,128], index: 7, kind: input, shape index: {}]   ;;  %s7483_s8 = inlined_call_operand.vmem [shape: f32[5,1,128], index: 8, kind: input, shape index: {}]   ;;  %s7484_s9 = inlined_call_operand.vmem [shape: f32[384,128], index: 9, kind: output, shape index: {0}]   ;;  %s7485_s10 = inlined_call_operand.vmem [shape: f32[768,128], index: 10, kind: output, shape index: {1}]  }
   0x1 LB: > { %s5165_s14 = sadd.s32 4294967295, %s5100_s13   ;;  %p4371_p0 = scmp.ge.s32.totalorder %s5100_s13, 1  ;;  %s5100_s13 = sphi %s5159_s13, %s21_s13  }
   0x2   : > { %p355_p1 = scmp.lt.s32.totalorder %s5100_s13, 4 }
   0x4   : > { %p356_p2 = pnand %p4371_p0, %p355_p1 }
   0x6   : > { %359 = sbr.rel (%p356_p2) target bundleno = 1067 (0x42b), region = 56 }
   0xd   : > { %s4372_s15 = sshll.u32 %s5165_s14, 5  ;;  %s4380_s16 = sshll.u32 %s5165_s14, 1 }
   0xe   : > { %p414_p3 = scmp.lt.s32.totalorder %s4372_s15, 95  ;;  %p434_p4 = scmp.lt.s32.totalorder %s4380_s16, 5 }
   0xf   : > { %p4384_p5 = scmp.ne.s32.totalorder %s5165_s14, 0 }
  0x10   : > { %s7763_s15 = smov (!%p414_p3, %s4372_s15), 95  ;;  %s7765_s16 = smov (!%p434_p4, %s4380_s16), 5 }
  0x11   : > { %s4373_s17 = sshll.u32 %s7763_s15, 3  ;;  %s436_s29 = scalar_lea.vmem %s7478_s3, %s7765_s16  ;;  %v5102_v0 = vmov (!%p4384_p5), 0.0  }
  0x12   : > { %s5176_s20 = scalar_lea.vmem %s7475_s0, %s4373_s17  ;;  %s5181_s23 = scalar_lea.vmem %s7476_s1, %s4373_s17  ;;  %454 = vst [vmem:[#allocation2] sm:$0xff] (!%p4384_p5), %v5102_v0  ;;  %455 = vst [vmem:[#allocation2 + $0x8] sm:$0xff] (!%p4384_p5), %v5102_v0 }
  0x13   : > { %s5186_s26 = scalar_lea.vmem %s7477_s2, %s4373_s17  ;;  %s441_s12 = scalar_lea.vmem %s7479_s4, %s7765_s16  ;;  %456 = vst [vmem:[#allocation2 + $0x10] sm:$0xff] (!%p4384_p5), %v5102_v0  ;;  %457 = vst [vmem:[#allocation2 + $0x18] sm:$0xff] (!%p4384_p5), %v5102_v0 }
  0x14   : > { %s5199_s19 = scalar_lea.vmem %s7485_s10, %s4373_s17  ;;  %453 = sbr.rel (%p4384_p5) target bundleno = 114 (0x72), region = 60  ;;  %458 = vst [vmem:[#allocation2 + $0x20] sm:$0xff] (!%p4384_p5), %v5102_v0  ;;  %459 = vst [vmem:[#allocation2 + $0x28] sm:$0xff] (!%p4384_p5), %v5102_v0 }
  0x15   : > { %460 = vst [vmem:[#allocation2 + $0x30] sm:$0xff] (!%p4384_p5), %v5102_v0  ;;  %461 = vst [vmem:[#allocation2 + $0x38] sm:$0xff] (!%p4384_p5), %v5102_v0 }
  0x16   : > { %462 = vst [vmem:[#allocation2 + $0x40] sm:$0xff] (!%p4384_p5), %v5102_v0  ;;  %463 = vst [vmem:[#allocation2 + $0x48] sm:$0xff] (!%p4384_p5), %v5102_v0 }
  0x17   : > { %464 = vst [vmem:[#allocation2 + $0x50] sm:$0xff] (!%p4384_p5), %v5102_v0  ;;  %465 = vst [vmem:[#allocation2 + $0x58] sm:$0xff] (!%p4384_p5), %v5102_v0 }
  0x18   : > { %466 = vst [vmem:[#allocation2 + $0x60] sm:$0xff] (!%p4384_p5), %v5102_v0  ;;  %467 = vst [vmem:[#allocation2 + $0x68] sm:$0xff] (!%p4384_p5), %v5102_v0 }
  0x19   : > { %468 = vst [vmem:[#allocation2 + $0x70] sm:$0xff] (!%p4384_p5), %v5102_v0  ;;  %469 = vst [vmem:[#allocation2 + $0x78] sm:$0xff] (!%p4384_p5), %v5102_v0 }
  0x1a   : > { %470 = vst [vmem:[#allocation2 + $0x80] sm:$0xff] (!%p4384_p5), %v5102_v0  ;;  %471 = vst [vmem:[#allocation2 + $0x88] sm:$0xff] (!%p4384_p5), %v5102_v0 }
  0x1b   : > { %472 = vst [vmem:[#allocation2 + $0x90] sm:$0xff] %v5102_v0  ;;  %473 = vst [vmem:[#allocation2 + $0x98] sm:$0xff] %v5102_v0 }
  0x1c   : > { %474 = vst [vmem:[#allocation2 + $0xa0] sm:$0xff] %v5102_v0  ;;  %475 = vst [vmem:[#allocation2 + $0xa8] sm:$0xff] %v5102_v0 }
  0x1d   : > { %476 = vst [vmem:[#allocation2 + $0xb0] sm:$0xff] %v5102_v0  ;;  %477 = vst [vmem:[#allocation2 + $0xb8] sm:$0xff] %v5102_v0 }
  0x1e   : > { %478 = vst [vmem:[#allocation2 + $0xc0] sm:$0xff] %v5102_v0  ;;  %479 = vst [vmem:[#allocation2 + $0xc8] sm:$0xff] %v5102_v0 }
  0x1f   : > { %480 = vst [vmem:[#allocation2 + $0xd0] sm:$0xff] %v5102_v0  ;;  %481 = vst [vmem:[#allocation2 + $0xd8] sm:$0xff] %v5102_v0 }
  0x20   : > { %482 = vst [vmem:[#allocation2 + $0xe0] sm:$0xff] %v5102_v0  ;;  %483 = vst [vmem:[#allocation2 + $0xe8] sm:$0xff] %v5102_v0 }
  0x21   : > { %484 = vst [vmem:[#allocation2 + $0xf0] sm:$0xff] %v5102_v0  ;;  %485 = vst [vmem:[#allocation2 + $0xf8] sm:$0xff] %v5102_v0 }
  0x22   : > { %486 = vst [vmem:[#allocation2 + $0x100] sm:$0xff] %v5102_v0  ;;  %487 = vst [vmem:[#allocation2 + $0x108] sm:$0xff] %v5102_v0 }
  0x23   : > { %488 = vst [vmem:[#allocation2 + $0x110] sm:$0xff] %v5102_v0  ;;  %489 = vst [vmem:[#allocation2 + $0x118] sm:$0xff] %v5102_v0 }
  0x24   : > { %490 = vst [vmem:[#allocation2 + $0x120] sm:$0xff] %v5102_v0  ;;  %491 = vst [vmem:[#allocation2 + $0x128] sm:$0xff] %v5102_v0 }
  0x25   : > { %492 = vst [vmem:[#allocation2 + $0x130] sm:$0xff] %v5102_v0  ;;  %493 = vst [vmem:[#allocation2 + $0x138] sm:$0xff] %v5102_v0 }
  0x26   : > { %494 = vst [vmem:[#allocation2 + $0x140] sm:$0xff] %v5102_v0  ;;  %495 = vst [vmem:[#allocation2 + $0x148] sm:$0xff] %v5102_v0 }
  0x27   : > { %496 = vst [vmem:[#allocation2 + $0x150] sm:$0xff] %v5102_v0  ;;  %497 = vst [vmem:[#allocation2 + $0x158] sm:$0xff] %v5102_v0 }
  0x28   : > { %498 = vst [vmem:[#allocation2 + $0x160] sm:$0xff] %v5102_v0  ;;  %499 = vst [vmem:[#allocation2 + $0x168] sm:$0xff] %v5102_v0 }
  0x29   : > { %500 = vst [vmem:[#allocation2 + $0x170] sm:$0xff] %v5102_v0  ;;  %501 = vst [vmem:[#allocation2 + $0x178] sm:$0xff] %v5102_v0 }
  0x2a   : > { %502 = vst [vmem:[#allocation2 + $0x180] sm:$0xff] %v5102_v0  ;;  %503 = vst [vmem:[#allocation2 + $0x188] sm:$0xff] %v5102_v0 }
  0x2b   : > { %504 = vst [vmem:[#allocation2 + $0x190] sm:$0xff] %v5102_v0  ;;  %505 = vst [vmem:[#allocation2 + $0x198] sm:$0xff] %v5102_v0 }
  0x2c   : > { %506 = vst [vmem:[#allocation2 + $0x1a0] sm:$0xff] %v5102_v0  ;;  %507 = vst [vmem:[#allocation2 + $0x1a8] sm:$0xff] %v5102_v0 }
  0x2d   : > { %508 = vst [vmem:[#allocation2 + $0x1b0] sm:$0xff] %v5102_v0  ;;  %509 = vst [vmem:[#allocation2 + $0x1b8] sm:$0xff] %v5102_v0 }
  0x2e   : > { %510 = vst [vmem:[#allocation2 + $0x1c0] sm:$0xff] %v5102_v0  ;;  %511 = vst [vmem:[#allocation2 + $0x1c8] sm:$0xff] %v5102_v0 }
  0x2f   : > { %512 = vst [vmem:[#allocation2 + $0x1d0] sm:$0xff] %v5102_v0  ;;  %513 = vst [vmem:[#allocation2 + $0x1d8] sm:$0xff] %v5102_v0 }
  0x30   : > { %514 = vst [vmem:[#allocation2 + $0x1e0] sm:$0xff] %v5102_v0  ;;  %515 = vst [vmem:[#allocation2 + $0x1e8] sm:$0xff] %v5102_v0 }
  0x31   : > { %516 = vst [vmem:[#allocation2 + $0x1f0] sm:$0xff] %v5102_v0  ;;  %517 = vst [vmem:[#allocation2 + $0x1f8] sm:$0xff] %v5102_v0 }
  0x32   : > { %518 = vst [vmem:[#allocation2 + $0x200] sm:$0xff] %v5102_v0  ;;  %519 = vst [vmem:[#allocation2 + $0x208] sm:$0xff] %v5102_v0 }
  0x33   : > { %520 = vst [vmem:[#allocation2 + $0x210] sm:$0xff] %v5102_v0  ;;  %521 = vst [vmem:[#allocation2 + $0x218] sm:$0xff] %v5102_v0 }
  0x34   : > { %522 = vst [vmem:[#allocation2 + $0x220] sm:$0xff] %v5102_v0  ;;  %523 = vst [vmem:[#allocation2 + $0x228] sm:$0xff] %v5102_v0 }
  0x35   : > { %524 = vst [vmem:[#allocation2 + $0x230] sm:$0xff] %v5102_v0  ;;  %525 = vst [vmem:[#allocation2 + $0x238] sm:$0xff] %v5102_v0 }
  0x36   : > { %526 = vst [vmem:[#allocation2 + $0x240] sm:$0xff] %v5102_v0  ;;  %527 = vst [vmem:[#allocation2 + $0x248] sm:$0xff] %v5102_v0 }
  0x37   : > { %528 = vst [vmem:[#allocation2 + $0x250] sm:$0xff] %v5102_v0  ;;  %529 = vst [vmem:[#allocation2 + $0x258] sm:$0xff] %v5102_v0 }
  0x38   : > { %530 = vst [vmem:[#allocation2 + $0x260] sm:$0xff] %v5102_v0  ;;  %531 = vst [vmem:[#allocation2 + $0x268] sm:$0xff] %v5102_v0 }
  0x39   : > { %532 = vst [vmem:[#allocation2 + $0x270] sm:$0xff] %v5102_v0  ;;  %533 = vst [vmem:[#allocation2 + $0x278] sm:$0xff] %v5102_v0 }
  0x3a   : > { %534 = vst [vmem:[#allocation2 + $0x280] sm:$0xff] %v5102_v0  ;;  %535 = vst [vmem:[#allocation2 + $0x288] sm:$0xff] %v5102_v0 }
  0x3b   : > { %536 = vst [vmem:[#allocation2 + $0x290] sm:$0xff] %v5102_v0  ;;  %537 = vst [vmem:[#allocation2 + $0x298] sm:$0xff] %v5102_v0 }
  0x3c   : > { %538 = vst [vmem:[#allocation2 + $0x2a0] sm:$0xff] %v5102_v0  ;;  %539 = vst [vmem:[#allocation2 + $0x2a8] sm:$0xff] %v5102_v0 }
  0x3d   : > { %540 = vst [vmem:[#allocation2 + $0x2b0] sm:$0xff] %v5102_v0  ;;  %541 = vst [vmem:[#allocation2 + $0x2b8] sm:$0xff] %v5102_v0 }
  0x3e   : > { %542 = vst [vmem:[#allocation2 + $0x2c0] sm:$0xff] %v5102_v0  ;;  %543 = vst [vmem:[#allocation2 + $0x2c8] sm:$0xff] %v5102_v0 }
  0x3f   : > { %544 = vst [vmem:[#allocation2 + $0x2d0] sm:$0xff] %v5102_v0  ;;  %545 = vst [vmem:[#allocation2 + $0x2d8] sm:$0xff] %v5102_v0 }
  0x40   : > { %546 = vst [vmem:[#allocation2 + $0x2e0] sm:$0xff] %v5102_v0  ;;  %547 = vst [vmem:[#allocation2 + $0x2e8] sm:$0xff] %v5102_v0 }
  0x41   : > { %548 = vst [vmem:[#allocation2 + $0x2f0] sm:$0xff] %v5102_v0  ;;  %549 = vst [vmem:[#allocation2 + $0x2f8] sm:$0xff] %v5102_v0 }
  0x42   : > { %550 = vst [vmem:[#allocation2 + $0x300] sm:$0xff] %v5102_v0  ;;  %551 = vst [vmem:[#allocation2 + $0x308] sm:$0xff] %v5102_v0 }
  0x43   : > { %552 = vst [vmem:[#allocation2 + $0x310] sm:$0xff] %v5102_v0  ;;  %553 = vst [vmem:[#allocation2 + $0x318] sm:$0xff] %v5102_v0 }
  0x44   : > { %554 = vst [vmem:[#allocation2 + $0x320] sm:$0xff] %v5102_v0  ;;  %555 = vst [vmem:[#allocation2 + $0x328] sm:$0xff] %v5102_v0 }
  0x45   : > { %556 = vst [vmem:[#allocation2 + $0x330] sm:$0xff] %v5102_v0  ;;  %557 = vst [vmem:[#allocation2 + $0x338] sm:$0xff] %v5102_v0 }
  0x46   : > { %558 = vst [vmem:[#allocation2 + $0x340] sm:$0xff] %v5102_v0  ;;  %559 = vst [vmem:[#allocation2 + $0x348] sm:$0xff] %v5102_v0 }
  0x47   : > { %560 = vst [vmem:[#allocation2 + $0x350] sm:$0xff] %v5102_v0  ;;  %561 = vst [vmem:[#allocation2 + $0x358] sm:$0xff] %v5102_v0 }
  0x48   : > { %562 = vst [vmem:[#allocation2 + $0x360] sm:$0xff] %v5102_v0  ;;  %563 = vst [vmem:[#allocation2 + $0x368] sm:$0xff] %v5102_v0 }
  0x49   : > { %564 = vst [vmem:[#allocation2 + $0x370] sm:$0xff] %v5102_v0  ;;  %565 = vst [vmem:[#allocation2 + $0x378] sm:$0xff] %v5102_v0 }
  0x4a   : > { %566 = vst [vmem:[#allocation2 + $0x380] sm:$0xff] %v5102_v0  ;;  %567 = vst [vmem:[#allocation2 + $0x388] sm:$0xff] %v5102_v0 }
  0x4b   : > { %568 = vst [vmem:[#allocation2 + $0x390] sm:$0xff] %v5102_v0  ;;  %569 = vst [vmem:[#allocation2 + $0x398] sm:$0xff] %v5102_v0 }
  0x4c   : > { %570 = vst [vmem:[#allocation2 + $0x3a0] sm:$0xff] %v5102_v0  ;;  %571 = vst [vmem:[#allocation2 + $0x3a8] sm:$0xff] %v5102_v0 }
  0x4d   : > { %572 = vst [vmem:[#allocation2 + $0x3b0] sm:$0xff] %v5102_v0  ;;  %573 = vst [vmem:[#allocation2 + $0x3b8] sm:$0xff] %v5102_v0 }
  0x4e   : > { %574 = vst [vmem:[#allocation2 + $0x3c0] sm:$0xff] %v5102_v0  ;;  %575 = vst [vmem:[#allocation2 + $0x3c8] sm:$0xff] %v5102_v0 }
  0x4f   : > { %576 = vst [vmem:[#allocation2 + $0x3d0] sm:$0xff] %v5102_v0  ;;  %577 = vst [vmem:[#allocation2 + $0x3d8] sm:$0xff] %v5102_v0 }
  0x50   : > { %578 = vst [vmem:[#allocation2 + $0x3e0] sm:$0xff] %v5102_v0  ;;  %579 = vst [vmem:[#allocation2 + $0x3e8] sm:$0xff] %v5102_v0 }
  0x51   : > { %580 = vst [vmem:[#allocation2 + $0x3f0] sm:$0xff] %v5102_v0  ;;  %581 = vst [vmem:[#allocation2 + $0x3f8] sm:$0xff] %v5102_v0 }
  0x52   : > { %582 = vst [vmem:[#allocation2 + $0x400] sm:$0xff] %v5102_v0  ;;  %583 = vst [vmem:[#allocation2 + $0x408] sm:$0xff] %v5102_v0 }
  0x53   : > { %584 = vst [vmem:[#allocation2 + $0x410] sm:$0xff] %v5102_v0  ;;  %585 = vst [vmem:[#allocation2 + $0x418] sm:$0xff] %v5102_v0 }
  0x54   : > { %586 = vst [vmem:[#allocation2 + $0x420] sm:$0xff] %v5102_v0  ;;  %587 = vst [vmem:[#allocation2 + $0x428] sm:$0xff] %v5102_v0 }
  0x55   : > { %588 = vst [vmem:[#allocation2 + $0x430] sm:$0xff] %v5102_v0  ;;  %589 = vst [vmem:[#allocation2 + $0x438] sm:$0xff] %v5102_v0 }
  0x56   : > { %590 = vst [vmem:[#allocation2 + $0x440] sm:$0xff] %v5102_v0  ;;  %591 = vst [vmem:[#allocation2 + $0x448] sm:$0xff] %v5102_v0 }
  0x57   : > { %592 = vst [vmem:[#allocation2 + $0x450] sm:$0xff] %v5102_v0  ;;  %593 = vst [vmem:[#allocation2 + $0x458] sm:$0xff] %v5102_v0 }
  0x58   : > { %594 = vst [vmem:[#allocation2 + $0x460] sm:$0xff] %v5102_v0  ;;  %595 = vst [vmem:[#allocation2 + $0x468] sm:$0xff] %v5102_v0 }
  0x59   : > { %596 = vst [vmem:[#allocation2 + $0x470] sm:$0xff] %v5102_v0  ;;  %597 = vst [vmem:[#allocation2 + $0x478] sm:$0xff] %v5102_v0 }
  0x5a   : > { %598 = vst [vmem:[#allocation2 + $0x480] sm:$0xff] %v5102_v0  ;;  %599 = vst [vmem:[#allocation2 + $0x488] sm:$0xff] %v5102_v0 }
  0x5b   : > { %600 = vst [vmem:[#allocation2 + $0x490] sm:$0xff] %v5102_v0  ;;  %601 = vst [vmem:[#allocation2 + $0x498] sm:$0xff] %v5102_v0 }
  0x5c   : > { %602 = vst [vmem:[#allocation2 + $0x4a0] sm:$0xff] %v5102_v0  ;;  %603 = vst [vmem:[#allocation2 + $0x4a8] sm:$0xff] %v5102_v0 }
  0x5d   : > { %604 = vst [vmem:[#allocation2 + $0x4b0] sm:$0xff] %v5102_v0  ;;  %605 = vst [vmem:[#allocation2 + $0x4b8] sm:$0xff] %v5102_v0 }
  0x5e   : > { %606 = vst [vmem:[#allocation2 + $0x4c0] sm:$0xff] %v5102_v0  ;;  %607 = vst [vmem:[#allocation2 + $0x4c8] sm:$0xff] %v5102_v0 }
  0x5f   : > { %608 = vst [vmem:[#allocation2 + $0x4d0] sm:$0xff] %v5102_v0  ;;  %609 = vst [vmem:[#allocation2 + $0x4d8] sm:$0xff] %v5102_v0 }
  0x60   : > { %610 = vst [vmem:[#allocation2 + $0x4e0] sm:$0xff] %v5102_v0  ;;  %611 = vst [vmem:[#allocation2 + $0x4e8] sm:$0xff] %v5102_v0 }
  0x61   : > { %612 = vst [vmem:[#allocation2 + $0x4f0] sm:$0xff] %v5102_v0  ;;  %613 = vst [vmem:[#allocation2 + $0x4f8] sm:$0xff] %v5102_v0 }
  0x62   : > { %614 = vst [vmem:[#allocation2 + $0x500] sm:$0xff] %v5102_v0  ;;  %615 = vst [vmem:[#allocation2 + $0x508] sm:$0xff] %v5102_v0 }
  0x63   : > { %616 = vst [vmem:[#allocation2 + $0x510] sm:$0xff] %v5102_v0  ;;  %617 = vst [vmem:[#allocation2 + $0x518] sm:$0xff] %v5102_v0 }
  0x64   : > { %618 = vst [vmem:[#allocation2 + $0x520] sm:$0xff] %v5102_v0  ;;  %619 = vst [vmem:[#allocation2 + $0x528] sm:$0xff] %v5102_v0 }
  0x65   : > { %620 = vst [vmem:[#allocation2 + $0x530] sm:$0xff] %v5102_v0  ;;  %621 = vst [vmem:[#allocation2 + $0x538] sm:$0xff] %v5102_v0 }
  0x66   : > { %622 = vst [vmem:[#allocation2 + $0x540] sm:$0xff] %v5102_v0  ;;  %623 = vst [vmem:[#allocation2 + $0x548] sm:$0xff] %v5102_v0 }
  0x67   : > { %624 = vst [vmem:[#allocation2 + $0x550] sm:$0xff] %v5102_v0  ;;  %625 = vst [vmem:[#allocation2 + $0x558] sm:$0xff] %v5102_v0 }
  0x68   : > { %626 = vst [vmem:[#allocation2 + $0x560] sm:$0xff] %v5102_v0  ;;  %627 = vst [vmem:[#allocation2 + $0x568] sm:$0xff] %v5102_v0 }
  0x69   : > { %628 = vst [vmem:[#allocation2 + $0x570] sm:$0xff] %v5102_v0  ;;  %629 = vst [vmem:[#allocation2 + $0x578] sm:$0xff] %v5102_v0 }
  0x6a   : > { %630 = vst [vmem:[#allocation2 + $0x580] sm:$0xff] %v5102_v0  ;;  %631 = vst [vmem:[#allocation2 + $0x588] sm:$0xff] %v5102_v0 }
  0x6b   : > { %632 = vst [vmem:[#allocation2 + $0x590] sm:$0xff] %v5102_v0  ;;  %633 = vst [vmem:[#allocation2 + $0x598] sm:$0xff] %v5102_v0 }
  0x6c   : > { %634 = vst [vmem:[#allocation2 + $0x5a0] sm:$0xff] %v5102_v0  ;;  %635 = vst [vmem:[#allocation2 + $0x5a8] sm:$0xff] %v5102_v0 }
  0x6d   : > { %636 = vst [vmem:[#allocation2 + $0x5b0] sm:$0xff] %v5102_v0  ;;  %637 = vst [vmem:[#allocation2 + $0x5b8] sm:$0xff] %v5102_v0 }
  0x6e   : > { %638 = vst [vmem:[#allocation2 + $0x5c0] sm:$0xff] %v5102_v0  ;;  %639 = vst [vmem:[#allocation2 + $0x5c8] sm:$0xff] %v5102_v0 }
  0x6f   : > { %640 = vst [vmem:[#allocation2 + $0x5d0] sm:$0xff] %v5102_v0  ;;  %641 = vst [vmem:[#allocation2 + $0x5d8] sm:$0xff] %v5102_v0 }
  0x70   : > { %642 = vst [vmem:[#allocation2 + $0x5e0] sm:$0xff] %v5102_v0  ;;  %643 = vst [vmem:[#allocation2 + $0x5e8] sm:$0xff] %v5102_v0 }
  0x71   : > { %644 = vst [vmem:[#allocation2 + $0x5f0] sm:$0xff] %v5102_v0  ;;  %645 = vst [vmem:[#allocation2 + $0x5f8] sm:$0xff] %v5102_v0 }
  0x72 PF: > { %v4745_v1 = vld [vmem:[%s7482_s7] sm:$0xff]   ;;  %v4746_v2 = vld [vmem:[%s7482_s7 + $0x8] sm:$0xff]   ;;  %v4747_v3 = vld [vmem:[%s7482_s7 + $0x10] sm:$0xff]   ;;  %p4622_p6 = scmp.ne.s32.totalorder %s5165_s14, 2 }
  0x73   : > { %4655 = vmatprep.subr.bf16.mxu0 %v4745_v1  ;;  %v4748_v4 = vld [vmem:[%s7482_s7 + $0x18] sm:$0xff]   ;;  %v5407_v5 = vld [vmem:[%s5176_s20] sm:$0xff]  ;;  %v5410_v6 = vld [vmem:[%s5176_s20 + $0x8] sm:$0xff] }
  0x74   : > { %4656 = vmatpush3.bf16.msra.mxu0 %v4745_v1  ;;  %7548 = vst [vmem:[#allocation3_spill] sm:$0xff] %v5407_v5  ;;  %7549 = vst [vmem:[#allocation4_spill] sm:$0xff] %v5410_v6  ;;  %v870_v7 = vpack.c.bf16 %v5410_v6, %v5407_v5  ;;  %v4749_v8 = vld [vmem:[%s7482_s7 + $0x20] sm:$0xff]   ;;  %v4750_v9 = vld [vmem:[%s7482_s7 + $0x28] sm:$0xff]  }
  0x75   : > { %4657 = vmatprep.subr.bf16.mxu0 %v4746_v2  ;;  %v4751_v10 = vld [vmem:[%s7482_s7 + $0x30] sm:$0xff]   ;;  %v4752_v11 = vld [vmem:[%s7482_s7 + $0x38] sm:$0xff]   ;;  %v5433_v14 = vld [vmem:[%s5176_s20 + $0x20] sm:$0xff] }
  0x76   : > { %4671 = vmatprep.mubr.bf16.mxu0 %v870_v7  ;;  %v5427_v12 = vld [vmem:[%s5176_s20 + $0x10] sm:$0xff]  ;;  %v5430_v13 = vld [vmem:[%s5176_s20 + $0x18] sm:$0xff]  ;;  %7552 = vst [vmem:[#allocation7_spill] sm:$0xff] %v5433_v14  ;;  %v5436_v15 = vld [vmem:[%s5176_s20 + $0x28] sm:$0xff] }
  0x77   : > { %7550 = vst [vmem:[#allocation5_spill] sm:$0xff] %v5427_v12  ;;  %7551 = vst [vmem:[#allocation6_spill] sm:$0xff] %v5430_v13  ;;  %v871_v16 = vpack.c.bf16 %v5430_v13, %v5427_v12  ;;  %v872_v17 = vpack.c.bf16 %v5436_v15, %v5433_v14  ;;  %v5443_v18 = vld [vmem:[%s5176_s20 + $0x30] sm:$0xff]  ;;  %v5446_v19 = vld [vmem:[%s5176_s20 + $0x38] sm:$0xff] }
  0x78   : > { %4658 = vmatpush3.bf16.msra.mxu0 %v4746_v2  ;;  %7553 = vst [vmem:[#allocation8_spill] sm:$0xff] %v5436_v15  ;;  %7554 = vst [vmem:[#allocation9_spill] sm:$0xff] %v5443_v18  ;;  %v5449_v20 = vld [vmem:[%s5176_s20 + $0x40] sm:$0xff]  ;;  %v5452_v21 = vld [vmem:[%s5176_s20 + $0x48] sm:$0xff]  ;;  %v873_v22 = vpack.c.bf16 %v5446_v19, %v5443_v18 }
  0x79   : > { %4659 = vmatprep.subr.bf16.mxu0 %v4747_v3  ;;  %7555 = vst [vmem:[#allocation10_spill] sm:$0xff] %v5446_v19  ;;  %7556 = vst [vmem:[#allocation11_spill] sm:$0xff] %v5449_v20  ;;  %v874_v23 = vpack.c.bf16 %v5452_v21, %v5449_v20  ;;  %v5459_v24 = vld [vmem:[%s5176_s20 + $0x50] sm:$0xff]  ;;  %v5462_v25 = vld [vmem:[%s5176_s20 + $0x58] sm:$0xff] }
  0x7a   : > { %7557 = vst [vmem:[#allocation12_spill] sm:$0xff] %v5452_v21  ;;  %7558 = vst [vmem:[#allocation13_spill] sm:$0xff] %v5459_v24  ;;  %v5465_v26 = vld [vmem:[%s5176_s20 + $0x60] sm:$0xff]  ;;  %v5468_v27 = vld [vmem:[%s5176_s20 + $0x68] sm:$0xff]  ;;  %v875_v28 = vpack.c.bf16 %v5462_v25, %v5459_v24 }
  0x7b   : > { %7559 = vst [vmem:[#allocation14_spill] sm:$0xff] %v5462_v25  ;;  %7560 = vst [vmem:[#allocation15_spill] sm:$0xff] %v5465_v26  ;;  %v876_v29 = vpack.c.bf16 %v5468_v27, %v5465_v26  ;;  %v5475_v30 = vld [vmem:[%s5176_s20 + $0x70] sm:$0xff]  ;;  %v5478_v31 = vld [vmem:[%s5176_s20 + $0x78] sm:$0xff] }
  0x7c   : > { %4660 = vmatpush3.bf16.msra.mxu0 %v4747_v3  ;;  %7561 = vst [vmem:[#allocation16_spill] sm:$0xff] %v5468_v27  ;;  %7562 = vst [vmem:[#allocation17_spill] sm:$0xff] %v5475_v30  ;;  %v5481_v32 = vld [vmem:[%s5176_s20 + $0x80] sm:$0xff]  ;;  %v5484_v33 = vld [vmem:[%s5176_s20 + $0x88] sm:$0xff]  ;;  %v877_v34 = vpack.c.bf16 %v5478_v31, %v5475_v30 }
  0x7d   : > { %4661 = vmatprep.subr.bf16.mxu0 %v4748_v4  ;;  %7563 = vst [vmem:[#allocation18_spill] sm:$0xff] %v5478_v31  ;;  %7564 = vst [vmem:[#allocation19_spill] sm:$0xff] %v5481_v32  ;;  %v878_v35 = vpack.c.bf16 %v5484_v33, %v5481_v32  ;;  %v5491_v36 = vld [vmem:[%s5176_s20 + $0x90] sm:$0xff]  ;;  %v5494_v37 = vld [vmem:[%s5176_s20 + $0x98] sm:$0xff] }
  0x7e   : > { %7565 = vst [vmem:[#allocation20_spill] sm:$0xff] %v5484_v33  ;;  %7566 = vst [vmem:[#allocation21_spill] sm:$0xff] %v5491_v36  ;;  %v666_v38 = vld [vmem:[%s5176_s20 + $0xa0] sm:$0xff]  ;;  %v667_v39 = vld [vmem:[%s5176_s20 + $0xa8] sm:$0xff]  ;;  %v879_v40 = vpack.c.bf16 %v5494_v37, %v5491_v36 }
  0x7f   : > { %7567 = vst [vmem:[#allocation22_spill] sm:$0xff] %v5494_v37  ;;  %v880_v41 = vpack.c.bf16 %v667_v39, %v666_v38  ;;  %v5501_v42 = vld [vmem:[%s5176_s20 + $0xb0] sm:$0xff]  ;;  %v669_v43 = vld [vmem:[%s5176_s20 + $0xb8] sm:$0xff]  ;;  %v670_v44 = vld [vmem:[%s5176_s20 + $0xc0] sm:$0xff] }
  0x80   : > { %4662 = vmatpush3.bf16.msra.mxu0 %v4748_v4  ;;  %7568 = vst [vmem:[#allocation23_spill] sm:$0xff] %v5501_v42  ;;  %v671_v45 = vld [vmem:[%s5176_s20 + $0xc8] sm:$0xff]  ;;  %v881_v46 = vpack.c.bf16 %v669_v43, %v5501_v42  ;;  %v672_v48 = vld [vmem:[%s5176_s20 + $0xd0] sm:$0xff]  ;;  %v673_v49 = vld [vmem:[%s5176_s20 + $0xd8] sm:$0xff] }
  0x81   : > { %4663 = vmatprep.subr.bf16.mxu0 %v4749_v8  ;;  %v882_v47 = vpack.c.bf16 %v671_v45, %v670_v44  ;;  %v674_v50 = vld [vmem:[%s5176_s20 + $0xe0] sm:$0xff]  ;;  %v675_v51 = vld [vmem:[%s5176_s20 + $0xe8] sm:$0xff]  ;;  %v883_v52 = vpack.c.bf16 %v673_v49, %v672_v48  ;;  %v676_v54 = vld [vmem:[%s5176_s20 + $0xf0] sm:$0xff] }
  0x82   : > { %v884_v53 = vpack.c.bf16 %v675_v51, %v674_v50  ;;  %v677_v55 = vld [vmem:[%s5176_s20 + $0xf8] sm:$0xff]  ;;  %v5514_v57 = vld [vmem:[%s5181_s23 + $0x10] sm:$0xff]  ;;  %v5520_v59 = vld [vmem:[%s5181_s23] sm:$0xff] }
  0x83   : > { %v885_v56 = vpack.c.bf16 %v677_v55, %v676_v54  ;;  %7569 = vst [vmem:[#allocation24_spill] sm:$0xff] %v5514_v57  ;;  %v5517_v58 = vld [vmem:[%s5186_s26 + $0x10] sm:$0xff]  ;;  %v5523_v60 = vld [vmem:[%s5186_s26] sm:$0xff]  ;;  %v5526_v61 = vld [vmem:[%s5181_s23 + $0x18] sm:$0xff]  ;;  %v714_v7 = vunpack.c.l.bf16 %v5514_v57 }
  0x84   : > { %4664 = vmatpush3.bf16.msra.mxu0 %v4749_v8  ;;  %7570 = vst [vmem:[#allocation25_spill] sm:$0xff] %v5517_v58  ;;  %7571 = vst [vmem:[#allocation26_spill] sm:$0xff] %v5523_v60  ;;  %v5529_v62 = vld [vmem:[%s5186_s26 + $0x18] sm:$0xff]  ;;  %v5532_v63 = vld [vmem:[%s5181_s23 + $0x8] sm:$0xff] }
  0x85   : > { %4665 = vmatprep.subr.bf16.mxu0 %v4750_v9  ;;  %7572 = vst [vmem:[#allocation27_spill] sm:$0xff] %v5526_v61  ;;  %7573 = vst [vmem:[#allocation28_spill] sm:$0xff] %v5529_v62  ;;  %v5535_v0 = vld [vmem:[%s5186_s26 + $0x8] sm:$0xff]  ;;  %v5538_v1 = vld [vmem:[%s5181_s23 + $0x30] sm:$0xff]  ;;  %v712_v38 = vunpack.c.l.bf16 %v5532_v63 }
  0x86   : > { %7574 = vst [vmem:[#allocation29_spill] sm:$0xff] %v5535_v0  ;;  %v5541_v2 = vld [vmem:[%s5186_s26 + $0x30] sm:$0xff]  ;;  %v5544_v3 = vld [vmem:[%s5181_s23 + $0x20] sm:$0xff]  ;;  %v5551_v8 = vld [vmem:[%s5181_s23 + $0x38] sm:$0xff]  ;;  %v808_v39 = vunpack.c.l.bf16 %v5535_v0  ;;  %v722_v44 = vunpack.c.l.bf16 %v5538_v1 }
  0x87   : > { %7575 = vst [vmem:[#allocation30_spill] sm:$0xff] %v5541_v2  ;;  %v5547_v4 = vld [vmem:[%s5186_s26 + $0x20] sm:$0xff]  ;;  %v5583_v43 = vld [vmem:[%s5181_s23 + $0x58] sm:$0xff]  ;;  %v818_v45 = vunpack.c.l.bf16 %v5541_v2  ;;  %v5593_v49 = vld [vmem:[%s5181_s23 + $0x48] sm:$0xff]  ;;  %v724_v51 = vunpack.c.l.bf16 %v5551_v8 }
  0x88   : > { %4666 = vmatpush3.bf16.msra.mxu0 %v4750_v9  ;;  %7576 = vst [vmem:[#allocation31_spill] sm:$0xff] %v5547_v4  ;;  %v5554_v9 = vld [vmem:[%s5186_s26 + $0x38] sm:$0xff]  ;;  %v5596_v50 = vld [vmem:[%s5186_s26 + $0x48] sm:$0xff]  ;;  %v5603_v55 = vld [vmem:[%s5181_s23 + $0x70] sm:$0xff]  ;;  %v732_v37 = vunpack.c.l.bf16 %v5583_v43  ;;  %v728_v36 = vunpack.c.l.bf16 %v5593_v49  ;;  %v5630_v15 = vadd.f32 %v808_v39, %v712_v38 }
  0x89   : > { %4667 = vmatprep.subr.bf16.mxu0 %v4751_v10  ;;  %7577 = vst [vmem:[#allocation32_spill] sm:$0xff] %v5554_v9  ;;  %v5590_v48 = vld [vmem:[%s5186_s26 + $0x58] sm:$0xff]  ;;  %7582 = vst [vmem:[#allocation37_spill] sm:$0xff] %v5596_v50  ;;  %v824_v27 = vunpack.c.l.bf16 %v5596_v50  ;;  %v5617_v31 = vld [vmem:[%s5181_s23 + $0x60] sm:$0xff]  ;;  %v738_v25 = vunpack.c.l.bf16 %v5603_v55  ;;  %v5632_v19 = vadd.f32 %v818_v45, %v722_v44 }
  0x8a   : > { %7581 = vst [vmem:[#allocation36_spill] sm:$0xff] %v5590_v48  ;;  %v828_v32 = vunpack.c.l.bf16 %v5590_v48  ;;  %v5620_v26 = vld [vmem:[%s5186_s26 + $0x60] sm:$0xff]  ;;  %v5637_v18 = vld [vmem:[%s5181_s23 + $0x78] sm:$0xff]  ;;  %v5652_v38 = vld [vmem:[%s5186_s26 + $0x68] sm:$0xff] }
  0x8b   : > { %7584 = vst [vmem:[#allocation39_spill] sm:$0xff] %v5620_v26  ;;  %7585 = vst [vmem:[#allocation40_spill] sm:$0xff] %v5632_v19  ;;  %v5727_v5 = vld [vmem:[%s5181_s23 + $0xb8] sm:$0xff]  ;;  %v5740_v13 = vld [vmem:[%s5186_s26 + $0xa8] sm:$0xff] }
  0x8c   : > { %4668 = vmatpush3.bf16.msra.mxu0 %v4751_v10  ;;  %v5557_v10 = vld [vmem:[%s5181_s23 + $0x28] sm:$0xff]  ;;  %7590 = vst [vmem:[#allocation45_spill] sm:$0xff] %v5652_v38  ;;  %v5658_v45 = vadd.f32 %v828_v32, %v732_v37  ;;  %v5677_v37 = vld [vmem:[%s5186_s26 + $0x80] sm:$0xff]  ;;  %7608 = vst [vmem:[#allocation63_spill] sm:$0xff] %v5727_v5  ;;  %v848_v19 = vunpack.c.l.bf16 %v5740_v13 }
  0x8d   : > { %4669 = vmatprep.subr.bf16.mxu0 %v4752_v11  ;;  %7597 = vst [vmem:[#allocation52_spill] sm:$0xff] %v5677_v37  ;;  %v838_v0 = vunpack.c.l.bf16 %v5677_v37  ;;  %7611 = vst [vmem:[#allocation66_spill] sm:$0xff] %v5740_v13  ;;  %v803_v37 = vld [vmem:[%s5186_s26 + $0xe8] sm:$0xff] }
  0x8e   : > { %7593 = vst [vmem:[#allocation48_spill] sm:$0xff] %v5658_v45 }
  0x90   : > { %4670 = vmatpush3.bf16.msra.mxu0 %v4752_v11  ;;  %v810_v11 = vunpack.c.l.bf16 %v5517_v58 }
  0x92   : > { %v5622_v30 = vadd.f32 %v810_v11, %v714_v7  ;;  %v5640_v7 = vld [vmem:[%s5186_s26 + $0x78] sm:$0xff] }
  0x93   : > { %4672 = vmatmul.mubr.bf16.vlgmr.msra.gmra.mrb[0].mxu0 %v871_v16  ;;  %7587 = vst [vmem:[#allocation42_spill] sm:$0xff] %v5640_v7  ;;  %v836_v32 = vunpack.c.l.bf16 %v5640_v7 }
  0x94   : > { %4675 = vmatprep.mubr.bf16.mxu0 %v872_v17  ;;  %v710_v17 = vunpack.c.l.bf16 %v5520_v59 }
  0x9b   : > { %4676 = vmatmul.mubr.bf16.gmra.mrb[4].mxu0 %v873_v22  ;;  %v806_v22 = vunpack.c.l.bf16 %v5523_v60  ;;  %v5730_v60 = vld [vmem:[%s5186_s26 + $0xb8] sm:$0xff] }
  0x9c   : > { %4679 = vmatprep.mubr.bf16.mxu0 %v874_v23  ;;  %v5564_v23 = vld [vmem:[%s5186_s26 + $0x28] sm:$0xff]  ;;  %7609 = vst [vmem:[#allocation64_spill] sm:$0xff] %v5730_v60 }
  0x9d   : > { %7578 = vst [vmem:[#allocation33_spill] sm:$0xff] %v5564_v23  ;;  %v816_v54 = vunpack.c.l.bf16 %v5564_v23  ;;  %v5624_v21 = vadd.f32 %v806_v22, %v710_v17  ;;  %v734_v22 = vunpack.c.l.bf16 %v5617_v31 }
  0xa3   : > { %4680 = vmatmul.mubr.bf16.gmra.mrb[8].mxu0 %v875_v28  ;;  %v5567_v28 = vld [vmem:[%s5181_s23 + $0x50] sm:$0xff] }
  0xa4   : > { %4683 = vmatprep.mubr.bf16.mxu0 %v876_v29  ;;  %v5570_v29 = vld [vmem:[%s5186_s26 + $0x50] sm:$0xff]  ;;  %v730_v16 = vunpack.c.l.bf16 %v5567_v28 }
  0xa5   : > { %7579 = vst [vmem:[#allocation34_spill] sm:$0xff] %v5570_v29  ;;  %v826_v58 = vunpack.c.l.bf16 %v5570_v29 }
  0xa7   : > { %v5654_v39 = vadd.f32 %v826_v58, %v730_v16  ;;  %v5690_v16 = vld [vmem:[%s5181_s23 + $0x88] sm:$0xff] }
  0xa9   : > { %7591 = vst [vmem:[#allocation46_spill] sm:$0xff] %v5654_v39  ;;  %v5708_v39 = vld [vmem:[%s5186_s26 + $0xb0] sm:$0xff] }
  0xaa   : > { %7603 = vst [vmem:[#allocation58_spill] sm:$0xff] %v5708_v39 }
  0xab   : > { %4684 = vmatmul.mubr.bf16.gmra.mrb[12].mxu0 %v877_v34  ;;  %v716_v34 = vunpack.c.l.bf16 %v5526_v61 }
  0xac   : > { %4687 = vmatprep.mubr.bf16.mxu0 %v878_v35  ;;  %v812_v35 = vunpack.c.l.bf16 %v5529_v62  ;;  %v5701_v62 = vld [vmem:[%s5181_s23 + $0xb0] sm:$0xff] }
  0xad   : > { %7602 = vst [vmem:[#allocation57_spill] sm:$0xff] %v5701_v62 }
  0xae   : > { %v5628_v24 = vadd.f32 %v812_v35, %v716_v34  ;;  %v830_v34 = vunpack.c.l.bf16 %v5620_v26  ;;  %v5649_v35 = vld [vmem:[%s5181_s23 + $0x68] sm:$0xff] }
  0xb3   : > { %4688 = vmatmul.mubr.bf16.gmra.mrb[16].mxu0 %v879_v40  ;;  %v5577_v40 = vld [vmem:[%s5181_s23 + $0x40] sm:$0xff] }
  0xb4   : > { %4691 = vmatprep.mubr.bf16.mxu0 %v880_v41  ;;  %v5580_v41 = vld [vmem:[%s5186_s26 + $0x40] sm:$0xff]  ;;  %v726_v42 = vunpack.c.l.bf16 %v5577_v40 }
  0xb5   : > { %7580 = vst [vmem:[#allocation35_spill] sm:$0xff] %v5580_v41  ;;  %v822_v33 = vunpack.c.l.bf16 %v5580_v41 }
  0xb7   : > { %v5656_v44 = vadd.f32 %v822_v33, %v726_v42  ;;  %v740_v33 = vunpack.c.l.bf16 %v5637_v18 }
  0xb9   : > { %7592 = vst [vmem:[#allocation47_spill] sm:$0xff] %v5656_v44  ;;  %v5717_v2 = vadd.f32 %v836_v32, %v740_v33  ;;  %v754_v33 = vunpack.c.l.bf16 %v5701_v62  ;;  %v850_v32 = vunpack.c.l.bf16 %v5708_v39 }
  0xbb   : > { %4692 = vmatmul.mubr.bf16.gmra.mrb[20].mxu0 %v881_v46  ;;  %v718_v46 = vunpack.c.l.bf16 %v5544_v3  ;;  %7606 = vst [vmem:[#allocation61_spill] sm:$0xff] %v5717_v2  ;;  %v5756_v2 = vld [vmem:[%s5181_s23 + $0xc0] sm:$0xff] }
  0xbc   : > { %4695 = vmatprep.mubr.bf16.mxu0 %v882_v47  ;;  %v814_v47 = vunpack.c.l.bf16 %v5547_v4  ;;  %v5750_v4 = vld [vmem:[%s5181_s23 + $0xd0] sm:$0xff]  ;;  %7616 = vst [vmem:[#allocation71_spill] sm:$0xff] %v5756_v2 }
  0xbd   : > { %7614 = vst [vmem:[#allocation69_spill] sm:$0xff] %v5750_v4  ;;  %v762_v48 = vunpack.c.l.bf16 %v5750_v4 }
  0xbe   : > { %v5634_v14 = vadd.f32 %v814_v47, %v718_v46  ;;  %v5660_v46 = vadd.f32 %v824_v27, %v728_v36  ;;  %v5663_v47 = vld [vmem:[%s5181_s23 + $0x90] sm:$0xff]  ;;  %v5680_v27 = vld [vmem:[%s5181_s23 + $0x98] sm:$0xff] }
  0xbf   : > { %7598 = vst [vmem:[#allocation53_spill] sm:$0xff] %v5680_v27  ;;  %v5683_v36 = vld [vmem:[%s5186_s26 + $0x98] sm:$0xff]  ;;  %v748_v45 = vunpack.c.l.bf16 %v5680_v27 }
  0xc0   : > { %7586 = vst [vmem:[#allocation41_spill] sm:$0xff] %v5634_v14  ;;  %7594 = vst [vmem:[#allocation49_spill] sm:$0xff] %v5660_v46  ;;  %v746_v46 = vunpack.c.l.bf16 %v5663_v47  ;;  %v844_v44 = vunpack.c.l.bf16 %v5683_v36 }
  0xc1   : > { %7599 = vst [vmem:[#allocation54_spill] sm:$0xff] %v5683_v36  ;;  %v707_v36 = vld [vmem:[%s5181_s23 + $0xe8] sm:$0xff] }
  0xc2   : > { %v5747_v23 = vadd.f32 %v844_v44, %v748_v45  ;;  %v5770_v44 = vld [vmem:[%s5186_s26 + $0xd8] sm:$0xff]  ;;  %v768_v39 = vunpack.c.l.bf16 %v707_v36 }
  0xc3   : > { %4696 = vmatmul.mubr.bf16.gmra.mrb[24].mxu0 %v883_v52  ;;  %v820_v52 = vunpack.c.l.bf16 %v5554_v9  ;;  %v5737_v9 = vld [vmem:[%s5181_s23 + $0xa8] sm:$0xff]  ;;  %7620 = vst [vmem:[#allocation75_spill] sm:$0xff] %v5770_v44 }
  0xc4   : > { %4699 = vmatprep.mubr.bf16.mxu0 %v884_v53  ;;  %v720_v53 = vunpack.c.l.bf16 %v5557_v10  ;;  %7610 = vst [vmem:[#allocation65_spill] sm:$0xff] %v5737_v9  ;;  %7613 = vst [vmem:[#allocation68_spill] sm:$0xff] %v5747_v23 }
  0xc5   : > { %v5642_v11 = vadd.f32 %v820_v52, %v724_v51  ;;  %v5666_v51 = vld [vmem:[%s5186_s26 + $0x90] sm:$0xff]  ;;  %v5669_v52 = vld [vmem:[%s5181_s23 + $0x80] sm:$0xff] }
  0xc6   : > { %v5644_v17 = vadd.f32 %v816_v54, %v720_v53  ;;  %7595 = vst [vmem:[#allocation50_spill] sm:$0xff] %v5666_v51  ;;  %v5693_v53 = vld [vmem:[%s5186_s26 + $0x88] sm:$0xff]  ;;  %v842_v42 = vunpack.c.l.bf16 %v5666_v51  ;;  %v742_v58 = vunpack.c.l.bf16 %v5669_v52 }
  0xc7   : > { %7588 = vst [vmem:[#allocation43_spill] sm:$0xff] %v5642_v11  ;;  %7600 = vst [vmem:[#allocation55_spill] sm:$0xff] %v5693_v53 }
  0xc8   : > { %7589 = vst [vmem:[#allocation44_spill] sm:$0xff] %v5644_v17  ;;  %v840_v17 = vunpack.c.l.bf16 %v5693_v53  ;;  %v5745_v29 = vadd.f32 %v838_v0, %v742_v58  ;;  %v5767_v0 = vld [vmem:[%s5181_s23 + $0xd8] sm:$0xff]  ;;  %v752_v58 = vunpack.c.l.bf16 %v5737_v9  ;;  %v5832_v53 = vld [vmem:[%s7483_s8] ss:$0 sm:$0xff] }
  0xc9   : > { %7619 = vst [vmem:[#allocation74_spill] sm:$0xff] %v5767_v0 }
  0xca   : > { %7612 = vst [vmem:[#allocation67_spill] sm:$0xff] %v5745_v29  ;;  %v5797_v29 = vld [vmem:[%s5181_s23 + $0xc8] sm:$0xff] }
  0xcb   : > { %4700 = vmatmul.mubr.bf16.gmra.mrb[28].mxu0 %v885_v56  ;;  %v5606_v56 = vld [vmem:[%s5186_s26 + $0x70] sm:$0xff]  ;;  %7623 = vst [vmem:[#allocation78_spill] sm:$0xff] %v5797_v29  ;;  %v760_v51 = vunpack.c.l.bf16 %v5797_v29 }
  0xcc   : > { %7583 = vst [vmem:[#allocation38_spill] sm:$0xff] %v5606_v56  ;;  %v834_v20 = vunpack.c.l.bf16 %v5606_v56  ;;  %v860_v56 = vunpack.c.l.bf16 %v5770_v44 }
  0xce   : > { %v5672_v54 = vadd.f32 %v834_v20, %v738_v25  ;;  %v736_v20 = vunpack.c.l.bf16 %v5649_v35  ;;  %v832_v25 = vunpack.c.l.bf16 %v5652_v38  ;;  %v805_v38 = vld [vmem:[%s5186_s26 + $0xf8] sm:$0xff] }
  0xd0   : > { %7596 = vst [vmem:[#allocation51_spill] sm:$0xff] %v5672_v54  ;;  %v5696_v54 = vadd.f32 %v830_v34, %v734_v22  ;;  %v5711_v22 = vld [vmem:[%s5181_s23 + $0xa0] sm:$0xff]  ;;  %v5724_v14 = vadd.f32 %v832_v25, %v736_v20  ;;  %v5743_v25 = vadd.f32 %v842_v42, %v746_v46  ;;  %v852_v20 = vunpack.c.l.bf16 %v5730_v60 }
  0xd1   : > { %7604 = vst [vmem:[#allocation59_spill] sm:$0xff] %v5711_v22  ;;  %v5714_v34 = vld [vmem:[%s5186_s26 + $0xa0] sm:$0xff]  ;;  %v750_v6 = vunpack.c.l.bf16 %v5711_v22  ;;  %v756_v22 = vunpack.c.l.bf16 %v5727_v5  ;;  %v764_v42 = vunpack.c.l.bf16 %v5767_v0 }
  0xd2   : > { %7601 = vst [vmem:[#allocation56_spill] sm:$0xff] %v5696_v54  ;;  %7605 = vst [vmem:[#allocation60_spill] sm:$0xff] %v5714_v34  ;;  %v744_v54 = vunpack.c.l.bf16 %v5690_v16  ;;  %v846_v11 = vunpack.c.l.bf16 %v5714_v34  ;;  %v5764_v46 = vld [vmem:[%s5186_s26 + $0xc0] sm:$0xff]  ;;  %v864_v34 = vunpack.c.l.bf16 %v803_v37 }
  0xd3   : > { %7607 = vst [vmem:[#allocation62_spill] sm:$0xff] %v5724_v14  ;;  %v5753_v14 = vld [vmem:[%s5186_s26 + $0xd0] sm:$0xff]  ;;  %7618 = vst [vmem:[#allocation73_spill] sm:$0xff] %v5764_v46  ;;  %v854_v45 = vunpack.c.l.bf16 %v5764_v46  ;;  %v5815_v61 = vadd.f32 %v860_v56, %v764_v42 }
  0xd4   : > { %7615 = vst [vmem:[#allocation70_spill] sm:$0xff] %v5753_v14  ;;  %v5759_v12 = vadd.f32 %v840_v17, %v744_v54  ;;  %v5776_v17 = vadd.f32 %v850_v32, %v754_v33  ;;  %v5778_v54 = vadd.f32 %v846_v11, %v750_v6  ;;  %v858_v41 = vunpack.c.l.bf16 %v5753_v14  ;;  %v5800_v33 = vld [vmem:[%s5186_s26 + $0xc8] sm:$0xff]  ;;  %v802_v32 = vld [vmem:[%s5186_s26 + $0xe0] sm:$0xff] }
  0xd5   : > { %v5787_v6 = vadd.f32 %v852_v20, %v756_v22  ;;  %7624 = vst [vmem:[#allocation79_spill] sm:$0xff] %v5800_v33  ;;  %v708_v22 = vld [vmem:[%s5181_s23 + $0xf0] sm:$0xff]  ;;  %v709_v20 = vld [vmem:[%s5181_s23 + $0xf8] sm:$0xff] }
  0xd6   : > { %7617 = vst [vmem:[#allocation72_spill] sm:$0xff] %v5759_v12  ;;  %7621 = vst [vmem:[#allocation76_spill] sm:$0xff] %v5776_v17  ;;  %v758_v12 = vunpack.c.l.bf16 %v5756_v2  ;;  %v706_v17 = vld [vmem:[%s5181_s23 + $0xe0] sm:$0xff]  ;;  %v5811_v7 = vadd.f32 %v858_v41, %v762_v48  ;;  %v770_v57 = vunpack.c.l.bf16 %v708_v22  ;;  %v862_v48 = vunpack.c.l.bf16 %v802_v32 }
  0xd7   : > { %7622 = vst [vmem:[#allocation77_spill] sm:$0xff] %v5778_v54  ;;  %v5792_v54 = vadd.f32 %v848_v19, %v752_v58  ;;  %v804_v58 = vld [vmem:[%s5186_s26 + $0xf0] sm:$0xff]  ;;  %v856_v19 = vunpack.c.l.bf16 %v5800_v33  ;;  %v766_v41 = vunpack.c.l.bf16 %v706_v17  ;;  %v772_v56 = vunpack.c.l.bf16 %v709_v20  ;;  %v7628_v33 = vld [vmem:[#allocation3_spill] sm:$0xff] }
  0xd8   : > { %v5813_v26 = vadd.f32 %v854_v45, %v758_v12  ;;  %v866_v23 = vunpack.c.l.bf16 %v804_v58  ;;  %v868_v45 = vunpack.c.l.bf16 %v805_v38 }
  0xd9   : > { %v5837_v38 = vadd.f32 %v856_v19, %v760_v51  ;;  %v5841_v58 = vadd.f32 %v862_v48, %v766_v41  ;;  %v5853_v41 = vadd.f32 %v864_v34, %v768_v39  ;;  %v5858_v48 = vld [vmem:[%s7483_s8 + $0x1] ss:$0 sm:$0xff] }
  0xda   : > { %v5839_v20 = vadd.f32 %v866_v23, %v770_v57  ;;  %v5846_v11 = vadd.f32 %v868_v45, %v772_v56 }
 0x166   : > { %v4673_v50 = vpop.f32.mrb[0].mxu0 }
 0x167   : > { %v1000_v51 = vadd.f32 %v4673_v50, %v5832_v53  ;;  %v991_v19 = vpop.f32.mrb[1].mxu0  ;;  %v7630_v50 = vld [vmem:[#allocation6_spill] sm:$0xff] }
 0x168   : > { %v992_v56 = vadd.f32 %v5832_v53, %v991_v19  ;;  %v4674_v45 = vpop.f32.mrb[2].mxu0  ;;  %v5871_v19 = vld [vmem:[%s7483_s8 + $0x2] ss:$0 sm:$0xff] }
 0x169   : > { %v1152_v57 = vadd.f32 %v5622_v30, %v1000_v51  ;;  %v1003_v23 = vadd.f32 %v4674_v45, %v5832_v53  ;;  %v994_v39 = vpop.f32.mrb[3].mxu0 }
 0x16a   : > { %v1150_v22 = vadd.f32 %v5624_v21, %v992_v56  ;;  %v995_v42 = vadd.f32 %v5832_v53, %v994_v39 }
 0x16b   : > { %v1192_v51 = vmul.f32 %v5858_v48, %v1152_v57  ;;  %v1153_v45 = vadd.f32 %v5628_v24, %v1003_v23 }
 0x16c   : > { %v1190_v37 = vmul.f32 %v5858_v48, %v1150_v22  ;;  %v1151_v17 = vadd.f32 %v5630_v15, %v995_v42  ;;  %v7626_v22 = vld [vmem:[#allocation5_spill] sm:$0xff] }
 0x16d   : > { %v1232_v39 = vadd.f32 %v5871_v19, %v1192_v51  ;;  %v1193_v30 = vmul.f32 %v5858_v48, %v1153_v45 }
 0x16e   : > { %v1230_v23 = vadd.f32 %v5871_v19, %v1190_v37  ;;  %v1191_v32 = vmul.f32 %v5858_v48, %v1151_v17  ;;  %v4677_v34 = vpop.f32.mrb[4].mxu0 }
 0x16f   : > { %v1264_v42 = vmax.f32 %v1232_v39, 0.0  ;;  %v1233_v56 = vadd.f32 %v5871_v19, %v1193_v30  ;;  %v1016_v51 = vadd.f32 %v4677_v34, %v5832_v53  ;;  %v1007_v21 = vpop.f32.mrb[5].mxu0  ;;  %v7627_v39 = vld [vmem:[#allocation40_spill] sm:$0xff] }
 0x170   : > { %v1262_v57 = vmax.f32 %v1230_v23, 0.0  ;;  %v1231_v24 = vadd.f32 %v5871_v19, %v1191_v32  ;;  %v1008_v37 = vadd.f32 %v5832_v53, %v1007_v21  ;;  %v4678_v17 = vpop.f32.mrb[6].mxu0  ;;  %v7629_v23 = vld [vmem:[#allocation41_spill] sm:$0xff] }
 0x171   : > { %v1296_v12 = vadd.f32 %v1264_v42, %v7626_v22  ;;  %v1265_v15 = vmax.f32 %v1233_v56, 0.0  ;;  %v1156_v44 = vadd.f32 %v7627_v39, %v1016_v51  ;;  %v1019_v30 = vadd.f32 %v4678_v17, %v5832_v53  ;;  %v1010_v34 = vpop.f32.mrb[7].mxu0  ;;  %v7631_v22 = vld [vmem:[#allocation43_spill] sm:$0xff]  ;;  %v7632_v17 = vld [vmem:[#allocation4_spill] sm:$0xff] }
 0x172   : > { %v1294_v29 = vadd.f32 %v1262_v57, %v7628_v33  ;;  %v1263_v45 = vmax.f32 %v1231_v24, 0.0  ;;  %v1154_v14 = vadd.f32 %v7629_v23, %v1008_v37  ;;  %v1011_v32 = vadd.f32 %v5832_v53, %v1010_v34  ;;  %v7633_v57 = vld [vmem:[#allocation44_spill] sm:$0xff] }
 0x173   : > { %1328 = vst [vmem:[%s5199_s19 + $0x10] sm:$0xff] %v1296_v12  ;;  %v4400_v21 = vmul.f32 -1.442695, %v1296_v12  ;;  %v1297_v0 = vadd.f32 %v1265_v15, %v7630_v50  ;;  %v1196_v56 = vmul.f32 %v5858_v48, %v1156_v44  ;;  %v1157_v42 = vadd.f32 %v7631_v22, %v1019_v30  ;;  %v7634_v22 = vld [vmem:[#allocation9_spill] sm:$0xff] }
 0x174   : > { %1326 = vst [vmem:[%s5199_s19] sm:$0xff] %v1294_v29  ;;  %v4398_v51 = vmul.f32 -1.442695, %v1294_v29  ;;  %v1295_v39 = vadd.f32 %v1263_v45, %v7632_v17  ;;  %v1194_v33 = vmul.f32 %v5858_v48, %v1154_v14  ;;  %v1155_v24 = vadd.f32 %v7633_v57, %v1011_v32  ;;  %v7635_v17 = vld [vmem:[#allocation46_spill] sm:$0xff] }
 0x175   : > { %4753 = vpow2.f32 %v4400_v21  ;;  %1329 = vst [vmem:[%s5199_s19 + $0x18] sm:$0xff] %v1297_v0  ;;  %v4401_v37 = vmul.f32 -1.442695, %v1297_v0  ;;  %v1236_v34 = vadd.f32 %v5871_v19, %v1196_v56  ;;  %v1197_v12 = vmul.f32 %v5858_v48, %v1157_v42 }
 0x176   : > { %4755 = vpow2.f32 %v4398_v51  ;;  %1327 = vst [vmem:[%s5199_s19 + $0x8] sm:$0xff] %v1295_v39  ;;  %v4399_v44 = vmul.f32 -1.442695, %v1295_v39  ;;  %v1234_v50 = vadd.f32 %v5871_v19, %v1194_v33  ;;  %v1195_v29 = vmul.f32 %v5858_v48, %v1155_v24  ;;  %v4681_v15 = vpop.f32.mrb[8].mxu0  ;;  %v7636_v24 = vld [vmem:[#allocation7_spill] sm:$0xff] }
 0x177   : > { %4757 = vpow2.f32 %v4401_v37  ;;  %v1268_v45 = vmax.f32 %v1236_v34, 0.0  ;;  %v1237_v14 = vadd.f32 %v5871_v19, %v1197_v12  ;;  %v1032_v30 = vadd.f32 %v4681_v15, %v5832_v53  ;;  %v1023_v0 = vpop.f32.mrb[9].mxu0  ;;  %v7637_v12 = vld [vmem:[#allocation47_spill] sm:$0xff]  ;;  %v7638_v15 = vld [vmem:[#allocation10_spill] sm:$0xff] }
 0x178   : > { %4759 = vpow2.f32 %v4399_v44  ;;  %v1266_v23 = vmax.f32 %v1234_v50, 0.0  ;;  %v1235_v32 = vadd.f32 %v5871_v19, %v1195_v29  ;;  %v1024_v21 = vadd.f32 %v5832_v53, %v1023_v0  ;;  %v4682_v56 = vpop.f32.mrb[10].mxu0 }
 0x179   : > { %v1300_v42 = vadd.f32 %v1268_v45, %v7634_v22  ;;  %v1269_v51 = vmax.f32 %v1237_v14, 0.0  ;;  %v1160_v39 = vadd.f32 %v7635_v17, %v1032_v30  ;;  %v1035_v33 = vadd.f32 %v4682_v56, %v5832_v53  ;;  %v1026_v57 = vpop.f32.mrb[11].mxu0  ;;  %v7639_v14 = vld [vmem:[#allocation48_spill] sm:$0xff] }
 0x17a   : > { %v1298_v37 = vadd.f32 %v1266_v23, %v7636_v24  ;;  %v1267_v34 = vmax.f32 %v1235_v32, 0.0  ;;  %v1158_v44 = vadd.f32 %v7637_v12, %v1024_v21  ;;  %v1027_v50 = vadd.f32 %v5832_v53, %v1026_v57  ;;  %v7640_v22 = vld [vmem:[#allocation8_spill] sm:$0xff]  ;;  %v7641_v32 = vld [vmem:[#allocation49_spill] sm:$0xff] }
 0x17b   : > { %1332 = vst [vmem:[%s5199_s19 + $0x30] sm:$0xff] %v1300_v42  ;;  %v4404_v29 = vmul.f32 -1.442695, %v1300_v42  ;;  %v1301_v0 = vadd.f32 %v1269_v51, %v7638_v15  ;;  %v1200_v45 = vmul.f32 %v5858_v48, %v1160_v39  ;;  %v1161_v30 = vadd.f32 %v7639_v14, %v1035_v33 }
 0x17c   : > { %1330 = vst [vmem:[%s5199_s19 + $0x20] sm:$0xff] %v1298_v37  ;;  %v4402_v56 = vmul.f32 -1.442695, %v1298_v37  ;;  %v1299_v17 = vadd.f32 %v1267_v34, %v7640_v22  ;;  %v1198_v23 = vmul.f32 %v5858_v48, %v1158_v44  ;;  %v1159_v24 = vadd.f32 %v7641_v32, %v1027_v50 }
 0x17d   : > { %4761 = vpow2.f32 %v4404_v29  ;;  %1333 = vst [vmem:[%s5199_s19 + $0x38] sm:$0xff] %v1301_v0  ;;  %v4405_v21 = vmul.f32 -1.442695, %v1301_v0  ;;  %v1240_v57 = vadd.f32 %v5871_v19, %v1200_v45  ;;  %v1201_v42 = vmul.f32 %v5858_v48, %v1161_v30 }
 0x17e   : > { %4763 = vpow2.f32 %v4402_v56  ;;  %1331 = vst [vmem:[%s5199_s19 + $0x28] sm:$0xff] %v1299_v17  ;;  %v4403_v51 = vmul.f32 -1.442695, %v1299_v17  ;;  %v1238_v39 = vadd.f32 %v5871_v19, %v1198_v23  ;;  %v1199_v33 = vmul.f32 %v5858_v48, %v1159_v24  ;;  %v4685_v37 = vpop.f32.mrb[12].mxu0  ;;  %v7642_v17 = vld [vmem:[#allocation13_spill] sm:$0xff]  ;;  %v7643_v24 = vld [vmem:[#allocation51_spill] sm:$0xff] }
 0x17f   : > { %v4754_v34 = vpop.eup %4753  ;;  %4765 = vpow2.f32 %v4405_v21  ;;  %v1272_v12 = vmax.f32 %v1240_v57, 0.0  ;;  %v1241_v44 = vadd.f32 %v5871_v19, %v1201_v42  ;;  %v1048_v50 = vadd.f32 %v4685_v37, %v5832_v53  ;;  %v1039_v29 = vpop.f32.mrb[13].mxu0 }
 0x180   : > { %v4756_v15 = vpop.eup %4755  ;;  %v1456_v0 = vadd.f32 1.0, %v4754_v34  ;;  %4767 = vpow2.f32 %v4403_v51  ;;  %v1270_v45 = vmax.f32 %v1238_v39, 0.0  ;;  %v1239_v14 = vadd.f32 %v5871_v19, %v1199_v33  ;;  %v4686_v30 = vpop.f32.mrb[14].mxu0  ;;  %v7644_v34 = vld [vmem:[#allocation11_spill] sm:$0xff] }
 0x181   : > { %v4758_v56 = vpop.eup %4757  ;;  %v1454_v22 = vadd.f32 1.0, %v4756_v15  ;;  %v1304_v23 = vadd.f32 %v1272_v12, %v7642_v17  ;;  %v1273_v32 = vmax.f32 %v1241_v44, 0.0  ;;  %v1164_v21 = vadd.f32 %v7643_v24, %v1048_v50  ;;  %v1042_v57 = vpop.f32.mrb[15].mxu0  ;;  %v7645_v15 = vld [vmem:[#allocation14_spill] sm:$0xff]  ;;  %v7646_v44 = vld [vmem:[#allocation12_spill] sm:$0xff] }
 0x182   : > { %v4760_v42 = vpop.eup %4759  ;;  %4769 = vrcp.f32 %v1456_v0  ;;  %v1457_v37 = vadd.f32 1.0, %v4758_v56  ;;  %v1302_v51 = vadd.f32 %v1270_v45, %v7644_v34  ;;  %v1271_v39 = vmax.f32 %v1239_v14, 0.0 }
 0x183   : > { %4771 = vrcp.f32 %v1454_v22  ;;  %v1455_v33 = vadd.f32 1.0, %v4760_v42  ;;  %1336 = vst [vmem:[%s5199_s19 + $0x50] sm:$0xff] %v1304_v23  ;;  %v4408_v4 = vmul.f32 -1.442695, %v1304_v23  ;;  %v1305_v46 = vadd.f32 %v1273_v32, %v7645_v15  ;;  %v7647_v42 = vld [vmem:[#allocation56_spill] sm:$0xff] }
 0x184   : > { %4773 = vrcp.f32 %v1457_v37  ;;  %1334 = vst [vmem:[%s5199_s19 + $0x40] sm:$0xff] %v1302_v51  ;;  %v4406_v12 = vmul.f32 -1.442695, %v1302_v51  ;;  %v1303_v50 = vadd.f32 %v1271_v39, %v7646_v44  ;;  %v1204_v17 = vmul.f32 %v5858_v48, %v1164_v21  ;;  %v7648_v21 = vld [vmem:[#allocation61_spill] sm:$0xff] }
 0x185   : > { %4775 = vrcp.f32 %v1455_v33  ;;  %1337 = vst [vmem:[%s5199_s19 + $0x58] sm:$0xff] %v1305_v46  ;;  %v4409_v0 = vmul.f32 -1.442695, %v1305_v46  ;;  %v1040_v45 = vadd.f32 %v5832_v53, %v1039_v29  ;;  %v1051_v14 = vadd.f32 %v4686_v30, %v5832_v53  ;;  %v7649_v30 = vld [vmem:[#allocation62_spill] sm:$0xff] }
 0x186   : > { %4777 = vpow2.f32 %v4408_v4  ;;  %1335 = vst [vmem:[%s5199_s19 + $0x48] sm:$0xff] %v1303_v50  ;;  %v4407_v56 = vmul.f32 -1.442695, %v1303_v50  ;;  %v1244_v22 = vadd.f32 %v5871_v19, %v1204_v17  ;;  %v1043_v23 = vadd.f32 %v5832_v53, %v1042_v57  ;;  %v4689_v32 = vpop.f32.mrb[16].mxu0 }
 0x187   : > { %v4762_v24 = vpop.eup %4761  ;;  %4779 = vpow2.f32 %v4406_v12  ;;  %v1162_v37 = vadd.f32 %v7647_v42, %v1040_v45  ;;  %v1165_v34 = vadd.f32 %v7648_v21, %v1051_v14  ;;  %v1064_v46 = vadd.f32 %v4689_v32, %v5832_v53  ;;  %v1055_v51 = vpop.f32.mrb[17].mxu0  ;;  %v7650_v32 = vld [vmem:[#allocation17_spill] sm:$0xff] }
 0x188   : > { %v4764_v29 = vpop.eup %4763  ;;  %v1460_v39 = vadd.f32 1.0, %v4762_v24  ;;  %4781 = vpow2.f32 %v4409_v0  ;;  %v1276_v4 = vmax.f32 %v1244_v22, 0.0  ;;  %v1163_v33 = vadd.f32 %v7649_v30, %v1043_v23  ;;  %v4690_v15 = vpop.f32.mrb[18].mxu0 }
 0x189   : > { %v4766_v44 = vpop.eup %4765  ;;  %v1458_v50 = vadd.f32 1.0, %v4764_v29  ;;  %4783 = vpow2.f32 %v4407_v56  ;;  %v1202_v57 = vmul.f32 %v5858_v48, %v1162_v37  ;;  %v1205_v12 = vmul.f32 %v5858_v48, %v1165_v34  ;;  %v1058_v17 = vpop.f32.mrb[19].mxu0 }
 0x18a   : > { %v4768_v45 = vpop.eup %4767  ;;  %4785 = vrcp.f32 %v1460_v39  ;;  %v1461_v14 = vadd.f32 1.0, %v4766_v44  ;;  %v1308_v42 = vadd.f32 %v1276_v4, %v7650_v32  ;;  %v1203_v0 = vmul.f32 %v5858_v48, %v1163_v33 }
 0x18b   : > { %4787 = vrcp.f32 %v1458_v50  ;;  %v1459_v22 = vadd.f32 1.0, %v4768_v45  ;;  %v1242_v23 = vadd.f32 %v5871_v19, %v1202_v57  ;;  %v1245_v24 = vadd.f32 %v5871_v19, %v1205_v12 }
 0x18c   : > { %v5969_v21 = vpop.eup %4769  ;;  %4789 = vrcp.f32 %v1461_v14  ;;  %1340 = vst [vmem:[%s5199_s19 + $0x70] sm:$0xff] %v1308_v42  ;;  %v4412_v56 = vmul.f32 -1.442695, %v1308_v42  ;;  %v1243_v37 = vadd.f32 %v5871_v19, %v1203_v0  ;;  %v1168_v34 = vadd.f32 %v5743_v25, %v1064_v46  ;;  %v7651_v25 = vld [vmem:[#allocation15_spill] sm:$0xff]  ;;  %v7652_v14 = vld [vmem:[#allocation18_spill] sm:$0xff] }
 0x18d   : > { %v5974_v29 = vpop.eup %4771  ;;  %4791 = vrcp.f32 %v1459_v22  ;;  %v1274_v39 = vmax.f32 %v1242_v23, 0.0  ;;  %v1277_v4 = vmax.f32 %v1245_v24, 0.0  ;;  %v1056_v30 = vadd.f32 %v5832_v53, %v1055_v51  ;;  %v7653_v42 = vld [vmem:[#allocation67_spill] sm:$0xff]  ;;  %v7654_v24 = vld [vmem:[#allocation16_spill] sm:$0xff] }
 0x18e   : > { %v5977_v33 = vpop.eup %4773  ;;  %4793 = vpow2.f32 %v4412_v56  ;;  %v1275_v44 = vmax.f32 %v1243_v37, 0.0  ;;  %v1208_v50 = vmul.f32 %v5858_v48, %v1168_v34  ;;  %v1067_v57 = vadd.f32 %v4690_v15, %v5832_v53  ;;  %v4693_v12 = vpop.f32.mrb[20].mxu0  ;;  %v7655_v37 = vld [vmem:[#allocation68_spill] sm:$0xff] }
 0x18f   : > { %v5981_v45 = vpop.eup %4775  ;;  %v1306_v46 = vadd.f32 %v1274_v39, %v7651_v25  ;;  %v1309_v32 = vadd.f32 %v1277_v4, %v7652_v14  ;;  %v1166_v0 = vadd.f32 %v7653_v42, %v1056_v30  ;;  %v1059_v51 = vadd.f32 %v5832_v53, %v1058_v17  ;;  %v1071_v22 = vpop.f32.mrb[21].mxu0 }
 0x190   : > { %v4778_v23 = vpop.eup %4777  ;;  %v1307_v56 = vadd.f32 %v1275_v44, %v7654_v24  ;;  %v1248_v15 = vadd.f32 %v5871_v19, %v1208_v50  ;;  %v1169_v34 = vadd.f32 %v7655_v37, %v1067_v57  ;;  %v1080_v2 = vadd.f32 %v4693_v12, %v5832_v53  ;;  %v4694_v60 = vpop.f32.mrb[22].mxu0  ;;  %v7656_v37 = vld [vmem:[#allocation72_spill] sm:$0xff] }
 0x191   : > { %v4780_v5 = vpop.eup %4779  ;;  %v1464_v39 = vadd.f32 1.0, %v4778_v23  ;;  %1338 = vst [vmem:[%s5199_s19 + $0x60] sm:$0xff] %v1306_v46  ;;  %v4410_v4 = vmul.f32 -1.442695, %v1306_v46  ;;  %1341 = vst [vmem:[%s5199_s19 + $0x78] sm:$0xff] %v1309_v32  ;;  %v1206_v17 = vmul.f32 %v5858_v48, %v1166_v0  ;;  %v1074_v25 = vpop.f32.mrb[23].mxu0  ;;  %v1167_v46 = vadd.f32 %v7656_v37, %v1059_v51 }
 0x192   : > { %v4413_v30 = vmul.f32 -1.442695, %v1309_v32  ;;  %v4782_v14 = vpop.eup %4781  ;;  %v1462_v42 = vadd.f32 1.0, %v4780_v5  ;;  %1339 = vst [vmem:[%s5199_s19 + $0x68] sm:$0xff] %v1307_v56  ;;  %v4411_v44 = vmul.f32 -1.442695, %v1307_v56  ;;  %v1209_v50 = vmul.f32 %v5858_v48, %v1169_v34 }
 0x193   : > { %v1280_v24 = vmax.f32 %v1248_v15, 0.0  ;;  %v4784_v57 = vpop.eup %4783  ;;  %4795 = vrcp.f32 %v1464_v39  ;;  %v1465_v12 = vadd.f32 1.0, %v4782_v14  ;;  %v1246_v23 = vadd.f32 %v5871_v19, %v1206_v17  ;;  %v7657_v0 = vld [vmem:[#allocation21_spill] sm:$0xff]  ;;  %v7658_v39 = vld [vmem:[#allocation76_spill] sm:$0xff] }
 0x194   : > { %v5998_v62 = vpop.eup %4785  ;;  %4797 = vrcp.f32 %v1462_v42  ;;  %v1463_v32 = vadd.f32 1.0, %v4784_v57  ;;  %v1249_v5 = vadd.f32 %v5871_v19, %v1209_v50  ;;  %v1207_v34 = vmul.f32 %v5858_v48, %v1167_v46  ;;  %v7659_v57 = vld [vmem:[#allocation19_spill] sm:$0xff] }
 0x195   : > { %v1312_v13 = vadd.f32 %v1280_v24, %v7657_v0  ;;  %v6002_v56 = vpop.eup %4787  ;;  %4799 = vrcp.f32 %v1465_v12  ;;  %v1278_v15 = vmax.f32 %v1246_v23, 0.0  ;;  %v1172_v14 = vadd.f32 %v7658_v39, %v1080_v2 }
 0x196   : > { %v6006_v9 = vpop.eup %4789  ;;  %4801 = vrcp.f32 %v1463_v32  ;;  %v1281_v17 = vmax.f32 %v1249_v5, 0.0  ;;  %v1072_v42 = vadd.f32 %v5832_v53, %v1071_v22  ;;  %v6010_v24 = vpop.f32.mrb[24].mxu0  ;;  %v1247_v23 = vadd.f32 %v5871_v19, %v1207_v34  ;;  %v7661_v22 = vld [vmem:[#allocation77_spill] sm:$0xff] }
 0x197   : > { %1344 = vst [vmem:[%s5199_s19 + $0x90] sm:$0xff] %v1312_v13  ;;  %v4416_v51 = vmul.f32 -1.442695, %v1312_v13  ;;  %v6012_v50 = vpop.eup %4791  ;;  %4803 = vpow2.f32 %v4410_v4  ;;  %v1310_v12 = vadd.f32 %v1278_v15, %v7659_v57  ;;  %v1212_v2 = vmul.f32 %v5858_v48, %v1172_v14  ;;  %v6017_v37 = vpop.f32.mrb[25].mxu0  ;;  %v7660_v13 = vld [vmem:[#allocation22_spill] sm:$0xff] }
 0x198   : > { %v4794_v46 = vpop.eup %4793  ;;  %4805 = vpow2.f32 %v4413_v30  ;;  %v1313_v32 = vadd.f32 %v1281_v17, %v7660_v13  ;;  %v1170_v0 = vadd.f32 %v7661_v22, %v1072_v42  ;;  %v1083_v5 = vadd.f32 %v4694_v60, %v5832_v53  ;;  %v6022_v39 = vpop.f32.mrb[26].mxu0  ;;  %v7662_v42 = vld [vmem:[#allocation20_spill] sm:$0xff] }
 0x199   : > { %v1468_v4 = vadd.f32 1.0, %v4794_v46  ;;  %4807 = vpow2.f32 %v4411_v44  ;;  %1342 = vst [vmem:[%s5199_s19 + $0x80] sm:$0xff] %v1310_v12  ;;  %v4414_v15 = vmul.f32 -1.442695, %v1310_v12  ;;  %v1279_v34 = vmax.f32 %v1247_v23, 0.0  ;;  %v6025_v57 = vpop.f32.mrb[27].mxu0 }
 0x19a   : > { %4809 = vpow2.f32 %v4416_v51  ;;  %1345 = vst [vmem:[%s5199_s19 + $0x98] sm:$0xff] %v1313_v32  ;;  %v4417_v14 = vmul.f32 -1.442695, %v1313_v32  ;;  %v1252_v30 = vadd.f32 %v5871_v19, %v1212_v2  ;;  %v1210_v17 = vmul.f32 %v5858_v48, %v1170_v0 }
 0x19b   : > { %4811 = vrcp.f32 %v1468_v4  ;;  %v1311_v60 = vadd.f32 %v1279_v34, %v7662_v42  ;;  %v1173_v13 = vadd.f32 %v5787_v6, %v1083_v5  ;;  %v1075_v44 = vadd.f32 %v5832_v53, %v1074_v25  ;;  %v7664_v25 = vld [vmem:[#allocation23_spill] sm:$0xff] }
 0x19c   : > { %4813 = vpow2.f32 %v4414_v15  ;;  %v1284_v12 = vmax.f32 %v1252_v30, 0.0  ;;  %v1250_v23 = vadd.f32 %v5871_v19, %v1210_v17  ;;  %v6036_v51 = vpack.c.bf16 %v5981_v45, %v5974_v29 }
 0x19d   : > { %v6038_v46 = vpop.eup %4795  ;;  %4815 = vpow2.f32 %v4417_v14  ;;  %1343 = vst [vmem:[%s5199_s19 + $0x88] sm:$0xff] %v1311_v60  ;;  %v4415_v2 = vmul.f32 -1.442695, %v1311_v60  ;;  %v1213_v32 = vmul.f32 %v5858_v48, %v1173_v13  ;;  %v1171_v22 = vadd.f32 %v5792_v54, %v1075_v44  ;;  %v7667_v60 = vld [vmem:[#allocation26_spill] sm:$0xff] }
 0x19e   : > { %7663 = vst [vmem:[#allocation5_spill] sm:$0xff] %v6036_v51  ;;  %v6043_v6 = vpop.eup %4797  ;;  %v1316_v0 = vadd.f32 %v1284_v12, %v7664_v25  ;;  %v1282_v5 = vmax.f32 %v1250_v23, 0.0  ;;  %2305 = vmatprep.subr.bf16.mxu1 %v6036_v51  ;;  %2866 = vmatprep.subr.bf16.mxu0 %v6036_v51  ;;  %v7665_v4 = vunpack.c.h.bf16 %v5520_v59  ;;  %v7666_v34 = vunpack.c.h.bf16 %v5532_v63  ;;  %v6054_v54 = vpop.f32.mrb[28].mxu0  ;;  %v4881_v23 = vld [vmem:[%s5176_s20 + $0xa0] sm:$0xff] }
 0x19f   : > { %v6056_v30 = vpop.eup %4799  ;;  %4817 = vpow2.f32 %v4415_v2  ;;  %v1253_v17 = vadd.f32 %v5871_v19, %v1213_v32  ;;  %v1211_v42 = vmul.f32 %v5858_v48, %v1171_v22  ;;  %v7668_v13 = vunpack.c.h.bf16 %v7667_v60  ;;  %v6063_v59 = vpop.f32.mrb[29].mxu0 }
 0x1a0   : > { %v1550_v15 = vmul.f32 %v5974_v29, %v7665_v4  ;;  %v1551_v14 = vmul.f32 %v5981_v45, %v7666_v34  ;;  %v6065_v12 = vpop.eup %4801  ;;  %1348 = vst [vmem:[%s5199_s19 + $0xb0] sm:$0xff] %v1316_v0  ;;  %v4420_v63 = vmul.f32 -1.442695, %v1316_v0  ;;  %v1314_v25 = vadd.f32 %v4881_v23, %v1282_v5  ;;  %v7669_v34 = vld [vmem:[#allocation29_spill] sm:$0xff]  ;;  %v6072_v51 = vpop.f32.mrb[30].mxu0 }
 0x1a1   : > { %v1614_v44 = vmul.f32 %v5974_v29, %v7668_v13  ;;  %v7670_v2 = vunpack.c.h.bf16 %v7669_v34  ;;  %v4804_v22 = vpop.eup %4803  ;;  %v1285_v60 = vmax.f32 %v1253_v17, 0.0  ;;  %v1251_v29 = vadd.f32 %v5871_v19, %v1211_v42  ;;  %v6081_v5 = vpop.f32.mrb[31].mxu0  ;;  %v4882_v34 = vld [vmem:[%s5176_s20 + $0xb8] sm:$0xff] }
 0x1a2   : > { %v1582_v4 = vpack.c.bf16 %v1551_v14, %v1550_v15  ;;  %v6077_v13 = vpack.c.bf16 %v5977_v33, %v5969_v21  ;;  %v1096_v0 = vadd.f32 %v6010_v24, %v5832_v53  ;;  %v4806_v15 = vpop.eup %4805  ;;  %v1466_v14 = vadd.f32 1.0, %v4804_v22  ;;  %1346 = vst [vmem:[%s5199_s19 + $0xa0] sm:$0xff] %v1314_v25 }
 0x1a3   : > { %v1615_v32 = vmul.f32 %v5981_v45, %v7670_v2  ;;  %4819 = vpow2.f32 %v4420_v63  ;;  %v4418_v45 = vmul.f32 -1.442695, %v1314_v25  ;;  %v4808_v17 = vpop.eup %4807  ;;  %v1469_v42 = vadd.f32 1.0, %v4806_v15 }
 0x1a4   : > { %2306 = vmatpush1.bf16.msra.mxu1 %v1582_v4  ;;  %v1317_v2 = vadd.f32 %v4882_v34, %v1285_v60  ;;  %v1283_v36 = vmax.f32 %v1251_v29, 0.0  ;;  %v1176_v24 = vadd.f32 %v5811_v7, %v1096_v0  ;;  %v4810_v27 = vpop.eup %4809  ;;  %4821 = vrcp.f32 %v1466_v14  ;;  %v4883_v60 = vld [vmem:[%s5176_s20 + $0xa8] sm:$0xff] }
 0x1a5   : > { %v6084_v23 = vpack.c.bf16 %v1615_v32, %v1614_v44  ;;  %2307 = vmatprep.subr.bf16.mxu1 %v6077_v13  ;;  %v1467_v22 = vadd.f32 1.0, %v4808_v17  ;;  %v1088_v44 = vadd.f32 %v5832_v53, %v6017_v37  ;;  %v1099_v63 = vadd.f32 %v6022_v39, %v5832_v53  ;;  %v6094_v25 = vpop.eup %4811 }
 0x1a6   : > { %4823 = vrcp.f32 %v1469_v42  ;;  %v1472_v4 = vadd.f32 1.0, %v4810_v27  ;;  %1349 = vst [vmem:[%s5199_s19 + $0xb8] sm:$0xff] %v1317_v2  ;;  %v4421_v32 = vmul.f32 -1.442695, %v1317_v2  ;;  %v1315_v7 = vadd.f32 %v4883_v60, %v1283_v36  ;;  %v4814_v29 = vpop.eup %4813  ;;  %v7671_v27 = vld [vmem:[#allocation24_spill] sm:$0xff] }
 0x1a7   : > { %2867 = vmatpush1.bf16.msra.mxu0 %v6084_v23  ;;  %4825 = vrcp.f32 %v1467_v22  ;;  %v1216_v0 = vmul.f32 %v5858_v48, %v1176_v24  ;;  %v1174_v37 = vadd.f32 %v5813_v26, %v1088_v44  ;;  %v1177_v15 = vadd.f32 %v5815_v61, %v1099_v63  ;;  %v4816_v39 = vpop.eup %4815  ;;  %v7673_v61 = vld [vmem:[#allocation27_spill] sm:$0xff] }
 0x1a8   : > { %2868 = vmatprep.subr.bf16.mxu0 %v6077_v13  ;;  %4827 = vrcp.f32 %v1472_v4  ;;  %v1470_v14 = vadd.f32 1.0, %v4814_v29  ;;  %1347 = vst [vmem:[%s5199_s19 + $0xa8] sm:$0xff] %v1315_v7  ;;  %v4419_v17 = vmul.f32 -1.442695, %v1315_v7  ;;  %v7672_v42 = vunpack.c.h.bf16 %v7671_v27  ;;  %v7675_v4 = vld [vmem:[#allocation25_spill] sm:$0xff] }
 0x1a9   : > { %v1473_v36 = vadd.f32 1.0, %v4816_v39  ;;  %4829 = vpow2.f32 %v4418_v45  ;;  %v1256_v2 = vadd.f32 %v5871_v19, %v1216_v0  ;;  %v1214_v22 = vmul.f32 %v5858_v48, %v1174_v37  ;;  %v4818_v24 = vpop.eup %4817 }
 0x1aa   : > { %v1552_v34 = vmul.f32 %v5969_v21, %v7672_v42  ;;  %4831 = vrcp.f32 %v1470_v14  ;;  %v1217_v26 = vmul.f32 %v5858_v48, %v1177_v15  ;;  %v7674_v44 = vunpack.c.h.bf16 %v7673_v61  ;;  %v7677_v14 = vld [vmem:[#allocation28_spill] sm:$0xff]  ;;  %v4884_v61 = vld [vmem:[%s5176_s20 + $0xd0] sm:$0xff] }
 0x1ab   : > { %v7676_v60 = vunpack.c.h.bf16 %v7675_v4  ;;  %4833 = vrcp.f32 %v1473_v36  ;;  %v1471_v29 = vadd.f32 1.0, %v4818_v24  ;;  %v1288_v45 = vmax.f32 %v1256_v2, 0.0  ;;  %v4885_v24 = vld [vmem:[%s5176_s20 + $0xc0] sm:$0xff] }
 0x1ac   : > { %v1553_v63 = vmul.f32 %v5977_v33, %v7674_v44  ;;  %v1254_v0 = vadd.f32 %v5871_v19, %v1214_v22  ;;  %4835 = vpow2.f32 %v4421_v32  ;;  %v1257_v37 = vadd.f32 %v5871_v19, %v1217_v26 }
 0x1ad   : > { %v1616_v7 = vmul.f32 %v5969_v21, %v7676_v60  ;;  %v7678_v15 = vunpack.c.h.bf16 %v7677_v14  ;;  %v4820_v42 = vpop.eup %4819  ;;  %4837 = vrcp.f32 %v1471_v29  ;;  %v1320_v44 = vadd.f32 %v4884_v61, %v1288_v45  ;;  %v7681_v14 = vld [vmem:[#allocation31_spill] sm:$0xff]  ;;  %v7683_v61 = vld [vmem:[#allocation33_spill] sm:$0xff] }
 0x1ae   : > { %v1584_v39 = vpack.c.bf16 %v1553_v63, %v1552_v34  ;;  %v1286_v21 = vmax.f32 %v1254_v0, 0.0  ;;  %v1091_v36 = vadd.f32 %v5832_v53, %v6025_v57  ;;  %v1476_v2 = vadd.f32 1.0, %v4820_v42  ;;  %v6125_v34 = vpop.eup %4821 }
 0x1af   : > { %v1617_v27 = vmul.f32 %v5977_v33, %v7678_v15  ;;  %4839 = vpow2.f32 %v4419_v17  ;;  %v1289_v32 = vmax.f32 %v1257_v37, 0.0  ;;  %1352 = vst [vmem:[%s5199_s19 + $0xd0] sm:$0xff] %v1320_v44  ;;  %v4424_v33 = vmul.f32 -1.442695, %v1320_v44  ;;  %v4886_v17 = vld [vmem:[%s5176_s20 + $0xd8] sm:$0xff] }
 0x1b0   : > { %2308 = vmatpush1.bf16.msra.mxu1 %v1584_v39  ;;  %v1318_v26 = vadd.f32 %v4885_v24, %v1286_v21  ;;  %v1175_v63 = vadd.f32 %v5837_v38, %v1091_v36  ;;  %v6132_v4 = vpack.c.bf16 %v6012_v50, %v6002_v56  ;;  %v6134_v57 = vpop.eup %4823  ;;  %4841 = vrcp.f32 %v1476_v2 }
 0x1b1   : > { %v6123_v22 = vpack.c.bf16 %v1617_v27, %v1616_v7  ;;  %v1321_v60 = vadd.f32 %v4886_v17, %v1289_v32  ;;  %v7679_v7 = vunpack.c.h.bf16 %v5544_v3  ;;  %v7680_v45 = vunpack.c.h.bf16 %v5557_v10  ;;  %v6144_v0 = vpop.eup %4825 }
 0x1b2   : > { %4843 = vpow2.f32 %v4424_v33  ;;  %1350 = vst [vmem:[%s5199_s19 + $0xc0] sm:$0xff] %v1318_v26  ;;  %v4422_v37 = vmul.f32 -1.442695, %v1318_v26  ;;  %v1215_v39 = vmul.f32 %v5858_v48, %v1175_v63  ;;  %2309 = vmatprep.subr.bf16.mxu1 %v6132_v4  ;;  %v7682_v15 = vunpack.c.h.bf16 %v7681_v14  ;;  %v6153_v27 = vpop.eup %4827 }
 0x1b3   : > { %2869 = vmatpush1.bf16.msra.mxu0 %v6123_v22  ;;  %v1554_v29 = vmul.f32 %v6002_v56, %v7679_v7  ;;  %v1555_v38 = vmul.f32 %v6012_v50, %v7680_v45  ;;  %1353 = vst [vmem:[%s5199_s19 + $0xd8] sm:$0xff] %v1321_v60  ;;  %v4425_v10 = vmul.f32 -1.442695, %v1321_v60  ;;  %v7684_v44 = vunpack.c.h.bf16 %v7683_v61  ;;  %v4830_v2 = vpop.eup %4829 }
 0x1b4   : > { %2870 = vmatprep.subr.bf16.mxu0 %v6132_v4  ;;  %v1618_v3 = vmul.f32 %v6002_v56, %v7682_v15  ;;  %v6161_v36 = vpack.c.bf16 %v6006_v9, %v5998_v62  ;;  %4845 = vpow2.f32 %v4422_v37  ;;  %v1255_v32 = vadd.f32 %v5871_v19, %v1215_v39  ;;  %v6168_v24 = vpop.eup %4831  ;;  %v7688_v15 = vld [vmem:[#allocation30_spill] sm:$0xff] }
 0x1b5   : > { %v1586_v42 = vpack.c.bf16 %v1555_v38, %v1554_v29  ;;  %v1619_v21 = vmul.f32 %v6012_v50, %v7684_v44  ;;  %v1112_v56 = vadd.f32 %v6054_v54, %v5832_v53  ;;  %v1104_v33 = vadd.f32 %v5832_v53, %v6063_v59  ;;  %v6177_v60 = vpop.eup %4833 }
 0x1b6   : > { %4847 = vpow2.f32 %v4425_v10  ;;  %v1115_v50 = vadd.f32 %v6072_v51, %v5832_v53  ;;  %v7685_v63 = vlaneseq  ;;  %v1474_v7 = vadd.f32 1.0, %v4830_v2  ;;  %v4836_v45 = vpop.eup %4835  ;;  %v7690_v2 = vld [vmem:[#allocation32_spill] sm:$0xff] }
 0x1b7   : > { %2310 = vmatpush1.bf16.msra.mxu1 %v1586_v42  ;;  %v6170_v26 = vpack.c.bf16 %v1619_v21, %v1618_v3  ;;  %v1287_v54 = vmax.f32 %v1255_v32, 0.0  ;;  %v1180_v59 = vadd.f32 %v5839_v20, %v1112_v56  ;;  %v1178_v29 = vadd.f32 %v5841_v58, %v1104_v33  ;;  %v6193_v10 = vpop.eup %4837  ;;  %v4887_v42 = vld [vmem:[%s5176_s20 + $0xc8] sm:$0xff] }
 0x1b8   : > { %v6175_v17 = vshrl.u32 %v7685_v63, 7  ;;  %2311 = vmatprep.subr.bf16.mxu1 %v6161_v36  ;;  %v1181_v38 = vadd.f32 %v5846_v11, %v1115_v50  ;;  %v7686_v51 = vunpack.c.h.bf16 %v5538_v1  ;;  %v7687_v39 = vunpack.c.h.bf16 %v5551_v8 }
 0x1b9   : > { %2871 = vmatpush1.bf16.msra.mxu0 %v6170_v26  ;;  %v7689_v3 = vunpack.c.h.bf16 %v7688_v15  ;;  %v1477_v58 = vadd.f32 1.0, %v4836_v45  ;;  %v1319_v61 = vadd.f32 %v4887_v42, %v1287_v54  ;;  %v1220_v1 = vmul.f32 %v5858_v48, %v1180_v59  ;;  %v4840_v44 = vpop.eup %4839  ;;  %v4888_v15 = vld [vmem:[%s5176_s20 + $0xf0] sm:$0xff] }
 0x1ba   : > { %v1556_v37 = vmul.f32 %v5998_v62, %v7686_v51  ;;  %v1557_v14 = vmul.f32 %v6006_v9, %v7687_v39  ;;  %2872 = vmatprep.subr.bf16.mxu0 %v6161_v36  ;;  %v1218_v11 = vmul.f32 %v5858_v48, %v1178_v29  ;;  %v1221_v8 = vmul.f32 %v5858_v48, %v1181_v38  ;;  %v6207_v54 = vpop.eup %4841 }
 0x1bb   : > { %v1620_v20 = vmul.f32 %v5998_v62, %v7689_v3  ;;  %v7691_v32 = vunpack.c.h.bf16 %v7690_v2  ;;  %v1107_v62 = vadd.f32 %v5832_v53, %v6081_v5  ;;  %4849 = vrcp.f32 %v1474_v7  ;;  %1351 = vst [vmem:[%s5199_s19 + $0xc8] sm:$0xff] %v1319_v61 }
 0x1bc   : > { %v1588_v21 = vpack.c.bf16 %v1557_v14, %v1556_v37  ;;  %v1475_v33 = vadd.f32 1.0, %v4840_v44  ;;  %v4423_v50 = vmul.f32 -1.442695, %v1319_v61  ;;  %v1260_v63 = vadd.f32 %v5871_v19, %v1220_v1  ;;  %v4844_v38 = vpop.eup %4843 }
 0x1bd   : > { %v1621_v56 = vmul.f32 %v6006_v9, %v7691_v32  ;;  %v1258_v59 = vadd.f32 %v5871_v19, %v1218_v11  ;;  %v1261_v29 = vadd.f32 %v5871_v19, %v1221_v8  ;;  %v1179_v9 = vadd.f32 %v5853_v41, %v1107_v62  ;;  %v4889_v11 = vld [vmem:[%s5176_s20 + $0xe0] sm:$0xff]  ;;  %v4890_v8 = vld [vmem:[%s5176_s20 + $0xf8] sm:$0xff] }
 0x1be   : > { %2312 = vmatpush1.bf16.msra.mxu1 %v1588_v21  ;;  %4851 = vrcp.f32 %v1477_v58  ;;  %v1292_v53 = vmax.f32 %v1260_v63, 0.0  ;;  %v6216_v5 = vpack.c.bf16 %v6065_v12, %v6043_v6  ;;  %v6219_v7 = vadd.s32 8, %v6175_v17  ;;  %v4846_v14 = vpop.eup %4845 }
 0x1bf   : > { %v6211_v45 = vpack.c.bf16 %v1621_v56, %v1620_v20  ;;  %4853 = vpow2.f32 %v4423_v50  ;;  %v1290_v51 = vmax.f32 %v1258_v59, 0.0  ;;  %v1293_v37 = vmax.f32 %v1261_v29, 0.0  ;;  %v7696_v29 = vld [vmem:[#allocation37_spill] sm:$0xff] }
 0x1c0   : > { %v7692_v39 = vunpack.c.h.bf16 %v5577_v40  ;;  %4855 = vrcp.f32 %v1475_v33  ;;  %v1324_v3 = vadd.f32 %v4888_v15, %v1292_v53  ;;  %v1219_v20 = vmul.f32 %v5858_v48, %v1179_v9  ;;  %2313 = vmatprep.subr.bf16.mxu1 %v6216_v5  ;;  %v4848_v40 = vpop.eup %4847  ;;  %v7694_v33 = vld [vmem:[#allocation35_spill] sm:$0xff] }
 0x1c1   : > { %2873 = vmatpush1.bf16.msra.mxu0 %v6211_v45  ;;  %v7693_v58 = vunpack.c.h.bf16 %v5593_v49  ;;  %v1480_v61 = vadd.f32 1.0, %v4844_v38  ;;  %v1478_v1 = vadd.f32 1.0, %v4846_v14  ;;  %v1322_v44 = vadd.f32 %v4889_v11, %v1290_v51 }
 0x1c2   : > { %v1558_v41 = vmul.f32 %v6043_v6, %v7692_v39  ;;  %2874 = vmatprep.subr.bf16.mxu0 %v6216_v5  ;;  %v1325_v21 = vadd.f32 %v4890_v8, %v1293_v37  ;;  %v1481_v2 = vadd.f32 1.0, %v4848_v40  ;;  %1356 = vst [vmem:[%s5199_s19 + $0xf0] sm:$0xff] %v1324_v3  ;;  %v4428_v48 = vmul.f32 -1.442695, %v1324_v3  ;;  %v7700_v39 = vld [vmem:[#allocation34_spill] sm:$0xff] }
 0x1c3   : > { %v1559_v42 = vmul.f32 %v6065_v12, %v7693_v58  ;;  %v1259_v32 = vadd.f32 %v5871_v19, %v1219_v20  ;;  %4857 = vrcp.f32 %v1478_v1  ;;  %1354 = vst [vmem:[%s5199_s19 + $0xe0] sm:$0xff] %v1322_v44  ;;  %v4426_v49 = vmul.f32 -1.442695, %v1322_v44 }
 0x1c4   : > { %1357 = vst [vmem:[%s5199_s19 + $0xf8] sm:$0xff] %v1325_v21  ;;  %v4429_v62 = vmul.f32 -1.442695, %v1325_v21  ;;  %v7695_v50 = vunpack.c.h.bf16 %v7694_v33  ;;  %4859 = vrcp.f32 %v1481_v2  ;;  %v7697_v9 = vunpack.c.h.bf16 %v7696_v29  ;;  %v7706_v2 = vld [vmem:[#allocation39_spill] sm:$0xff] }
 0x1c5   : > { %v1590_v56 = vpack.c.bf16 %v1559_v42, %v1558_v41  ;;  %v1291_v59 = vmax.f32 %v1259_v32, 0.0  ;;  %v6246_v19 = vpack.c.bf16 %v6056_v30, %v6038_v46  ;;  %4861 = vpow2.f32 %v4428_v48  ;;  %v6257_v15 = vpop.eup %4849 }
 0x1c6   : > { %v1622_v63 = vmul.f32 %v6043_v6, %v7695_v50  ;;  %v1623_v38 = vmul.f32 %v6065_v12, %v7697_v9  ;;  %v7698_v53 = vunpack.c.h.bf16 %v5567_v28  ;;  %v7699_v37 = vunpack.c.h.bf16 %v5583_v43  ;;  %v4891_v12 = vld [vmem:[%s5176_s20 + $0xe8] sm:$0xff] }
 0x1c7   : > { %2314 = vmatpush1.bf16.msra.mxu1 %v1590_v56  ;;  %v7701_v41 = vunpack.c.h.bf16 %v7700_v39  ;;  %4863 = vpow2.f32 %v4426_v49  ;;  %v1323_v3 = vadd.f32 %v4891_v12, %v1291_v59  ;;  %v7702_v28 = vld [vmem:[#allocation36_spill] sm:$0xff]  ;;  %v6268_v40 = vpack.c.bf16 %v6144_v0, %v6125_v34 }
 0x1c8   : > { %v1560_v51 = vmul.f32 %v6038_v46, %v7698_v53  ;;  %v1561_v6 = vmul.f32 %v6056_v30, %v7699_v37  ;;  %v6260_v20 = vpack.c.bf16 %v1623_v38, %v1622_v63  ;;  %2315 = vmatprep.subr.bf16.mxu1 %v6246_v19  ;;  %v7703_v58 = vunpack.c.h.bf16 %v7702_v28  ;;  %v6273_v11 = vpop.eup %4851 }
 0x1c9   : > { %v1624_v14 = vmul.f32 %v6038_v46, %v7701_v41  ;;  %4865 = vpow2.f32 %v4429_v62  ;;  %v7704_v46 = vunpack.c.h.bf16 %v5617_v31  ;;  %1355 = vst [vmem:[%s5199_s19 + $0xe8] sm:$0xff] %v1323_v3  ;;  %v4427_v44 = vmul.f32 -1.442695, %v1323_v3  ;;  %v4854_v56 = vpop.eup %4853  ;;  %v7708_v31 = vld [vmem:[#allocation45_spill] sm:$0xff]  ;;  %v7718_v3 = vld [vmem:[#allocation52_spill] sm:$0xff] }
 0x1ca   : > { %v1625_v42 = vmul.f32 %v6056_v30, %v7703_v58  ;;  %v1592_v43 = vpack.c.bf16 %v1561_v6, %v1560_v51  ;;  %2875 = vmatpush1.bf16.msra.mxu0 %v6260_v20  ;;  %v7705_v30 = vunpack.c.h.bf16 %v5649_v35  ;;  %v7707_v48 = vunpack.c.h.bf16 %v7706_v2  ;;  %v4856_v63 = vpop.eup %4855  ;;  %v7714_v51 = vld [vmem:[#allocation42_spill] sm:$0xff]  ;;  %v7723_v2 = vld [vmem:[#allocation53_spill] sm:$0xff] }
 0x1cb   : > { %v1562_v1 = vmul.f32 %v6125_v34, %v7704_v46  ;;  %4867 = vrcp.f32 %v1480_v61  ;;  %2876 = vmatprep.subr.bf16.mxu0 %v6246_v19  ;;  %v7709_v49 = vunpack.c.h.bf16 %v7708_v31  ;;  %v6291_v33 = vpack.c.bf16 %v6134_v57, %v6094_v25 }
 0x1cc   : > { %v6277_v8 = vpack.c.bf16 %v1625_v42, %v1624_v14  ;;  %v1563_v21 = vmul.f32 %v6144_v0, %v7705_v30  ;;  %v1626_v32 = vmul.f32 %v6125_v34, %v7707_v48  ;;  %2316 = vmatpush1.bf16.msra.mxu1 %v1592_v43  ;;  %v7710_v35 = vunpack.c.h.bf16 %v5603_v55  ;;  %v7720_v42 = vld [vmem:[#allocation55_spill] sm:$0xff] }
 0x1cd   : > { %v1627_v62 = vmul.f32 %v6144_v0, %v7709_v49  ;;  %v1479_v59 = vadd.f32 1.0, %v4854_v56  ;;  %4869 = vpow2.f32 %v4427_v44  ;;  %2317 = vmatprep.subr.bf16.mxu1 %v6268_v40  ;;  %v7711_v61 = vunpack.c.h.bf16 %v5637_v18  ;;  %v7712_v0 = vld [vmem:[#allocation38_spill] sm:$0xff]  ;;  %v4858_v12 = vpop.eup %4857 }
 0x1ce   : > { %v1564_v50 = vmul.f32 %v6094_v25, %v7710_v35  ;;  %v1594_v34 = vpack.c.bf16 %v1563_v21, %v1562_v1  ;;  %v7713_v38 = vunpack.c.h.bf16 %v7712_v0  ;;  %v7715_v55 = vunpack.c.h.bf16 %v7714_v51  ;;  %2877 = vmatpush1.bf16.msra.mxu0 %v6277_v8  ;;  %v4860_v1 = vpop.eup %4859  ;;  %v7725_v56 = vld [vmem:[#allocation50_spill] sm:$0xff] }
 0x1cf   : > { %v1565_v29 = vmul.f32 %v6134_v57, %v7711_v61  ;;  %v6300_v9 = vpack.c.bf16 %v1627_v62, %v1626_v32  ;;  %v6310_v6 = vpack.c.bf16 %v6193_v10, %v6168_v24  ;;  %4871 = vrcp.f32 %v1479_v59  ;;  %2878 = vmatprep.subr.bf16.mxu0 %v6268_v40  ;;  %v4862_v32 = vpop.eup %4861  ;;  %v7727_v62 = vld [vmem:[#allocation54_spill] sm:$0xff] }
 0x1d0   : > { %v1628_v53 = vmul.f32 %v6094_v25, %v7713_v38  ;;  %v1629_v37 = vmul.f32 %v6134_v57, %v7715_v55  ;;  %v7716_v39 = vunpack.c.h.bf16 %v5669_v52  ;;  %v7717_v14 = vunpack.c.h.bf16 %v5690_v16  ;;  %2318 = vmatpush1.bf16.msra.mxu1 %v1594_v34 }
 0x1d1   : > { %v1596_v18 = vpack.c.bf16 %v1565_v29, %v1564_v50  ;;  %v7719_v28 = vunpack.c.h.bf16 %v7718_v3  ;;  %v7721_v43 = vunpack.c.h.bf16 %v7720_v42  ;;  %v1718_v46 = vsub.s32 1, %v6175_v17  ;;  %2319 = vmatprep.subr.bf16.mxu1 %v6291_v33  ;;  %v7729_v29 = vld [vmem:[#allocation59_spill] sm:$0xff] }
 0x1d2   : > { %v1566_v41 = vmul.f32 %v6168_v24, %v7716_v39  ;;  %v1567_v25 = vmul.f32 %v6193_v10, %v7717_v14  ;;  %v6320_v57 = vpack.c.bf16 %v1629_v37, %v1628_v53  ;;  %v6332_v44 = vpack.c.bf16 %v6177_v60, %v6153_v27  ;;  %2879 = vmatpush1.bf16.msra.mxu0 %v6300_v9  ;;  %v7731_v53 = vld [vmem:[#allocation65_spill] sm:$0xff]  ;;  %v7733_v39 = vld [vmem:[#allocation60_spill] sm:$0xff] }
 0x1d3   : > { %v1630_v58 = vmul.f32 %v6168_v24, %v7719_v28  ;;  %v1631_v52 = vmul.f32 %v6193_v10, %v7721_v43  ;;  %v7722_v30 = vunpack.c.h.bf16 %v5663_v47  ;;  %v7724_v24 = vunpack.c.h.bf16 %v7723_v2  ;;  %v4864_v47 = vpop.eup %4863  ;;  %2880 = vmatprep.subr.bf16.mxu0 %v6291_v33 }
 0x1d4   : > { %v1598_v16 = vpack.c.bf16 %v1567_v25, %v1566_v41  ;;  %v7726_v31 = vunpack.c.h.bf16 %v7725_v56  ;;  %v7728_v35 = vunpack.c.h.bf16 %v7727_v62  ;;  %v6349_v59 = vpack.c.bf16 %v4856_v63, %v6257_v15  ;;  %v4866_v55 = vpop.eup %4865  ;;  %2320 = vmatpush1.bf16.msra.mxu1 %v1596_v18  ;;  %v7735_v25 = vld [vmem:[#allocation66_spill] sm:$0xff] }
 0x1d5   : > { %v1568_v21 = vmul.f32 %v6153_v27, %v7722_v30  ;;  %v1569_v48 = vmul.f32 %v6177_v60, %v7724_v24  ;;  %v6340_v10 = vpack.c.bf16 %v1631_v52, %v1630_v58  ;;  %v1484_v34 = vadd.f32 1.0, %v4862_v32  ;;  %2321 = vmatprep.subr.bf16.mxu1 %v6310_v6  ;;  %v4868_v18 = vpop.eup %4867  ;;  %v7741_v32 = vld [vmem:[#allocation58_spill] sm:$0xff] }
 0x1d6   : > { %v1632_v49 = vmul.f32 %v6153_v27, %v7726_v31  ;;  %v1633_v50 = vmul.f32 %v6177_v60, %v7728_v35  ;;  %v7730_v0 = vunpack.c.h.bf16 %v7729_v29  ;;  %v7732_v51 = vunpack.c.h.bf16 %v7731_v53  ;;  %2881 = vmatpush1.bf16.msra.mxu0 %v6320_v57 }
 0x1d7   : > { %v1600_v61 = vpack.c.bf16 %v1569_v48, %v1568_v21  ;;  %v1482_v37 = vadd.f32 1.0, %v4864_v47  ;;  %v7734_v41 = vunpack.c.h.bf16 %v7733_v39  ;;  %v7736_v3 = vunpack.c.h.bf16 %v7735_v25  ;;  %v7739_v21 = vld [vmem:[#allocation63_spill] sm:$0xff]  ;;  %v4870_v48 = vpop.eup %4869  ;;  %2882 = vmatprep.subr.bf16.mxu0 %v6310_v6 }
 0x1d8   : > { %v6355_v38 = vmul.f32 %v6257_v15, %v7730_v0  ;;  %v6359_v27 = vmul.f32 %v4856_v63, %v7732_v51  ;;  %v6362_v60 = vpack.c.bf16 %v1633_v50, %v1632_v49  ;;  %4873 = vrcp.f32 %v1484_v34  ;;  %v7743_v49 = vld [vmem:[#allocation64_spill] sm:$0xff]  ;;  %v7745_v50 = vld [vmem:[#allocation71_spill] sm:$0xff]  ;;  %2322 = vmatpush1.bf16.msra.mxu1 %v1598_v16  ;;  %v7749_v16 = vld [vmem:[#allocation69_spill] sm:$0xff] }
 0x1d9   : > { %v1634_v14 = vmul.f32 %v6257_v15, %v7734_v41  ;;  %v1635_v28 = vmul.f32 %v4856_v63, %v7736_v3  ;;  %v1485_v58 = vadd.f32 1.0, %v4866_v55  ;;  %v6374_v43 = vpack.c.bf16 %v6273_v11, %v6207_v54  ;;  %v7737_v15 = vld [vmem:[#allocation57_spill] sm:$0xff]  ;;  %2323 = vmatprep.subr.bf16.mxu1 %v6332_v44  ;;  %v7751_v41 = vld [vmem:[#allocation74_spill] sm:$0xff] }
 0x1da   : > { %v1602_v42 = vpack.c.bf16 %v6359_v27, %v6355_v38  ;;  %4875 = vrcp.f32 %v1482_v37  ;;  %v7738_v30 = vunpack.c.h.bf16 %v7737_v15  ;;  %v7740_v2 = vunpack.c.h.bf16 %v7739_v21  ;;  %v7747_v38 = vld [vmem:[#allocation73_spill] sm:$0xff]  ;;  %v7753_v3 = vld [vmem:[#allocation70_spill] sm:$0xff]  ;;  %2883 = vmatpush1.bf16.msra.mxu0 %v6340_v10 }
 0x1db   : > { %v6376_v52 = vpack.c.bf16 %v1635_v28, %v1634_v14  ;;  %4877 = vrcp.f32 %v1485_v58  ;;  %v7742_v56 = vunpack.c.h.bf16 %v7741_v32  ;;  %v7744_v62 = vunpack.c.h.bf16 %v7743_v49  ;;  %2884 = vmatprep.subr.bf16.mxu0 %v6332_v44 }
 0x1dc   : > { %v6381_v63 = vmul.f32 %v6207_v54, %v7738_v30  ;;  %v6386_v24 = vmul.f32 %v6273_v11, %v7740_v2  ;;  %v7746_v47 = vunpack.c.h.bf16 %v7745_v50  ;;  %v1483_v29 = vadd.f32 1.0, %v4870_v48  ;;  %v7755_v30 = vld [vmem:[#allocation78_spill] sm:$0xff]  ;;  %v7757_v2 = vld [vmem:[#allocation79_spill] sm:$0xff]  ;;  %2324 = vmatpush1.bf16.msra.mxu1 %v1600_v61  ;;  %v4893_v61 = vld [vmem:[%s5186_s26 + $0xf0] sm:$0xff] }
 0x1dd   : > { %v1636_v31 = vmul.f32 %v6207_v54, %v7742_v56  ;;  %v1637_v35 = vmul.f32 %v6273_v11, %v7744_v62  ;;  %v7748_v53 = vunpack.c.h.bf16 %v7747_v38  ;;  %v6404_v27 = vpack.c.bf16 %v4860_v1, %v4868_v18  ;;  %v6411_v54 = vld [vmem:[%s441_s12] sm:$0x3]  ;;  %v4872_v11 = vpop.eup %4871  ;;  %2325 = vmatprep.subr.bf16.mxu1 %v6349_v59  ;;  %v4895_v38 = vld [vmem:[%s5181_s23 + $0xf8] sm:$0xff] }
 0x1de   : > { %v6397_v34 = vmul.f32 %v4858_v12, %v7746_v47  ;;  %v1604_v0 = vpack.c.bf16 %v6386_v24, %v6381_v63  ;;  %v7750_v37 = vunpack.c.h.bf16 %v7749_v16  ;;  %v7752_v14 = vunpack.c.h.bf16 %v7751_v41  ;;  %v7759_v56 = vld [vmem:[#allocation75_spill] sm:$0xff]  ;;  %2885 = vmatpush1.bf16.msra.mxu0 %v6362_v60 }
 0x1df   : > { %v1638_v51 = vmul.f32 %v4858_v12, %v7748_v53  ;;  %v6414_v55 = vpack.c.bf16 %v1637_v35, %v1636_v31  ;;  %v7754_v28 = vunpack.c.h.bf16 %v7753_v3  ;;  %4879 = vrcp.f32 %v1483_v29  ;;  %v4894_v29 = vld [vmem:[%s5186_s26 + $0xf8] sm:$0xff]  ;;  %2886 = vmatprep.subr.bf16.mxu0 %v6349_v59 }
 0x1e0   : > { %v6418_v39 = vmul.f32 %v4868_v18, %v7750_v37  ;;  %v6422_v25 = vmul.f32 %v4860_v1, %v7752_v14  ;;  %v6426_v15 = vpack.c.bf16 %v4872_v11, %v4858_v12  ;;  %v7756_v63 = vunpack.c.h.bf16 %v7755_v30  ;;  %v4897_v14 = vld [vmem:[%s5186_s26 + $0xe0] sm:$0xff]  ;;  %2326 = vmatpush1.bf16.msra.mxu1 %v1602_v42 }
 0x1e1   : > { %v1640_v58 = vmul.f32 %v4868_v18, %v7754_v28  ;;  %v7758_v24 = vunpack.c.h.bf16 %v7757_v2  ;;  %v7760_v31 = vunpack.c.h.bf16 %v7759_v56  ;;  %v6442_v12 = vrot.slane %v6411_v54, %v1718_v46  ;;  %2327 = vmatprep.subr.bf16.mxu1 %v6374_v43 }
 0x1e2   : > { %v6430_v21 = vmul.f32 %v4872_v11, %v7756_v63  ;;  %v1608_v32 = vpack.c.bf16 %v6422_v25, %v6418_v39  ;;  %v867_v47 = vunpack.c.h.bf16 %v4893_v61  ;;  %v773_v53 = vunpack.c.h.bf16 %v4895_v38  ;;  %v4899_v63 = vld [vmem:[%s5181_s23 + $0xe8] sm:$0xff]  ;;  %2887 = vmatpush1.bf16.msra.mxu0 %v6376_v52 }
 0x1e3   : > { %v1639_v48 = vmul.f32 %v4872_v11, %v7758_v24  ;;  %v1641_v18 = vmul.f32 %v4860_v1, %v7760_v31  ;;  %v4892_v1 = vld [vmem:[%s5181_s23 + $0xf0] sm:$0xff]  ;;  %vm1721_vm0 = vcmp.eq.s32.totalorder %v6175_v17, %v6442_v12  ;;  %vm1723_vm1 = vcmp.eq.s32.totalorder %v6219_v7, %v6442_v12  ;;  %v4896_v11 = vld [vmem:[%s5181_s23 + $0xe0] sm:$0xff]  ;;  %2888 = vmatprep.subr.bf16.mxu0 %v6374_v43 }
 0x1e4   : > { %v1606_v49 = vpack.c.bf16 %v6430_v21, %v6397_v34  ;;  %v771_v50 = vunpack.c.h.bf16 %v4892_v1  ;;  %v869_v34 = vunpack.c.h.bf16 %v4894_v29  ;;  %vm4430_vm2 = vmpackc.low %vm1723_vm1, %vm1721_vm0  ;;  %v767_v16 = vunpack.c.h.bf16 %v4896_v11  ;;  %2328 = vmatpush1.bf16.msra.mxu1 %v1604_v0 }
 0x1e5   : > { %v6447_v62 = vpack.c.bf16 %v1639_v48, %v1638_v51  ;;  %v6450_v35 = vpack.c.bf16 %v1641_v18, %v1640_v58  ;;  %v4874_v51 = vpop.eup %4873  ;;  %v5103_v37 = vmov 1.0|1.0   ;;  %v863_v3 = vunpack.c.h.bf16 %v4897_v14  ;;  %v4898_v58 = vld [vmem:[%s5186_s26 + $0xe8] sm:$0xff]  ;;  %v1960_v18 = vld [vmem:[%s436_s29] sm:$0x3]  ;;  %2329 = vmatprep.subr.bf16.mxu1 %v6426_v15 }
 0x1e6   : > { %4431 = vmatprep.mubr.msk.bf16.mxu1 %vm4430_vm2, %v5103_v37  ;;  %v4876_v41 = vpop.eup %4875  ;;  %v865_v30 = vunpack.c.h.bf16 %v4898_v58  ;;  %v769_v21 = vunpack.c.h.bf16 %v4899_v63  ;;  %v1580_v2 = vmul.f32 %v4874_v51, %v771_v50  ;;  %v1644_v56 = vmul.f32 %v4874_v51, %v867_v47  ;;  %2889 = vmatpush1.bf16.msra.mxu0 %v6414_v55 }
 0x1e7   : > { %v4878_v28 = vpop.eup %4877  ;;  %v1578_v42 = vmul.f32 %v4876_v41, %v767_v16  ;;  %v1642_v61 = vmul.f32 %v4876_v41, %v863_v3  ;;  %2890 = vmatprep.subr.bf16.mxu0 %v6426_v15  ;;  %v1666_v16 = vadd.s32 24, %v6175_v17  ;;  %v1667_v39 = vadd.s32 32, %v6175_v17 }
 0x1e8   : > { %v6468_v24 = vpack.c.bf16 %v4878_v28, %v4874_v51  ;;  %v1581_v48 = vmul.f32 %v4878_v28, %v773_v53  ;;  %v1645_v31 = vmul.f32 %v4878_v28, %v869_v34  ;;  %v6484_v53 = vrot.slane %v1960_v18, %v1718_v46  ;;  %2330 = vmatpush1.bf16.msra.mxu1 %v1606_v49 }
 0x1e9   : > { %v4880_v1 = vpop.eup %4879  ;;  %2331 = vmatprep.subr.bf16.mxu1 %v6404_v27  ;;  %v1714_v46 = vsub.s32 0, %v6175_v17  ;;  %v1665_v49 = vadd.s32 16, %v6175_v17  ;;  %vm1727_vm9 = vcmp.eq.s32.totalorder %v1666_v16, %v6442_v12  ;;  %v1668_v25 = vadd.s32 40, %v6175_v17 }
 0x1ea   : > { %v1612_v29 = vpack.c.bf16 %v1581_v48, %v1580_v2  ;;  %v6477_v50 = vpack.c.bf16 %v1645_v31, %v1644_v56  ;;  %v6480_v47 = vpack.c.bf16 %v4880_v1, %v4876_v41  ;;  %v1579_v34 = vmul.f32 %v4880_v1, %v769_v21  ;;  %2891 = vmatpush1.bf16.msra.mxu0 %v6447_v62 }
 0x1eb   : > { %v1643_v38 = vmul.f32 %v4880_v1, %v865_v30  ;;  %vm1970_vm3 = vcmp.eq.s32.totalorder %v6175_v17, %v6484_v53  ;;  %vm1972_vm4 = vcmp.eq.s32.totalorder %v6219_v7, %v6484_v53  ;;  %2892 = vmatprep.subr.bf16.mxu0 %v6404_v27  ;;  %v6504_v0 = vrot.slane %v6411_v54, %v1714_v46  ;;  %v7761_v54 = vld [vmem:[#allocation5_spill] sm:$0xff]  ;;  %v2211_v1 = vld [vmem:[#allocation2 + $0x20] sm:$0xff] }
 0x1ec   : > { %v1610_v51 = vpack.c.bf16 %v1579_v34, %v1578_v42  ;;  %vm4526_vm5 = vmpackc.low %vm1972_vm4, %vm1970_vm3  ;;  %2332 = vmatpush1.bf16.msra.mxu1 %v1608_v32  ;;  %v6510_v41 = vrot.slane %v1960_v18, %v1714_v46  ;;  %vm1725_vm8 = vcmp.eq.s32.totalorder %v1665_v49, %v6442_v12  ;;  %vm1974_vm14 = vcmp.eq.s32.totalorder %v1665_v49, %v6484_v53 }
 0x1ed   : > { %v6487_v11 = vpack.c.bf16 %v1643_v38, %v1642_v61  ;;  %4527 = vmatprep.mubr.msk.bf16.mxu0 %vm4526_vm5, %v5103_v37  ;;  %2333 = vmatprep.subr.bf16.mxu1 %v6480_v47  ;;  %vm1720_vm6 = vcmp.eq.s32.totalorder %v6175_v17, %v6504_v0  ;;  %vm1722_vm7 = vcmp.eq.s32.totalorder %v6219_v7, %v6504_v0  ;;  %vm4434_vm13 = vmpackc.low %vm1727_vm9, %vm1725_vm8  ;;  %v1695_v32 = vadd.s32 256, %v6175_v17 }
 0x1ee   : > { %2893 = vmatpush1.bf16.msra.mxu0 %v6450_v35  ;;  %vm4432_vm10 = vmpackc.low %vm1722_vm7, %vm1720_vm6  ;;  %vm1969_vm11 = vcmp.eq.s32.totalorder %v6175_v17, %v6510_v41  ;;  %vm1971_vm12 = vcmp.eq.s32.totalorder %v6219_v7, %v6510_v41  ;;  %vm1976_vm15 = vcmp.eq.s32.totalorder %v1666_v16, %v6484_v53  ;;  %vm1724_vm2 = vcmp.eq.s32.totalorder %v1665_v49, %v6504_v0 }
 0x1ef   : > { %2894 = vmatprep.subr.bf16.mxu0 %v6480_v47  ;;  %vm4528_vm0 = vmpackc.low %vm1971_vm12, %vm1969_vm11  ;;  %vm1726_vm3 = vcmp.eq.s32.totalorder %v1666_v16, %v6504_v0  ;;  %vm1729_vm4 = vcmp.eq.s32.totalorder %v1667_v39, %v6442_v12  ;;  %vm1731_vm5 = vcmp.eq.s32.totalorder %v1668_v25, %v6442_v12  ;;  %vm1973_vm7 = vcmp.eq.s32.totalorder %v1665_v49, %v6510_v41 }
 0x1f0   : > { %2334 = vmatpush1.bf16.msra.mxu1 %v1610_v51  ;;  %vm4530_vm1 = vmpackc.low %vm1976_vm15, %vm1974_vm14  ;;  %vm1975_vm8 = vcmp.eq.s32.totalorder %v1666_v16, %v6510_v41  ;;  %vm1980_vm11 = vcmp.eq.s32.totalorder %v1668_v25, %v6484_v53  ;;  %vm1728_vm14 = vcmp.eq.s32.totalorder %v1667_v39, %v6504_v0  ;;  %vm1730_vm15 = vcmp.eq.s32.totalorder %v1668_v25, %v6504_v0 }
 0x1f1   : > { %2335 = vmatprep.subr.bf16.mxu1 %v6468_v24  ;;  %vm4436_vm6 = vmpackc.low %vm1726_vm3, %vm1724_vm2  ;;  %vm1977_vm3 = vcmp.eq.s32.totalorder %v1667_v39, %v6510_v41  ;;  %v1677_v7 = vadd.s32 112, %v6175_v17  ;;  %v1698_v14 = vadd.s32 280, %v6175_v17  ;;  %v1699_v3 = vadd.s32 288, %v6175_v17 }
 0x1f2   : > { %2895 = vmatpush1.bf16.msra.mxu0 %v6487_v11  ;;  %vm4438_vm9 = vmpackc.low %vm1731_vm5, %vm1729_vm4  ;;  %vm1979_vm4 = vcmp.eq.s32.totalorder %v1668_v25, %v6510_v41  ;;  %v1700_v28 = vadd.s32 296, %v6175_v17  ;;  %v1701_v58 = vadd.s32 304, %v6175_v17  ;;  %v1702_v30 = vadd.s32 312, %v6175_v17  ;;  %v2213_v25 = vld [vmem:[#allocation2 + $0x40] sm:$0xff] }
 0x1f3   : > { %2896 = vmatprep.subr.bf16.mxu0 %v6468_v24  ;;  %vm4532_vm12 = vmpackc.low %vm1975_vm8, %vm1973_vm7  ;;  %v1703_v63 = vadd.s32 320, %v6175_v17  ;;  %v1704_v21 = vadd.s32 328, %v6175_v17  ;;  %v1705_v2 = vadd.s32 336, %v6175_v17  ;;  %v1707_v48 = vadd.s32 352, %v6175_v17 }
 0x1f4   : > { %2336 = vmatpush1.bf16.msra.mxu1 %v1612_v29  ;;  %vm4440_vm2 = vmpackc.low %vm1730_vm15, %vm1728_vm14  ;;  %v1708_v56 = vadd.s32 360, %v6175_v17  ;;  %v1709_v31 = vadd.s32 368, %v6175_v17  ;;  %v1710_v18 = vadd.s32 376, %v6175_v17 }
 0x1f5   : > { %4703 = vmatprep.subr.bf16.mxu1 %v7761_v54  ;;  %vm4536_vm8 = vmpackc.low %vm1979_vm4, %vm1977_vm3 }
 0x1f6   : > { %2897 = vmatpush1.bf16.msra.mxu0 %v6477_v50 }
 0x1f7   : > { %4433 = vmatmul.mubr.msk.bf16.vlgmr.msra.gmra.mrb[0].mxu1 %vm4432_vm10, %v5103_v37  ;;  %vm1978_vm10 = vcmp.eq.s32.totalorder %v1667_v39, %v6484_v53 }
 0x1f8   : > { %4719 = vmatpush1.bf16.msra.mxu1 %v6084_v23  ;;  %4435 = vmatprep.mubr.msk.bf16.mxu1 %vm4434_vm13, %v5103_v37  ;;  %v1670_v23 = vadd.s32 56, %v6175_v17  ;;  %vm4534_vm13 = vmpackc.low %vm1980_vm11, %vm1978_vm10 }
 0x1f9   : > { %4704 = vmatprep.subr.bf16.mxu1 %v6077_v13  ;;  %4529 = vmatmul.mubr.msk.bf16.vlgmr.msra.gmra.mrb[32].mxu0 %vm4528_vm0, %v5103_v37  ;;  %v1669_v13 = vadd.s32 48, %v6175_v17 }
 0x1fa   : > { %4531 = vmatprep.mubr.msk.bf16.mxu0 %vm4530_vm1, %v5103_v37  ;;  %vm1735_vm1 = vcmp.eq.s32.totalorder %v1670_v23, %v6442_v12  ;;  %vm1984_vm7 = vcmp.eq.s32.totalorder %v1670_v23, %v6484_v53  ;;  %vm1734_vm11 = vcmp.eq.s32.totalorder %v1670_v23, %v6504_v0 }
 0x1fb   : > { %vm1733_vm0 = vcmp.eq.s32.totalorder %v1669_v13, %v6442_v12  ;;  %vm1732_vm10 = vcmp.eq.s32.totalorder %v1669_v13, %v6504_v0  ;;  %vm1981_vm15 = vcmp.eq.s32.totalorder %v1669_v13, %v6510_v41 }
 0x1fc   : > { %4720 = vmatpush1.bf16.msra.mxu1 %v6123_v22  ;;  %vm4442_vm5 = vmpackc.low %vm1735_vm1, %vm1733_vm0  ;;  %v1671_v22 = vadd.s32 64, %v6175_v17  ;;  %vm1983_vm0 = vcmp.eq.s32.totalorder %v1670_v23, %v6510_v41 }
 0x1fd   : > { %4705 = vmatprep.subr.bf16.mxu1 %v6132_v4  ;;  %v1672_v4 = vadd.s32 72, %v6175_v17  ;;  %vm4444_vm14 = vmpackc.low %vm1734_vm11, %vm1732_vm10 }
 0x1fe   : > { %vm4540_vm4 = vmpackc.low %vm1983_vm0, %vm1981_vm15  ;;  %vm1985_vm11 = vcmp.eq.s32.totalorder %v1671_v22, %v6510_v41 }
 0x1ff   : > { %4437 = vmatmul.mubr.msk.bf16.gmra.mrb[4].mxu1 %vm4436_vm6, %v5103_v37  ;;  %vm1982_vm6 = vcmp.eq.s32.totalorder %v1669_v13, %v6484_v53  ;;  %vm1988_vm3 = vcmp.eq.s32.totalorder %v1672_v4, %v6484_v53 }
 0x200   : > { %4721 = vmatpush1.bf16.msra.mxu1 %v6170_v26  ;;  %4439 = vmatprep.mubr.msk.bf16.mxu1 %vm4438_vm9, %v5103_v37  ;;  %vm4538_vm9 = vmpackc.low %vm1984_vm7, %vm1982_vm6  ;;  %v1674_v26 = vadd.s32 88, %v6175_v17  ;;  %vm1736_vm6 = vcmp.eq.s32.totalorder %v1671_v22, %v6504_v0  ;;  %vm1738_vm7 = vcmp.eq.s32.totalorder %v1672_v4, %v6504_v0 }
 0x201   : > { %4706 = vmatprep.subr.bf16.mxu1 %v6161_v36  ;;  %4533 = vmatmul.mubr.msk.bf16.gmra.mrb[36].mxu0 %vm4532_vm12, %v5103_v37  ;;  %vm1737_vm12 = vcmp.eq.s32.totalorder %v1671_v22, %v6442_v12  ;;  %v1673_v36 = vadd.s32 80, %v6175_v17  ;;  %vm4448_vm10 = vmpackc.low %vm1738_vm7, %vm1736_vm6 }
 0x202   : > { %4535 = vmatprep.mubr.msk.bf16.mxu0 %vm4534_vm13, %v5103_v37  ;;  %vm1739_vm13 = vcmp.eq.s32.totalorder %v1672_v4, %v6442_v12  ;;  %vm1992_vm15 = vcmp.eq.s32.totalorder %v1674_v26, %v6484_v53 }
 0x203   : > { %vm4446_vm1 = vmpackc.low %vm1739_vm13, %vm1737_vm12  ;;  %vm1987_vm12 = vcmp.eq.s32.totalorder %v1672_v4, %v6510_v41  ;;  %vm1989_vm7 = vcmp.eq.s32.totalorder %v1673_v36, %v6510_v41 }
 0x204   : > { %4722 = vmatpush1.bf16.msra.mxu1 %v6211_v45  ;;  %v1675_v45 = vadd.s32 96, %v6175_v17  ;;  %vm4544_vm0 = vmpackc.low %vm1987_vm12, %vm1985_vm11 }
 0x205   : > { %4707 = vmatprep.subr.bf16.mxu1 %v6216_v5  ;;  %v1676_v5 = vadd.s32 104, %v6175_v17 }
 0x207   : > { %4441 = vmatmul.mubr.msk.bf16.gmra.mrb[8].mxu1 %vm4440_vm2, %v5103_v37  ;;  %vm1986_vm2 = vcmp.eq.s32.totalorder %v1671_v22, %v6484_v53  ;;  %vm1996_vm11 = vcmp.eq.s32.totalorder %v1676_v5, %v6484_v53  ;;  %v2214_v22 = vld [vmem:[#allocation2 + $0x48] sm:$0xff] }
 0x208   : > { %4723 = vmatpush1.bf16.msra.mxu1 %v6260_v20  ;;  %4443 = vmatprep.mubr.msk.bf16.mxu1 %vm4442_vm5, %v5103_v37  ;;  %vm4542_vm5 = vmpackc.low %vm1988_vm3, %vm1986_vm2  ;;  %vm1740_vm2 = vcmp.eq.s32.totalorder %v1673_v36, %v6504_v0  ;;  %vm1742_vm3 = vcmp.eq.s32.totalorder %v1674_v26, %v6504_v0  ;;  %v1679_v20 = vadd.s32 128, %v6175_v17 }
 0x209   : > { %4708 = vmatprep.subr.bf16.mxu1 %v6246_v19  ;;  %4537 = vmatmul.mubr.msk.bf16.gmra.mrb[40].mxu0 %vm4536_vm8, %v5103_v37  ;;  %vm1741_vm8 = vcmp.eq.s32.totalorder %v1673_v36, %v6442_v12  ;;  %vm4452_vm6 = vmpackc.low %vm1742_vm3, %vm1740_vm2  ;;  %v1678_v19 = vadd.s32 120, %v6175_v17  ;;  %vm1993_vm3 = vcmp.eq.s32.totalorder %v1675_v45, %v6510_v41 }
 0x20a   : > { %4539 = vmatprep.mubr.msk.bf16.mxu0 %vm4538_vm9, %v5103_v37  ;;  %vm1743_vm9 = vcmp.eq.s32.totalorder %v1674_v26, %v6442_v12 }
 0x20b   : > { %vm4450_vm13 = vmpackc.low %vm1743_vm9, %vm1741_vm8  ;;  %vm1991_vm8 = vcmp.eq.s32.totalorder %v1674_v26, %v6510_v41  ;;  %v2215_v26 = vld [vmem:[#allocation2 + $0x60] sm:$0xff] }
 0x20c   : > { %4724 = vmatpush1.bf16.msra.mxu1 %v6277_v8  ;;  %vm4548_vm12 = vmpackc.low %vm1991_vm8, %vm1989_vm7  ;;  %vm2000_vm7 = vcmp.eq.s32.totalorder %v1678_v19, %v6484_v53  ;;  %v1681_v8 = vadd.s32 144, %v6175_v17 }
 0x20d   : > { %4709 = vmatprep.subr.bf16.mxu1 %v6268_v40  ;;  %v1680_v40 = vadd.s32 136, %v6175_v17 }
 0x20f   : > { %4445 = vmatmul.mubr.msk.bf16.gmra.mrb[12].mxu1 %vm4444_vm14, %v5103_v37  ;;  %vm1990_vm14 = vcmp.eq.s32.totalorder %v1673_v36, %v6484_v53 }
 0x210   : > { %4725 = vmatpush1.bf16.msra.mxu1 %v6300_v9  ;;  %4447 = vmatprep.mubr.msk.bf16.mxu1 %vm4446_vm1, %v5103_v37  ;;  %vm4546_vm1 = vmpackc.low %vm1992_vm15, %vm1990_vm14  ;;  %vm1744_vm14 = vcmp.eq.s32.totalorder %v1675_v45, %v6504_v0  ;;  %vm1746_vm15 = vcmp.eq.s32.totalorder %v1676_v5, %v6504_v0  ;;  %v1683_v9 = vadd.s32 160, %v6175_v17 }
 0x211   : > { %4710 = vmatprep.subr.bf16.mxu1 %v6291_v33  ;;  %4541 = vmatmul.mubr.msk.bf16.gmra.mrb[44].mxu0 %vm4540_vm4, %v5103_v37  ;;  %vm1745_vm4 = vcmp.eq.s32.totalorder %v1675_v45, %v6442_v12  ;;  %vm4456_vm2 = vmpackc.low %vm1746_vm15, %vm1744_vm14  ;;  %vm1997_vm15 = vcmp.eq.s32.totalorder %v1677_v7, %v6510_v41  ;;  %v1682_v33 = vadd.s32 152, %v6175_v17 }
 0x212   : > { %4543 = vmatprep.mubr.msk.bf16.mxu0 %vm4542_vm5, %v5103_v37  ;;  %vm1747_vm5 = vcmp.eq.s32.totalorder %v1676_v5, %v6442_v12 }
 0x213   : > { %vm4454_vm9 = vmpackc.low %vm1747_vm5, %vm1745_vm4  ;;  %vm1995_vm4 = vcmp.eq.s32.totalorder %v1676_v5, %v6510_v41 }
 0x214   : > { %4726 = vmatpush1.bf16.msra.mxu1 %v6320_v57  ;;  %vm4552_vm8 = vmpackc.low %vm1995_vm4, %vm1993_vm3  ;;  %vm2004_vm3 = vcmp.eq.s32.totalorder %v1680_v40, %v6484_v53  ;;  %v1685_v57 = vadd.s32 176, %v6175_v17 }
 0x215   : > { %4711 = vmatprep.subr.bf16.mxu1 %v6310_v6  ;;  %v1684_v6 = vadd.s32 168, %v6175_v17 }
 0x217   : > { %4449 = vmatmul.mubr.msk.bf16.gmra.mrb[16].mxu1 %vm4448_vm10, %v5103_v37  ;;  %vm1994_vm10 = vcmp.eq.s32.totalorder %v1675_v45, %v6484_v53 }
 0x218   : > { %4727 = vmatpush1.bf16.msra.mxu1 %v6340_v10  ;;  %4451 = vmatprep.mubr.msk.bf16.mxu1 %vm4450_vm13, %v5103_v37  ;;  %vm4550_vm13 = vmpackc.low %vm1996_vm11, %vm1994_vm10  ;;  %vm1748_vm10 = vcmp.eq.s32.totalorder %v1677_v7, %v6504_v0  ;;  %vm1750_vm11 = vcmp.eq.s32.totalorder %v1678_v19, %v6504_v0  ;;  %v1687_v10 = vadd.s32 192, %v6175_v17 }
 0x219   : > { %4712 = vmatprep.subr.bf16.mxu1 %v6332_v44  ;;  %4545 = vmatmul.mubr.msk.bf16.gmra.mrb[48].mxu0 %vm4544_vm0, %v5103_v37  ;;  %vm1749_vm0 = vcmp.eq.s32.totalorder %v1677_v7, %v6442_v12  ;;  %vm4460_vm14 = vmpackc.low %vm1750_vm11, %vm1748_vm10  ;;  %vm2001_vm11 = vcmp.eq.s32.totalorder %v1679_v20, %v6510_v41  ;;  %v1686_v44 = vadd.s32 184, %v6175_v17 }
 0x21a   : > { %4547 = vmatprep.mubr.msk.bf16.mxu0 %vm4546_vm1, %v5103_v37  ;;  %vm1751_vm1 = vcmp.eq.s32.totalorder %v1678_v19, %v6442_v12 }
 0x21b   : > { %vm4458_vm5 = vmpackc.low %vm1751_vm1, %vm1749_vm0  ;;  %vm1999_vm0 = vcmp.eq.s32.totalorder %v1678_v19, %v6510_v41  ;;  %v2774_v19 = vld [vmem:[#allocation2 + $0x50] sm:$0xff] }
 0x21c   : > { %4728 = vmatpush1.bf16.msra.mxu1 %v6362_v60  ;;  %vm4556_vm4 = vmpackc.low %vm1999_vm0, %vm1997_vm15  ;;  %vm2008_vm15 = vcmp.eq.s32.totalorder %v1682_v33, %v6484_v53  ;;  %v1689_v60 = vadd.s32 208, %v6175_v17 }
 0x21d   : > { %4713 = vmatprep.subr.bf16.mxu1 %v6349_v59  ;;  %v1688_v59 = vadd.s32 200, %v6175_v17 }
 0x21f   : > { %4453 = vmatmul.mubr.msk.bf16.gmra.mrb[20].mxu1 %vm4452_vm6, %v5103_v37  ;;  %vm1998_vm6 = vcmp.eq.s32.totalorder %v1677_v7, %v6484_v53  ;;  %v2216_v7 = vld [vmem:[#allocation2 + $0x68] sm:$0xff] }
 0x220   : > { %4729 = vmatpush1.bf16.msra.mxu1 %v6376_v52  ;;  %4455 = vmatprep.mubr.msk.bf16.mxu1 %vm4454_vm9, %v5103_v37  ;;  %vm4554_vm9 = vmpackc.low %vm2000_vm7, %vm1998_vm6  ;;  %vm1752_vm6 = vcmp.eq.s32.totalorder %v1679_v20, %v6504_v0  ;;  %vm1754_vm7 = vcmp.eq.s32.totalorder %v1680_v40, %v6504_v0  ;;  %v1691_v52 = vadd.s32 224, %v6175_v17 }
 0x221   : > { %4714 = vmatprep.subr.bf16.mxu1 %v6374_v43  ;;  %4549 = vmatmul.mubr.msk.bf16.gmra.mrb[52].mxu0 %vm4548_vm12, %v5103_v37  ;;  %vm1753_vm12 = vcmp.eq.s32.totalorder %v1679_v20, %v6442_v12  ;;  %vm4464_vm10 = vmpackc.low %vm1754_vm7, %vm1752_vm6  ;;  %vm2005_vm7 = vcmp.eq.s32.totalorder %v1681_v8, %v6510_v41  ;;  %v1690_v43 = vadd.s32 216, %v6175_v17 }
 0x222   : > { %4551 = vmatprep.mubr.msk.bf16.mxu0 %vm4550_vm13, %v5103_v37  ;;  %vm1755_vm13 = vcmp.eq.s32.totalorder %v1680_v40, %v6442_v12 }
 0x223   : > { %vm4462_vm1 = vmpackc.low %vm1755_vm13, %vm1753_vm12  ;;  %vm2003_vm12 = vcmp.eq.s32.totalorder %v1680_v40, %v6510_v41 }
 0x224   : > { %4730 = vmatpush1.bf16.msra.mxu1 %v6414_v55  ;;  %vm4560_vm0 = vmpackc.low %vm2003_vm12, %vm2001_vm11  ;;  %vm2012_vm11 = vcmp.eq.s32.totalorder %v1684_v6, %v6484_v53  ;;  %v1693_v55 = vadd.s32 240, %v6175_v17 }
 0x225   : > { %4715 = vmatprep.subr.bf16.mxu1 %v6426_v15  ;;  %v1694_v15 = vadd.s32 248, %v6175_v17 }
 0x227   : > { %4457 = vmatmul.mubr.msk.bf16.gmra.mrb[24].mxu1 %vm4456_vm2, %v5103_v37  ;;  %vm2002_vm2 = vcmp.eq.s32.totalorder %v1679_v20, %v6484_v53 }
 0x228   : > { %4731 = vmatpush1.bf16.msra.mxu1 %v6447_v62  ;;  %4459 = vmatprep.mubr.msk.bf16.mxu1 %vm4458_vm5, %v5103_v37  ;;  %vm4558_vm5 = vmpackc.low %vm2004_vm3, %vm2002_vm2  ;;  %vm1756_vm2 = vcmp.eq.s32.totalorder %v1681_v8, %v6504_v0  ;;  %vm1758_vm3 = vcmp.eq.s32.totalorder %v1682_v33, %v6504_v0  ;;  %v1696_v62 = vadd.s32 264, %v6175_v17 }
 0x229   : > { %4716 = vmatprep.subr.bf16.mxu1 %v6404_v27  ;;  %4553 = vmatmul.mubr.msk.bf16.gmra.mrb[56].mxu0 %vm4552_vm8, %v5103_v37  ;;  %vm1757_vm8 = vcmp.eq.s32.totalorder %v1681_v8, %v6442_v12  ;;  %vm4468_vm6 = vmpackc.low %vm1758_vm3, %vm1756_vm2  ;;  %vm2009_vm3 = vcmp.eq.s32.totalorder %v1683_v9, %v6510_v41  ;;  %v1692_v27 = vadd.s32 232, %v6175_v17 }
 0x22a   : > { %4555 = vmatprep.mubr.msk.bf16.mxu0 %vm4554_vm9, %v5103_v37  ;;  %vm1759_vm9 = vcmp.eq.s32.totalorder %v1682_v33, %v6442_v12 }
 0x22b   : > { %vm4466_vm13 = vmpackc.low %vm1759_vm9, %vm1757_vm8  ;;  %vm2007_vm8 = vcmp.eq.s32.totalorder %v1682_v33, %v6510_v41 }
 0x22c   : > { %4732 = vmatpush1.bf16.msra.mxu1 %v6450_v35  ;;  %vm4564_vm12 = vmpackc.low %vm2007_vm8, %vm2005_vm7  ;;  %vm2016_vm7 = vcmp.eq.s32.totalorder %v1686_v44, %v6484_v53  ;;  %v1697_v35 = vadd.s32 272, %v6175_v17 }
 0x22d   : > { %4717 = vmatprep.subr.bf16.mxu1 %v6480_v47  ;;  %v2770_v47 = vld [vmem:[#allocation2 + $0x10] sm:$0xff] }
 0x22f   : > { %4461 = vmatmul.mubr.msk.bf16.gmra.mrb[28].mxu1 %vm4460_vm14, %v5103_v37  ;;  %vm2006_vm14 = vcmp.eq.s32.totalorder %v1681_v8, %v6484_v53  ;;  %v2775_v8 = vld [vmem:[#allocation2 + $0x58] sm:$0xff] }
 0x230   : > { %4733 = vmatpush1.bf16.msra.mxu1 %v6487_v11  ;;  %4463 = vmatprep.mubr.msk.bf16.mxu1 %vm4462_vm1, %v5103_v37  ;;  %vm4562_vm1 = vmpackc.low %vm2008_vm15, %vm2006_vm14  ;;  %vm1760_vm14 = vcmp.eq.s32.totalorder %v1683_v9, %v6504_v0  ;;  %vm1762_vm15 = vcmp.eq.s32.totalorder %v1684_v6, %v6504_v0 }
 0x231   : > { %4718 = vmatprep.subr.bf16.mxu1 %v6468_v24  ;;  %4557 = vmatmul.mubr.msk.bf16.gmra.mrb[60].mxu0 %vm4556_vm4, %v5103_v37  ;;  %vm1761_vm4 = vcmp.eq.s32.totalorder %v1683_v9, %v6442_v12  ;;  %vm4472_vm2 = vmpackc.low %vm1762_vm15, %vm1760_vm14  ;;  %vm2013_vm15 = vcmp.eq.s32.totalorder %v1685_v57, %v6510_v41  ;;  %v1706_v24 = vadd.s32 344, %v6175_v17  ;;  %v2209_v17 = vld [vmem:[#allocation2] sm:$0xff] }
 0x232   : > { %4559 = vmatprep.mubr.msk.bf16.mxu0 %vm4558_vm5, %v5103_v37  ;;  %vm1763_vm5 = vcmp.eq.s32.totalorder %v1684_v6, %v6442_v12 }
 0x233   : > { %vm4470_vm9 = vmpackc.low %vm1763_vm5, %vm1761_vm4  ;;  %vm2011_vm4 = vcmp.eq.s32.totalorder %v1684_v6, %v6510_v41 }
 0x234   : > { %4734 = vmatpush1.bf16.msra.mxu1 %v6477_v50  ;;  %vm4568_vm8 = vmpackc.low %vm2011_vm4, %vm2009_vm3  ;;  %vm2020_vm3 = vcmp.eq.s32.totalorder %v1688_v59, %v6484_v53  ;;  %v2212_v50 = vld [vmem:[#allocation2 + $0x28] sm:$0xff] }
 0x237   : > { %4465 = vmatmul.mubr.msk.bf16.gmra.mrb[32].mxu1 %vm4464_vm10, %v5103_v37  ;;  %vm2010_vm10 = vcmp.eq.s32.totalorder %v1683_v9, %v6484_v53 }
 0x238   : > { %4467 = vmatprep.mubr.msk.bf16.mxu1 %vm4466_vm13, %v5103_v37  ;;  %vm4566_vm13 = vmpackc.low %vm2012_vm11, %vm2010_vm10  ;;  %vm1764_vm10 = vcmp.eq.s32.totalorder %v1685_v57, %v6504_v0  ;;  %vm1766_vm11 = vcmp.eq.s32.totalorder %v1686_v44, %v6504_v0 }
 0x239   : > { %4561 = vmatmul.mubr.msk.bf16.gmra.mrb[64].mxu0 %vm4560_vm0, %v5103_v37  ;;  %vm1765_vm0 = vcmp.eq.s32.totalorder %v1685_v57, %v6442_v12  ;;  %vm4476_vm14 = vmpackc.low %vm1766_vm11, %vm1764_vm10  ;;  %vm2017_vm11 = vcmp.eq.s32.totalorder %v1687_v10, %v6510_v41 }
 0x23a   : > { %4563 = vmatprep.mubr.msk.bf16.mxu0 %vm4562_vm1, %v5103_v37  ;;  %vm1767_vm1 = vcmp.eq.s32.totalorder %v1686_v44, %v6442_v12 }
 0x23b   : > { %vm4474_vm5 = vmpackc.low %vm1767_vm1, %vm1765_vm0  ;;  %vm2015_vm0 = vcmp.eq.s32.totalorder %v1686_v44, %v6510_v41 }
 0x23c   : > { %vm4572_vm4 = vmpackc.low %vm2015_vm0, %vm2013_vm15  ;;  %vm2024_vm15 = vcmp.eq.s32.totalorder %v1690_v43, %v6484_v53 }
 0x23f   : > { %4469 = vmatmul.mubr.msk.bf16.gmra.mrb[36].mxu1 %vm4468_vm6, %v5103_v37  ;;  %vm2014_vm6 = vcmp.eq.s32.totalorder %v1685_v57, %v6484_v53  ;;  %v2776_v57 = vld [vmem:[#allocation2 + $0x70] sm:$0xff] }
 0x240   : > { %4471 = vmatprep.mubr.msk.bf16.mxu1 %vm4470_vm9, %v5103_v37  ;;  %vm4570_vm9 = vmpackc.low %vm2016_vm7, %vm2014_vm6  ;;  %vm1768_vm6 = vcmp.eq.s32.totalorder %v1687_v10, %v6504_v0  ;;  %vm1770_vm7 = vcmp.eq.s32.totalorder %v1688_v59, %v6504_v0 }
 0x241   : > { %4565 = vmatmul.mubr.msk.bf16.gmra.mrb[68].mxu0 %vm4564_vm12, %v5103_v37  ;;  %vm1769_vm12 = vcmp.eq.s32.totalorder %v1687_v10, %v6442_v12  ;;  %vm4480_vm10 = vmpackc.low %vm1770_vm7, %vm1768_vm6  ;;  %vm2021_vm7 = vcmp.eq.s32.totalorder %v1689_v60, %v6510_v41 }
 0x242   : > { %4567 = vmatprep.mubr.msk.bf16.mxu0 %vm4566_vm13, %v5103_v37  ;;  %vm1771_vm13 = vcmp.eq.s32.totalorder %v1688_v59, %v6442_v12 }
 0x243   : > { %vm4478_vm1 = vmpackc.low %vm1771_vm13, %vm1769_vm12  ;;  %vm2019_vm12 = vcmp.eq.s32.totalorder %v1688_v59, %v6510_v41 }
 0x244   : > { %vm4576_vm0 = vmpackc.low %vm2019_vm12, %vm2017_vm11  ;;  %vm2028_vm11 = vcmp.eq.s32.totalorder %v1692_v27, %v6484_v53 }
 0x247   : > { %4473 = vmatmul.mubr.msk.bf16.gmra.mrb[40].mxu1 %vm4472_vm2, %v5103_v37  ;;  %vm2018_vm2 = vcmp.eq.s32.totalorder %v1687_v10, %v6484_v53 }
 0x248   : > { %4475 = vmatprep.mubr.msk.bf16.mxu1 %vm4474_vm5, %v5103_v37  ;;  %vm4574_vm5 = vmpackc.low %vm2020_vm3, %vm2018_vm2  ;;  %vm1772_vm2 = vcmp.eq.s32.totalorder %v1689_v60, %v6504_v0  ;;  %vm1774_vm3 = vcmp.eq.s32.totalorder %v1690_v43, %v6504_v0 }
 0x249   : > { %4569 = vmatmul.mubr.msk.bf16.gmra.mrb[72].mxu0 %vm4568_vm8, %v5103_v37  ;;  %vm1773_vm8 = vcmp.eq.s32.totalorder %v1689_v60, %v6442_v12  ;;  %vm4484_vm6 = vmpackc.low %vm1774_vm3, %vm1772_vm2  ;;  %vm2025_vm3 = vcmp.eq.s32.totalorder %v1691_v52, %v6510_v41 }
 0x24a   : > { %4571 = vmatprep.mubr.msk.bf16.mxu0 %vm4570_vm9, %v5103_v37  ;;  %vm1775_vm9 = vcmp.eq.s32.totalorder %v1690_v43, %v6442_v12 }
 0x24b   : > { %vm4482_vm13 = vmpackc.low %vm1775_vm9, %vm1773_vm8  ;;  %vm2023_vm8 = vcmp.eq.s32.totalorder %v1690_v43, %v6510_v41 }
 0x24c   : > { %vm4580_vm12 = vmpackc.low %vm2023_vm8, %vm2021_vm7  ;;  %vm2032_vm7 = vcmp.eq.s32.totalorder %v1694_v15, %v6484_v53 }
 0x24f   : > { %4477 = vmatmul.mubr.msk.bf16.gmra.mrb[44].mxu1 %vm4476_vm14, %v5103_v37  ;;  %vm2022_vm14 = vcmp.eq.s32.totalorder %v1689_v60, %v6484_v53  ;;  %v2777_v60 = vld [vmem:[#allocation2 + $0x78] sm:$0xff] }
 0x250   : > { %4479 = vmatprep.mubr.msk.bf16.mxu1 %vm4478_vm1, %v5103_v37  ;;  %vm4578_vm1 = vmpackc.low %vm2024_vm15, %vm2022_vm14  ;;  %vm1776_vm14 = vcmp.eq.s32.totalorder %v1691_v52, %v6504_v0  ;;  %vm1778_vm15 = vcmp.eq.s32.totalorder %v1692_v27, %v6504_v0 }
 0x251   : > { %4573 = vmatmul.mubr.msk.bf16.gmra.mrb[76].mxu0 %vm4572_vm4, %v5103_v37  ;;  %vm1777_vm4 = vcmp.eq.s32.totalorder %v1691_v52, %v6442_v12  ;;  %vm4488_vm2 = vmpackc.low %vm1778_vm15, %vm1776_vm14  ;;  %vm2029_vm15 = vcmp.eq.s32.totalorder %v1693_v55, %v6510_v41 }
 0x252   : > { %4575 = vmatprep.mubr.msk.bf16.mxu0 %vm4574_vm5, %v5103_v37  ;;  %vm1779_vm5 = vcmp.eq.s32.totalorder %v1692_v27, %v6442_v12 }
 0x253   : > { %vm4486_vm9 = vmpackc.low %vm1779_vm5, %vm1777_vm4  ;;  %vm2027_vm4 = vcmp.eq.s32.totalorder %v1692_v27, %v6510_v41  ;;  %v2217_v27 = vld [vmem:[#allocation2 + $0x80] sm:$0xff] }
 0x254   : > { %vm4584_vm8 = vmpackc.low %vm2027_vm4, %vm2025_vm3  ;;  %vm2036_vm3 = vcmp.eq.s32.totalorder %v1696_v62, %v6484_v53 }
 0x257   : > { %4481 = vmatmul.mubr.msk.bf16.gmra.mrb[48].mxu1 %vm4480_vm10, %v5103_v37  ;;  %vm2026_vm10 = vcmp.eq.s32.totalorder %v1691_v52, %v6484_v53 }
 0x258   : > { %4483 = vmatprep.mubr.msk.bf16.mxu1 %vm4482_vm13, %v5103_v37  ;;  %vm4582_vm13 = vmpackc.low %vm2028_vm11, %vm2026_vm10  ;;  %vm1780_vm10 = vcmp.eq.s32.totalorder %v1693_v55, %v6504_v0  ;;  %vm1782_vm11 = vcmp.eq.s32.totalorder %v1694_v15, %v6504_v0 }
 0x259   : > { %4577 = vmatmul.mubr.msk.bf16.gmra.mrb[80].mxu0 %vm4576_vm0, %v5103_v37  ;;  %vm1781_vm0 = vcmp.eq.s32.totalorder %v1693_v55, %v6442_v12  ;;  %vm4492_vm14 = vmpackc.low %vm1782_vm11, %vm1780_vm10  ;;  %vm2033_vm11 = vcmp.eq.s32.totalorder %v1695_v32, %v6510_v41 }
 0x25a   : > { %4579 = vmatprep.mubr.msk.bf16.mxu0 %vm4578_vm1, %v5103_v37  ;;  %vm1783_vm1 = vcmp.eq.s32.totalorder %v1694_v15, %v6442_v12 }
 0x25b   : > { %vm4490_vm5 = vmpackc.low %vm1783_vm1, %vm1781_vm0  ;;  %vm2031_vm0 = vcmp.eq.s32.totalorder %v1694_v15, %v6510_v41 }
 0x25c   : > { %vm4588_vm4 = vmpackc.low %vm2031_vm0, %vm2029_vm15  ;;  %vm2040_vm15 = vcmp.eq.s32.totalorder %v1698_v14, %v6484_v53 }
 0x25f   : > { %4485 = vmatmul.mubr.msk.bf16.gmra.mrb[52].mxu1 %vm4484_vm6, %v5103_v37  ;;  %vm2030_vm6 = vcmp.eq.s32.totalorder %v1693_v55, %v6484_v53 }
 0x260   : > { %4487 = vmatprep.mubr.msk.bf16.mxu1 %vm4486_vm9, %v5103_v37  ;;  %vm4586_vm9 = vmpackc.low %vm2032_vm7, %vm2030_vm6  ;;  %vm1784_vm6 = vcmp.eq.s32.totalorder %v1695_v32, %v6504_v0  ;;  %vm1786_vm7 = vcmp.eq.s32.totalorder %v1696_v62, %v6504_v0 }
 0x261   : > { %4581 = vmatmul.mubr.msk.bf16.gmra.mrb[84].mxu0 %vm4580_vm12, %v5103_v37  ;;  %vm1785_vm12 = vcmp.eq.s32.totalorder %v1695_v32, %v6442_v12  ;;  %vm4496_vm10 = vmpackc.low %vm1786_vm7, %vm1784_vm6  ;;  %vm2037_vm7 = vcmp.eq.s32.totalorder %v1697_v35, %v6510_v41 }
 0x262   : > { %4583 = vmatprep.mubr.msk.bf16.mxu0 %vm4582_vm13, %v5103_v37  ;;  %vm1787_vm13 = vcmp.eq.s32.totalorder %v1696_v62, %v6442_v12 }
 0x263   : > { %vm4494_vm1 = vmpackc.low %vm1787_vm13, %vm1785_vm12  ;;  %vm2035_vm12 = vcmp.eq.s32.totalorder %v1696_v62, %v6510_v41 }
 0x264   : > { %vm4592_vm0 = vmpackc.low %vm2035_vm12, %vm2033_vm11  ;;  %vm2044_vm11 = vcmp.eq.s32.totalorder %v1700_v28, %v6484_v53 }
 0x267   : > { %4489 = vmatmul.mubr.msk.bf16.gmra.mrb[56].mxu1 %vm4488_vm2, %v5103_v37  ;;  %vm2034_vm2 = vcmp.eq.s32.totalorder %v1695_v32, %v6484_v53  ;;  %v2218_v32 = vld [vmem:[#allocation2 + $0x88] sm:$0xff] }
 0x268   : > { %4491 = vmatprep.mubr.msk.bf16.mxu1 %vm4490_vm5, %v5103_v37  ;;  %vm4590_vm5 = vmpackc.low %vm2036_vm3, %vm2034_vm2  ;;  %vm1788_vm2 = vcmp.eq.s32.totalorder %v1697_v35, %v6504_v0  ;;  %vm1790_vm3 = vcmp.eq.s32.totalorder %v1698_v14, %v6504_v0 }
 0x269   : > { %4585 = vmatmul.mubr.msk.bf16.gmra.mrb[88].mxu0 %vm4584_vm8, %v5103_v37  ;;  %vm1789_vm8 = vcmp.eq.s32.totalorder %v1697_v35, %v6442_v12  ;;  %vm4500_vm6 = vmpackc.low %vm1790_vm3, %vm1788_vm2  ;;  %vm2041_vm3 = vcmp.eq.s32.totalorder %v1699_v3, %v6510_v41 }
 0x26a   : > { %4587 = vmatprep.mubr.msk.bf16.mxu0 %vm4586_vm9, %v5103_v37  ;;  %vm1791_vm9 = vcmp.eq.s32.totalorder %v1698_v14, %v6442_v12 }
 0x26b   : > { %vm4498_vm13 = vmpackc.low %vm1791_vm9, %vm1789_vm8  ;;  %vm2039_vm8 = vcmp.eq.s32.totalorder %v1698_v14, %v6510_v41  ;;  %v2219_v14 = vld [vmem:[#allocation2 + $0xa0] sm:$0xff] }
 0x26c   : > { %vm4596_vm12 = vmpackc.low %vm2039_vm8, %vm2037_vm7  ;;  %vm2048_vm7 = vcmp.eq.s32.totalorder %v1702_v30, %v6484_v53 }
 0x26f   : > { %4493 = vmatmul.mubr.msk.bf16.gmra.mrb[60].mxu1 %vm4492_vm14, %v5103_v37  ;;  %vm2038_vm14 = vcmp.eq.s32.totalorder %v1697_v35, %v6484_v53 }
 0x270   : > { %4495 = vmatprep.mubr.msk.bf16.mxu1 %vm4494_vm1, %v5103_v37  ;;  %vm4594_vm1 = vmpackc.low %vm2040_vm15, %vm2038_vm14  ;;  %vm1792_vm14 = vcmp.eq.s32.totalorder %v1699_v3, %v6504_v0  ;;  %vm1794_vm15 = vcmp.eq.s32.totalorder %v1700_v28, %v6504_v0 }
 0x271   : > { %4589 = vmatmul.mubr.msk.bf16.gmra.mrb[92].mxu0 %vm4588_vm4, %v5103_v37  ;;  %vm1793_vm4 = vcmp.eq.s32.totalorder %v1699_v3, %v6442_v12  ;;  %vm4504_vm2 = vmpackc.low %vm1794_vm15, %vm1792_vm14  ;;  %vm2045_vm15 = vcmp.eq.s32.totalorder %v1701_v58, %v6510_v41 }
 0x272   : > { %4591 = vmatprep.mubr.msk.bf16.mxu0 %vm4590_vm5, %v5103_v37  ;;  %vm1795_vm5 = vcmp.eq.s32.totalorder %v1700_v28, %v6442_v12 }
 0x273   : > { %vm4502_vm9 = vmpackc.low %vm1795_vm5, %vm1793_vm4  ;;  %vm2043_vm4 = vcmp.eq.s32.totalorder %v1700_v28, %v6510_v41 }
 0x274   : > { %vm4600_vm8 = vmpackc.low %vm2043_vm4, %vm2041_vm3  ;;  %vm2052_vm3 = vcmp.eq.s32.totalorder %v1704_v21, %v6484_v53 }
 0x277   : > { %4497 = vmatmul.mubr.msk.bf16.gmra.mrb[64].mxu1 %vm4496_vm10, %v5103_v37  ;;  %vm2042_vm10 = vcmp.eq.s32.totalorder %v1699_v3, %v6484_v53 }
 0x278   : > { %4499 = vmatprep.mubr.msk.bf16.mxu1 %vm4498_vm13, %v5103_v37  ;;  %vm4598_vm13 = vmpackc.low %vm2044_vm11, %vm2042_vm10  ;;  %vm1796_vm10 = vcmp.eq.s32.totalorder %v1701_v58, %v6504_v0  ;;  %vm1798_vm11 = vcmp.eq.s32.totalorder %v1702_v30, %v6504_v0 }
 0x279   : > { %4593 = vmatmul.mubr.msk.bf16.gmra.mrb[96].mxu0 %vm4592_vm0, %v5103_v37  ;;  %vm1797_vm0 = vcmp.eq.s32.totalorder %v1701_v58, %v6442_v12  ;;  %vm4508_vm14 = vmpackc.low %vm1798_vm11, %vm1796_vm10  ;;  %vm2049_vm11 = vcmp.eq.s32.totalorder %v1703_v63, %v6510_v41 }
 0x27a   : > { %4595 = vmatprep.mubr.msk.bf16.mxu0 %vm4594_vm1, %v5103_v37  ;;  %vm1799_vm1 = vcmp.eq.s32.totalorder %v1702_v30, %v6442_v12 }
 0x27b   : > { %vm4506_vm5 = vmpackc.low %vm1799_vm1, %vm1797_vm0  ;;  %vm2047_vm0 = vcmp.eq.s32.totalorder %v1702_v30, %v6510_v41  ;;  %v2778_v30 = vld [vmem:[#allocation2 + $0x90] sm:$0xff] }
 0x27c   : > { %vm4604_vm4 = vmpackc.low %vm2047_vm0, %vm2045_vm15  ;;  %vm2056_vm15 = vcmp.eq.s32.totalorder %v1706_v24, %v6484_v53 }
 0x27f   : > { %4501 = vmatmul.mubr.msk.bf16.gmra.mrb[68].mxu1 %vm4500_vm6, %v5103_v37  ;;  %vm2046_vm6 = vcmp.eq.s32.totalorder %v1701_v58, %v6484_v53  ;;  %v2220_v58 = vld [vmem:[#allocation2 + $0xa8] sm:$0xff] }
 0x280   : > { %4503 = vmatprep.mubr.msk.bf16.mxu1 %vm4502_vm9, %v5103_v37  ;;  %vm4602_vm9 = vmpackc.low %vm2048_vm7, %vm2046_vm6  ;;  %vm1800_vm6 = vcmp.eq.s32.totalorder %v1703_v63, %v6504_v0  ;;  %vm1802_vm7 = vcmp.eq.s32.totalorder %v1704_v21, %v6504_v0 }
 0x281   : > { %4597 = vmatmul.mubr.msk.bf16.gmra.mrb[100].mxu0 %vm4596_vm12, %v5103_v37  ;;  %vm1801_vm12 = vcmp.eq.s32.totalorder %v1703_v63, %v6442_v12  ;;  %vm4512_vm10 = vmpackc.low %vm1802_vm7, %vm1800_vm6  ;;  %vm2053_vm7 = vcmp.eq.s32.totalorder %v1705_v2, %v6510_v41 }
 0x282   : > { %4599 = vmatprep.mubr.msk.bf16.mxu0 %vm4598_vm13, %v5103_v37  ;;  %vm1803_vm13 = vcmp.eq.s32.totalorder %v1704_v21, %v6442_v12 }
 0x283   : > { %vm4510_vm1 = vmpackc.low %vm1803_vm13, %vm1801_vm12  ;;  %vm2051_vm12 = vcmp.eq.s32.totalorder %v1704_v21, %v6510_v41 }
 0x284   : > { %vm4608_vm0 = vmpackc.low %vm2051_vm12, %vm2049_vm11  ;;  %vm1808_vm11 = vcmp.eq.s32.totalorder %v1707_v48, %v6504_v0  ;;  %vm1810_vm12 = vcmp.eq.s32.totalorder %v1708_v56, %v6504_v0 }
 0x287   : > { %4505 = vmatmul.mubr.msk.bf16.gmra.mrb[72].mxu1 %vm4504_vm2, %v5103_v37  ;;  %vm2050_vm2 = vcmp.eq.s32.totalorder %v1703_v63, %v6484_v53 }
 0x288   : > { %4507 = vmatprep.mubr.msk.bf16.mxu1 %vm4506_vm5, %v5103_v37  ;;  %vm4606_vm5 = vmpackc.low %vm2052_vm3, %vm2050_vm2  ;;  %vm1804_vm2 = vcmp.eq.s32.totalorder %v1705_v2, %v6504_v0  ;;  %vm1806_vm3 = vcmp.eq.s32.totalorder %v1706_v24, %v6504_v0 }
 0x289   : > { %4601 = vmatmul.mubr.msk.bf16.gmra.mrb[104].mxu0 %vm4600_vm8, %v5103_v37  ;;  %vm1805_vm8 = vcmp.eq.s32.totalorder %v1705_v2, %v6442_v12  ;;  %vm4516_vm6 = vmpackc.low %vm1806_vm3, %vm1804_vm2  ;;  %vm1814_vm2 = vcmp.eq.s32.totalorder %v1710_v18, %v6504_v0  ;;  %vm2058_vm3 = vcmp.eq.s32.totalorder %v1707_v48, %v6484_v53 }
 0x28a   : > { %4603 = vmatprep.mubr.msk.bf16.mxu0 %vm4602_vm9, %v5103_v37  ;;  %vm1807_vm9 = vcmp.eq.s32.totalorder %v1706_v24, %v6442_v12 }
 0x28b   : > { %vm4514_vm13 = vmpackc.low %vm1807_vm9, %vm1805_vm8  ;;  %vm2055_vm8 = vcmp.eq.s32.totalorder %v1706_v24, %v6510_v41 }
 0x28f   : > { %4509 = vmatmul.mubr.msk.bf16.gmra.mrb[76].mxu1 %vm4508_vm14, %v5103_v37  ;;  %vm2054_vm14 = vcmp.eq.s32.totalorder %v1705_v2, %v6484_v53  ;;  %v2779_v2 = vld [vmem:[#allocation2 + $0x98] sm:$0xff] }
 0x290   : > { %4511 = vmatprep.mubr.msk.bf16.mxu1 %vm4510_vm1, %v5103_v37  ;;  %vm4610_vm1 = vmpackc.low %vm2056_vm15, %vm2054_vm14  ;;  %vm1815_vm14 = vcmp.eq.s32.totalorder %v1710_v18, %v6442_v12 }
 0x291   : > { %4605 = vmatmul.mubr.msk.bf16.gmra.mrb[108].mxu0 %vm4604_vm4, %v5103_v37  ;;  %vm1809_vm4 = vcmp.eq.s32.totalorder %v1707_v48, %v6442_v12  ;;  %vm4520_vm15 = vmpackc.low %vm1810_vm12, %vm1808_vm11 }
 0x292   : > { %4607 = vmatprep.mubr.msk.bf16.mxu0 %vm4606_vm5, %v5103_v37  ;;  %vm1811_vm5 = vcmp.eq.s32.totalorder %v1708_v56, %v6442_v12 }
 0x293   : > { %vm4518_vm9 = vmpackc.low %vm1811_vm5, %vm1809_vm4  ;;  %vm2060_vm4 = vcmp.eq.s32.totalorder %v1708_v56, %v6484_v53 }
 0x297   : > { %4513 = vmatmul.mubr.msk.bf16.gmra.mrb[80].mxu1 %vm4512_vm10, %v5103_v37  ;;  %vm4612_vm10 = vmpackc.low %vm2055_vm8, %vm2053_vm7  ;;  %vm2057_vm7 = vcmp.eq.s32.totalorder %v1707_v48, %v6510_v41  ;;  %vm2059_vm8 = vcmp.eq.s32.totalorder %v1708_v56, %v6510_v41 }
 0x298   : > { %4515 = vmatprep.mubr.msk.bf16.mxu1 %vm4514_vm13, %v5103_v37  ;;  %vm1813_vm13 = vcmp.eq.s32.totalorder %v1709_v31, %v6442_v12  ;;  %vm4616_vm11 = vmpackc.low %vm2059_vm8, %vm2057_vm7  ;;  %v2210_v12 = vld [vmem:[#allocation2 + $0x8] sm:$0xff] }
 0x299   : > { %4609 = vmatmul.mubr.msk.bf16.gmra.mrb[112].mxu0 %vm4608_vm0, %v5103_v37  ;;  %vm4522_vm0 = vmpackc.low %vm1815_vm14, %vm1813_vm13  ;;  %vm2061_vm13 = vcmp.eq.s32.totalorder %v1709_v31, %v6510_v41  ;;  %vm2063_vm14 = vcmp.eq.s32.totalorder %v1710_v18, %v6510_v41  ;;  %v2773_v41 = vld [vmem:[#allocation2 + $0x38] sm:$0xff] }
 0x29a   : > { %4611 = vmatprep.mubr.msk.bf16.mxu0 %vm4610_vm1, %v5103_v37  ;;  %vm1812_vm1 = vcmp.eq.s32.totalorder %v1709_v31, %v6504_v0  ;;  %v2772_v0 = vld [vmem:[#allocation2 + $0x30] sm:$0xff] }
 0x29b   : > { %vm4524_vm5 = vmpackc.low %vm1814_vm2, %vm1812_vm1 }
 0x29f   : > { %4517 = vmatmul.mubr.msk.bf16.gmra.mrb[84].mxu1 %vm4516_vm6, %v5103_v37  ;;  %vm4614_vm6 = vmpackc.low %vm2060_vm4, %vm2058_vm3 }
 0x2a0   : > { %4519 = vmatprep.mubr.msk.bf16.mxu1 %vm4518_vm9, %v5103_v37  ;;  %vm2062_vm9 = vcmp.eq.s32.totalorder %v1709_v31, %v6484_v53  ;;  %v2780_v31 = vld [vmem:[#allocation2 + $0xb0] sm:$0xff] }
 0x2a1   : > { %4613 = vmatmul.mubr.msk.bf16.gmra.mrb[116].mxu0 %vm4612_vm10, %v5103_v37  ;;  %vm2064_vm10 = vcmp.eq.s32.totalorder %v1710_v18, %v6484_v53  ;;  %v2771_v53 = vld [vmem:[#allocation2 + $0x18] sm:$0xff] }
 0x2a2   : > { %vm4618_vm12 = vmpackc.low %vm2064_vm10, %vm2062_vm9 }
 0x2a7   : > { %4521 = vmatmul.mubr.msk.bf16.gmra.mrb[88].mxu1 %vm4520_vm15, %v5103_v37  ;;  %vm4620_vm15 = vmpackc.low %vm2063_vm14, %vm2061_vm13 }
 0x2a8   : > { %4523 = vmatprep.mubr.msk.bf16.mxu1 %vm4522_vm0, %v5103_v37 }
 0x2af   : > { %4525 = vmatmul.mubr.msk.bf16.gmra.mrb[92].mxu1 %vm4524_vm5, %v5103_v37 }
 0x2b0   : > { %4615 = vmatprep.mubr.msk.bf16.mxu1 %vm4614_vm6, %v5103_v37 }
 0x2b7   : > { %4617 = vmatmul.mubr.msk.bf16.vlgmr.msra.gmra.mrb[96].mxu1 %vm4616_vm11, %v5103_v37 }
 0x2b8   : > { %4619 = vmatprep.mubr.msk.bf16.mxu1 %vm4618_vm12, %v5103_v37 }
 0x2bf   : > { %4621 = vmatmul.mubr.msk.bf16.gmra.mrb[100].mxu1 %vm4620_vm15, %v5103_v37 }
 0x2ca   : > { %v2339_v42 = vpop.f32.mrb[0].mxu1 }
 0x2cb   : > { %v2578_v61 = vadd.f32 %v2339_v42, %v2209_v17  ;;  %v2341_v29 = vpop.f32.mrb[1].mxu1  ;;  %v2781_v42 = vld [vmem:[#allocation2 + $0xb8] sm:$0xff] }
 0x2cc   : > { %v2579_v34 = vadd.f32 %v2341_v29, %v2210_v12  ;;  %v2343_v38 = vpop.f32.mrb[2].mxu1  ;;  %v2900_v46 = vpop.f32.mrb[32].mxu0  ;;  %v2221_v29 = vld [vmem:[#allocation2 + $0xc0] sm:$0xff] }
 0x2cd   : > { %2674 = vst [vmem:[#allocation2] sm:$0xff] %v2578_v61  ;;  %v2580_v51 = vadd.f32 %v2343_v38, %v2211_v1  ;;  %v2345_v11 = vpop.f32.mrb[3].mxu1  ;;  %v3139_v16 = vadd.f32 %v2900_v46, %v2770_v47  ;;  %v2902_v37 = vpop.f32.mrb[33].mxu0 }
 0x2ce   : > { %2675 = vst [vmem:[#allocation2 + $0x8] sm:$0xff] %v2579_v34  ;;  %v2581_v49 = vadd.f32 %v2345_v11, %v2212_v50  ;;  %v3140_v54 = vadd.f32 %v2902_v37, %v2771_v53  ;;  %v2904_v39 = vpop.f32.mrb[34].mxu0  ;;  %v2222_v34 = vld [vmem:[#allocation2 + $0xc8] sm:$0xff] }
 0x2cf   : > { %2676 = vst [vmem:[#allocation2 + $0x20] sm:$0xff] %v2580_v51  ;;  %3235 = vst [vmem:[#allocation2 + $0x10] sm:$0xff] %v3139_v16  ;;  %v3141_v13 = vadd.f32 %v2904_v39, %v2772_v0  ;;  %v2906_v23 = vpop.f32.mrb[35].mxu0  ;;  %v2223_v51 = vld [vmem:[#allocation2 + $0xe0] sm:$0xff]  ;;  %v2224_v0 = vld [vmem:[#allocation2 + $0xe8] sm:$0xff] }
 0x2d0   : > { %2677 = vst [vmem:[#allocation2 + $0x28] sm:$0xff] %v2581_v49  ;;  %3236 = vst [vmem:[#allocation2 + $0x18] sm:$0xff] %v3140_v54  ;;  %v3142_v4 = vadd.f32 %v2906_v23, %v2773_v41  ;;  %v2782_v49 = vld [vmem:[#allocation2 + $0xd0] sm:$0xff]  ;;  %v2783_v41 = vld [vmem:[#allocation2 + $0xd8] sm:$0xff] }
 0x2d1   : > { %3237 = vst [vmem:[#allocation2 + $0x30] sm:$0xff] %v3141_v13  ;;  %v2784_v13 = vld [vmem:[#allocation2 + $0xf0] sm:$0xff] }
 0x2d2   : > { %v2349_v36 = vpop.f32.mrb[4].mxu1  ;;  %3238 = vst [vmem:[#allocation2 + $0x38] sm:$0xff] %v3142_v4 }
 0x2d3   : > { %v2582_v45 = vadd.f32 %v2349_v36, %v2213_v25  ;;  %v2351_v5 = vpop.f32.mrb[5].mxu1  ;;  %v2785_v36 = vld [vmem:[#allocation2 + $0xf8] sm:$0xff] }
 0x2d4   : > { %v2583_v20 = vadd.f32 %v2351_v5, %v2214_v22  ;;  %v2353_v40 = vpop.f32.mrb[6].mxu1  ;;  %v2910_v6 = vpop.f32.mrb[36].mxu0  ;;  %v2225_v5 = vld [vmem:[#allocation2 + $0x100] sm:$0xff] }
 0x2d5   : > { %2678 = vst [vmem:[#allocation2 + $0x40] sm:$0xff] %v2582_v45  ;;  %v2584_v33 = vadd.f32 %v2353_v40, %v2215_v26  ;;  %v2355_v9 = vpop.f32.mrb[7].mxu1  ;;  %v3143_v10 = vadd.f32 %v2910_v6, %v2774_v19  ;;  %v2912_v59 = vpop.f32.mrb[37].mxu0 }
 0x2d6   : > { %2679 = vst [vmem:[#allocation2 + $0x48] sm:$0xff] %v2583_v20  ;;  %v2585_v44 = vadd.f32 %v2355_v9, %v2216_v7  ;;  %v3144_v43 = vadd.f32 %v2912_v59, %v2775_v8  ;;  %v2914_v52 = vpop.f32.mrb[38].mxu0  ;;  %v2226_v20 = vld [vmem:[#allocation2 + $0x108] sm:$0xff] }
 0x2d7   : > { %2680 = vst [vmem:[#allocation2 + $0x60] sm:$0xff] %v2584_v33  ;;  %3239 = vst [vmem:[#allocation2 + $0x50] sm:$0xff] %v3143_v10  ;;  %v3145_v55 = vadd.f32 %v2914_v52, %v2776_v57  ;;  %v2916_v15 = vpop.f32.mrb[39].mxu0  ;;  %v2227_v33 = vld [vmem:[#allocation2 + $0x120] sm:$0xff]  ;;  %v2228_v57 = vld [vmem:[#allocation2 + $0x128] sm:$0xff] }
 0x2d8   : > { %2681 = vst [vmem:[#allocation2 + $0x68] sm:$0xff] %v2585_v44  ;;  %3240 = vst [vmem:[#allocation2 + $0x58] sm:$0xff] %v3144_v43  ;;  %v3146_v62 = vadd.f32 %v2916_v15, %v2777_v60  ;;  %v2786_v44 = vld [vmem:[#allocation2 + $0x110] sm:$0xff]  ;;  %v2787_v60 = vld [vmem:[#allocation2 + $0x118] sm:$0xff] }
 0x2d9   : > { %3241 = vst [vmem:[#allocation2 + $0x70] sm:$0xff] %v3145_v55  ;;  %v2788_v55 = vld [vmem:[#allocation2 + $0x130] sm:$0xff] }
 0x2da   : > { %v2359_v35 = vpop.f32.mrb[8].mxu1  ;;  %3242 = vst [vmem:[#allocation2 + $0x78] sm:$0xff] %v3146_v62 }
 0x2db   : > { %v2586_v3 = vadd.f32 %v2359_v35, %v2217_v27  ;;  %v2361_v28 = vpop.f32.mrb[9].mxu1  ;;  %v2789_v35 = vld [vmem:[#allocation2 + $0x138] sm:$0xff] }
 0x2dc   : > { %v2587_v63 = vadd.f32 %v2361_v28, %v2218_v32  ;;  %v2363_v21 = vpop.f32.mrb[10].mxu1  ;;  %v2920_v56 = vpop.f32.mrb[40].mxu0  ;;  %v2229_v28 = vld [vmem:[#allocation2 + $0x140] sm:$0xff] }
 0x2dd   : > { %2682 = vst [vmem:[#allocation2 + $0x80] sm:$0xff] %v2586_v3  ;;  %v2588_v24 = vadd.f32 %v2363_v21, %v2219_v14  ;;  %v2365_v48 = vpop.f32.mrb[11].mxu1  ;;  %v3147_v17 = vadd.f32 %v2920_v56, %v2778_v30  ;;  %v2922_v12 = vpop.f32.mrb[41].mxu0 }
 0x2de   : > { %2683 = vst [vmem:[#allocation2 + $0x88] sm:$0xff] %v2587_v63  ;;  %v2589_v18 = vadd.f32 %v2365_v48, %v2220_v58  ;;  %v3148_v1 = vadd.f32 %v2922_v12, %v2779_v2  ;;  %v2924_v61 = vpop.f32.mrb[42].mxu0  ;;  %v2230_v63 = vld [vmem:[#allocation2 + $0x148] sm:$0xff] }
 0x2df   : > { %2684 = vst [vmem:[#allocation2 + $0xa0] sm:$0xff] %v2588_v24  ;;  %3243 = vst [vmem:[#allocation2 + $0x90] sm:$0xff] %v3147_v17  ;;  %v3149_v50 = vadd.f32 %v2924_v61, %v2780_v31  ;;  %v2926_v47 = vpop.f32.mrb[43].mxu0  ;;  %v2231_v24 = vld [vmem:[#allocation2 + $0x160] sm:$0xff]  ;;  %v2232_v31 = vld [vmem:[#allocation2 + $0x168] sm:$0xff] }
 0x2e0   : > { %2685 = vst [vmem:[#allocation2 + $0xa8] sm:$0xff] %v2589_v18  ;;  %3244 = vst [vmem:[#allocation2 + $0x98] sm:$0xff] %v3148_v1  ;;  %v3150_v38 = vadd.f32 %v2926_v47, %v2781_v42  ;;  %v2790_v18 = vld [vmem:[#allocation2 + $0x150] sm:$0xff]  ;;  %v2791_v42 = vld [vmem:[#allocation2 + $0x158] sm:$0xff] }
 0x2e1   : > { %3245 = vst [vmem:[#allocation2 + $0xb0] sm:$0xff] %v3149_v50  ;;  %v2792_v50 = vld [vmem:[#allocation2 + $0x170] sm:$0xff] }
 0x2e2   : > { %v2369_v53 = vpop.f32.mrb[12].mxu1  ;;  %3246 = vst [vmem:[#allocation2 + $0xb8] sm:$0xff] %v3150_v38 }
 0x2e3   : > { %v2590_v11 = vadd.f32 %v2369_v53, %v2221_v29  ;;  %v2371_v46 = vpop.f32.mrb[13].mxu1  ;;  %v2793_v53 = vld [vmem:[#allocation2 + $0x178] sm:$0xff] }
 0x2e4   : > { %v2591_v16 = vadd.f32 %v2371_v46, %v2222_v34  ;;  %v2373_v37 = vpop.f32.mrb[14].mxu1  ;;  %v2930_v25 = vpop.f32.mrb[44].mxu0  ;;  %v2233_v46 = vld [vmem:[#allocation2 + $0x180] sm:$0xff] }
 0x2e5   : > { %2686 = vst [vmem:[#allocation2 + $0xc0] sm:$0xff] %v2590_v11  ;;  %v2592_v54 = vadd.f32 %v2373_v37, %v2223_v51  ;;  %v2375_v39 = vpop.f32.mrb[15].mxu1  ;;  %v3151_v22 = vadd.f32 %v2930_v25, %v2782_v49  ;;  %v2932_v4 = vpop.f32.mrb[45].mxu0 }
 0x2e6   : > { %2687 = vst [vmem:[#allocation2 + $0xc8] sm:$0xff] %v2591_v16  ;;  %v2593_v23 = vadd.f32 %v2375_v39, %v2224_v0  ;;  %v3152_v26 = vadd.f32 %v2932_v4, %v2783_v41  ;;  %v2934_v45 = vpop.f32.mrb[46].mxu0  ;;  %v2234_v16 = vld [vmem:[#allocation2 + $0x188] sm:$0xff] }
 0x2e7   : > { %2688 = vst [vmem:[#allocation2 + $0xe0] sm:$0xff] %v2592_v54  ;;  %3247 = vst [vmem:[#allocation2 + $0xd0] sm:$0xff] %v3151_v22  ;;  %v3153_v7 = vadd.f32 %v2934_v45, %v2784_v13  ;;  %v2936_v19 = vpop.f32.mrb[47].mxu0  ;;  %v2235_v54 = vld [vmem:[#allocation2 + $0x1a0] sm:$0xff]  ;;  %v2236_v13 = vld [vmem:[#allocation2 + $0x1a8] sm:$0xff] }
 0x2e8   : > { %2689 = vst [vmem:[#allocation2 + $0xe8] sm:$0xff] %v2593_v23  ;;  %3248 = vst [vmem:[#allocation2 + $0xd8] sm:$0xff] %v3152_v26  ;;  %v3154_v40 = vadd.f32 %v2936_v19, %v2785_v36  ;;  %v2794_v23 = vld [vmem:[#allocation2 + $0x190] sm:$0xff]  ;;  %v2795_v36 = vld [vmem:[#allocation2 + $0x198] sm:$0xff] }
 0x2e9   : > { %3249 = vst [vmem:[#allocation2 + $0xf0] sm:$0xff] %v3153_v7  ;;  %v2796_v7 = vld [vmem:[#allocation2 + $0x1b0] sm:$0xff] }
 0x2ea   : > { %v2379_v8 = vpop.f32.mrb[16].mxu1  ;;  %3250 = vst [vmem:[#allocation2 + $0xf8] sm:$0xff] %v3154_v40 }
 0x2eb   : > { %v2594_v9 = vadd.f32 %v2379_v8, %v2225_v5  ;;  %v2381_v6 = vpop.f32.mrb[17].mxu1  ;;  %v2797_v8 = vld [vmem:[#allocation2 + $0x1b8] sm:$0xff] }
 0x2ec   : > { %v2595_v10 = vadd.f32 %v2381_v6, %v2226_v20  ;;  %v2383_v59 = vpop.f32.mrb[18].mxu1  ;;  %v2940_v27 = vpop.f32.mrb[48].mxu0  ;;  %v2237_v6 = vld [vmem:[#allocation2 + $0x1c0] sm:$0xff] }
 0x2ed   : > { %2690 = vst [vmem:[#allocation2 + $0x100] sm:$0xff] %v2594_v9  ;;  %v2596_v43 = vadd.f32 %v2383_v59, %v2227_v33  ;;  %v2385_v52 = vpop.f32.mrb[19].mxu1  ;;  %v3155_v32 = vadd.f32 %v2940_v27, %v2786_v44  ;;  %v2942_v62 = vpop.f32.mrb[49].mxu0 }
 0x2ee   : > { %2691 = vst [vmem:[#allocation2 + $0x108] sm:$0xff] %v2595_v10  ;;  %v2597_v15 = vadd.f32 %v2385_v52, %v2228_v57  ;;  %v3156_v14 = vadd.f32 %v2942_v62, %v2787_v60  ;;  %v2944_v3 = vpop.f32.mrb[50].mxu0  ;;  %v2238_v10 = vld [vmem:[#allocation2 + $0x1c8] sm:$0xff] }
 0x2ef   : > { %2692 = vst [vmem:[#allocation2 + $0x120] sm:$0xff] %v2596_v43  ;;  %3251 = vst [vmem:[#allocation2 + $0x110] sm:$0xff] %v3155_v32  ;;  %v3157_v58 = vadd.f32 %v2944_v3, %v2788_v55  ;;  %v2946_v30 = vpop.f32.mrb[51].mxu0  ;;  %v2239_v43 = vld [vmem:[#allocation2 + $0x1e0] sm:$0xff]  ;;  %v2240_v55 = vld [vmem:[#allocation2 + $0x1e8] sm:$0xff] }
 0x2f0   : > { %2693 = vst [vmem:[#allocation2 + $0x128] sm:$0xff] %v2597_v15  ;;  %3252 = vst [vmem:[#allocation2 + $0x118] sm:$0xff] %v3156_v14  ;;  %v3158_v21 = vadd.f32 %v2946_v30, %v2789_v35  ;;  %v2798_v15 = vld [vmem:[#allocation2 + $0x1d0] sm:$0xff]  ;;  %v2799_v35 = vld [vmem:[#allocation2 + $0x1d8] sm:$0xff] }
 0x2f1   : > { %3253 = vst [vmem:[#allocation2 + $0x130] sm:$0xff] %v3157_v58  ;;  %v2800_v58 = vld [vmem:[#allocation2 + $0x1f0] sm:$0xff] }
 0x2f2   : > { %v2389_v2 = vpop.f32.mrb[20].mxu1  ;;  %3254 = vst [vmem:[#allocation2 + $0x138] sm:$0xff] %v3158_v21 }
 0x2f3   : > { %v2598_v48 = vadd.f32 %v2389_v2, %v2229_v28  ;;  %v2391_v56 = vpop.f32.mrb[21].mxu1  ;;  %v2801_v2 = vld [vmem:[#allocation2 + $0x1f8] sm:$0xff] }
 0x2f4   : > { %v2599_v17 = vadd.f32 %v2391_v56, %v2230_v63  ;;  %v2393_v12 = vpop.f32.mrb[22].mxu1  ;;  %v2950_v29 = vpop.f32.mrb[52].mxu0  ;;  %v2241_v56 = vld [vmem:[#allocation2 + $0x200] sm:$0xff] }
 0x2f5   : > { %2694 = vst [vmem:[#allocation2 + $0x140] sm:$0xff] %v2598_v48  ;;  %v2600_v1 = vadd.f32 %v2393_v12, %v2231_v24  ;;  %v2395_v61 = vpop.f32.mrb[23].mxu1  ;;  %v3159_v34 = vadd.f32 %v2950_v29, %v2790_v18  ;;  %v2952_v38 = vpop.f32.mrb[53].mxu0 }
 0x2f6   : > { %2695 = vst [vmem:[#allocation2 + $0x148] sm:$0xff] %v2599_v17  ;;  %v2601_v47 = vadd.f32 %v2395_v61, %v2232_v31  ;;  %v3160_v51 = vadd.f32 %v2952_v38, %v2791_v42  ;;  %v2954_v11 = vpop.f32.mrb[54].mxu0  ;;  %v2242_v17 = vld [vmem:[#allocation2 + $0x208] sm:$0xff] }
 0x2f7   : > { %2696 = vst [vmem:[#allocation2 + $0x160] sm:$0xff] %v2600_v1  ;;  %3255 = vst [vmem:[#allocation2 + $0x150] sm:$0xff] %v3159_v34  ;;  %v3161_v0 = vadd.f32 %v2954_v11, %v2792_v50  ;;  %v2956_v49 = vpop.f32.mrb[55].mxu0  ;;  %v2243_v1 = vld [vmem:[#allocation2 + $0x220] sm:$0xff]  ;;  %v2244_v50 = vld [vmem:[#allocation2 + $0x228] sm:$0xff] }
 0x2f8   : > { %2697 = vst [vmem:[#allocation2 + $0x168] sm:$0xff] %v2601_v47  ;;  %3256 = vst [vmem:[#allocation2 + $0x158] sm:$0xff] %v3160_v51  ;;  %v3162_v37 = vadd.f32 %v2956_v49, %v2793_v53  ;;  %v2802_v47 = vld [vmem:[#allocation2 + $0x210] sm:$0xff]  ;;  %v2803_v53 = vld [vmem:[#allocation2 + $0x218] sm:$0xff] }
 0x2f9   : > { %3257 = vst [vmem:[#allocation2 + $0x170] sm:$0xff] %v3161_v0  ;;  %v2804_v0 = vld [vmem:[#allocation2 + $0x230] sm:$0xff] }
 0x2fa   : > { %v2399_v41 = vpop.f32.mrb[24].mxu1  ;;  %3258 = vst [vmem:[#allocation2 + $0x178] sm:$0xff] %v3162_v37 }
 0x2fb   : > { %v2602_v39 = vadd.f32 %v2399_v41, %v2233_v46  ;;  %v2401_v25 = vpop.f32.mrb[25].mxu1  ;;  %v2805_v41 = vld [vmem:[#allocation2 + $0x238] sm:$0xff] }
 0x2fc   : > { %v2603_v22 = vadd.f32 %v2401_v25, %v2234_v16  ;;  %v2403_v4 = vpop.f32.mrb[26].mxu1  ;;  %v2960_v5 = vpop.f32.mrb[56].mxu0  ;;  %v2245_v25 = vld [vmem:[#allocation2 + $0x240] sm:$0xff] }
 0x2fd   : > { %2698 = vst [vmem:[#allocation2 + $0x180] sm:$0xff] %v2602_v39  ;;  %v2604_v26 = vadd.f32 %v2403_v4, %v2235_v54  ;;  %v2405_v45 = vpop.f32.mrb[27].mxu1  ;;  %v3163_v20 = vadd.f32 %v2960_v5, %v2794_v23  ;;  %v2962_v40 = vpop.f32.mrb[57].mxu0 }
 0x2fe   : > { %2699 = vst [vmem:[#allocation2 + $0x188] sm:$0xff] %v2603_v22  ;;  %v2605_v19 = vadd.f32 %v2405_v45, %v2236_v13  ;;  %v3164_v33 = vadd.f32 %v2962_v40, %v2795_v36  ;;  %v2964_v9 = vpop.f32.mrb[58].mxu0  ;;  %v2246_v22 = vld [vmem:[#allocation2 + $0x248] sm:$0xff] }
 0x2ff   : > { %2700 = vst [vmem:[#allocation2 + $0x1a0] sm:$0xff] %v2604_v26  ;;  %3259 = vst [vmem:[#allocation2 + $0x190] sm:$0xff] %v3163_v20  ;;  %v3165_v57 = vadd.f32 %v2964_v9, %v2796_v7  ;;  %v2966_v44 = vpop.f32.mrb[59].mxu0  ;;  %v2247_v26 = vld [vmem:[#allocation2 + $0x260] sm:$0xff]  ;;  %v2248_v7 = vld [vmem:[#allocation2 + $0x268] sm:$0xff] }
 0x300   : > { %2701 = vst [vmem:[#allocation2 + $0x1a8] sm:$0xff] %v2605_v19  ;;  %3260 = vst [vmem:[#allocation2 + $0x198] sm:$0xff] %v3164_v33  ;;  %v3166_v59 = vadd.f32 %v2966_v44, %v2797_v8  ;;  %v2806_v19 = vld [vmem:[#allocation2 + $0x250] sm:$0xff]  ;;  %v2807_v8 = vld [vmem:[#allocation2 + $0x258] sm:$0xff] }
 0x301   : > { %3261 = vst [vmem:[#allocation2 + $0x1b0] sm:$0xff] %v3165_v57  ;;  %v2808_v57 = vld [vmem:[#allocation2 + $0x270] sm:$0xff] }
 0x302   : > { %v2409_v60 = vpop.f32.mrb[28].mxu1  ;;  %3262 = vst [vmem:[#allocation2 + $0x1b8] sm:$0xff] %v3166_v59 }
 0x303   : > { %v2606_v52 = vadd.f32 %v2409_v60, %v2237_v6  ;;  %v2411_v27 = vpop.f32.mrb[29].mxu1  ;;  %v2809_v60 = vld [vmem:[#allocation2 + $0x278] sm:$0xff] }
 0x304   : > { %v2607_v32 = vadd.f32 %v2411_v27, %v2238_v10  ;;  %v2413_v62 = vpop.f32.mrb[30].mxu1  ;;  %v2970_v28 = vpop.f32.mrb[60].mxu0  ;;  %v2249_v27 = vld [vmem:[#allocation2 + $0x280] sm:$0xff] }
 0x305   : > { %2702 = vst [vmem:[#allocation2 + $0x1c0] sm:$0xff] %v2606_v52  ;;  %v2608_v14 = vadd.f32 %v2413_v62, %v2239_v43  ;;  %v2415_v3 = vpop.f32.mrb[31].mxu1  ;;  %v3167_v63 = vadd.f32 %v2970_v28, %v2798_v15  ;;  %v2972_v21 = vpop.f32.mrb[61].mxu0 }
 0x306   : > { %2703 = vst [vmem:[#allocation2 + $0x1c8] sm:$0xff] %v2607_v32  ;;  %v2609_v30 = vadd.f32 %v2415_v3, %v2240_v55  ;;  %v3168_v24 = vadd.f32 %v2972_v21, %v2799_v35  ;;  %v2974_v48 = vpop.f32.mrb[62].mxu0  ;;  %v2250_v32 = vld [vmem:[#allocation2 + $0x288] sm:$0xff] }
 0x307   : > { %2704 = vst [vmem:[#allocation2 + $0x1e0] sm:$0xff] %v2608_v14  ;;  %3263 = vst [vmem:[#allocation2 + $0x1d0] sm:$0xff] %v3167_v63  ;;  %v3169_v31 = vadd.f32 %v2974_v48, %v2800_v58  ;;  %v2976_v18 = vpop.f32.mrb[63].mxu0  ;;  %v2251_v14 = vld [vmem:[#allocation2 + $0x2a0] sm:$0xff]  ;;  %v2252_v58 = vld [vmem:[#allocation2 + $0x2a8] sm:$0xff] }
 0x308   : > { %2705 = vst [vmem:[#allocation2 + $0x1e8] sm:$0xff] %v2609_v30  ;;  %3264 = vst [vmem:[#allocation2 + $0x1d8] sm:$0xff] %v3168_v24  ;;  %v3170_v12 = vadd.f32 %v2976_v18, %v2801_v2  ;;  %v2810_v30 = vld [vmem:[#allocation2 + $0x290] sm:$0xff]  ;;  %v2811_v2 = vld [vmem:[#allocation2 + $0x298] sm:$0xff] }
 0x309   : > { %3265 = vst [vmem:[#allocation2 + $0x1f0] sm:$0xff] %v3169_v31  ;;  %v2812_v31 = vld [vmem:[#allocation2 + $0x2b0] sm:$0xff] }
 0x30a   : > { %v2419_v42 = vpop.f32.mrb[32].mxu1  ;;  %3266 = vst [vmem:[#allocation2 + $0x1f8] sm:$0xff] %v3170_v12 }
 0x30b   : > { %v2610_v61 = vadd.f32 %v2419_v42, %v2241_v56  ;;  %v2421_v29 = vpop.f32.mrb[33].mxu1  ;;  %v2813_v42 = vld [vmem:[#allocation2 + $0x2b8] sm:$0xff] }
 0x30c   : > { %v2611_v34 = vadd.f32 %v2421_v29, %v2242_v17  ;;  %v2423_v38 = vpop.f32.mrb[34].mxu1  ;;  %v2980_v46 = vpop.f32.mrb[64].mxu0  ;;  %v2253_v29 = vld [vmem:[#allocation2 + $0x2c0] sm:$0xff] }
 0x30d   : > { %2706 = vst [vmem:[#allocation2 + $0x200] sm:$0xff] %v2610_v61  ;;  %v2612_v51 = vadd.f32 %v2423_v38, %v2243_v1  ;;  %v2425_v11 = vpop.f32.mrb[35].mxu1  ;;  %v3171_v16 = vadd.f32 %v2980_v46, %v2802_v47  ;;  %v2982_v37 = vpop.f32.mrb[65].mxu0 }
 0x30e   : > { %2707 = vst [vmem:[#allocation2 + $0x208] sm:$0xff] %v2611_v34  ;;  %v2613_v49 = vadd.f32 %v2425_v11, %v2244_v50  ;;  %v3172_v54 = vadd.f32 %v2982_v37, %v2803_v53  ;;  %v2984_v39 = vpop.f32.mrb[66].mxu0  ;;  %v2254_v34 = vld [vmem:[#allocation2 + $0x2c8] sm:$0xff] }
 0x30f   : > { %2708 = vst [vmem:[#allocation2 + $0x220] sm:$0xff] %v2612_v51  ;;  %3267 = vst [vmem:[#allocation2 + $0x210] sm:$0xff] %v3171_v16  ;;  %v3173_v13 = vadd.f32 %v2984_v39, %v2804_v0  ;;  %v2986_v23 = vpop.f32.mrb[67].mxu0  ;;  %v2255_v51 = vld [vmem:[#allocation2 + $0x2e0] sm:$0xff]  ;;  %v2256_v0 = vld [vmem:[#allocation2 + $0x2e8] sm:$0xff] }
 0x310   : > { %2709 = vst [vmem:[#allocation2 + $0x228] sm:$0xff] %v2613_v49  ;;  %3268 = vst [vmem:[#allocation2 + $0x218] sm:$0xff] %v3172_v54  ;;  %v3174_v4 = vadd.f32 %v2986_v23, %v2805_v41  ;;  %v2814_v49 = vld [vmem:[#allocation2 + $0x2d0] sm:$0xff]  ;;  %v2815_v41 = vld [vmem:[#allocation2 + $0x2d8] sm:$0xff] }
 0x311   : > { %3269 = vst [vmem:[#allocation2 + $0x230] sm:$0xff] %v3173_v13  ;;  %v2816_v13 = vld [vmem:[#allocation2 + $0x2f0] sm:$0xff] }
 0x312   : > { %v2429_v36 = vpop.f32.mrb[36].mxu1  ;;  %3270 = vst [vmem:[#allocation2 + $0x238] sm:$0xff] %v3174_v4 }
 0x313   : > { %v2614_v45 = vadd.f32 %v2429_v36, %v2245_v25  ;;  %v2431_v5 = vpop.f32.mrb[37].mxu1  ;;  %v2817_v36 = vld [vmem:[#allocation2 + $0x2f8] sm:$0xff] }
 0x314   : > { %v2615_v20 = vadd.f32 %v2431_v5, %v2246_v22  ;;  %v2433_v40 = vpop.f32.mrb[38].mxu1  ;;  %v2990_v6 = vpop.f32.mrb[68].mxu0  ;;  %v2257_v5 = vld [vmem:[#allocation2 + $0x300] sm:$0xff] }
 0x315   : > { %2710 = vst [vmem:[#allocation2 + $0x240] sm:$0xff] %v2614_v45  ;;  %v2616_v33 = vadd.f32 %v2433_v40, %v2247_v26  ;;  %v2435_v9 = vpop.f32.mrb[39].mxu1  ;;  %v3175_v10 = vadd.f32 %v2990_v6, %v2806_v19  ;;  %v2992_v59 = vpop.f32.mrb[69].mxu0 }
 0x316   : > { %2711 = vst [vmem:[#allocation2 + $0x248] sm:$0xff] %v2615_v20  ;;  %v2617_v44 = vadd.f32 %v2435_v9, %v2248_v7  ;;  %v3176_v43 = vadd.f32 %v2992_v59, %v2807_v8  ;;  %v2994_v52 = vpop.f32.mrb[70].mxu0  ;;  %v2258_v20 = vld [vmem:[#allocation2 + $0x308] sm:$0xff] }
 0x317   : > { %2712 = vst [vmem:[#allocation2 + $0x260] sm:$0xff] %v2616_v33  ;;  %3271 = vst [vmem:[#allocation2 + $0x250] sm:$0xff] %v3175_v10  ;;  %v3177_v55 = vadd.f32 %v2994_v52, %v2808_v57  ;;  %v2996_v15 = vpop.f32.mrb[71].mxu0  ;;  %v2259_v33 = vld [vmem:[#allocation2 + $0x320] sm:$0xff]  ;;  %v2260_v57 = vld [vmem:[#allocation2 + $0x328] sm:$0xff] }
 0x318   : > { %2713 = vst [vmem:[#allocation2 + $0x268] sm:$0xff] %v2617_v44  ;;  %3272 = vst [vmem:[#allocation2 + $0x258] sm:$0xff] %v3176_v43  ;;  %v3178_v62 = vadd.f32 %v2996_v15, %v2809_v60  ;;  %v2818_v44 = vld [vmem:[#allocation2 + $0x310] sm:$0xff]  ;;  %v2819_v60 = vld [vmem:[#allocation2 + $0x318] sm:$0xff] }
 0x319   : > { %3273 = vst [vmem:[#allocation2 + $0x270] sm:$0xff] %v3177_v55  ;;  %v2820_v55 = vld [vmem:[#allocation2 + $0x330] sm:$0xff] }
 0x31a   : > { %v2439_v35 = vpop.f32.mrb[40].mxu1  ;;  %3274 = vst [vmem:[#allocation2 + $0x278] sm:$0xff] %v3178_v62 }
 0x31b   : > { %v2618_v3 = vadd.f32 %v2439_v35, %v2249_v27  ;;  %v2441_v28 = vpop.f32.mrb[41].mxu1  ;;  %v2821_v35 = vld [vmem:[#allocation2 + $0x338] sm:$0xff] }
 0x31c   : > { %v2619_v63 = vadd.f32 %v2441_v28, %v2250_v32  ;;  %v2443_v21 = vpop.f32.mrb[42].mxu1  ;;  %v3000_v56 = vpop.f32.mrb[72].mxu0  ;;  %v2261_v28 = vld [vmem:[#allocation2 + $0x340] sm:$0xff] }
 0x31d   : > { %2714 = vst [vmem:[#allocation2 + $0x280] sm:$0xff] %v2618_v3  ;;  %v2620_v24 = vadd.f32 %v2443_v21, %v2251_v14  ;;  %v2445_v48 = vpop.f32.mrb[43].mxu1  ;;  %v3179_v17 = vadd.f32 %v3000_v56, %v2810_v30  ;;  %v3002_v12 = vpop.f32.mrb[73].mxu0 }
 0x31e   : > { %2715 = vst [vmem:[#allocation2 + $0x288] sm:$0xff] %v2619_v63  ;;  %v2621_v18 = vadd.f32 %v2445_v48, %v2252_v58  ;;  %v3180_v1 = vadd.f32 %v3002_v12, %v2811_v2  ;;  %v3004_v61 = vpop.f32.mrb[74].mxu0  ;;  %v2262_v63 = vld [vmem:[#allocation2 + $0x348] sm:$0xff] }
 0x31f   : > { %2716 = vst [vmem:[#allocation2 + $0x2a0] sm:$0xff] %v2620_v24  ;;  %3275 = vst [vmem:[#allocation2 + $0x290] sm:$0xff] %v3179_v17  ;;  %v3181_v50 = vadd.f32 %v3004_v61, %v2812_v31  ;;  %v3006_v47 = vpop.f32.mrb[75].mxu0  ;;  %v2263_v24 = vld [vmem:[#allocation2 + $0x360] sm:$0xff]  ;;  %v2264_v31 = vld [vmem:[#allocation2 + $0x368] sm:$0xff] }
 0x320   : > { %2717 = vst [vmem:[#allocation2 + $0x2a8] sm:$0xff] %v2621_v18  ;;  %3276 = vst [vmem:[#allocation2 + $0x298] sm:$0xff] %v3180_v1  ;;  %v3182_v38 = vadd.f32 %v3006_v47, %v2813_v42  ;;  %v2822_v18 = vld [vmem:[#allocation2 + $0x350] sm:$0xff]  ;;  %v2823_v42 = vld [vmem:[#allocation2 + $0x358] sm:$0xff] }
 0x321   : > { %3277 = vst [vmem:[#allocation2 + $0x2b0] sm:$0xff] %v3181_v50  ;;  %v2824_v50 = vld [vmem:[#allocation2 + $0x370] sm:$0xff] }
 0x322   : > { %v2449_v53 = vpop.f32.mrb[44].mxu1  ;;  %3278 = vst [vmem:[#allocation2 + $0x2b8] sm:$0xff] %v3182_v38 }
 0x323   : > { %v2622_v11 = vadd.f32 %v2449_v53, %v2253_v29  ;;  %v2451_v46 = vpop.f32.mrb[45].mxu1  ;;  %v2825_v53 = vld [vmem:[#allocation2 + $0x378] sm:$0xff] }
 0x324   : > { %v2623_v16 = vadd.f32 %v2451_v46, %v2254_v34  ;;  %v2453_v37 = vpop.f32.mrb[46].mxu1  ;;  %v3010_v25 = vpop.f32.mrb[76].mxu0  ;;  %v2265_v46 = vld [vmem:[#allocation2 + $0x380] sm:$0xff] }
 0x325   : > { %2718 = vst [vmem:[#allocation2 + $0x2c0] sm:$0xff] %v2622_v11  ;;  %v2624_v54 = vadd.f32 %v2453_v37, %v2255_v51  ;;  %v2455_v39 = vpop.f32.mrb[47].mxu1  ;;  %v3183_v22 = vadd.f32 %v3010_v25, %v2814_v49  ;;  %v3012_v4 = vpop.f32.mrb[77].mxu0 }
 0x326   : > { %2719 = vst [vmem:[#allocation2 + $0x2c8] sm:$0xff] %v2623_v16  ;;  %v2625_v23 = vadd.f32 %v2455_v39, %v2256_v0  ;;  %v3184_v26 = vadd.f32 %v3012_v4, %v2815_v41  ;;  %v3014_v45 = vpop.f32.mrb[78].mxu0  ;;  %v2266_v16 = vld [vmem:[#allocation2 + $0x388] sm:$0xff] }
 0x327   : > { %2720 = vst [vmem:[#allocation2 + $0x2e0] sm:$0xff] %v2624_v54  ;;  %3279 = vst [vmem:[#allocation2 + $0x2d0] sm:$0xff] %v3183_v22  ;;  %v3185_v7 = vadd.f32 %v3014_v45, %v2816_v13  ;;  %v3016_v19 = vpop.f32.mrb[79].mxu0  ;;  %v2267_v54 = vld [vmem:[#allocation2 + $0x3a0] sm:$0xff]  ;;  %v2268_v13 = vld [vmem:[#allocation2 + $0x3a8] sm:$0xff] }
 0x328   : > { %2721 = vst [vmem:[#allocation2 + $0x2e8] sm:$0xff] %v2625_v23  ;;  %3280 = vst [vmem:[#allocation2 + $0x2d8] sm:$0xff] %v3184_v26  ;;  %v3186_v40 = vadd.f32 %v3016_v19, %v2817_v36  ;;  %v2826_v23 = vld [vmem:[#allocation2 + $0x390] sm:$0xff]  ;;  %v2827_v36 = vld [vmem:[#allocation2 + $0x398] sm:$0xff] }
 0x329   : > { %3281 = vst [vmem:[#allocation2 + $0x2f0] sm:$0xff] %v3185_v7  ;;  %v2828_v7 = vld [vmem:[#allocation2 + $0x3b0] sm:$0xff] }
 0x32a   : > { %v2459_v8 = vpop.f32.mrb[48].mxu1  ;;  %3282 = vst [vmem:[#allocation2 + $0x2f8] sm:$0xff] %v3186_v40 }
 0x32b   : > { %v2626_v9 = vadd.f32 %v2459_v8, %v2257_v5  ;;  %v2461_v6 = vpop.f32.mrb[49].mxu1  ;;  %v2829_v8 = vld [vmem:[#allocation2 + $0x3b8] sm:$0xff] }
 0x32c   : > { %v2627_v10 = vadd.f32 %v2461_v6, %v2258_v20  ;;  %v2463_v59 = vpop.f32.mrb[50].mxu1  ;;  %v3020_v27 = vpop.f32.mrb[80].mxu0  ;;  %v2269_v6 = vld [vmem:[#allocation2 + $0x3c0] sm:$0xff] }
 0x32d   : > { %2722 = vst [vmem:[#allocation2 + $0x300] sm:$0xff] %v2626_v9  ;;  %v2628_v43 = vadd.f32 %v2463_v59, %v2259_v33  ;;  %v2465_v52 = vpop.f32.mrb[51].mxu1  ;;  %v3187_v32 = vadd.f32 %v3020_v27, %v2818_v44  ;;  %v3022_v62 = vpop.f32.mrb[81].mxu0 }
 0x32e   : > { %2723 = vst [vmem:[#allocation2 + $0x308] sm:$0xff] %v2627_v10  ;;  %v2629_v15 = vadd.f32 %v2465_v52, %v2260_v57  ;;  %v3188_v14 = vadd.f32 %v3022_v62, %v2819_v60  ;;  %v3024_v3 = vpop.f32.mrb[82].mxu0  ;;  %v2270_v10 = vld [vmem:[#allocation2 + $0x3c8] sm:$0xff] }
 0x32f   : > { %2724 = vst [vmem:[#allocation2 + $0x320] sm:$0xff] %v2628_v43  ;;  %3283 = vst [vmem:[#allocation2 + $0x310] sm:$0xff] %v3187_v32  ;;  %v3189_v58 = vadd.f32 %v3024_v3, %v2820_v55  ;;  %v3026_v30 = vpop.f32.mrb[83].mxu0  ;;  %v2271_v43 = vld [vmem:[#allocation2 + $0x3e0] sm:$0xff]  ;;  %v2272_v55 = vld [vmem:[#allocation2 + $0x3e8] sm:$0xff] }
 0x330   : > { %2725 = vst [vmem:[#allocation2 + $0x328] sm:$0xff] %v2629_v15  ;;  %3284 = vst [vmem:[#allocation2 + $0x318] sm:$0xff] %v3188_v14  ;;  %v3190_v21 = vadd.f32 %v3026_v30, %v2821_v35  ;;  %v2830_v15 = vld [vmem:[#allocation2 + $0x3d0] sm:$0xff]  ;;  %v2831_v35 = vld [vmem:[#allocation2 + $0x3d8] sm:$0xff] }
 0x331   : > { %3285 = vst [vmem:[#allocation2 + $0x330] sm:$0xff] %v3189_v58  ;;  %v2832_v58 = vld [vmem:[#allocation2 + $0x3f0] sm:$0xff] }
 0x332   : > { %v2469_v2 = vpop.f32.mrb[52].mxu1  ;;  %3286 = vst [vmem:[#allocation2 + $0x338] sm:$0xff] %v3190_v21 }
 0x333   : > { %v2630_v48 = vadd.f32 %v2469_v2, %v2261_v28  ;;  %v2471_v56 = vpop.f32.mrb[53].mxu1  ;;  %v2833_v2 = vld [vmem:[#allocation2 + $0x3f8] sm:$0xff] }
 0x334   : > { %v2631_v17 = vadd.f32 %v2471_v56, %v2262_v63  ;;  %v2473_v12 = vpop.f32.mrb[54].mxu1  ;;  %v3030_v29 = vpop.f32.mrb[84].mxu0  ;;  %v2273_v56 = vld [vmem:[#allocation2 + $0x400] sm:$0xff] }
 0x335   : > { %2726 = vst [vmem:[#allocation2 + $0x340] sm:$0xff] %v2630_v48  ;;  %v2632_v1 = vadd.f32 %v2473_v12, %v2263_v24  ;;  %v2475_v61 = vpop.f32.mrb[55].mxu1  ;;  %v3191_v34 = vadd.f32 %v3030_v29, %v2822_v18  ;;  %v3032_v38 = vpop.f32.mrb[85].mxu0 }
 0x336   : > { %2727 = vst [vmem:[#allocation2 + $0x348] sm:$0xff] %v2631_v17  ;;  %v2633_v47 = vadd.f32 %v2475_v61, %v2264_v31  ;;  %v3192_v51 = vadd.f32 %v3032_v38, %v2823_v42  ;;  %v3034_v11 = vpop.f32.mrb[86].mxu0  ;;  %v2274_v17 = vld [vmem:[#allocation2 + $0x408] sm:$0xff] }
 0x337   : > { %2728 = vst [vmem:[#allocation2 + $0x360] sm:$0xff] %v2632_v1  ;;  %3287 = vst [vmem:[#allocation2 + $0x350] sm:$0xff] %v3191_v34  ;;  %v3193_v0 = vadd.f32 %v3034_v11, %v2824_v50  ;;  %v3036_v49 = vpop.f32.mrb[87].mxu0  ;;  %v2275_v1 = vld [vmem:[#allocation2 + $0x420] sm:$0xff]  ;;  %v2276_v50 = vld [vmem:[#allocation2 + $0x428] sm:$0xff] }
 0x338   : > { %2729 = vst [vmem:[#allocation2 + $0x368] sm:$0xff] %v2633_v47  ;;  %3288 = vst [vmem:[#allocation2 + $0x358] sm:$0xff] %v3192_v51  ;;  %v3194_v37 = vadd.f32 %v3036_v49, %v2825_v53  ;;  %v2834_v47 = vld [vmem:[#allocation2 + $0x410] sm:$0xff]  ;;  %v2835_v53 = vld [vmem:[#allocation2 + $0x418] sm:$0xff] }
 0x339   : > { %3289 = vst [vmem:[#allocation2 + $0x370] sm:$0xff] %v3193_v0  ;;  %v2836_v0 = vld [vmem:[#allocation2 + $0x430] sm:$0xff] }
 0x33a   : > { %v2479_v41 = vpop.f32.mrb[56].mxu1  ;;  %3290 = vst [vmem:[#allocation2 + $0x378] sm:$0xff] %v3194_v37 }
 0x33b   : > { %v2634_v39 = vadd.f32 %v2479_v41, %v2265_v46  ;;  %v2481_v25 = vpop.f32.mrb[57].mxu1  ;;  %v2837_v41 = vld [vmem:[#allocation2 + $0x438] sm:$0xff] }
 0x33c   : > { %v2635_v22 = vadd.f32 %v2481_v25, %v2266_v16  ;;  %v2483_v4 = vpop.f32.mrb[58].mxu1  ;;  %v3040_v5 = vpop.f32.mrb[88].mxu0  ;;  %v2277_v25 = vld [vmem:[#allocation2 + $0x440] sm:$0xff] }
 0x33d   : > { %2730 = vst [vmem:[#allocation2 + $0x380] sm:$0xff] %v2634_v39  ;;  %v2636_v26 = vadd.f32 %v2483_v4, %v2267_v54  ;;  %v2485_v45 = vpop.f32.mrb[59].mxu1  ;;  %v3195_v20 = vadd.f32 %v3040_v5, %v2826_v23  ;;  %v3042_v40 = vpop.f32.mrb[89].mxu0 }
 0x33e   : > { %2731 = vst [vmem:[#allocation2 + $0x388] sm:$0xff] %v2635_v22  ;;  %v2637_v19 = vadd.f32 %v2485_v45, %v2268_v13  ;;  %v3196_v33 = vadd.f32 %v3042_v40, %v2827_v36  ;;  %v3044_v9 = vpop.f32.mrb[90].mxu0  ;;  %v2278_v22 = vld [vmem:[#allocation2 + $0x448] sm:$0xff] }
 0x33f   : > { %2732 = vst [vmem:[#allocation2 + $0x3a0] sm:$0xff] %v2636_v26  ;;  %3291 = vst [vmem:[#allocation2 + $0x390] sm:$0xff] %v3195_v20  ;;  %v3197_v57 = vadd.f32 %v3044_v9, %v2828_v7  ;;  %v3046_v44 = vpop.f32.mrb[91].mxu0  ;;  %v2279_v26 = vld [vmem:[#allocation2 + $0x460] sm:$0xff]  ;;  %v2280_v7 = vld [vmem:[#allocation2 + $0x468] sm:$0xff] }
 0x340   : > { %2733 = vst [vmem:[#allocation2 + $0x3a8] sm:$0xff] %v2637_v19  ;;  %3292 = vst [vmem:[#allocation2 + $0x398] sm:$0xff] %v3196_v33  ;;  %v3198_v59 = vadd.f32 %v3046_v44, %v2829_v8  ;;  %v2838_v19 = vld [vmem:[#allocation2 + $0x450] sm:$0xff]  ;;  %v2839_v8 = vld [vmem:[#allocation2 + $0x458] sm:$0xff] }
 0x341   : > { %3293 = vst [vmem:[#allocation2 + $0x3b0] sm:$0xff] %v3197_v57  ;;  %v2840_v57 = vld [vmem:[#allocation2 + $0x470] sm:$0xff] }
 0x342   : > { %v2489_v60 = vpop.f32.mrb[60].mxu1  ;;  %3294 = vst [vmem:[#allocation2 + $0x3b8] sm:$0xff] %v3198_v59 }
 0x343   : > { %v2638_v52 = vadd.f32 %v2489_v60, %v2269_v6  ;;  %v2491_v27 = vpop.f32.mrb[61].mxu1  ;;  %v2841_v60 = vld [vmem:[#allocation2 + $0x478] sm:$0xff] }
 0x344   : > { %v2639_v32 = vadd.f32 %v2491_v27, %v2270_v10  ;;  %v2493_v62 = vpop.f32.mrb[62].mxu1  ;;  %v3050_v28 = vpop.f32.mrb[92].mxu0  ;;  %v2281_v27 = vld [vmem:[#allocation2 + $0x480] sm:$0xff] }
 0x345   : > { %2734 = vst [vmem:[#allocation2 + $0x3c0] sm:$0xff] %v2638_v52  ;;  %v2640_v14 = vadd.f32 %v2493_v62, %v2271_v43  ;;  %v2495_v3 = vpop.f32.mrb[63].mxu1  ;;  %v3199_v63 = vadd.f32 %v3050_v28, %v2830_v15  ;;  %v3052_v21 = vpop.f32.mrb[93].mxu0 }
 0x346   : > { %2735 = vst [vmem:[#allocation2 + $0x3c8] sm:$0xff] %v2639_v32  ;;  %v2641_v30 = vadd.f32 %v2495_v3, %v2272_v55  ;;  %v3200_v24 = vadd.f32 %v3052_v21, %v2831_v35  ;;  %v3054_v48 = vpop.f32.mrb[94].mxu0  ;;  %v2282_v32 = vld [vmem:[#allocation2 + $0x488] sm:$0xff] }
 0x347   : > { %2736 = vst [vmem:[#allocation2 + $0x3e0] sm:$0xff] %v2640_v14  ;;  %3295 = vst [vmem:[#allocation2 + $0x3d0] sm:$0xff] %v3199_v63  ;;  %v3201_v31 = vadd.f32 %v3054_v48, %v2832_v58  ;;  %v3056_v18 = vpop.f32.mrb[95].mxu0  ;;  %v2283_v14 = vld [vmem:[#allocation2 + $0x4a0] sm:$0xff]  ;;  %v2284_v58 = vld [vmem:[#allocation2 + $0x4a8] sm:$0xff] }
 0x348   : > { %2737 = vst [vmem:[#allocation2 + $0x3e8] sm:$0xff] %v2641_v30  ;;  %3296 = vst [vmem:[#allocation2 + $0x3d8] sm:$0xff] %v3200_v24  ;;  %v3202_v12 = vadd.f32 %v3056_v18, %v2833_v2  ;;  %v2842_v30 = vld [vmem:[#allocation2 + $0x490] sm:$0xff]  ;;  %v2843_v2 = vld [vmem:[#allocation2 + $0x498] sm:$0xff] }
 0x349   : > { %3297 = vst [vmem:[#allocation2 + $0x3f0] sm:$0xff] %v3201_v31  ;;  %v2844_v31 = vld [vmem:[#allocation2 + $0x4b0] sm:$0xff] }
 0x34a   : > { %v2499_v42 = vpop.f32.mrb[64].mxu1  ;;  %3298 = vst [vmem:[#allocation2 + $0x3f8] sm:$0xff] %v3202_v12 }
 0x34b   : > { %v2642_v61 = vadd.f32 %v2499_v42, %v2273_v56  ;;  %v2501_v29 = vpop.f32.mrb[65].mxu1  ;;  %v2845_v42 = vld [vmem:[#allocation2 + $0x4b8] sm:$0xff] }
 0x34c   : > { %v2643_v34 = vadd.f32 %v2501_v29, %v2274_v17  ;;  %v2503_v38 = vpop.f32.mrb[66].mxu1  ;;  %v3060_v46 = vpop.f32.mrb[96].mxu0  ;;  %v2285_v29 = vld [vmem:[#allocation2 + $0x4c0] sm:$0xff] }
 0x34d   : > { %2738 = vst [vmem:[#allocation2 + $0x400] sm:$0xff] %v2642_v61  ;;  %v2644_v51 = vadd.f32 %v2503_v38, %v2275_v1  ;;  %v2505_v11 = vpop.f32.mrb[67].mxu1  ;;  %v3203_v16 = vadd.f32 %v3060_v46, %v2834_v47  ;;  %v3062_v37 = vpop.f32.mrb[97].mxu0 }
 0x34e   : > { %2739 = vst [vmem:[#allocation2 + $0x408] sm:$0xff] %v2643_v34  ;;  %v2645_v49 = vadd.f32 %v2505_v11, %v2276_v50  ;;  %v3204_v54 = vadd.f32 %v3062_v37, %v2835_v53  ;;  %v3064_v39 = vpop.f32.mrb[98].mxu0  ;;  %v2286_v34 = vld [vmem:[#allocation2 + $0x4c8] sm:$0xff] }
 0x34f   : > { %2740 = vst [vmem:[#allocation2 + $0x420] sm:$0xff] %v2644_v51  ;;  %3299 = vst [vmem:[#allocation2 + $0x410] sm:$0xff] %v3203_v16  ;;  %v3205_v13 = vadd.f32 %v3064_v39, %v2836_v0  ;;  %v3066_v23 = vpop.f32.mrb[99].mxu0  ;;  %v2287_v51 = vld [vmem:[#allocation2 + $0x4e0] sm:$0xff]  ;;  %v2288_v0 = vld [vmem:[#allocation2 + $0x4e8] sm:$0xff] }
 0x350   : > { %2741 = vst [vmem:[#allocation2 + $0x428] sm:$0xff] %v2645_v49  ;;  %3300 = vst [vmem:[#allocation2 + $0x418] sm:$0xff] %v3204_v54  ;;  %v3206_v4 = vadd.f32 %v3066_v23, %v2837_v41  ;;  %v2846_v49 = vld [vmem:[#allocation2 + $0x4d0] sm:$0xff]  ;;  %v2847_v41 = vld [vmem:[#allocation2 + $0x4d8] sm:$0xff] }
 0x351   : > { %3301 = vst [vmem:[#allocation2 + $0x430] sm:$0xff] %v3205_v13  ;;  %v2848_v13 = vld [vmem:[#allocation2 + $0x4f0] sm:$0xff] }
 0x352   : > { %v2509_v36 = vpop.f32.mrb[68].mxu1  ;;  %3302 = vst [vmem:[#allocation2 + $0x438] sm:$0xff] %v3206_v4 }
 0x353   : > { %v2646_v45 = vadd.f32 %v2509_v36, %v2277_v25  ;;  %v2511_v5 = vpop.f32.mrb[69].mxu1  ;;  %v2849_v36 = vld [vmem:[#allocation2 + $0x4f8] sm:$0xff] }
 0x354   : > { %v2647_v20 = vadd.f32 %v2511_v5, %v2278_v22  ;;  %v2513_v40 = vpop.f32.mrb[70].mxu1  ;;  %v3070_v6 = vpop.f32.mrb[100].mxu0  ;;  %v2289_v5 = vld [vmem:[#allocation2 + $0x500] sm:$0xff] }
 0x355   : > { %2742 = vst [vmem:[#allocation2 + $0x440] sm:$0xff] %v2646_v45  ;;  %v2648_v33 = vadd.f32 %v2513_v40, %v2279_v26  ;;  %v2515_v9 = vpop.f32.mrb[71].mxu1  ;;  %v3207_v10 = vadd.f32 %v3070_v6, %v2838_v19  ;;  %v3072_v59 = vpop.f32.mrb[101].mxu0 }
 0x356   : > { %2743 = vst [vmem:[#allocation2 + $0x448] sm:$0xff] %v2647_v20  ;;  %v2649_v44 = vadd.f32 %v2515_v9, %v2280_v7  ;;  %v3208_v43 = vadd.f32 %v3072_v59, %v2839_v8  ;;  %v3074_v52 = vpop.f32.mrb[102].mxu0  ;;  %v2290_v20 = vld [vmem:[#allocation2 + $0x508] sm:$0xff] }
 0x357   : > { %2744 = vst [vmem:[#allocation2 + $0x460] sm:$0xff] %v2648_v33  ;;  %3303 = vst [vmem:[#allocation2 + $0x450] sm:$0xff] %v3207_v10  ;;  %v3209_v55 = vadd.f32 %v3074_v52, %v2840_v57  ;;  %v3076_v15 = vpop.f32.mrb[103].mxu0  ;;  %v2291_v33 = vld [vmem:[#allocation2 + $0x520] sm:$0xff]  ;;  %v2292_v57 = vld [vmem:[#allocation2 + $0x528] sm:$0xff] }
 0x358   : > { %2745 = vst [vmem:[#allocation2 + $0x468] sm:$0xff] %v2649_v44  ;;  %3304 = vst [vmem:[#allocation2 + $0x458] sm:$0xff] %v3208_v43  ;;  %v3210_v62 = vadd.f32 %v3076_v15, %v2841_v60  ;;  %v2850_v44 = vld [vmem:[#allocation2 + $0x510] sm:$0xff]  ;;  %v2851_v60 = vld [vmem:[#allocation2 + $0x518] sm:$0xff] }
 0x359   : > { %3305 = vst [vmem:[#allocation2 + $0x470] sm:$0xff] %v3209_v55  ;;  %v2852_v55 = vld [vmem:[#allocation2 + $0x530] sm:$0xff] }
 0x35a   : > { %v2519_v35 = vpop.f32.mrb[72].mxu1  ;;  %3306 = vst [vmem:[#allocation2 + $0x478] sm:$0xff] %v3210_v62 }
 0x35b   : > { %v2650_v3 = vadd.f32 %v2519_v35, %v2281_v27  ;;  %v2521_v28 = vpop.f32.mrb[73].mxu1  ;;  %v2853_v35 = vld [vmem:[#allocation2 + $0x538] sm:$0xff] }
 0x35c   : > { %v2651_v63 = vadd.f32 %v2521_v28, %v2282_v32  ;;  %v2523_v21 = vpop.f32.mrb[74].mxu1  ;;  %v3080_v56 = vpop.f32.mrb[104].mxu0  ;;  %v2293_v28 = vld [vmem:[#allocation2 + $0x540] sm:$0xff] }
 0x35d   : > { %2746 = vst [vmem:[#allocation2 + $0x480] sm:$0xff] %v2650_v3  ;;  %v2652_v24 = vadd.f32 %v2523_v21, %v2283_v14  ;;  %v2525_v48 = vpop.f32.mrb[75].mxu1  ;;  %v3211_v17 = vadd.f32 %v3080_v56, %v2842_v30  ;;  %v3082_v12 = vpop.f32.mrb[105].mxu0 }
 0x35e   : > { %2747 = vst [vmem:[#allocation2 + $0x488] sm:$0xff] %v2651_v63  ;;  %v2653_v18 = vadd.f32 %v2525_v48, %v2284_v58  ;;  %v3212_v1 = vadd.f32 %v3082_v12, %v2843_v2  ;;  %v3084_v61 = vpop.f32.mrb[106].mxu0  ;;  %v2294_v63 = vld [vmem:[#allocation2 + $0x548] sm:$0xff] }
 0x35f   : > { %2748 = vst [vmem:[#allocation2 + $0x4a0] sm:$0xff] %v2652_v24  ;;  %3307 = vst [vmem:[#allocation2 + $0x490] sm:$0xff] %v3211_v17  ;;  %v3213_v50 = vadd.f32 %v3084_v61, %v2844_v31  ;;  %v3086_v47 = vpop.f32.mrb[107].mxu0  ;;  %v2295_v24 = vld [vmem:[#allocation2 + $0x560] sm:$0xff]  ;;  %v2296_v31 = vld [vmem:[#allocation2 + $0x568] sm:$0xff] }
 0x360   : > { %2749 = vst [vmem:[#allocation2 + $0x4a8] sm:$0xff] %v2653_v18  ;;  %3308 = vst [vmem:[#allocation2 + $0x498] sm:$0xff] %v3212_v1  ;;  %v3214_v38 = vadd.f32 %v3086_v47, %v2845_v42  ;;  %v2854_v18 = vld [vmem:[#allocation2 + $0x550] sm:$0xff]  ;;  %v2855_v42 = vld [vmem:[#allocation2 + $0x558] sm:$0xff] }
 0x361   : > { %3309 = vst [vmem:[#allocation2 + $0x4b0] sm:$0xff] %v3213_v50  ;;  %v2856_v50 = vld [vmem:[#allocation2 + $0x570] sm:$0xff] }
 0x362   : > { %v2529_v53 = vpop.f32.mrb[76].mxu1  ;;  %3310 = vst [vmem:[#allocation2 + $0x4b8] sm:$0xff] %v3214_v38 }
 0x363   : > { %v2654_v11 = vadd.f32 %v2529_v53, %v2285_v29  ;;  %v2531_v46 = vpop.f32.mrb[77].mxu1  ;;  %v2857_v53 = vld [vmem:[#allocation2 + $0x578] sm:$0xff] }
 0x364   : > { %v2655_v16 = vadd.f32 %v2531_v46, %v2286_v34  ;;  %v2533_v37 = vpop.f32.mrb[78].mxu1  ;;  %v3090_v25 = vpop.f32.mrb[108].mxu0  ;;  %v2297_v46 = vld [vmem:[#allocation2 + $0x580] sm:$0xff] }
 0x365   : > { %2750 = vst [vmem:[#allocation2 + $0x4c0] sm:$0xff] %v2654_v11  ;;  %v2656_v54 = vadd.f32 %v2533_v37, %v2287_v51  ;;  %v2535_v39 = vpop.f32.mrb[79].mxu1  ;;  %v3215_v22 = vadd.f32 %v3090_v25, %v2846_v49  ;;  %v3092_v4 = vpop.f32.mrb[109].mxu0 }
 0x366   : > { %2751 = vst [vmem:[#allocation2 + $0x4c8] sm:$0xff] %v2655_v16  ;;  %v2657_v23 = vadd.f32 %v2535_v39, %v2288_v0  ;;  %v3216_v26 = vadd.f32 %v3092_v4, %v2847_v41  ;;  %v3094_v45 = vpop.f32.mrb[110].mxu0  ;;  %v2298_v16 = vld [vmem:[#allocation2 + $0x588] sm:$0xff] }
 0x367   : > { %2752 = vst [vmem:[#allocation2 + $0x4e0] sm:$0xff] %v2656_v54  ;;  %3311 = vst [vmem:[#allocation2 + $0x4d0] sm:$0xff] %v3215_v22  ;;  %v3217_v7 = vadd.f32 %v3094_v45, %v2848_v13  ;;  %v3096_v19 = vpop.f32.mrb[111].mxu0  ;;  %v2299_v54 = vld [vmem:[#allocation2 + $0x5a0] sm:$0xff]  ;;  %v2300_v13 = vld [vmem:[#allocation2 + $0x5a8] sm:$0xff] }
 0x368   : > { %2753 = vst [vmem:[#allocation2 + $0x4e8] sm:$0xff] %v2657_v23  ;;  %3312 = vst [vmem:[#allocation2 + $0x4d8] sm:$0xff] %v3216_v26  ;;  %v3218_v40 = vadd.f32 %v3096_v19, %v2849_v36  ;;  %v2301_v45 = vld [vmem:[#allocation2 + $0x5c0] sm:$0xff] }
 0x369   : > { %3313 = vst [vmem:[#allocation2 + $0x4f0] sm:$0xff] %v3217_v7  ;;  %v2303_v19 = vld [vmem:[#allocation2 + $0x5e0] sm:$0xff] }
 0x36a   : > { %v2539_v8 = vpop.f32.mrb[80].mxu1  ;;  %3314 = vst [vmem:[#allocation2 + $0x4f8] sm:$0xff] %v3218_v40 }
 0x36b   : > { %v2658_v9 = vadd.f32 %v2539_v8, %v2289_v5  ;;  %v2541_v6 = vpop.f32.mrb[81].mxu1  ;;  %v2302_v5 = vld [vmem:[#allocation2 + $0x5c8] sm:$0xff] }
 0x36c   : > { %v2659_v10 = vadd.f32 %v2541_v6, %v2290_v20  ;;  %v2543_v59 = vpop.f32.mrb[82].mxu1  ;;  %v3100_v27 = vpop.f32.mrb[112].mxu0  ;;  %v2304_v8 = vld [vmem:[#allocation2 + $0x5e8] sm:$0xff] }
 0x36d   : > { %2754 = vst [vmem:[#allocation2 + $0x500] sm:$0xff] %v2658_v9  ;;  %v2660_v43 = vadd.f32 %v2543_v59, %v2291_v33  ;;  %v2545_v52 = vpop.f32.mrb[83].mxu1  ;;  %v3219_v32 = vadd.f32 %v3100_v27, %v2850_v44  ;;  %v3102_v62 = vpop.f32.mrb[113].mxu0  ;;  %v2859_v59 = vld [vmem:[#allocation2 + $0x598] sm:$0xff] }
 0x36e   : > { %2755 = vst [vmem:[#allocation2 + $0x508] sm:$0xff] %v2659_v10  ;;  %v2661_v15 = vadd.f32 %v2545_v52, %v2292_v57  ;;  %v3220_v14 = vadd.f32 %v3102_v62, %v2851_v60  ;;  %v3104_v3 = vpop.f32.mrb[114].mxu0  ;;  %v2858_v10 = vld [vmem:[#allocation2 + $0x590] sm:$0xff] }
 0x36f   : > { %2756 = vst [vmem:[#allocation2 + $0x520] sm:$0xff] %v2660_v43  ;;  %3315 = vst [vmem:[#allocation2 + $0x510] sm:$0xff] %v3219_v32  ;;  %v3221_v58 = vadd.f32 %v3104_v3, %v2852_v55  ;;  %v3106_v30 = vpop.f32.mrb[115].mxu0  ;;  %v2860_v43 = vld [vmem:[#allocation2 + $0x5b0] sm:$0xff]  ;;  %v2861_v55 = vld [vmem:[#allocation2 + $0x5b8] sm:$0xff] }
 0x370   : > { %2757 = vst [vmem:[#allocation2 + $0x528] sm:$0xff] %v2661_v15  ;;  %3316 = vst [vmem:[#allocation2 + $0x518] sm:$0xff] %v3220_v14  ;;  %v3222_v21 = vadd.f32 %v3106_v30, %v2853_v35  ;;  %v2862_v3 = vld [vmem:[#allocation2 + $0x5d0] sm:$0xff] }
 0x371   : > { %3317 = vst [vmem:[#allocation2 + $0x530] sm:$0xff] %v3221_v58  ;;  %v2864_v30 = vld [vmem:[#allocation2 + $0x5f0] sm:$0xff] }
 0x372   : > { %v2549_v2 = vpop.f32.mrb[84].mxu1  ;;  %3318 = vst [vmem:[#allocation2 + $0x538] sm:$0xff] %v3222_v21 }
 0x373   : > { %v2662_v48 = vadd.f32 %v2549_v2, %v2293_v28  ;;  %v2551_v56 = vpop.f32.mrb[85].mxu1  ;;  %v2863_v28 = vld [vmem:[#allocation2 + $0x5d8] sm:$0xff] }
 0x374   : > { %v2663_v17 = vadd.f32 %v2551_v56, %v2294_v63  ;;  %v2553_v12 = vpop.f32.mrb[86].mxu1  ;;  %v3110_v29 = vpop.f32.mrb[116].mxu0  ;;  %v2865_v2 = vld [vmem:[#allocation2 + $0x5f8] sm:$0xff] }
 0x375   : > { %2758 = vst [vmem:[#allocation2 + $0x540] sm:$0xff] %v2662_v48  ;;  %v2664_v1 = vadd.f32 %v2553_v12, %v2295_v24  ;;  %v2555_v61 = vpop.f32.mrb[87].mxu1  ;;  %v3223_v34 = vadd.f32 %v3110_v29, %v2854_v18  ;;  %v3112_v38 = vpop.f32.mrb[117].mxu0  ;;  %v3338_v12 = vld [vmem:[#allocation2 + $0x18] sm:$0xff] (!%p4622_p6) }
 0x376   : > { %2759 = vst [vmem:[#allocation2 + $0x548] sm:$0xff] %v2663_v17  ;;  %v2665_v47 = vadd.f32 %v2555_v61, %v2296_v31  ;;  %v3224_v51 = vadd.f32 %v3112_v38, %v2855_v42  ;;  %v3114_v11 = vpop.f32.mrb[118].mxu0  ;;  %v3336_v17 = vld [vmem:[#allocation2 + $0x8] sm:$0xff] (!%p4622_p6)  ;;  %v3342_v29 = vld [vmem:[#allocation2 + $0x38] sm:$0xff] (!%p4622_p6) }
 0x377   : > { %2760 = vst [vmem:[#allocation2 + $0x560] sm:$0xff] %v2664_v1  ;;  %3319 = vst [vmem:[#allocation2 + $0x550] sm:$0xff] %v3223_v34  ;;  %v3225_v0 = vadd.f32 %v3114_v11, %v2856_v50  ;;  %v3116_v49 = vpop.f32.mrb[119].mxu0  ;;  %v3527_v42 = vadd.f32 (!%p4622_p6), 1e-06, %v3336_v17  ;;  %v3340_v61 = vld [vmem:[#allocation2 + $0x28] sm:$0xff] (!%p4622_p6) }
 0x378   : > { %2761 = vst [vmem:[#allocation2 + $0x568] sm:$0xff] %v2665_v47  ;;  %3320 = vst [vmem:[#allocation2 + $0x558] sm:$0xff] %v3224_v51  ;;  %v3226_v37 = vadd.f32 %v3116_v49, %v2857_v53  ;;  %v3671_v1 = vadd.f32 (!%p4622_p6), 1e-06, %v3338_v12  ;;  %v3528_v50 = vadd.f32 (!%p4622_p6), 1e-06, %v3340_v61 }
 0x379   : > { %3321 = vst [vmem:[#allocation2 + $0x570] sm:$0xff] %v3225_v0  ;;  %4900 = vrcp.f32 (!%p4622_p6), %v3527_v42  ;;  %v3672_v47 = vadd.f32 (!%p4622_p6), 1e-06, %v3342_v29  ;;  %v3344_v34 = vld [vmem:[#allocation2 + $0x48] sm:$0xff] (!%p4622_p6)  ;;  %v3346_v38 = vld [vmem:[#allocation2 + $0x58] sm:$0xff] (!%p4622_p6)  ;;  %v3351_v61 = vld [vmem:[#allocation2 + $0x80] sm:$0xff] (!%p4622_p6) }
 0x37a   : > { %v2559_v41 = vpop.f32.mrb[88].mxu1  ;;  %3322 = vst [vmem:[#allocation2 + $0x578] sm:$0xff] %v3226_v37  ;;  %4902 = vrcp.f32 (!%p4622_p6), %v3671_v1  ;;  %v3529_v53 = vadd.f32 (!%p4622_p6), 1e-06, %v3344_v34  ;;  %v3673_v51 = vadd.f32 (!%p4622_p6), 1e-06, %v3346_v38 }
 0x37b   : > { %v2666_v39 = vadd.f32 %v2559_v41, %v2297_v46  ;;  %v2561_v25 = vpop.f32.mrb[89].mxu1  ;;  %4904 = vrcp.f32 (!%p4622_p6), %v3528_v50  ;;  %v3348_v11 = vld [vmem:[#allocation2 + $0x68] sm:$0xff] (!%p4622_p6)  ;;  %v3350_v46 = vld [vmem:[#allocation2 + $0x78] sm:$0xff] (!%p4622_p6) }
 0x37c   : > { %v2667_v23 = vadd.f32 %v2561_v25, %v2298_v16  ;;  %v2563_v22 = vpop.f32.mrb[90].mxu1  ;;  %4906 = vrcp.f32 (!%p4622_p6), %v3672_v47  ;;  %v3530_v0 = vadd.f32 (!%p4622_p6), 1e-06, %v3348_v11  ;;  %v3674_v49 = vadd.f32 (!%p4622_p6), 1e-06, %v3350_v46  ;;  %v3352_v16 = vld [vmem:[#allocation2 + $0x88] sm:$0xff] (!%p4622_p6) }
 0x37d   : > { %2762 = vst [vmem:[#allocation2 + $0x580] sm:$0xff] %v2666_v39  ;;  %v2668_v4 = vadd.f32 %v2563_v22, %v2299_v54  ;;  %v2565_v36 = vpop.f32.mrb[91].mxu1  ;;  %4908 = vrcp.f32 (!%p4622_p6), %v3529_v53  ;;  %v3354_v37 = vld [vmem:[#allocation2 + $0x98] sm:$0xff] (!%p4622_p6)  ;;  %v3531_v41 = vadd.f32 (!%p4622_p6), 1e-06, %v3352_v16  ;;  %v3335_v54 = vld [vmem:[#allocation2] sm:$0xff] (!%p4622_p6) }
 0x37e   : > { %2763 = vst [vmem:[#allocation2 + $0x588] sm:$0xff] %v2667_v23  ;;  %v2669_v26 = vadd.f32 %v2565_v36, %v2300_v13  ;;  %4910 = vrcp.f32 (!%p4622_p6), %v3673_v51  ;;  %v3675_v39 = vadd.f32 (!%p4622_p6), 1e-06, %v3354_v37  ;;  %v3356_v25 = vld [vmem:[#allocation2 + $0xa8] sm:$0xff] (!%p4622_p6)  ;;  %v3337_v13 = vld [vmem:[#allocation2 + $0x10] sm:$0xff] (!%p4622_p6)  ;;  %v3358_v23 = vld [vmem:[#allocation2 + $0xb8] sm:$0xff] (!%p4622_p6) }
 0x37f   : > { %2764 = vst [vmem:[#allocation2 + $0x5a0] sm:$0xff] %v2668_v4  ;;  %4912 = vrcp.f32 (!%p4622_p6), %v3530_v0  ;;  %v3532_v22 = vadd.f32 (!%p4622_p6), 1e-06, %v3356_v25  ;;  %v3815_v36 = vld [vmem:[%s7480_s5] sm:$0xff] (!%p4622_p6)  ;;  %v3818_v1 = vld [vmem:[%s7480_s5 + $0x18] sm:$0xff] (!%p4622_p6)  ;;  %v3353_v51 = vld [vmem:[#allocation2 + $0x90] sm:$0xff] (!%p4622_p6) }
 0x380   : > { %2765 = vst [vmem:[#allocation2 + $0x5a8] sm:$0xff] %v2669_v26  ;;  %4914 = vrcp.f32 (!%p4622_p6), %v3674_v49  ;;  %v3676_v26 = vadd.f32 (!%p4622_p6), 1e-06, %v3358_v23  ;;  %v3374_v29 = vld [vmem:[#allocation2 + $0x138] sm:$0xff] (!%p4622_p6)  ;;  %v3376_v11 = vld [vmem:[#allocation2 + $0x148] sm:$0xff] (!%p4622_p6)  ;;  %v3819_v16 = vld [vmem:[%s7480_s5 + $0x20] sm:$0xff] (!%p4622_p6) }
 0x381   : > { %4916 = vrcp.f32 (!%p4622_p6), %v3531_v41  ;;  %v3680_v37 = vadd.f32 (!%p4622_p6), 1e-06, %v3374_v29  ;;  %v4074_v29 = vld [vmem:[%s7481_s6 + $0x18] sm:$0xff] (!%p4622_p6) }
 0x382   : > { %v2569_v7 = vpop.f32.mrb[92].mxu1  ;;  %4918 = vrcp.f32 (!%p4622_p6), %v3675_v39 }
 0x383   : > { %v2670_v20 = vadd.f32 %v2569_v7, %v2301_v45  ;;  %v2571_v40 = vpop.f32.mrb[93].mxu1  ;;  %v4901_v4 = vpop.eup (!%p4622_p6), %4900  ;;  %v3360_v45 = vld [vmem:[#allocation2 + $0xc8] sm:$0xff] (!%p4622_p6)  ;;  %4920 = vrcp.f32 (!%p4622_p6), %v3532_v22  ;;  %v3355_v22 = vld [vmem:[#allocation2 + $0xa0] sm:$0xff] (!%p4622_p6) }
 0x384   : > { %v2671_v33 = vadd.f32 %v2571_v40, %v2302_v5  ;;  %v2573_v9 = vpop.f32.mrb[94].mxu1  ;;  %v4903_v5 = vpop.eup (!%p4622_p6), %4902  ;;  %v3576_v7 = vmul.f32 (!%p4622_p6), %v4901_v4, %v3335_v54  ;;  %v3533_v40 = vadd.f32 (!%p4622_p6), 1e-06, %v3360_v45  ;;  %4922 = vrcp.f32 (!%p4622_p6), %v3676_v26  ;;  %v4071_v54 = vld [vmem:[%s7481_s6] sm:$0xff] (!%p4622_p6)  ;;  %v3357_v4 = vld [vmem:[#allocation2 + $0xb0] sm:$0xff] (!%p4622_p6) }
 0x385   : > { %2766 = vst [vmem:[#allocation2 + $0x5c0] sm:$0xff] %v2670_v20  ;;  %v2672_v6 = vadd.f32 %v2573_v9, %v2303_v19  ;;  %v2575_v57 = vpop.f32.mrb[95].mxu1  ;;  %v3339_v19 = vld [vmem:[#allocation2 + $0x20] sm:$0xff] (!%p4622_p6)  ;;  %v3362_v20 = vld [vmem:[#allocation2 + $0xd8] sm:$0xff] (!%p4622_p6) }
 0x386   : > { %2767 = vst [vmem:[#allocation2 + $0x5c8] sm:$0xff] %v2671_v33  ;;  %v2673_v44 = vadd.f32 %v2575_v57, %v2304_v8  ;;  %v3720_v8 = vmul.f32 (!%p4622_p6), %v4903_v5, %v3337_v13  ;;  %v3341_v33 = vld [vmem:[#allocation2 + $0x30] sm:$0xff] (!%p4622_p6)  ;;  %v3677_v9 = vadd.f32 (!%p4622_p6), 1e-06, %v3362_v20  ;;  %v4905_v57 = vpop.eup (!%p4622_p6), %4904  ;;  %4924 = vrcp.f32 (!%p4622_p6), %v3533_v40  ;;  %v3820_v5 = vld [vmem:[%s7480_s5 + $0x28] sm:$0xff] (!%p4622_p6) }
 0x387   : > { %2768 = vst [vmem:[#allocation2 + $0x5e0] sm:$0xff] %v2672_v6  ;;  %v3364_v6 = vld [vmem:[#allocation2 + $0xe8] sm:$0xff] (!%p4622_p6) }
 0x388   : > { %2769 = vst [vmem:[#allocation2 + $0x5e8] sm:$0xff] %v2673_v44  ;;  %v3863_v44 = vadd.f32 (!%p4622_p6), %v3815_v36, %v3576_v7  ;;  %4926 = vrcp.f32 (!%p4622_p6), %v3677_v9  ;;  %v3537_v7 = vadd.f32 (!%p4622_p6), 1e-06, %v3376_v11  ;;  %v3359_v9 = vld [vmem:[#allocation2 + $0xc0] sm:$0xff] (!%p4622_p6) }
 0x38a   : > { %v3120_v60 = vpop.f32.mrb[96].mxu1 }
 0x38b   : > { %v3227_v52 = vadd.f32 %v3120_v60, %v2858_v10  ;;  %v3122_v27 = vpop.f32.mrb[97].mxu1  ;;  %v3816_v10 = vld [vmem:[%s7480_s5 + $0x8] sm:$0xff] (!%p4622_p6)  ;;  %v3366_v60 = vld [vmem:[#allocation2 + $0xf8] sm:$0xff] (!%p4622_p6) }
 0x38c   : > { %v3228_v15 = vadd.f32 %v3122_v27, %v2859_v59  ;;  %v3124_v32 = vpop.f32.mrb[98].mxu1  ;;  %v3343_v59 = vld [vmem:[#allocation2 + $0x40] sm:$0xff] (!%p4622_p6) }
 0x38d   : > { %3323 = vst [vmem:[#allocation2 + $0x590] sm:$0xff] %v3227_v52  ;;  %v3229_v62 = vadd.f32 %v3124_v32, %v2860_v43  ;;  %v3126_v35 = vpop.f32.mrb[99].mxu1  ;;  %v3534_v43 = vadd.f32 (!%p4622_p6), 1e-06, %v3364_v6  ;;  %v4907_v52 = vpop.eup (!%p4622_p6), %4906  ;;  %v6888_v27 = vld [vmem:[%s7483_s8 + $0x3] ss:$0 sm:$0xff] (!%p4622_p6) }
 0x38e   : > { %3324 = vst [vmem:[#allocation2 + $0x598] sm:$0xff] %v3228_v15  ;;  %v3230_v14 = vadd.f32 %v3126_v35, %v2861_v55  ;;  %v3578_v55 = vmul.f32 (!%p4622_p6), %v4905_v57, %v3339_v19  ;;  %v3345_v15 = vld [vmem:[#allocation2 + $0x50] sm:$0xff] (!%p4622_p6)  ;;  %v3678_v32 = vadd.f32 (!%p4622_p6), 1e-06, %v3366_v60  ;;  %v4909_v35 = vpop.eup (!%p4622_p6), %4908  ;;  %v3378_v57 = vld [vmem:[#allocation2 + $0x158] sm:$0xff] (!%p4622_p6) }
 0x38f   : > { %3325 = vst [vmem:[#allocation2 + $0x5b0] sm:$0xff] %v3229_v62  ;;  %v3368_v62 = vld [vmem:[#allocation2 + $0x108] sm:$0xff] (!%p4622_p6)  ;;  %4928 = vrcp.f32 (!%p4622_p6), %v3534_v43  ;;  %v3361_v6 = vld [vmem:[#allocation2 + $0xd0] sm:$0xff] (!%p4622_p6) }
 0x390   : > { %3326 = vst [vmem:[#allocation2 + $0x5b8] sm:$0xff] %v3230_v14  ;;  %v3911_v14 = vadd.f32 (!%p4622_p6), %v3863_v44, %v3720_v8  ;;  %4930 = vrcp.f32 (!%p4622_p6), %v3678_v32 }
 0x392   : > { %v3130_v58 = vpop.f32.mrb[100].mxu1  ;;  %3334 = sbr.rel (%p4622_p6) target bundleno = 1067 (0x42b), region = 64  ;;  %v3967_v12 = vmul.f32 (!%p4622_p6), %v6888_v27, %v3911_v14  ;;  %v3363_v14 = vld [vmem:[#allocation2 + $0xe0] sm:$0xff] (!%p4622_p6) }
 0x393   : > { %v3231_v63 = vadd.f32 %v3130_v58, %v2862_v3  ;;  %v3132_v21 = vpop.f32.mrb[101].mxu1  ;;  %v3722_v3 = vmul.f32 (!%p4622_p6), %v4907_v52, %v3341_v33  ;;  %v3347_v58 = vld [vmem:[#allocation2 + $0x60] sm:$0xff] (!%p4622_p6) }
 0x394   : > { %v3232_v24 = vadd.f32 %v3132_v21, %v2863_v28  ;;  %v3134_v48 = vpop.f32.mrb[102].mxu1  ;;  %v3817_v28 = vld [vmem:[%s7480_s5 + $0x10] sm:$0xff] (!%p4622_p6)  ;;  %v4911_v21 = vpop.eup (!%p4622_p6), %4910 }
 0x395   : > { %3327 = vst [vmem:[#allocation2 + $0x5d0] sm:$0xff] %v3231_v63  ;;  %v3233_v56 = vadd.f32 %v3134_v48, %v2864_v30  ;;  %v3136_v31 = vpop.f32.mrb[103].mxu1  ;;  %v3370_v30 = vld [vmem:[#allocation2 + $0x118] sm:$0xff] (!%p4622_p6)  ;;  %v3535_v63 = vadd.f32 (!%p4622_p6), 1e-06, %v3368_v62  ;;  %v3580_v48 = vmul.f32 (!%p4622_p6), %v4909_v35, %v3343_v59  ;;  %v4913_v17 = vpop.eup (!%p4622_p6), %4912  ;;  %v3724_v42 = vmul.f32 (!%p4622_p6), %v4911_v21, %v3345_v15  ;;  %v4072_v59 = vld [vmem:[%s7481_s6 + $0x8] sm:$0xff] (!%p4622_p6) }
 0x396   : > { %3328 = vst [vmem:[#allocation2 + $0x5d8] sm:$0xff] %v3232_v24  ;;  %v3234_v18 = vadd.f32 %v3136_v31, %v2865_v2  ;;  %v6896_v2 = vld [vmem:[%s7483_s8 + $0x4] ss:$0 sm:$0xff] (!%p4622_p6)  ;;  %v3864_v24 = vadd.f32 (!%p4622_p6), %v3816_v10, %v3578_v55  ;;  %v3679_v31 = vadd.f32 (!%p4622_p6), 1e-06, %v3370_v30  ;;  %v4915_v47 = vpop.eup (!%p4622_p6), %4914  ;;  %v3582_v53 = vmul.f32 (!%p4622_p6), %v4913_v17, %v3347_v58  ;;  %v3821_v35 = vld [vmem:[%s7480_s5 + $0x30] sm:$0xff] (!%p4622_p6) }
 0x397   : > { %3329 = vst [vmem:[#allocation2 + $0x5f0] sm:$0xff] %v3233_v56  ;;  %v3349_v56 = vld [vmem:[#allocation2 + $0x70] sm:$0xff] (!%p4622_p6)  ;;  %4932 = vrcp.f32 (!%p4622_p6), %v3535_v63  ;;  %v3865_v38 = vadd.f32 (!%p4622_p6), %v3817_v28, %v3580_v48  ;;  %v4917_v46 = vpop.eup (!%p4622_p6), %4916  ;;  %v4023_v0 = vadd.f32 (!%p4622_p6), %v6896_v2, %v3967_v12  ;;  %v3681_v48 = vadd.f32 (!%p4622_p6), 1e-06, %v3378_v57 }
 0x398   : > { %3330 = vst [vmem:[#allocation2 + $0x5f8] sm:$0xff] %v3234_v18  ;;  %v3372_v18 = vld [vmem:[#allocation2 + $0x128] sm:$0xff] (!%p4622_p6)  ;;  %v3912_v34 = vadd.f32 (!%p4622_p6), %v3864_v24, %v3722_v3  ;;  %4934 = vrcp.f32 (!%p4622_p6), %v3679_v31  ;;  %v3726_v49 = vmul.f32 (!%p4622_p6), %v4915_v47, %v3349_v56  ;;  %v4919_v41 = vpop.eup (!%p4622_p6), %4918  ;;  %v3866_v13 = vadd.f32 (!%p4622_p6), %v3818_v1, %v3582_v53  ;;  %v3365_v3 = vld [vmem:[#allocation2 + $0xf0] sm:$0xff] (!%p4622_p6)  ;;  %v3367_v24 = vld [vmem:[#allocation2 + $0x100] sm:$0xff] (!%p4622_p6) }
 0x399   : > { %v3536_v50 = vadd.f32 1e-06, %v3372_v18  ;;  %v3913_v25 = vadd.f32 %v3865_v38, %v3724_v42  ;;  %v3584_v23 = vmul.f32 %v4917_v46, %v3351_v61  ;;  %v4921_v36 = vpop.eup %4920  ;;  %v4119_v26 = vmax.f32 %v4023_v0, 0.0  ;;  %v4073_v58 = vld [vmem:[%s7481_s6 + $0x10] sm:$0xff]  ;;  %v3822_v42 = vld [vmem:[%s7480_s5 + $0x38] sm:$0xff]  ;;  %v3823_v53 = vld [vmem:[%s7480_s5 + $0x40] sm:$0xff] }
 0x39a   : > { %v3968_v39 = vmul.f32 %v6888_v27, %v3912_v34  ;;  %v3728_v45 = vmul.f32 %v4919_v41, %v3353_v51  ;;  %v4923_v19 = vpop.eup %4922  ;;  %v3914_v8 = vadd.f32 %v3866_v13, %v3726_v49  ;;  %v3586_v60 = vmul.f32 %v4921_v36, %v3355_v22  ;;  %v3369_v1 = vld [vmem:[#allocation2 + $0x110] sm:$0xff]  ;;  %v3371_v51 = vld [vmem:[#allocation2 + $0x120] sm:$0xff]  ;;  %v3824_v22 = vld [vmem:[%s7480_s5 + $0x48] sm:$0xff] }
 0x39b   : > { %4936 = vrcp.f32 %v3536_v50  ;;  %v3969_v40 = vmul.f32 %v6888_v27, %v3913_v25  ;;  %v3867_v33 = vadd.f32 %v3819_v16, %v3584_v23  ;;  %v4925_v44 = vpop.eup %4924  ;;  %v4167_v10 = vadd.f32 %v4119_v26, %v4071_v54  ;;  %v4075_v41 = vld [vmem:[%s7481_s6 + $0x20] sm:$0xff]  ;;  %v3373_v23 = vld [vmem:[#allocation2 + $0x130] sm:$0xff] }
 0x39c   : > { %4938 = vrcp.f32 %v3680_v37  ;;  %v4024_v20 = vadd.f32 %v6896_v2, %v3968_v39  ;;  %v3730_v43 = vmul.f32 %v4923_v19, %v3357_v4  ;;  %v4927_v52 = vpop.eup %4926  ;;  %v3970_v32 = vmul.f32 %v6888_v27, %v3914_v8  ;;  %v3375_v8 = vld [vmem:[#allocation2 + $0x140] sm:$0xff] }
 0x39d   : > { %4940 = vrcp.f32 %v3537_v7  ;;  %v4025_v15 = vadd.f32 %v6896_v2, %v3969_v40  ;;  %v3915_v62 = vadd.f32 %v3867_v33, %v3728_v45  ;;  %v4929_v28 = vpop.eup %4928  ;;  %4215 = vst [vmem:[%s7484_s9] sm:$0xff] %v4167_v10  ;;  %v3868_v30 = vadd.f32 %v3820_v5, %v3586_v60  ;;  %v3380_v5 = vld [vmem:[#allocation2 + $0x168] sm:$0xff]  ;;  %v3382_v33 = vld [vmem:[#allocation2 + $0x178] sm:$0xff] }
 0x39e   : > { %v4120_v55 = vmax.f32 %v4024_v20, 0.0  ;;  %v3588_v63 = vmul.f32 %v4925_v44, %v3359_v9  ;;  %v3732_v21 = vmul.f32 %v4927_v52, %v3361_v6  ;;  %v4931_v56 = vpop.eup %4930  ;;  %v4026_v17 = vadd.f32 %v6896_v2, %v3970_v32  ;;  %v4076_v6 = vld [vmem:[%s7481_s6 + $0x28] sm:$0xff]  ;;  %v4077_v52 = vld [vmem:[%s7481_s6 + $0x30] sm:$0xff]  ;;  %v4078_v32 = vld [vmem:[%s7481_s6 + $0x38] sm:$0xff] }
 0x39f   : > { %v4121_v18 = vmax.f32 %v4025_v15, 0.0  ;;  %v3971_v12 = vmul.f32 %v6888_v27, %v3915_v62  ;;  %v3916_v50 = vadd.f32 %v3868_v30, %v3730_v43  ;;  %v3590_v34 = vmul.f32 %v4929_v28, %v3363_v14  ;;  %v3384_v28 = vld [vmem:[#allocation2 + $0x188] sm:$0xff] }
 0x3a0   : > { %v4168_v31 = vadd.f32 %v4120_v55, %v4072_v59  ;;  %v3869_v47 = vadd.f32 %v3821_v35, %v3588_v63  ;;  %v3734_v38 = vmul.f32 %v4931_v56, %v3365_v3  ;;  %v4122_v0 = vmax.f32 %v4026_v17, 0.0  ;;  %v3390_v56 = vld [vmem:[#allocation2 + $0x1b8] sm:$0xff]  ;;  %v3825_v17 = vld [vmem:[%s7480_s5 + $0x50] sm:$0xff] }
 0x3a1   : > { %v4933_v61 = vpop.eup %4932  ;;  %v4169_v46 = vadd.f32 %v4121_v18, %v4073_v58  ;;  %v4027_v49 = vadd.f32 %v6896_v2, %v3971_v12  ;;  %v3972_v54 = vmul.f32 %v6888_v27, %v3916_v50  ;;  %v3870_v25 = vadd.f32 %v3822_v42, %v3590_v34  ;;  %v3386_v58 = vld [vmem:[#allocation2 + $0x198] sm:$0xff]  ;;  %v3392_v12 = vld [vmem:[#allocation2 + $0x1c8] sm:$0xff] }
 0x3a2   : > { %v4935_v11 = vpop.eup %4934  ;;  %4216 = vst [vmem:[%s7484_s9 + $0x8] sm:$0xff] %v4168_v31  ;;  %v3592_v16 = vmul.f32 %v4933_v61, %v3367_v24  ;;  %v3917_v39 = vadd.f32 %v3869_v47, %v3732_v21  ;;  %v4170_v4 = vadd.f32 %v4122_v0, %v4074_v29  ;;  %4942 = vrcp.f32 %v3681_v48  ;;  %v4079_v24 = vld [vmem:[%s7481_s6 + $0x40] sm:$0xff]  ;;  %v3388_v48 = vld [vmem:[#allocation2 + $0x1a8] sm:$0xff]  ;;  %v3394_v42 = vld [vmem:[#allocation2 + $0x1d8] sm:$0xff] }
 0x3a3   : > { %v3736_v13 = vmul.f32 %v4935_v11, %v3369_v1  ;;  %4217 = vst [vmem:[%s7484_s9 + $0x10] sm:$0xff] %v4169_v46  ;;  %v4123_v36 = vmax.f32 %v4027_v49, 0.0  ;;  %v4028_v19 = vadd.f32 %v6896_v2, %v3972_v54  ;;  %v3918_v40 = vadd.f32 %v3870_v25, %v3734_v38  ;;  %v3396_v47 = vld [vmem:[#allocation2 + $0x1e8] sm:$0xff]  ;;  %v3398_v11 = vld [vmem:[#allocation2 + $0x1f8] sm:$0xff]  ;;  %v3377_v49 = vld [vmem:[#allocation2 + $0x150] sm:$0xff] }
 0x3a4   : > { %v3871_v26 = vadd.f32 %v3823_v53, %v3592_v16  ;;  %v3973_v20 = vmul.f32 %v6888_v27, %v3917_v39  ;;  %4218 = vst [vmem:[%s7484_s9 + $0x18] sm:$0xff] %v4170_v4  ;;  %v3538_v15 = vadd.f32 1e-06, %v3380_v5  ;;  %v3682_v3 = vadd.f32 1e-06, %v3382_v33  ;;  %v4080_v0 = vld [vmem:[%s7481_s6 + $0x48] sm:$0xff] }
 0x3a5   : > { %v4937_v37 = vpop.eup %4936  ;;  %v4171_v9 = vadd.f32 %v4123_v36, %v4075_v41  ;;  %v4124_v60 = vmax.f32 %v4028_v19, 0.0  ;;  %v3974_v55 = vmul.f32 %v6888_v27, %v3918_v40  ;;  %v3539_v29 = vadd.f32 1e-06, %v3384_v28  ;;  %v3400_v41 = vld [vmem:[#allocation2 + $0x208] sm:$0xff]  ;;  %v3379_v36 = vld [vmem:[#allocation2 + $0x160] sm:$0xff]  ;;  %v3381_v40 = vld [vmem:[#allocation2 + $0x170] sm:$0xff] }
 0x3a6   : > { %v3594_v45 = vmul.f32 %v4937_v37, %v3371_v51  ;;  %v4939_v7 = vpop.eup %4938  ;;  %v3919_v57 = vadd.f32 %v3871_v26, %v3736_v13  ;;  %v4029_v43 = vadd.f32 %v6896_v2, %v3973_v20  ;;  %4944 = vrcp.f32 %v3538_v15  ;;  %v3402_v13 = vld [vmem:[#allocation2 + $0x218] sm:$0xff]  ;;  %v3408_v5 = vld [vmem:[#allocation2 + $0x248] sm:$0xff] }
 0x3a7   : > { %v3738_v44 = vmul.f32 %v4939_v7, %v3373_v23  ;;  %v4941_v59 = vpop.eup %4940  ;;  %4219 = vst [vmem:[%s7484_s9 + $0x20] sm:$0xff] %v4171_v9  ;;  %v4172_v30 = vadd.f32 %v4124_v60, %v4076_v6  ;;  %v4030_v21 = vadd.f32 %v6896_v2, %v3974_v55  ;;  %4946 = vrcp.f32 %v3682_v3  ;;  %v3404_v23 = vld [vmem:[#allocation2 + $0x228] sm:$0xff]  ;;  %v3410_v7 = vld [vmem:[#allocation2 + $0x258] sm:$0xff] }
 0x3a8   : > { %v3872_v10 = vadd.f32 %v3824_v22, %v3594_v45  ;;  %v3975_v62 = vmul.f32 %v6888_v27, %v3919_v57  ;;  %v3596_v14 = vmul.f32 %v4941_v59, %v3375_v8  ;;  %v4125_v63 = vmax.f32 %v4029_v43, 0.0  ;;  %v3406_v22 = vld [vmem:[#allocation2 + $0x238] sm:$0xff]  ;;  %v3412_v33 = vld [vmem:[#allocation2 + $0x268] sm:$0xff] }
 0x3a9   : > { %4220 = vst [vmem:[%s7484_s9 + $0x28] sm:$0xff] %v4172_v30  ;;  %v4126_v61 = vmax.f32 %v4030_v21, 0.0  ;;  %v3683_v50 = vadd.f32 1e-06, %v3386_v58  ;;  %v3540_v53 = vadd.f32 1e-06, %v3388_v48  ;;  %4948 = vrcp.f32 %v3539_v29 }
 0x3aa   : > { %v3920_v35 = vadd.f32 %v3872_v10, %v3738_v44  ;;  %v4031_v31 = vadd.f32 %v6896_v2, %v3975_v62  ;;  %v4173_v1 = vadd.f32 %v4125_v63, %v4077_v52  ;;  %v3684_v51 = vadd.f32 1e-06, %v3390_v56  ;;  %v3414_v9 = vld [vmem:[#allocation2 + $0x278] sm:$0xff]  ;;  %v3416_v6 = vld [vmem:[#allocation2 + $0x288] sm:$0xff]  ;;  %v4081_v21 = vld [vmem:[%s7481_s6 + $0x50] sm:$0xff] }
 0x3ab   : > { %v4174_v46 = vadd.f32 %v4126_v61, %v4078_v32  ;;  %v3873_v16 = vadd.f32 %v3825_v17, %v3596_v14  ;;  %v3541_v37 = vadd.f32 1e-06, %v3392_v12  ;;  %4950 = vrcp.f32 %v3683_v50  ;;  %v3418_v52 = vld [vmem:[#allocation2 + $0x298] sm:$0xff]  ;;  %v3420_v55 = vld [vmem:[#allocation2 + $0x2a8] sm:$0xff]  ;;  %v3383_v48 = vld [vmem:[#allocation2 + $0x180] sm:$0xff] }
 0x3ac   : > { %v3976_v18 = vmul.f32 %v6888_v27, %v3920_v35  ;;  %v4127_v34 = vmax.f32 %v4031_v31, 0.0  ;;  %4221 = vst [vmem:[%s7484_s9 + $0x30] sm:$0xff] %v4173_v1  ;;  %v3685_v25 = vadd.f32 1e-06, %v3394_v42  ;;  %v4943_v4 = vpop.eup %4942  ;;  %4952 = vrcp.f32 %v3540_v53  ;;  %v3826_v32 = vld [vmem:[%s7480_s5 + $0x58] sm:$0xff]  ;;  %v3424_v63 = vld [vmem:[#allocation2 + $0x2c8] sm:$0xff] }
 0x3ad   : > { %4222 = vst [vmem:[%s7484_s9 + $0x38] sm:$0xff] %v4174_v46  ;;  %v3542_v26 = vadd.f32 1e-06, %v3396_v47  ;;  %v3686_v45 = vadd.f32 1e-06, %v3398_v11  ;;  %v3740_v20 = vmul.f32 %v4943_v4, %v3377_v49  ;;  %4954 = vrcp.f32 %v3684_v51  ;;  %v3422_v14 = vld [vmem:[#allocation2 + $0x2b8] sm:$0xff] }
 0x3ae   : > { %v4032_v38 = vadd.f32 %v6896_v2, %v3976_v18  ;;  %v4175_v54 = vadd.f32 %v4127_v34, %v4079_v24  ;;  %v3543_v8 = vadd.f32 1e-06, %v3400_v41  ;;  %4956 = vrcp.f32 %v3541_v37  ;;  %v3426_v18 = vld [vmem:[#allocation2 + $0x2d8] sm:$0xff]  ;;  %v3385_v42 = vld [vmem:[#allocation2 + $0x190] sm:$0xff]  ;;  %v3827_v1 = vld [vmem:[%s7480_s5 + $0x60] sm:$0xff] }
 0x3af   : > { %v3687_v57 = vadd.f32 1e-06, %v3402_v13  ;;  %v3544_v44 = vadd.f32 1e-06, %v3404_v23  ;;  %v3688_v10 = vadd.f32 1e-06, %v3406_v22  ;;  %v3921_v59 = vadd.f32 %v3873_v16, %v3740_v20 }
 0x3b0   : > { %v4128_v39 = vmax.f32 %v4032_v38, 0.0  ;;  %4223 = vst [vmem:[%s7484_s9 + $0x40] sm:$0xff] %v4175_v54  ;;  %4958 = vrcp.f32 %v3685_v25  ;;  %v3545_v60 = vadd.f32 1e-06, %v3408_v5  ;;  %v3689_v43 = vadd.f32 1e-06, %v3410_v7  ;;  %v4945_v15 = vpop.eup %4944 }
 0x3b1   : > { %4960 = vrcp.f32 %v3542_v26  ;;  %v7005_v62 = vadd.f32 1e-06, %v3412_v33  ;;  %v7007_v35 = vadd.f32 1e-06, %v3414_v9  ;;  %v4947_v3 = vpop.eup %4946  ;;  %v3977_v28 = vmul.f32 %v6888_v27, %v3921_v59  ;;  %v3387_v61 = vld [vmem:[#allocation2 + $0x1a0] sm:$0xff]  ;;  %v3428_v38 = vld [vmem:[#allocation2 + $0x2e8] sm:$0xff] }
 0x3b2   : > { %v4176_v19 = vadd.f32 %v4128_v39, %v4080_v0  ;;  %v3598_v58 = vmul.f32 %v4945_v15, %v3379_v36  ;;  %4962 = vrcp.f32 %v3686_v45  ;;  %v7010_v30 = vadd.f32 1e-06, %v3416_v6  ;;  %v3430_v53 = vld [vmem:[#allocation2 + $0x2f8] sm:$0xff]  ;;  %v3389_v49 = vld [vmem:[#allocation2 + $0x1b0] sm:$0xff]  ;;  %v3828_v16 = vld [vmem:[%s7480_s5 + $0x68] sm:$0xff] }
 0x3b3   : > { %v3742_v24 = vmul.f32 %v4947_v3, %v3381_v40  ;;  %4964 = vrcp.f32 %v3543_v8  ;;  %v7015_v56 = vadd.f32 1e-06, %v3418_v52  ;;  %v7017_v31 = vadd.f32 1e-06, %v3420_v55  ;;  %v4949_v50 = vpop.eup %4948  ;;  %v3391_v54 = vld [vmem:[#allocation2 + $0x1c0] sm:$0xff]  ;;  %v3432_v13 = vld [vmem:[#allocation2 + $0x308] sm:$0xff] }
 0x3b4   : > { %4224 = vst [vmem:[%s7484_s9 + $0x48] sm:$0xff] %v4176_v19  ;;  %v4033_v17 = vadd.f32 %v6896_v2, %v3977_v28  ;;  %v3874_v12 = vadd.f32 %v3826_v32, %v3598_v58  ;;  %4966 = vrcp.f32 %v3687_v57  ;;  %v7023_v29 = vadd.f32 1e-06, %v3422_v14  ;;  %v3393_v45 = vld [vmem:[#allocation2 + $0x1d0] sm:$0xff]  ;;  %v3434_v5 = vld [vmem:[#allocation2 + $0x318] sm:$0xff]  ;;  %v3436_v33 = vld [vmem:[#allocation2 + $0x328] sm:$0xff] }
 0x3b5   : > { %4968 = vrcp.f32 %v3544_v44  ;;  %v7025_v47 = vadd.f32 1e-06, %v3424_v63  ;;  %v7027_v34 = vadd.f32 1e-06, %v3426_v18  ;;  %v4951_v51 = vpop.eup %4950  ;;  %v3600_v0 = vmul.f32 %v4949_v50, %v3383_v48  ;;  %v3829_v20 = vld [vmem:[%s7480_s5 + $0x70] sm:$0xff]  ;;  %v3395_v59 = vld [vmem:[#allocation2 + $0x1e0] sm:$0xff] }
 0x3b6   : > { %v4129_v11 = vmax.f32 %v4033_v17, 0.0  ;;  %v3922_v46 = vadd.f32 %v3874_v12, %v3742_v24  ;;  %4970 = vrcp.f32 %v3688_v10  ;;  %v4953_v37 = vpop.eup %4952  ;;  %v3744_v41 = vmul.f32 %v4951_v51, %v3385_v42  ;;  %v3438_v52 = vld [vmem:[#allocation2 + $0x338] sm:$0xff]  ;;  %v3399_v48 = vld [vmem:[#allocation2 + $0x200] sm:$0xff]  ;;  %v3401_v18 = vld [vmem:[#allocation2 + $0x210] sm:$0xff] }
 0x3b7   : > { %4972 = vrcp.f32 %v3545_v60  ;;  %v7032_v39 = vadd.f32 1e-06, %v3428_v38  ;;  %v7034_v25 = vadd.f32 1e-06, %v3430_v53  ;;  %v4955_v23 = vpop.eup %4954  ;;  %v3875_v36 = vadd.f32 %v3827_v1, %v3600_v0  ;;  %v3397_v60 = vld [vmem:[#allocation2 + $0x1f0] sm:$0xff]  ;;  %v3830_v32 = vld [vmem:[%s7480_s5 + $0x78] sm:$0xff] }
 0x3b8   : > { %v4177_v22 = vadd.f32 %v4129_v11, %v4081_v21  ;;  %v3978_v4 = vmul.f32 %v6888_v27, %v3922_v46  ;;  %v3602_v26 = vmul.f32 %v4953_v37, %v3387_v61  ;;  %v4957_v7 = vpop.eup %4956  ;;  %v3746_v19 = vmul.f32 %v4955_v23, %v3389_v49  ;;  %v3440_v17 = vld [vmem:[#allocation2 + $0x348] sm:$0xff]  ;;  %v3403_v61 = vld [vmem:[#allocation2 + $0x220] sm:$0xff]  ;;  %v3405_v0 = vld [vmem:[#allocation2 + $0x230] sm:$0xff] }
 0x3b9   : > { %4974 = vrcp.f32 %v3689_v43  ;;  %v7040_v40 = vadd.f32 1e-06, %v3432_v13  ;;  %v7042_v8 = vadd.f32 1e-06, %v3434_v5  ;;  %v3923_v57 = vadd.f32 %v3875_v36, %v3744_v41  ;;  %v4082_v43 = vld [vmem:[%s7481_s6 + $0x58] sm:$0xff]  ;;  %v3831_v46 = vld [vmem:[%s7480_s5 + $0x80] sm:$0xff] }
 0x3ba   : > { %v4959_v9 = vpop.eup %4958  ;;  %4225 = vst [vmem:[%s7484_s9 + $0x50] sm:$0xff] %v4177_v22  ;;  %v4034_v6 = vadd.f32 %v6896_v2, %v3978_v4  ;;  %v3876_v44 = vadd.f32 %v3828_v16, %v3602_v26  ;;  %v3604_v10 = vmul.f32 %v4957_v7, %v3391_v54  ;;  %4976 = vrcp.f32 %v7005_v62  ;;  %v4083_v16 = vld [vmem:[%s7481_s6 + $0x60] sm:$0xff]  ;;  %v3832_v54 = vld [vmem:[%s7480_s5 + $0x88] sm:$0xff] }
 0x3bb   : > { %v4961_v55 = vpop.eup %4960  ;;  %v3748_v15 = vmul.f32 %v4959_v9, %v3393_v45  ;;  %v7055_v14 = vadd.f32 1e-06, %v3436_v33  ;;  %v7057_v3 = vadd.f32 1e-06, %v3438_v52  ;;  %v3979_v63 = vmul.f32 %v6888_v27, %v3923_v57  ;;  %v3407_v26 = vld [vmem:[#allocation2 + $0x240] sm:$0xff]  ;;  %v4084_v5 = vld [vmem:[%s7481_s6 + $0x68] sm:$0xff] }
 0x3bc   : > { %v4963_v28 = vpop.eup %4962  ;;  %v4130_v58 = vmax.f32 %v4034_v6, 0.0  ;;  %v3924_v21 = vadd.f32 %v3876_v44, %v3746_v19  ;;  %v3877_v24 = vadd.f32 %v3829_v20, %v3604_v10  ;;  %v3606_v42 = vmul.f32 %v4961_v55, %v3395_v59  ;;  %v3409_v20 = vld [vmem:[#allocation2 + $0x250] sm:$0xff] }
 0x3bd   : > { %v4965_v12 = vpop.eup %4964  ;;  %v3750_v1 = vmul.f32 %v4963_v28, %v3397_v60  ;;  %4978 = vrcp.f32 %v7007_v35  ;;  %v7061_v62 = vadd.f32 1e-06, %v3440_v17  ;;  %v4035_v53 = vadd.f32 %v6896_v2, %v3979_v63  ;;  %v3833_v44 = vld [vmem:[%s7480_s5 + $0x90] sm:$0xff]  ;;  %v4086_v17 = vld [vmem:[%s7481_s6 + $0x78] sm:$0xff] }
 0x3be   : > { %v4967_v50 = vpop.eup %4966  ;;  %v4178_v38 = vadd.f32 %v4130_v58, %v4082_v43  ;;  %v3980_v51 = vmul.f32 %v6888_v27, %v3924_v21  ;;  %v3925_v11 = vadd.f32 %v3877_v24, %v3748_v15  ;;  %v3878_v35 = vadd.f32 %v3830_v32, %v3606_v42  ;;  %v4085_v59 = vld [vmem:[%s7481_s6 + $0x70] sm:$0xff]  ;;  %v3411_v43 = vld [vmem:[#allocation2 + $0x260] sm:$0xff] }
 0x3bf   : > { %v4969_v49 = vpop.eup %4968  ;;  %v3608_v37 = vmul.f32 %v4965_v12, %v3399_v48  ;;  %v3752_v41 = vmul.f32 %v4967_v50, %v3401_v18  ;;  %4980 = vrcp.f32 %v7010_v30  ;;  %v4131_v23 = vmax.f32 %v4035_v53, 0.0  ;;  %v3413_v48 = vld [vmem:[#allocation2 + $0x270] sm:$0xff]  ;;  %v3834_v18 = vld [vmem:[%s7480_s5 + $0x98] sm:$0xff]  ;;  %v4087_v53 = vld [vmem:[%s7481_s6 + $0x80] sm:$0xff] }
 0x3c0   : > { %v4971_v13 = vpop.eup %4970  ;;  %4226 = vst [vmem:[%s7484_s9 + $0x58] sm:$0xff] %v4178_v38  ;;  %v4036_v22 = vadd.f32 %v6896_v2, %v3980_v51  ;;  %v3981_v4 = vmul.f32 %v6888_v27, %v3925_v11  ;;  %v3610_v36 = vmul.f32 %v4969_v49, %v3403_v61  ;;  %v3926_v7 = vadd.f32 %v3878_v35, %v3750_v1 }
 0x3c1   : > { %v4973_v45 = vpop.eup %4972  ;;  %v3879_v19 = vadd.f32 %v3831_v46, %v3608_v37  ;;  %v3754_v30 = vmul.f32 %v4971_v13, %v3405_v0  ;;  %4982 = vrcp.f32 %v7015_v56  ;;  %v4179_v33 = vadd.f32 %v4131_v23, %v4083_v16  ;;  %v3442_v46 = vld [vmem:[#allocation2 + $0x358] sm:$0xff]  ;;  %v3417_v37 = vld [vmem:[#allocation2 + $0x290] sm:$0xff]  ;;  %v3444_v23 = vld [vmem:[#allocation2 + $0x368] sm:$0xff] }
 0x3c2   : > { %v4132_v9 = vmax.f32 %v4036_v22, 0.0  ;;  %v4037_v6 = vadd.f32 %v6896_v2, %v3981_v4  ;;  %v3880_v57 = vadd.f32 %v3832_v54, %v3610_v36  ;;  %v3982_v60 = vmul.f32 %v6888_v27, %v3926_v7  ;;  %v3446_v22 = vld [vmem:[#allocation2 + $0x378] sm:$0xff] }
 0x3c3   : > { %v4975_v10 = vpop.eup %4974  ;;  %v3927_v52 = vadd.f32 %v3879_v19, %v3752_v41  ;;  %v3612_v55 = vmul.f32 %v4973_v45, %v3407_v26  ;;  %4984 = vrcp.f32 %v7017_v31  ;;  %4227 = vst [vmem:[%s7484_s9 + $0x60] sm:$0xff] %v4179_v33  ;;  %v3835_v41 = vld [vmem:[%s7480_s5 + $0xa0] sm:$0xff]  ;;  %v4089_v45 = vld [vmem:[%s7481_s6 + $0x90] sm:$0xff]  ;;  %v3448_v33 = vld [vmem:[#allocation2 + $0x388] sm:$0xff] }
 0x3c4   : > { %v4180_v56 = vadd.f32 %v4132_v9, %v4084_v5  ;;  %v4133_v15 = vmax.f32 %v4037_v6, 0.0  ;;  %v3928_v32 = vadd.f32 %v3880_v57, %v3754_v30  ;;  %v3756_v28 = vmul.f32 %v4975_v10, %v3409_v20  ;;  %v4977_v58 = vpop.eup %4976  ;;  %v3421_v20 = vld [vmem:[#allocation2 + $0x2b0] sm:$0xff]  ;;  %v3450_v9 = vld [vmem:[#allocation2 + $0x398] sm:$0xff] }
 0x3c5   : > { %v4038_v63 = vadd.f32 %v6896_v2, %v3982_v60  ;;  %v3983_v21 = vmul.f32 %v6888_v27, %v3927_v52  ;;  %v3881_v24 = vadd.f32 %v3833_v44, %v3612_v55  ;;  %4986 = vrcp.f32 %v7023_v29  ;;  %v3415_v29 = vld [vmem:[#allocation2 + $0x280] sm:$0xff]  ;;  %v3836_v44 = vld [vmem:[%s7480_s5 + $0xa8] sm:$0xff] }
 0x3c6   : > { %4228 = vst [vmem:[%s7484_s9 + $0x68] sm:$0xff] %v4180_v56  ;;  %v4181_v31 = vadd.f32 %v4133_v15, %v4085_v59  ;;  %v3984_v12 = vmul.f32 %v6888_v27, %v3928_v32  ;;  %v3614_v42 = vmul.f32 %v4977_v58, %v3411_v43  ;;  %4988 = vrcp.f32 %v7025_v47  ;;  %v3423_v55 = vld [vmem:[#allocation2 + $0x2c0] sm:$0xff]  ;;  %v3452_v43 = vld [vmem:[#allocation2 + $0x3a8] sm:$0xff]  ;;  %v3454_v56 = vld [vmem:[#allocation2 + $0x3b8] sm:$0xff] }
 0x3c7   : > { %v4979_v1 = vpop.eup %4978  ;;  %v4134_v61 = vmax.f32 %v4038_v63, 0.0  ;;  %v4039_v50 = vadd.f32 %v6896_v2, %v3983_v21  ;;  %v3929_v38 = vadd.f32 %v3881_v24, %v3756_v28  ;;  %4990 = vrcp.f32 %v7027_v34  ;;  %v4088_v34 = vld [vmem:[%s7481_s6 + $0x88] sm:$0xff]  ;;  %v3425_v28 = vld [vmem:[#allocation2 + $0x2d0] sm:$0xff] }
 0x3c8   : > { %4229 = vst [vmem:[%s7484_s9 + $0x70] sm:$0xff] %v4181_v31  ;;  %v4040_v51 = vadd.f32 %v6896_v2, %v3984_v12  ;;  %v3758_v11 = vmul.f32 %v4979_v1, %v3413_v48  ;;  %v3882_v47 = vadd.f32 %v3834_v18, %v3614_v42  ;;  %4992 = vrcp.f32 %v7032_v39  ;;  %v3456_v12 = vld [vmem:[#allocation2 + $0x3c8] sm:$0xff]  ;;  %v3429_v1 = vld [vmem:[#allocation2 + $0x2f0] sm:$0xff] }
 0x3c9   : > { %v4981_v0 = vpop.eup %4980  ;;  %v4182_v49 = vadd.f32 %v4134_v61, %v4086_v17  ;;  %v4135_v16 = vmax.f32 %v4039_v50, 0.0  ;;  %v3985_v35 = vmul.f32 %v6888_v27, %v3929_v38  ;;  %4994 = vrcp.f32 %v7034_v25  ;;  %v3419_v25 = vld [vmem:[#allocation2 + $0x2a0] sm:$0xff] }
 0x3ca   : > { %v4136_v54 = vmax.f32 %v4040_v51, 0.0  ;;  %v3930_v13 = vadd.f32 %v3882_v47, %v3758_v11  ;;  %v3616_v39 = vmul.f32 %v4981_v0, %v3415_v29  ;;  %4996 = vrcp.f32 %v7040_v40  ;;  %v3427_v17 = vld [vmem:[#allocation2 + $0x2e0] sm:$0xff]  ;;  %v3838_v47 = vld [vmem:[%s7480_s5 + $0xb8] sm:$0xff] }
 0x3cb   : > { %v4983_v4 = vpop.eup %4982  ;;  %4230 = vst [vmem:[%s7484_s9 + $0x78] sm:$0xff] %v4182_v49  ;;  %v4183_v36 = vadd.f32 %v4135_v16, %v4087_v53  ;;  %v4041_v26 = vadd.f32 %v6896_v2, %v3985_v35  ;;  %4998 = vrcp.f32 %v7042_v8  ;;  %v3697_v5 = vadd.f32 1e-06, %v3442_v46  ;;  %v3431_v46 = vld [vmem:[#allocation2 + $0x300] sm:$0xff]  ;;  %v3433_v35 = vld [vmem:[#allocation2 + $0x310] sm:$0xff] }
 0x3cc   : > { %v4184_v7 = vadd.f32 %v4136_v54, %v4088_v34  ;;  %v3986_v40 = vmul.f32 %v6888_v27, %v3930_v13  ;;  %v3760_v19 = vmul.f32 %v4983_v4, %v3417_v37  ;;  %v3883_v30 = vadd.f32 %v3835_v41, %v3616_v39  ;;  %v4091_v49 = vld [vmem:[%s7481_s6 + $0xa0] sm:$0xff] }
 0x3cd   : > { %v4985_v6 = vpop.eup %4984  ;;  %4231 = vst [vmem:[%s7484_s9 + $0x80] sm:$0xff] %v4183_v36  ;;  %v4137_v57 = vmax.f32 %v4041_v26, 0.0  ;;  %5000 = vrcp.f32 %v7055_v14  ;;  %v3554_v8 = vadd.f32 1e-06, %v3444_v23  ;;  %v3698_v10 = vadd.f32 1e-06, %v3446_v22 }
 0x3ce   : > { %4232 = vst [vmem:[%s7484_s9 + $0x88] sm:$0xff] %v4184_v7  ;;  %v4042_v59 = vadd.f32 %v6896_v2, %v3986_v40  ;;  %v3931_v60 = vadd.f32 %v3883_v30, %v3760_v19  ;;  %v3618_v52 = vmul.f32 %v4985_v6, %v3419_v25  ;;  %5002 = vrcp.f32 %v7057_v3  ;;  %v4090_v14 = vld [vmem:[%s7481_s6 + $0x98] sm:$0xff]  ;;  %v3837_v3 = vld [vmem:[%s7480_s5 + $0xb0] sm:$0xff]  ;;  %v3839_v23 = vld [vmem:[%s7480_s5 + $0xc0] sm:$0xff] }
 0x3cf   : > { %v4987_v15 = vpop.eup %4986  ;;  %v4185_v32 = vadd.f32 %v4137_v57, %v4089_v45  ;;  %5004 = vrcp.f32 %v7061_v62  ;;  %v3555_v58 = vadd.f32 1e-06, %v3448_v33  ;;  %v3699_v63 = vadd.f32 1e-06, %v3450_v9  ;;  %v3435_v45 = vld [vmem:[#allocation2 + $0x320] sm:$0xff]  ;;  %v3458_v25 = vld [vmem:[#allocation2 + $0x3d8] sm:$0xff] }
 0x3d0   : > { %v4989_v21 = vpop.eup %4988  ;;  %v4138_v24 = vmax.f32 %v4042_v59, 0.0  ;;  %v3987_v48 = vmul.f32 %v6888_v27, %v3931_v60  ;;  %v3762_v18 = vmul.f32 %v4987_v15, %v3421_v20  ;;  %v3884_v31 = vadd.f32 %v3836_v44, %v3618_v52  ;;  %v3437_v19 = vld [vmem:[#allocation2 + $0x330] sm:$0xff]  ;;  %v4092_v20 = vld [vmem:[%s7481_s6 + $0xa8] sm:$0xff]  ;;  %v3439_v44 = vld [vmem:[#allocation2 + $0x340] sm:$0xff] }
 0x3d1   : > { %v4991_v42 = vpop.eup %4990  ;;  %4233 = vst [vmem:[%s7484_s9 + $0x90] sm:$0xff] %v4185_v32  ;;  %v3620_v62 = vmul.f32 %v4989_v21, %v3423_v55  ;;  %5006 = vrcp.f32 %v3697_v5  ;;  %v3556_v61 = vadd.f32 1e-06, %v3452_v43  ;;  %v3700_v50 = vadd.f32 1e-06, %v3454_v56  ;;  %v3840_v57 = vld [vmem:[%s7480_s5 + $0xc8] sm:$0xff] }
 0x3d2   : > { %v4993_v38 = vpop.eup %4992  ;;  %v4186_v29 = vadd.f32 %v4138_v24, %v4090_v14  ;;  %v4043_v53 = vadd.f32 %v6896_v2, %v3987_v48  ;;  %v3932_v51 = vadd.f32 %v3884_v31, %v3762_v18  ;;  %v3764_v11 = vmul.f32 %v4991_v42, %v3425_v28  ;;  %v3441_v32 = vld [vmem:[#allocation2 + $0x350] sm:$0xff]  ;;  %v3460_v28 = vld [vmem:[#allocation2 + $0x3e8] sm:$0xff]  ;;  %v3462_v48 = vld [vmem:[#allocation2 + $0x3f8] sm:$0xff] }
 0x3d3   : > { %v4995_v0 = vpop.eup %4994  ;;  %v3885_v16 = vadd.f32 %v3837_v3, %v3620_v62  ;;  %v3622_v34 = vmul.f32 %v4993_v38, %v3427_v17  ;;  %5008 = vrcp.f32 %v3554_v8  ;;  %v3557_v37 = vadd.f32 1e-06, %v3456_v12  ;;  %v3841_v14 = vld [vmem:[%s7480_s5 + $0xd0] sm:$0xff]  ;;  %v3443_v12 = vld [vmem:[#allocation2 + $0x360] sm:$0xff]  ;;  %v4094_v42 = vld [vmem:[%s7481_s6 + $0xb8] sm:$0xff] }
 0x3d4   : > { %v4997_v41 = vpop.eup %4996  ;;  %4234 = vst [vmem:[%s7484_s9 + $0x98] sm:$0xff] %v4186_v29  ;;  %v4139_v54 = vmax.f32 %v4043_v53, 0.0  ;;  %v3988_v13 = vmul.f32 %v6888_v27, %v3932_v51  ;;  %v3766_v39 = vmul.f32 %v4995_v0, %v3429_v1  ;;  %5010 = vrcp.f32 %v3698_v10 }
 0x3d5   : > { %v4999_v22 = vpop.eup %4998  ;;  %v3933_v4 = vadd.f32 %v3885_v16, %v3764_v11  ;;  %v3886_v36 = vadd.f32 %v3838_v47, %v3622_v34  ;;  %v3624_v26 = vmul.f32 %v4997_v41, %v3431_v46  ;;  %5012 = vrcp.f32 %v3555_v58  ;;  %v4095_v11 = vld [vmem:[%s7481_s6 + $0xc0] sm:$0xff]  ;;  %v3842_v47 = vld [vmem:[%s7480_s5 + $0xd8] sm:$0xff]  ;;  %v3464_v41 = vld [vmem:[#allocation2 + $0x408] sm:$0xff] }
 0x3d6   : > { %v4187_v5 = vadd.f32 %v4139_v54, %v4091_v49  ;;  %v4044_v7 = vadd.f32 %v6896_v2, %v3988_v13  ;;  %v3768_v40 = vmul.f32 %v4999_v22, %v3433_v35  ;;  %5014 = vrcp.f32 %v3699_v63  ;;  %v4093_v63 = vld [vmem:[%s7481_s6 + $0xb0] sm:$0xff]  ;;  %v3447_v46 = vld [vmem:[#allocation2 + $0x380] sm:$0xff]  ;;  %v3466_v54 = vld [vmem:[#allocation2 + $0x418] sm:$0xff] }
 0x3d7   : > { %v5001_v30 = vpop.eup %5000  ;;  %v3989_v33 = vmul.f32 %v6888_v27, %v3933_v4  ;;  %v3934_v9 = vadd.f32 %v3886_v36, %v3766_v39  ;;  %v3887_v6 = vadd.f32 %v3839_v23, %v3624_v26  ;;  %5016 = vrcp.f32 %v3556_v61  ;;  %v7212_v16 = vld [vmem:[%s7483_s8 + $0x3] ss:$0 sm:$0xff]  ;;  %v7224_v26 = vld [vmem:[%s7483_s8 + $0x4] ss:$0 sm:$0xff] }
 0x3d8   : > { %v5003_v8 = vpop.eup %5002  ;;  %4235 = vst [vmem:[%s7484_s9 + $0xa0] sm:$0xff] %v4187_v5  ;;  %v4140_v10 = vmax.f32 %v4044_v7, 0.0  ;;  %v3626_v59 = vmul.f32 %v5001_v30, %v3435_v45  ;;  %5018 = vrcp.f32 %v3700_v50  ;;  %v3701_v60 = vadd.f32 1e-06, %v3458_v25  ;;  %v3445_v50 = vld [vmem:[#allocation2 + $0x370] sm:$0xff]  ;;  %v3843_v4 = vld [vmem:[%s7480_s5 + $0xe0] sm:$0xff] }
 0x3d9   : > { %v5005_v52 = vpop.eup %5004  ;;  %v4045_v55 = vadd.f32 %v6896_v2, %v3989_v33  ;;  %v3990_v43 = vmul.f32 %v6888_v27, %v3934_v9  ;;  %v3935_v56 = vadd.f32 %v3887_v6, %v3768_v40  ;;  %v3770_v15 = vmul.f32 %v5003_v8, %v3437_v19  ;;  %v3451_v40 = vld [vmem:[#allocation2 + $0x3a0] sm:$0xff]  ;;  %v3453_v19 = vld [vmem:[#allocation2 + $0x3b0] sm:$0xff]  ;;  %v3468_v30 = vld [vmem:[#allocation2 + $0x428] sm:$0xff] }
 0x3da   : > { %v4188_v58 = vadd.f32 %v4140_v10, %v4092_v20  ;;  %v3888_v21 = vadd.f32 %v3840_v57, %v3626_v59  ;;  %v3628_v24 = vmul.f32 %v5005_v52, %v3439_v44  ;;  %5020 = vrcp.f32 %v3557_v37  ;;  %v3449_v37 = vld [vmem:[#allocation2 + $0x390] sm:$0xff]  ;;  %v4096_v9 = vld [vmem:[%s7481_s6 + $0xc8] sm:$0xff] }
 0x3db   : > { %v5007_v18 = vpop.eup %5006  ;;  %v4141_v31 = vmax.f32 %v4045_v55, 0.0  ;;  %v4046_v3 = vadd.f32 %v6896_v2, %v3990_v43  ;;  %v3991_v17 = vmul.f32 %v6888_v27, %v3935_v56  ;;  %5022 = vrcp.f32 %v3701_v60  ;;  %v3844_v55 = vld [vmem:[%s7480_s5 + $0xe8] sm:$0xff]  ;;  %v3455_v43 = vld [vmem:[#allocation2 + $0x3c0] sm:$0xff]  ;;  %v3470_v56 = vld [vmem:[#allocation2 + $0x438] sm:$0xff] }
 0x3dc   : > { %4236 = vst [vmem:[%s7484_s9 + $0xa8] sm:$0xff] %v4188_v58  ;;  %v3936_v62 = vadd.f32 %v3888_v21, %v3770_v15  ;;  %v3772_v1 = vmul.f32 %v5007_v18, %v3441_v32  ;;  %v3889_v61 = vadd.f32 %v3841_v14, %v3628_v24  ;;  %v3558_v38 = vadd.f32 1e-06, %v3460_v28  ;;  %v4097_v15 = vld [vmem:[%s7481_s6 + $0xd0] sm:$0xff] }
 0x3dd   : > { %v5009_v29 = vpop.eup %5008  ;;  %v4189_v53 = vadd.f32 %v4141_v31, %v4093_v63  ;;  %v4142_v51 = vmax.f32 %v4046_v3, 0.0  ;;  %v4047_v27 = vadd.f32 %v6896_v2, %v3991_v17  ;;  %v3702_v0 = vadd.f32 1e-06, %v3462_v48  ;;  %v3457_v28 = vld [vmem:[#allocation2 + $0x3d0] sm:$0xff]  ;;  %v3472_v3 = vld [vmem:[#allocation2 + $0x448] sm:$0xff] }
 0x3de   : > { %v5011_v49 = vpop.eup %5010  ;;  %v3992_v34 = vmul.f32 %v7212_v16, %v3936_v62  ;;  %v3937_v35 = vadd.f32 %v3889_v61, %v3772_v1  ;;  %v3630_v2 = vmul.f32 %v5009_v29, %v3443_v12  ;;  %5024 = vrcp.f32 %v3558_v38  ;;  %v3845_v31 = vld [vmem:[%s7480_s5 + $0xf0] sm:$0xff]  ;;  %v3474_v1 = vld [vmem:[#allocation2 + $0x458] sm:$0xff] }
 0x3df   : > { %v5013_v13 = vpop.eup %5012  ;;  %4237 = vst [vmem:[%s7484_s9 + $0xb0] sm:$0xff] %v4189_v53  ;;  %v4190_v39 = vadd.f32 %v4142_v51, %v4094_v42  ;;  %v4143_v23 = vmax.f32 %v4047_v27, 0.0  ;;  %v3774_v22 = vmul.f32 %v5011_v49, %v3445_v50  ;;  %5026 = vrcp.f32 %v3702_v0  ;;  %v3459_v53 = vld [vmem:[#allocation2 + $0x3e0] sm:$0xff]  ;;  %v4098_v51 = vld [vmem:[%s7481_s6 + $0xd8] sm:$0xff] }
 0x3e0   : > { %v5015_v36 = vpop.eup %5014  ;;  %v4048_v45 = vadd.f32 %v7224_v26, %v3992_v34  ;;  %v3993_v25 = vmul.f32 %v7212_v16, %v3937_v35  ;;  %v3890_v5 = vadd.f32 %v3842_v47, %v3630_v2  ;;  %v3632_v7 = vmul.f32 %v5013_v13, %v3447_v46  ;;  %v3461_v47 = vld [vmem:[#allocation2 + $0x3f0] sm:$0xff]  ;;  %v4099_v35 = vld [vmem:[%s7481_s6 + $0xe0] sm:$0xff]  ;;  %v3846_v2 = vld [vmem:[%s7480_s5 + $0xf8] sm:$0xff] }
 0x3e1   : > { %v5017_v20 = vpop.eup %5016  ;;  %4238 = vst [vmem:[%s7484_s9 + $0xb8] sm:$0xff] %v4190_v39  ;;  %v4191_v33 = vadd.f32 %v4143_v23, %v4095_v11  ;;  %v3776_v6 = vmul.f32 %v5015_v36, %v3449_v37  ;;  %v3559_v57 = vadd.f32 1e-06, %v3464_v41  ;;  %v3703_v44 = vadd.f32 1e-06, %v3466_v54  ;;  %v3476_v41 = vld [vmem:[#allocation2 + $0x468] sm:$0xff] }
 0x3e2   : > { %v5019_v8 = vpop.eup %5018  ;;  %v4144_v10 = vmax.f32 %v4048_v45, 0.0  ;;  %v4049_v59 = vadd.f32 %v7224_v26, %v3993_v25  ;;  %v3938_v60 = vadd.f32 %v3890_v5, %v3774_v22  ;;  %v3891_v52 = vadd.f32 %v3843_v4, %v3632_v7  ;;  %v3478_v22 = vld [vmem:[#allocation2 + $0x478] sm:$0xff]  ;;  %v3480_v4 = vld [vmem:[#allocation2 + $0x488] sm:$0xff] }
 0x3e3   : > { %4239 = vst [vmem:[%s7484_s9 + $0xc0] sm:$0xff] %v4191_v33  ;;  %v3634_v32 = vmul.f32 %v5017_v20, %v3451_v40  ;;  %v3778_v14 = vmul.f32 %v5019_v8, %v3453_v19  ;;  %5028 = vrcp.f32 %v3559_v57  ;;  %v3560_v58 = vadd.f32 1e-06, %v3468_v30  ;;  %v3482_v36 = vld [vmem:[#allocation2 + $0x498] sm:$0xff]  ;;  %v4100_v5 = vld [vmem:[%s7481_s6 + $0xe8] sm:$0xff]  ;;  %v3463_v20 = vld [vmem:[#allocation2 + $0x400] sm:$0xff] }
 0x3e4   : > { %v5021_v63 = vpop.eup %5020  ;;  %v4192_v21 = vadd.f32 %v4144_v10, %v4096_v9  ;;  %v4145_v24 = vmax.f32 %v4049_v59, 0.0  ;;  %v3994_v48 = vmul.f32 %v7212_v16, %v3938_v60  ;;  %v3939_v18 = vadd.f32 %v3891_v52, %v3776_v6  ;;  %v3484_v9 = vld [vmem:[#allocation2 + $0x4a8] sm:$0xff]  ;;  %v3486_v6 = vld [vmem:[#allocation2 + $0x4b8] sm:$0xff] }
 0x3e5   : > { %v5023_v17 = vpop.eup %5022  ;;  %v3892_v12 = vadd.f32 %v3844_v55, %v3634_v32  ;;  %v3636_v42 = vmul.f32 %v5021_v63, %v3455_v43  ;;  %5030 = vrcp.f32 %v3703_v44  ;;  %v3704_v62 = vadd.f32 1e-06, %v3470_v56  ;;  %v3465_v43 = vld [vmem:[#allocation2 + $0x410] sm:$0xff]  ;;  %v3847_v56 = vld [vmem:[%s7480_s5 + $0x100] sm:$0xff]  ;;  %v3490_v63 = vld [vmem:[#allocation2 + $0x4d8] sm:$0xff] }
 0x3e6   : > { %4240 = vst [vmem:[%s7484_s9 + $0xc8] sm:$0xff] %v4192_v21  ;;  %v4193_v61 = vadd.f32 %v4145_v24, %v4097_v15  ;;  %v4050_v50 = vadd.f32 %v7224_v26, %v3994_v48  ;;  %v3995_v38 = vmul.f32 %v7212_v16, %v3939_v18  ;;  %v3780_v29 = vmul.f32 %v5023_v17, %v3457_v28  ;;  %v3488_v15 = vld [vmem:[#allocation2 + $0x4c8] sm:$0xff]  ;;  %v4101_v32 = vld [vmem:[%s7481_s6 + $0xf0] sm:$0xff] }
 0x3e7   : > { %v3940_v27 = vadd.f32 %v3892_v12, %v3778_v14  ;;  %v3893_v11 = vadd.f32 %v3845_v31, %v3636_v42  ;;  %5032 = vrcp.f32 %v3560_v58  ;;  %v3561_v46 = vadd.f32 1e-06, %v3472_v3  ;;  %v3467_v31 = vld [vmem:[#allocation2 + $0x420] sm:$0xff]  ;;  %v3492_v3 = vld [vmem:[#allocation2 + $0x4e8] sm:$0xff]  ;;  %v3469_v42 = vld [vmem:[#allocation2 + $0x430] sm:$0xff] }
 0x3e8   : > { %v5025_v0 = vpop.eup %5024  ;;  %4241 = vst [vmem:[%s7484_s9 + $0xd0] sm:$0xff] %v4193_v61  ;;  %v4146_v49 = vmax.f32 %v4050_v50, 0.0  ;;  %v4051_v34 = vadd.f32 %v7224_v26, %v3995_v38  ;;  %5034 = vrcp.f32 %v3704_v62  ;;  %v3705_v37 = vadd.f32 1e-06, %v3474_v1  ;;  %v3494_v1 = vld [vmem:[#allocation2 + $0x4f8] sm:$0xff] }
 0x3e9   : > { %v5027_v54 = vpop.eup %5026  ;;  %v3996_v13 = vmul.f32 %v7212_v16, %v3940_v27  ;;  %v3941_v39 = vadd.f32 %v3893_v11, %v3780_v29  ;;  %v3638_v23 = vmul.f32 %v5025_v0, %v3459_v53  ;;  %5036 = vrcp.f32 %v3561_v46  ;;  %v3848_v29 = vld [vmem:[%s7480_s5 + $0x108] sm:$0xff]  ;;  %v3471_v53 = vld [vmem:[#allocation2 + $0x440] sm:$0xff]  ;;  %v4102_v11 = vld [vmem:[%s7481_s6 + $0xf8] sm:$0xff] }
 0x3ea   : > { %v4194_v45 = vadd.f32 %v4146_v49, %v4098_v51  ;;  %v4147_v25 = vmax.f32 %v4051_v34, 0.0  ;;  %v3782_v7 = vmul.f32 %v5027_v54, %v3461_v47  ;;  %5038 = vrcp.f32 %v3705_v37  ;;  %v3473_v0 = vld [vmem:[#allocation2 + $0x450] sm:$0xff]  ;;  %v3496_v34 = vld [vmem:[#allocation2 + $0x508] sm:$0xff] }
 0x3eb   : > { %v4052_v40 = vadd.f32 %v7224_v26, %v3996_v13  ;;  %v3997_v19 = vmul.f32 %v7212_v16, %v3941_v39  ;;  %v3894_v30 = vadd.f32 %v3846_v2, %v3638_v23  ;;  %v3562_v33 = vadd.f32 1e-06, %v3476_v41  ;;  %v3849_v41 = vld [vmem:[%s7480_s5 + $0x110] sm:$0xff] }
 0x3ec   : > { %4242 = vst [vmem:[%s7484_s9 + $0xd8] sm:$0xff] %v4194_v45  ;;  %v4195_v57 = vadd.f32 %v4147_v25, %v4099_v35  ;;  %v3706_v44 = vadd.f32 1e-06, %v3478_v22  ;;  %v3563_v8 = vadd.f32 1e-06, %v3480_v4  ;;  %v3498_v4 = vld [vmem:[#allocation2 + $0x518] sm:$0xff] }
 0x3ed   : > { %v3707_v10 = vadd.f32 1e-06, %v3482_v36  ;;  %v5029_v59 = vpop.eup %5028  ;;  %v4148_v60 = vmax.f32 %v4052_v40, 0.0  ;;  %v4053_v52 = vadd.f32 %v7224_v26, %v3997_v19  ;;  %v3942_v55 = vadd.f32 %v3894_v30, %v3782_v7  ;;  %v3500_v36 = vld [vmem:[#allocation2 + $0x528] sm:$0xff]  ;;  %v3502_v45 = vld [vmem:[#allocation2 + $0x538] sm:$0xff]  ;;  %v3475_v40 = vld [vmem:[#allocation2 + $0x460] sm:$0xff] }
 0x3ee   : > { %5040 = vrcp.f32 %v3562_v33  ;;  %4243 = vst [vmem:[%s7484_s9 + $0xe0] sm:$0xff] %v4195_v57  ;;  %v3640_v14 = vmul.f32 %v5029_v59, %v3463_v20  ;;  %v3564_v28 = vadd.f32 1e-06, %v3484_v9  ;;  %v3708_v58 = vadd.f32 1e-06, %v3486_v6  ;;  %v3477_v19 = vld [vmem:[#allocation2 + $0x470] sm:$0xff] }
 0x3ef   : > { %5042 = vrcp.f32 %v3706_v44  ;;  %v5031_v21 = vpop.eup %5030  ;;  %v4196_v24 = vadd.f32 %v4148_v60, %v4100_v5  ;;  %v4149_v48 = vmax.f32 %v4053_v52, 0.0  ;;  %v3998_v18 = vmul.f32 %v7212_v16, %v3942_v55  ;;  %v4103_v5 = vld [vmem:[%s7481_s6 + $0x100] sm:$0xff]  ;;  %v3850_v6 = vld [vmem:[%s7480_s5 + $0x118] sm:$0xff]  ;;  %v3504_v57 = vld [vmem:[#allocation2 + $0x548] sm:$0xff] }
 0x3f0   : > { %5044 = vrcp.f32 %v3563_v8  ;;  %v3784_v17 = vmul.f32 %v5031_v21, %v3465_v43  ;;  %v3895_v12 = vadd.f32 %v3847_v56, %v3640_v14  ;;  %v3565_v62 = vadd.f32 1e-06, %v3488_v15  ;;  %v3506_v44 = vld [vmem:[#allocation2 + $0x558] sm:$0xff]  ;;  %v3481_v14 = vld [vmem:[#allocation2 + $0x490] sm:$0xff]  ;;  %v3483_v21 = vld [vmem:[#allocation2 + $0x4a0] sm:$0xff] }
 0x3f1   : > { %5046 = vrcp.f32 %v3707_v10  ;;  %v5033_v61 = vpop.eup %5032  ;;  %4244 = vst [vmem:[%s7484_s9 + $0xe8] sm:$0xff] %v4196_v24  ;;  %v4197_v50 = vadd.f32 %v4149_v48, %v4101_v32  ;;  %v4054_v38 = vadd.f32 %v7224_v26, %v3998_v18  ;;  %v3709_v51 = vadd.f32 1e-06, %v3490_v63  ;;  %v3479_v32 = vld [vmem:[#allocation2 + $0x480] sm:$0xff] }
 0x3f2   : > { %5048 = vrcp.f32 %v3564_v28  ;;  %v5035_v27 = vpop.eup %5034  ;;  %v3943_v47 = vadd.f32 %v3895_v12, %v3784_v17  ;;  %v3642_v46 = vmul.f32 %v5033_v61, %v3467_v31  ;;  %v3566_v49 = vadd.f32 1e-06, %v3492_v3  ;;  %v3508_v28 = vld [vmem:[#allocation2 + $0x568] sm:$0xff] }
 0x3f3   : > { %5050 = vrcp.f32 %v3708_v58  ;;  %v5037_v35 = vpop.eup %5036  ;;  %4245 = vst [vmem:[%s7484_s9 + $0xf0] sm:$0xff] %v4197_v50  ;;  %v4150_v2 = vmax.f32 %v4054_v38, 0.0  ;;  %v3786_v37 = vmul.f32 %v5035_v27, %v3469_v42  ;;  %v3710_v54 = vadd.f32 1e-06, %v3494_v1  ;;  %v3851_v42 = vld [vmem:[%s7480_s5 + $0x120] sm:$0xff]  ;;  %v3510_v1 = vld [vmem:[#allocation2 + $0x578] sm:$0xff] }
 0x3f4   : > { %5052 = vrcp.f32 %v3565_v62  ;;  %v5039_v13 = vpop.eup %5038  ;;  %v3999_v39 = vmul.f32 %v7212_v16, %v3943_v47  ;;  %v3896_v23 = vadd.f32 %v3848_v29, %v3642_v46  ;;  %v3644_v22 = vmul.f32 %v5037_v35, %v3471_v53  ;;  %v3485_v62 = vld [vmem:[#allocation2 + $0x4b0] sm:$0xff]  ;;  %v4104_v50 = vld [vmem:[%s7481_s6 + $0x108] sm:$0xff] }
 0x3f5   : > { %5054 = vrcp.f32 %v3709_v51  ;;  %v4198_v25 = vadd.f32 %v4150_v2, %v4102_v11  ;;  %v3788_v7 = vmul.f32 %v5039_v13, %v3473_v0  ;;  %v3567_v30 = vadd.f32 1e-06, %v3496_v34  ;;  %v3852_v53 = vld [vmem:[%s7480_s5 + $0x128] sm:$0xff]  ;;  %v3489_v34 = vld [vmem:[#allocation2 + $0x4d0] sm:$0xff] }
 0x3f6   : > { %5056 = vrcp.f32 %v3566_v49  ;;  %v4055_v20 = vadd.f32 %v7224_v26, %v3999_v39  ;;  %v3944_v33 = vadd.f32 %v3896_v23, %v3786_v37  ;;  %v3897_v9 = vadd.f32 %v3849_v41, %v3644_v22  ;;  %v3487_v49 = vld [vmem:[#allocation2 + $0x4c0] sm:$0xff]  ;;  %v4105_v2 = vld [vmem:[%s7481_s6 + $0x110] sm:$0xff] }
 0x3f7   : > { %5058 = vrcp.f32 %v3710_v54  ;;  %4246 = vst [vmem:[%s7484_s9 + $0xf8] sm:$0xff] %v4198_v25  ;;  %v3711_v10 = vadd.f32 1e-06, %v3498_v4  ;;  %v3568_v59 = vadd.f32 1e-06, %v3500_v36  ;;  %v3491_v54 = vld [vmem:[#allocation2 + $0x4e0] sm:$0xff] }
 0x3f8   : > { %v5041_v8 = vpop.eup %5040  ;;  %5060 = vrcp.f32 %v3567_v30  ;;  %v3712_v60 = vadd.f32 1e-06, %v3502_v45  ;;  %v4151_v55 = vmax.f32 %v4055_v20, 0.0  ;;  %v4000_v43 = vmul.f32 %v7212_v16, %v3944_v33  ;;  %v3853_v45 = vld [vmem:[%s7480_s5 + $0x130] sm:$0xff]  ;;  %v3854_v30 = vld [vmem:[%s7480_s5 + $0x138] sm:$0xff]  ;;  %v3495_v20 = vld [vmem:[#allocation2 + $0x500] sm:$0xff] }
 0x3f9   : > { %v5043_v52 = vpop.eup %5042  ;;  %v3945_v56 = vadd.f32 %v3897_v9, %v3788_v7  ;;  %v3646_v15 = vmul.f32 %v5041_v8, %v3475_v40  ;;  %5062 = vrcp.f32 %v3711_v10  ;;  %v3569_v24 = vadd.f32 1e-06, %v3504_v57  ;;  %v3493_v25 = vld [vmem:[#allocation2 + $0x4f0] sm:$0xff]  ;;  %v3512_v8 = vld [vmem:[#allocation2 + $0x588] sm:$0xff] }
 0x3fa   : > { %v5045_v58 = vpop.eup %5044  ;;  %v3790_v63 = vmul.f32 %v5043_v52, %v3477_v19  ;;  %v3713_v48 = vadd.f32 1e-06, %v3506_v44  ;;  %v4199_v31 = vadd.f32 %v4151_v55, %v4103_v5  ;;  %v4056_v3 = vadd.f32 %v7224_v26, %v4000_v43  ;;  %v3497_v43 = vld [vmem:[#allocation2 + $0x510] sm:$0xff] }
 0x3fb   : > { %v5047_v18 = vpop.eup %5046  ;;  %v4001_v17 = vmul.f32 %v7212_v16, %v3945_v56  ;;  %v3898_v12 = vadd.f32 %v3850_v6, %v3646_v15  ;;  %v3648_v38 = vmul.f32 %v5045_v58, %v3479_v32  ;;  %5064 = vrcp.f32 %v3568_v59  ;;  %v4106_v59 = vld [vmem:[%s7481_s6 + $0x118] sm:$0xff] }
 0x3fc   : > { %v5049_v61 = vpop.eup %5048  ;;  %v3792_v29 = vmul.f32 %v5047_v18, %v3481_v14  ;;  %v3570_v51 = vadd.f32 1e-06, %v3508_v28  ;;  %4247 = vst [vmem:[%s7484_s9 + $0x100] sm:$0xff] %v4199_v31  ;;  %v4152_v11 = vmax.f32 %v4056_v3, 0.0  ;;  %5066 = vrcp.f32 %v3712_v60  ;;  %v3855_v28 = vld [vmem:[%s7480_s5 + $0x140] sm:$0xff] }
 0x3fd   : > { %v5051_v27 = vpop.eup %5050  ;;  %v4057_v47 = vadd.f32 %v7224_v26, %v4001_v17  ;;  %v3946_v46 = vadd.f32 %v3898_v12, %v3790_v63  ;;  %v3650_v0 = vmul.f32 %v5049_v61, %v3483_v21  ;;  %v3899_v37 = vadd.f32 %v3851_v42, %v3648_v38  ;;  %v4107_v31 = vld [vmem:[%s7481_s6 + $0x120] sm:$0xff]  ;;  %v3514_v42 = vld [vmem:[#allocation2 + $0x598] sm:$0xff]  ;;  %v4108_v61 = vld [vmem:[%s7481_s6 + $0x128] sm:$0xff] }
 0x3fe   : > { %v5053_v35 = vpop.eup %5052  ;;  %v3794_v41 = vmul.f32 %v5051_v27, %v3485_v62  ;;  %v3714_v13 = vadd.f32 1e-06, %v3510_v1  ;;  %v4200_v23 = vadd.f32 %v4152_v11, %v4104_v50  ;;  %5068 = vrcp.f32 %v3569_v24  ;;  %v3499_v24 = vld [vmem:[#allocation2 + $0x520] sm:$0xff] }
 0x3ff   : > { %v5055_v39 = vpop.eup %5054  ;;  %v4153_v22 = vmax.f32 %v4057_v47, 0.0  ;;  %v4002_v4 = vmul.f32 %v7212_v16, %v3946_v46  ;;  %v3900_v36 = vadd.f32 %v3852_v53, %v3650_v0  ;;  %v3947_v7 = vadd.f32 %v3899_v37, %v3792_v29  ;;  %v3501_v29 = vld [vmem:[#allocation2 + $0x530] sm:$0xff]  ;;  %v3856_v53 = vld [vmem:[%s7480_s5 + $0x148] sm:$0xff]  ;;  %v3518_v37 = vld [vmem:[#allocation2 + $0x5b8] sm:$0xff] }
 0x400   : > { %v5057_v5 = vpop.eup %5056  ;;  %v3652_v40 = vmul.f32 %v5053_v35, %v3487_v49  ;;  %v3796_v19 = vmul.f32 %v5055_v39, %v3489_v34  ;;  %4248 = vst [vmem:[%s7484_s9 + $0x108] sm:$0xff] %v4200_v23  ;;  %5070 = vrcp.f32 %v3713_v48  ;;  %v3571_v48 = vadd.f32 1e-06, %v3512_v8  ;;  %v3516_v47 = vld [vmem:[#allocation2 + $0x5a8] sm:$0xff]  ;;  %v3503_v35 = vld [vmem:[#allocation2 + $0x540] sm:$0xff] }
 0x401   : > { %v5059_v33 = vpop.eup %5058  ;;  %v4201_v9 = vadd.f32 %v4153_v22, %v4105_v2  ;;  %v4058_v6 = vadd.f32 %v7224_v26, %v4002_v4  ;;  %v3948_v57 = vadd.f32 %v3900_v36, %v3794_v41  ;;  %v3654_v44 = vmul.f32 %v5057_v5, %v3491_v54  ;;  %v4109_v54 = vld [vmem:[%s7481_s6 + $0x130] sm:$0xff]  ;;  %v3520_v22 = vld [vmem:[#allocation2 + $0x5c8] sm:$0xff] }
 0x402   : > { %v5061_v10 = vpop.eup %5060  ;;  %v4003_v60 = vmul.f32 %v7212_v16, %v3947_v7  ;;  %v3901_v52 = vadd.f32 %v3853_v45, %v3652_v40  ;;  %v3798_v55 = vmul.f32 %v5059_v33, %v3493_v25  ;;  %5072 = vrcp.f32 %v3570_v51  ;;  %v4110_v45 = vld [vmem:[%s7481_s6 + $0x138] sm:$0xff]  ;;  %v3505_v5 = vld [vmem:[#allocation2 + $0x550] sm:$0xff] }
 0x403   : > { %4249 = vst [vmem:[%s7484_s9 + $0x110] sm:$0xff] %v4201_v9  ;;  %v4154_v56 = vmax.f32 %v4058_v6, 0.0  ;;  %v4004_v15 = vmul.f32 %v7212_v16, %v3948_v57  ;;  %v3902_v32 = vadd.f32 %v3854_v30, %v3654_v44  ;;  %v3656_v14 = vmul.f32 %v5061_v10, %v3495_v20  ;;  %v5063_v58 = vpop.eup %5062  ;;  %v3857_v7 = vld [vmem:[%s7480_s5 + $0x150] sm:$0xff]  ;;  %v3522_v9 = vld [vmem:[#allocation2 + $0x5d8] sm:$0xff]  ;;  %v3524_v6 = vld [vmem:[#allocation2 + $0x5e8] sm:$0xff] }
 0x404   : > { %v4059_v63 = vadd.f32 %v7224_v26, %v4003_v60  ;;  %v3949_v21 = vadd.f32 %v3901_v52, %v3796_v19  ;;  %v3800_v12 = vmul.f32 %v5063_v58, %v3497_v43  ;;  %5074 = vrcp.f32 %v3714_v13  ;;  %v3507_v10 = vld [vmem:[#allocation2 + $0x560] sm:$0xff]  ;;  %v3858_v58 = vld [vmem:[%s7480_s5 + $0x158] sm:$0xff] }
 0x405   : > { %v4202_v18 = vadd.f32 %v4154_v56, %v4106_v59  ;;  %v4060_v3 = vadd.f32 %v7224_v26, %v4004_v15  ;;  %v3950_v17 = vadd.f32 %v3902_v32, %v3798_v55  ;;  %v5065_v62 = vpop.eup %5064  ;;  %v3903_v38 = vadd.f32 %v3855_v28, %v3656_v14  ;;  %v4111_v52 = vld [vmem:[%s7481_s6 + $0x140] sm:$0xff]  ;;  %v3509_v15 = vld [vmem:[#allocation2 + $0x570] sm:$0xff]  ;;  %v3526_v32 = vld [vmem:[#allocation2 + $0x5f8] sm:$0xff] }
 0x406   : > { %v4155_v1 = vmax.f32 %v4059_v63, 0.0  ;;  %v4005_v50 = vmul.f32 %v7212_v16, %v3949_v21  ;;  %v3658_v11 = vmul.f32 %v5065_v62, %v3499_v24  ;;  %5076 = vrcp.f32 %v3571_v48  ;;  %v5067_v46 = vpop.eup %5066 }
 0x407   : > { %4250 = vst [vmem:[%s7484_s9 + $0x118] sm:$0xff] %v4202_v18  ;;  %v4156_v51 = vmax.f32 %v4060_v3, 0.0  ;;  %v4006_v27 = vmul.f32 %v7212_v16, %v3950_v17  ;;  %v3951_v34 = vadd.f32 %v3903_v38, %v3800_v12  ;;  %v3715_v2 = vadd.f32 1e-06, %v3514_v42  ;;  %v4112_v12 = vld [vmem:[%s7481_s6 + $0x148] sm:$0xff] }
 0x408   : > { %v4203_v0 = vadd.f32 %v4155_v1, %v4107_v31  ;;  %v4061_v49 = vadd.f32 %v7224_v26, %v4005_v50  ;;  %v3802_v39 = vmul.f32 %v5067_v46, %v3501_v29  ;;  %v3904_v23 = vadd.f32 %v3856_v53, %v3658_v11  ;;  %v5069_v4 = vpop.eup %5068  ;;  %v3511_v31 = vld [vmem:[#allocation2 + $0x580] sm:$0xff]  ;;  %v3513_v53 = vld [vmem:[#allocation2 + $0x590] sm:$0xff] }
 0x409   : > { %v4204_v41 = vadd.f32 %v4156_v51, %v4108_v61  ;;  %v4062_v13 = vadd.f32 %v7224_v26, %v4006_v27  ;;  %v4007_v25 = vmul.f32 %v7212_v16, %v3951_v34  ;;  %5078 = vrcp.f32 %v3715_v2  ;;  %v3859_v29 = vld [vmem:[%s7480_s5 + $0x160] sm:$0xff] }
 0x40a   : > { %4251 = vst [vmem:[%s7484_s9 + $0x120] sm:$0xff] %v4203_v0  ;;  %v4157_v36 = vmax.f32 %v4061_v49, 0.0  ;;  %v3572_v40 = vadd.f32 1e-06, %v3516_v47  ;;  %v3952_v30 = vadd.f32 %v3904_v23, %v3802_v39  ;;  %v3660_v20 = vmul.f32 %v5069_v4, %v3503_v35  ;;  %v5071_v57 = vpop.eup %5070  ;;  %v4113_v0 = vld [vmem:[%s7481_s6 + $0x150] sm:$0xff]  ;;  %v3515_v34 = vld [vmem:[#allocation2 + $0x5a0] sm:$0xff] }
 0x40b   : > { %4252 = vst [vmem:[%s7484_s9 + $0x128] sm:$0xff] %v4204_v41  ;;  %v4158_v19 = vmax.f32 %v4062_v13, 0.0  ;;  %v3716_v33 = vadd.f32 1e-06, %v3518_v37  ;;  %v4063_v8 = vadd.f32 %v7224_v26, %v4007_v25  ;;  %v3573_v59 = vadd.f32 1e-06, %v3520_v22 }
 0x40c   : > { %v4205_v44 = vadd.f32 %v4157_v36, %v4109_v54  ;;  %5080 = vrcp.f32 %v3572_v40  ;;  %v4008_v55 = vmul.f32 %v7212_v16, %v3952_v30  ;;  %v3804_v43 = vmul.f32 %v5071_v57, %v3505_v5  ;;  %v5073_v14 = vpop.eup %5072  ;;  %v3517_v54 = vld [vmem:[#allocation2 + $0x5b0] sm:$0xff]  ;;  %v3860_v13 = vld [vmem:[%s7480_s5 + $0x168] sm:$0xff]  ;;  %v3519_v36 = vld [vmem:[#allocation2 + $0x5c0] sm:$0xff] }
 0x40d   : > { %v4206_v60 = vadd.f32 %v4158_v19, %v4110_v45  ;;  %v3905_v56 = vadd.f32 %v3857_v7, %v3660_v20  ;;  %v4159_v28 = vmax.f32 %v4063_v8, 0.0  ;;  %5082 = vrcp.f32 %v3716_v33  ;;  %v4114_v25 = vld [vmem:[%s7481_s6 + $0x158] sm:$0xff]  ;;  %v3521_v5 = vld [vmem:[#allocation2 + $0x5d0] sm:$0xff]  ;;  %v3523_v57 = vld [vmem:[#allocation2 + $0x5e0] sm:$0xff] }
 0x40e   : > { %4253 = vst [vmem:[%s7484_s9 + $0x130] sm:$0xff] %v4205_v44  ;;  %v3717_v63 = vadd.f32 1e-06, %v3522_v9  ;;  %v3574_v21 = vadd.f32 1e-06, %v3524_v6  ;;  %v4064_v24 = vadd.f32 %v7224_v26, %v4008_v55  ;;  %v3662_v18 = vmul.f32 %v5073_v14, %v3507_v10  ;;  %v5075_v3 = vpop.eup %5074  ;;  %v3861_v33 = vld [vmem:[%s7480_s5 + $0x170] sm:$0xff] }
 0x40f   : > { %4254 = vst [vmem:[%s7484_s9 + $0x138] sm:$0xff] %v4206_v60  ;;  %v3953_v48 = vadd.f32 %v3905_v56, %v3804_v43  ;;  %5084 = vrcp.f32 %v3573_v59  ;;  %v4207_v17 = vadd.f32 %v4159_v28, %v4111_v52  ;;  %v3718_v42 = vadd.f32 1e-06, %v3526_v32  ;;  %v3525_v60 = vld [vmem:[#allocation2 + $0x5f0] sm:$0xff]  ;;  %v4115_v55 = vld [vmem:[%s7481_s6 + $0x160] sm:$0xff]  ;;  %v3862_v56 = vld [vmem:[%s7480_s5 + $0x178] sm:$0xff] }
 0x410   : > { %5086 = vrcp.f32 %v3717_v63  ;;  %v5077_v62 = vpop.eup %5076  ;;  %v4160_v1 = vmax.f32 %v4064_v24, 0.0  ;;  %v3806_v50 = vmul.f32 %v5075_v3, %v3509_v15  ;;  %v3906_v38 = vadd.f32 %v3858_v58, %v3662_v18  ;;  %v4116_v18 = vld [vmem:[%s7481_s6 + $0x168] sm:$0xff] }
 0x411   : > { %v4009_v61 = vmul.f32 %v7212_v16, %v3953_v48  ;;  %4255 = vst [vmem:[%s7484_s9 + $0x140] sm:$0xff] %v4207_v17  ;;  %v3664_v51 = vmul.f32 %v5077_v62, %v3511_v31  ;;  %5088 = vrcp.f32 %v3574_v21  ;;  %v4117_v62 = vld [vmem:[%s7481_s6 + $0x170] sm:$0xff] }
 0x412   : > { %v4208_v27 = vadd.f32 %v4160_v1, %v4112_v12  ;;  %v3954_v47 = vadd.f32 %v3906_v38, %v3806_v50  ;;  %5090 = vrcp.f32 %v3718_v42 }
 0x413   : > { %v4065_v11 = vadd.f32 %v7224_v26, %v4009_v61  ;;  %v5079_v46 = vpop.eup %5078  ;;  %v3907_v49 = vadd.f32 %v3859_v29, %v3664_v51  ;;  %v4118_v29 = vld [vmem:[%s7481_s6 + $0x178] sm:$0xff] }
 0x414   : > { %4256 = vst [vmem:[%s7484_s9 + $0x148] sm:$0xff] %v4208_v27  ;;  %v4010_v2 = vmul.f32 %v7212_v16, %v3954_v47  ;;  %v3808_v37 = vmul.f32 %v5079_v46, %v3513_v53 }
 0x415   : > { %v4161_v35 = vmax.f32 %v4065_v11, 0.0 }
 0x416   : > { %v5081_v41 = vpop.eup %5080  ;;  %v4066_v23 = vadd.f32 %v7224_v26, %v4010_v2  ;;  %v3955_v22 = vadd.f32 %v3907_v49, %v3808_v37 }
 0x417   : > { %v4209_v39 = vadd.f32 %v4161_v35, %v4113_v0  ;;  %v3666_v4 = vmul.f32 %v5081_v41, %v3515_v34  ;;  %v5083_v45 = vpop.eup %5082 }
 0x418   : > { %v4162_v40 = vmax.f32 %v4066_v23, 0.0  ;;  %v4011_v19 = vmul.f32 %v7212_v16, %v3955_v22  ;;  %v3810_v30 = vmul.f32 %v5083_v45, %v3517_v54 }
 0x419   : > { %v5085_v7 = vpop.eup %5084  ;;  %4257 = vst [vmem:[%s7484_s9 + $0x150] sm:$0xff] %v4209_v39  ;;  %v3908_v20 = vadd.f32 %v3860_v13, %v3666_v4 }
 0x41a   : > { %v5087_v9 = vpop.eup %5086  ;;  %v3668_v6 = vmul.f32 %v5085_v7, %v3519_v36  ;;  %v4210_v44 = vadd.f32 %v4162_v40, %v4114_v25  ;;  %v4067_v8 = vadd.f32 %v7224_v26, %v4011_v19 }
 0x41b   : > { %v3956_v10 = vadd.f32 %v3908_v20, %v3810_v30  ;;  %v3812_v59 = vmul.f32 %v5087_v9, %v3521_v5  ;;  %v5089_v52 = vpop.eup %5088 }
 0x41c   : > { %v3909_v43 = vadd.f32 %v3861_v33, %v3668_v6  ;;  %v5091_v15 = vpop.eup %5090  ;;  %4258 = vst [vmem:[%s7484_s9 + $0x158] sm:$0xff] %v4210_v44  ;;  %v4163_v32 = vmax.f32 %v4067_v8, 0.0  ;;  %v3670_v28 = vmul.f32 %v5089_v52, %v3523_v57 }
 0x41d   : > { %v4012_v14 = vmul.f32 %v7212_v16, %v3956_v10  ;;  %v3814_v63 = vmul.f32 %v5091_v15, %v3525_v60 }
 0x41e   : > { %v3957_v58 = vadd.f32 %v3909_v43, %v3812_v59  ;;  %v4211_v21 = vadd.f32 %v4163_v32, %v4115_v55  ;;  %v3910_v48 = vadd.f32 %v3862_v56, %v3670_v28 }
 0x41f   : > { %v4068_v24 = vadd.f32 %v7224_v26, %v4012_v14 }
 0x420   : > { %v4013_v31 = vmul.f32 %v7212_v16, %v3957_v58  ;;  %4259 = vst [vmem:[%s7484_s9 + $0x160] sm:$0xff] %v4211_v21  ;;  %v3958_v17 = vadd.f32 %v3910_v48, %v3814_v63 }
 0x421   : > { %v4164_v3 = vmax.f32 %v4068_v24, 0.0 }
 0x422   : > { %v4069_v12 = vadd.f32 %v7224_v26, %v4013_v31  ;;  %v4014_v1 = vmul.f32 %v7212_v16, %v3958_v17 }
 0x423   : > { %v4212_v42 = vadd.f32 %v4164_v3, %v4116_v18 }
 0x424   : > { %v4165_v61 = vmax.f32 %v4069_v12, 0.0  ;;  %v4070_v50 = vadd.f32 %v7224_v26, %v4014_v1 }
 0x425   : > { %4260 = vst [vmem:[%s7484_s9 + $0x168] sm:$0xff] %v4212_v42 }
 0x426   : > { %v4213_v38 = vadd.f32 %v4165_v61, %v4117_v62  ;;  %v4166_v53 = vmax.f32 %v4070_v50, 0.0 }
 0x428   : > { %4261 = vst [vmem:[%s7484_s9 + $0x170] sm:$0xff] %v4213_v38  ;;  %v4214_v51 = vadd.f32 %v4166_v53, %v4118_v29 }
 0x42a   : > { %4262 = vst [vmem:[%s7484_s9 + $0x178] sm:$0xff] %v4214_v51 }
 0x42b PF: > { %s21_s13 = sadd.s32 1, %s5100_s13  }
 0x42c   : > { %p18_p7 = scmp.ge.s32.totalorder %s21_s13, 5  }
 0x42e   :  { %20 = sbr.rel (!%p18_p7) target bundleno = 1 (0x1), region = 118 }

</bundles_post_ra>
